<compile_context>
chip_gen: v7x
topology: tpu7x:2x2x1
jax: 0.10.0
libtpu: 0.0.40
codegen_flags: <defaults>
</compile_context>

<pallas_src>
import jax
import jax.numpy as jnp
from jax.experimental import pallas as pl
from jax.experimental.pallas import tpu as pltpu


def _round_up(a, b):
    return (a + b - 1) // b * b


def _vmem_limit_bytes():
    # ~75% of physical VMEM (48 MiB on v7x, 96 MiB cap on v5e/v6e).
    cap = 128 * 1024 * 1024
    try:
        info = pltpu.get_tpu_info()
        cap = getattr(info, "vmem_capacity_bytes", cap) or cap
    except Exception:
        pass
    return min(int(cap * 3 // 4), 96 * 1024 * 1024)


def _conv3x3_bias_relu_kernel(x_ref, w_ref, b_ref, o_ref):
    # x_ref: (TH+2, Wp, Cin)  zero-padded halo slab, f32.
    # w_ref: (3, 3*Cin, TC)   bf16 weights, rows ordered (kw, ci) per kh.
    # b_ref: (1, TC)          f32 bias tile.
    # o_ref: (TH, Wp, TC)     output tile (Wp/TC aligned -> unmasked stores).
    TH, Wp, TC = o_ref.shape
    Cin = x_ref.shape[2]
    R = (TH + 2) * Wp              # padded rows * padded width in this slab
    M = TH * Wp                    # output rows * padded width

    # Flatten the slab (view: Wp % 8 == 0) so the kw shift is a sublane roll.
    xf = x_ref[...].reshape(R, Cin)                       # f32
    # shifted[kw][r] == xf[r + kw]; wrap-around only lands in discarded
    # padded columns because Wp >= W + 2 (asserted in the wrapper).
    shifted = [xf] + [pltpu.roll(xf, R - kw, axis=0) for kw in (1, 2)]

    # Hoisted cast + concat: one (R, 3*Cin) bf16 im2col slab for all kh taps.
    big = jnp.concatenate([s.astype(jnp.bfloat16) for s in shifted], axis=-1)

    acc = jnp.zeros((M, TC), jnp.float32)
    for kh in range(3):
        lo = kh * Wp                                      # Wp % 16 == 0 -> aligned bf16 slice
        acc = acc + jnp.dot(big[lo:lo + M, :], w_ref[kh],
                            preferred_element_type=jnp.float32)

    out = jnp.maximum(acc + b_ref[...], 0.0)              # f32 bias + ReLU epilogue
    o_ref[...] = out.reshape(TH, Wp, TC).astype(o_ref.dtype)


def feature_reducer_nhwc(x_nhwc, weight_oihw, bias, *, tile_h=16):
    """Conv2d(k=3, s=1, p=1) + bias + ReLU on NHWC activations.

    x_nhwc     : (N, H, W, Cin)    float32
    weight_oihw: (Cout, Cin, 3, 3) float32 (PyTorch OIHW convention)
    bias       : (Cout,)           float32
    returns      (N, H, W, Cout)   float32
    """
    N, H, W, Cin = x_nhwc.shape
    Cout = weight_oihw.shape[0]
    assert weight_oihw.shape == (Cout, Cin, 3, 3)

    TH = max(1, min(tile_h, H))
    Hp = _round_up(H, TH)              # pad H up (no largest-divisor TH=1 cliff)
    nH = Hp // TH
    Wp = _round_up(W + 2, 16)          # left halo + right pad, bf16-sublane aligned
    assert Wp >= W + 2, "right padding must cover the conv halo (roll wrap safety)"

    # Cout tile: 256 fills the v6e/v7x MXU N dim and halves resident weights
    # at Cout=512; otherwise keep the full (lane-aligned) Cout.
    TC = 256 if (Cout % 256 == 0 and Cout > 256) else Cout
    nC = Cout // TC

    # One fused zero-pad: +1 halo row on top, (Hp-H+1) rows on the bottom,
    # +1 halo col left, right-pad up to Wp.
    x_pad = jnp.pad(x_nhwc, ((0, 0), (1, Hp - H + 1), (1, Wp - W - 1), (0, 0)))
    # Overlapping halo slabs: (N, nH, TH+2, Wp, Cin).  Keeps the kernel's input
    # block small (fits v7x VMEM at Cin=1024) with standard BlockSpec pipelining.
    x_slabs = jnp.stack([x_pad[:, i * TH:i * TH + TH + 2] for i in range(nH)],
                        axis=1)

    # Repack weights once: OIHW -> (kh, kw*Cin + ci, co), cast to bf16 for the MXU.
    w_packed = jnp.transpose(weight_oihw, (2, 3, 1, 0)).reshape(3, 3 * Cin, Cout)
    w_packed = w_packed.astype(jnp.bfloat16)
    b2 = bias.reshape(1, Cout).astype(jnp.float32)

    out_padded = pl.pallas_call(
        _conv3x3_bias_relu_kernel,
        out_shape=jax.ShapeDtypeStruct((N, Hp, Wp, Cout), x_nhwc.dtype),
        grid_spec=pltpu.PrefetchScalarGridSpec(
            num_scalar_prefetch=0,
            grid=(N, nH, nC),
            in_specs=[
                # Halo slab for (n, i); constant across the Cout axis.
                pl.BlockSpec((None, None, TH + 2, Wp, Cin),
                             lambda n, i, c: (n, i, 0, 0, 0)),
                # Weight / bias Cout tiles (constant across n, i -> fetched once
                # per tile).  TODO(synk): pl.Buffered(1) here once validated.
                pl.BlockSpec((3, 3 * Cin, TC), lambda n, i, c: (0, 0, c)),
                pl.BlockSpec((1, TC), lambda n, i, c: (0, c)),
            ],
            out_specs=pl.BlockSpec((None, TH, Wp, TC),
                                   lambda n, i, c: (n, i, 0, c)),
        ),
        compiler_params=pltpu.CompilerParams(
            dimension_semantics=("parallel", "parallel", "parallel"),
            vmem_limit_bytes=_vmem_limit_bytes(),
        ),
    )(x_slabs, w_packed, b2)

    # Drop the H/W alignment padding (cheap XLA slice, keeps kernel stores aligned).
    return out_padded[:, :H, :W, :]


def feature_reducer(x_nchw, weight_oihw, bias, *, tile_h=16):
    """NCHW-convention wrapper matching the PyTorch module's interface.

    TODO(synk): if the surrounding model can stay in NHWC end-to-end, call
    feature_reducer_nhwc directly and skip these two transposes (each is a full
    HBM pass over the activation).
    """
    x = jnp.transpose(x_nchw, (0, 2, 3, 1))                     # NCHW -> NHWC
    y = feature_reducer_nhwc(x, weight_oihw, bias, tile_h=tile_h)
    return jnp.transpose(y, (0, 3, 1, 2))                       # NHWC -> NCHW


def _reference(x_nchw, weight, bias):
    # Pure-JAX reference with the same numerics as the kernel
    # (bf16 operands, f32 accumulation, f32 bias + ReLU).
    y = jax.lax.conv_general_dilated(
        x_nchw.astype(jnp.bfloat16), weight.astype(jnp.bfloat16),
        window_strides=(1, 1),
        padding=((1, 1), (1, 1)),
        dimension_numbers=("NCHW", "OIHW", "NCHW"),
        preferred_element_type=jnp.float32,
    )
    y = y + bias[None, :, None, None]
    return jnp.maximum(y, 0.0).astype(x_nchw.dtype)


if __name__ == "__main__":
    # SceneGraphHeadVGG.__init__ :
    #   conv_dim = cfg.MODEL.ROI_MASK_HEAD.CONV_DIM
    #   feature_reducer = Conv2d(2*conv_dim, conv_dim, k=3, s=1, p=1,
    #                            bias=not conv_norm (default True), ReLU)
    conv_dim = 128
    Cin, Cout = 2 * conv_dim, conv_dim
    N, H, W = 2, 16, 16

    key = jax.random.PRNGKey(0)
    kx, kw, kb = jax.random.split(key, 3)
    x = jax.random.normal(kx, (N, Cin, H, W), dtype=jnp.float32)
    weight = jax.random.normal(kw, (Cout, Cin, 3, 3), dtype=jnp.float32) * 0.02
    bias = jax.random.normal(kb, (Cout,), dtype=jnp.float32) * 0.1

    out = jax.block_until_ready(feature_reducer(x, weight, bias))
    ref = jax.block_until_ready(_reference(x, weight, bias))

    assert out.shape == (N, Cout, H, W)
    max_diff = float(jnp.max(jnp.abs(out - ref)))
    assert jnp.allclose(out, ref, atol=1e-2, rtol=1e-2), (
        "mismatch vs reference, max abs diff = %f" % max_diff)

    print("KERNEL_OK")
</pallas_src>

<mosaic_0001>
module attributes {stable_mosaic.version = 11 : i64} {
  func.func @_conv3x3_bias_relu_kernel(%arg0: i32, %arg1: i32, %arg2: i32, %arg3: memref<1x1x18x32x256xf32, #tpu.memory_space<vmem>>, %arg4: memref<3x768x128xbf16, #tpu.memory_space<vmem>>, %arg5: memref<1x128xf32, #tpu.memory_space<vmem>>, %arg6: memref<1x16x32x128xf32, #tpu.memory_space<vmem>>) attributes {dimension_semantics = [#tpu.dimension_semantics<parallel>, #tpu.dimension_semantics<parallel>, #tpu.dimension_semantics<parallel>], iteration_bounds = array<i64: 2, 1, 1>, scalar_prefetch = 0 : i64, scratch_operands = 0 : i64, tpu.core_type = #tpu.core_type<tc>, window_params = [{transform_indices = @transform_0, window_bounds = array<i64: 1, 1, 18, 32, 256>}, {transform_indices = @transform_1, window_bounds = array<i64: 3, 768, 128>}, {transform_indices = @transform_2, window_bounds = array<i64: 1, 128>}, {transform_indices = @transform_3, window_bounds = array<i64: 1, 16, 32, 128>}]} {
    %c0 = arith.constant 0 : index
    %c0_0 = arith.constant 0 : index
    %c0_1 = arith.constant 0 : index
    %c0_2 = arith.constant 0 : index
    %c0_3 = arith.constant 0 : index
    %0 = vector.load %arg3[%c0, %c0_0, %c0_1, %c0_2, %c0_3] : memref<1x1x18x32x256xf32, #tpu.memory_space<vmem>>, vector<1x1x18x32x256xf32>
    %1 = vector.shape_cast %0 : vector<1x1x18x32x256xf32> to vector<18x32x256xf32>
    %2 = vector.shape_cast %1 : vector<18x32x256xf32> to vector<576x256xf32>
    %c575_i32 = arith.constant 575 : i32
    %3 = tpu.dynamic_rotate %2 by %c575_i32 dim 0 : vector<576x256xf32>, i32 -> vector<576x256xf32>
    %c574_i32 = arith.constant 574 : i32
    %4 = tpu.dynamic_rotate %2 by %c574_i32 dim 0 : vector<576x256xf32>, i32 -> vector<576x256xf32>
    %5 = arith.truncf %2 : vector<576x256xf32> to vector<576x256xbf16>
    %6 = arith.truncf %3 : vector<576x256xf32> to vector<576x256xbf16>
    %7 = arith.truncf %4 : vector<576x256xf32> to vector<576x256xbf16>
    %8 = tpu.concatenate %5, %6, %7 in 1 : vector<576x256xbf16>, vector<576x256xbf16>, vector<576x256xbf16> -> vector<576x768xbf16>
    %cst = arith.constant 0.000000e+00 : f32
    %9 = vector.broadcast %cst : f32 to vector<512x128xf32>
    %10 = vector.extract_strided_slice %8 {offsets = [0, 0], sizes = [512, 768], strides = [1, 1]} : vector<576x768xbf16> to vector<512x768xbf16>
    %c0_4 = arith.constant 0 : index
    %c0_5 = arith.constant 0 : index
    %c0_6 = arith.constant 0 : index
    %11 = vector.load %arg4[%c0_4, %c0_5, %c0_6] : memref<3x768x128xbf16, #tpu.memory_space<vmem>>, vector<1x768x128xbf16>
    %12 = vector.shape_cast %11 : vector<1x768x128xbf16> to vector<768x128xbf16>
    %cst_7 = arith.constant dense<0.000000e+00> : vector<512x128xf32>
    %13 = tpu.matmul %10, %12, %cst_7 {dimension_numbers = #tpu.dot_dimension_numbers<[1], [0], [0], [1], [0, 0, 1, 1], [], []>} : vector<512x768xbf16>, vector<768x128xbf16>, vector<512x128xf32> -> vector<512x128xf32>
    %14 = arith.addf %9, %13 : vector<512x128xf32>
    %15 = vector.extract_strided_slice %8 {offsets = [32, 0], sizes = [512, 768], strides = [1, 1]} : vector<576x768xbf16> to vector<512x768xbf16>
    %c1 = arith.constant 1 : index
    %c0_8 = arith.constant 0 : index
    %c0_9 = arith.constant 0 : index
    %16 = vector.load %arg4[%c1, %c0_8, %c0_9] : memref<3x768x128xbf16, #tpu.memory_space<vmem>>, vector<1x768x128xbf16>
    %17 = vector.shape_cast %16 : vector<1x768x128xbf16> to vector<768x128xbf16>
    %cst_10 = arith.constant dense<0.000000e+00> : vector<512x128xf32>
    %18 = tpu.matmul %15, %17, %cst_10 {dimension_numbers = #tpu.dot_dimension_numbers<[1], [0], [0], [1], [0, 0, 1, 1], [], []>} : vector<512x768xbf16>, vector<768x128xbf16>, vector<512x128xf32> -> vector<512x128xf32>
    %19 = arith.addf %14, %18 : vector<512x128xf32>
    %20 = vector.extract_strided_slice %8 {offsets = [64, 0], sizes = [512, 768], strides = [1, 1]} : vector<576x768xbf16> to vector<512x768xbf16>
    %c2 = arith.constant 2 : index
    %c0_11 = arith.constant 0 : index
    %c0_12 = arith.constant 0 : index
    %21 = vector.load %arg4[%c2, %c0_11, %c0_12] : memref<3x768x128xbf16, #tpu.memory_space<vmem>>, vector<1x768x128xbf16>
    %22 = vector.shape_cast %21 : vector<1x768x128xbf16> to vector<768x128xbf16>
    %cst_13 = arith.constant dense<0.000000e+00> : vector<512x128xf32>
    %23 = tpu.matmul %20, %22, %cst_13 {dimension_numbers = #tpu.dot_dimension_numbers<[1], [0], [0], [1], [0, 0, 1, 1], [], []>} : vector<512x768xbf16>, vector<768x128xbf16>, vector<512x128xf32> -> vector<512x128xf32>
    %24 = arith.addf %19, %23 : vector<512x128xf32>
    %c0_14 = arith.constant 0 : index
    %c0_15 = arith.constant 0 : index
    %25 = vector.load %arg5[%c0_14, %c0_15] : memref<1x128xf32, #tpu.memory_space<vmem>>, vector<1x128xf32>
    %26 = vector.broadcast %25 : vector<1x128xf32> to vector<512x128xf32>
    %27 = arith.addf %24, %26 : vector<512x128xf32>
    %cst_16 = arith.constant 0.000000e+00 : f32
    %28 = vector.broadcast %cst_16 : f32 to vector<512x128xf32>
    %29 = arith.maximumf %27, %28 : vector<512x128xf32>
    %30 = vector.shape_cast %29 : vector<512x128xf32> to vector<16x32x128xf32>
    %c0_17 = arith.constant 0 : index
    %c0_18 = arith.constant 0 : index
    %c0_19 = arith.constant 0 : index
    %c0_20 = arith.constant 0 : index
    %31 = vector.load %arg6[%c0_17, %c0_18, %c0_19, %c0_20] : memref<1x16x32x128xf32, #tpu.memory_space<vmem>>, vector<1x16x32x128xf32>
    %32 = vector.shape_cast %31 : vector<1x16x32x128xf32> to vector<16x32x128xf32>
    %33 = vector.shape_cast %30 : vector<16x32x128xf32> to vector<1x16x32x128xf32>
    tpu.vector_store %arg6[%c0_17, %c0_18, %c0_19, %c0_20], %33 {strides = array<i32>} : memref<1x16x32x128xf32, #tpu.memory_space<vmem>>, vector<1x16x32x128xf32>,
    return
  }
  func.func @transform_0(%arg0: i32, %arg1: i32, %arg2: i32) -> (i32, i32, i32, i32, i32) {
    %c0_i32 = arith.constant 0 : i32
    %c0_i32_0 = arith.constant 0 : i32
    %c0_i32_1 = arith.constant 0 : i32
    %c0_i32_2 = arith.constant 0 : i32
    return %arg0, %arg1, %c0_i32, %c0_i32_0, %c0_i32_1 : i32, i32, i32, i32, i32
  }
  func.func @transform_1(%arg0: i32, %arg1: i32, %arg2: i32) -> (i32, i32, i32) {
    %c0_i32 = arith.constant 0 : i32
    %c0_i32_0 = arith.constant 0 : i32
    %c0_i32_1 = arith.constant 0 : i32
    return %c0_i32, %c0_i32_0, %arg2 : i32, i32, i32
  }
  func.func @transform_2(%arg0: i32, %arg1: i32, %arg2: i32) -> (i32, i32) {
    %c0_i32 = arith.constant 0 : i32
    %c0_i32_0 = arith.constant 0 : i32
    return %c0_i32, %arg2 : i32, i32
  }
  func.func @transform_3(%arg0: i32, %arg1: i32, %arg2: i32) -> (i32, i32, i32, i32) {
    %c0_i32 = arith.constant 0 : i32
    %c0_i32_0 = arith.constant 0 : i32
    return %arg0, %arg1, %c0_i32, %arg2 : i32, i32, i32, i32
  }
}

</mosaic_0001>

<bundles_post_ra>
// kernel: tpu_custom_call.1
= control target key start
LH: loop header
LB: loop body
LE: loop exit
PB: predicated region body
PF: predicated region fallthrough
CT: control target
= control target key end

     0   :  { %8 = vsyncpa [#allocation3], 0  ;;  %s10353_s0 = inlined_call_operand.hbm [shape: f32[2,1,18,32,256], index: 0, kind: input, shape index: {}]   ;;  %s10354_s1 = inlined_call_operand.hbm [shape: bf16[3,768,128], index: 1, kind: input, shape index: {}]   ;;  %s10355_s2 = inlined_call_operand.hbm [shape: f32[1,128], index: 2, kind: input, shape index: {}]   ;;  %s10356_s3 = inlined_call_operand.hbm [shape: f32[2,16,32,128], index: 3, kind: output, shape index: {}]  }
   0x1   :  { %10 = vsyncpa [#allocation3 + $0x1], 0 }
   0x2   :  { %11 = vsyncpa [#allocation6], 0 }
   0x3   :  { %12 = vsyncpa [#allocation4], 0 }
   0x4   :  { %14 = vsyncpa [#allocation4 + $0x1], 0  ;;  %s6055_s12 = smov 0   ;;  %s6057_s13 = smov 0  }
   0x5   :  { %s6059_s14 = smov 0   ;;  %s6061_s15 = smov 0  }
   0x6   :  { %s6063_s16 = smov 0   ;;  %s6065_s17 = smov 0  }
   0x7 LB: > { %s5349_s18 = sadd.s32 4294967295, %s6022_s17   ;;  %s5350_s19 = sadd.s32 4294967294, %s6022_s17   ;;  %s6022_s17 = sphi %s6065_s17, %s20_s17   ;;  %s6018_s16 = sphi %s6063_s16, %s12094_s16   ;;  %s6014_s15 = sphi %s6061_s15, %s12093_s15   ;;  %s6010_s14 = sphi %s6059_s14, %s12092_s14   ;;  %s6006_s13 = sphi %s6057_s13, %s12091_s13   ;;  %s6002_s12 = sphi %s6055_s12, %s12090_s12  }
   0x8   : > { %p61_p0 = scmp.ne.s32.totalorder %s6006_s13, %s6002_s12  ;;  %p6089_p1 = scmp.eq.s32.totalorder %s5349_s18, 0 }
   0x9   : > { %p6093_p2 = scmp.eq.s32.totalorder %s5349_s18, 1  ;;  %p147_p3 = scmp.eq.s32.totalorder %s5350_s19, 1 }
   0xa   : > { %s10757_s20 = scalar_select %p6089_p1, 1, 0 }
   0xb   : > { %p6099_p4 = por %p6089_p1, %p61_p0  ;;  %p5351_p5 = scmp.ge.s32.totalorder %s6022_s17, 1 }
   0xc   : > { %p6104_p6 = por %p147_p3, %p61_p0  ;;  %p154_p7 = scmp.lt.s32.totalorder %s6022_s17, 3 }
   0xd   : > { %s10759_s22 = scalar_select %p6099_p4, 1, 0 }
   0xe   : > { %s10760_s23 = scalar_select %p6104_p6, 1, 0 }
   0xf   : > { %p6109_p8 = pnand %p5351_p5, %p154_p7  ;;  %s6024_s25 = smov [#allocation5]  }
  0x10   : > { %s168_s26 = sshll.u32 %s6024_s25, 4  ;;  %s6025_s28 = smov [#allocation7]   ;;  %s6113_s26 = int_to_ptr.vmem [resolvable:$true] %s168_s26 }
  0x11   : > { %p5558_p9 = pneg %p6109_p8  ;;  %s184_s29 = sshll.u32 %s6025_s28, 4  ;;  %s6124_s29 = int_to_ptr.vmem [resolvable:$true] %s184_s29 }
  0x12   : > { %s5850_s5 = scalar_lea.hbm %s10354_s1, 18432 }
  0x13   : > { %p6120_p11 = pnand %p5558_p9, %p6089_p1  ;;  %p5851_p12 = scmp.ne.s32.totalorder %s10354_s1, %s5850_s5 }
  0x14   : > { %p5857_p5 = scmp.lt.u32.totalorder %s5850_s5, %s10354_s1 }
  0x15   : > { %p5852_p13 = pneg %p6120_p11 }
  0x17   : > { %p5853_p0 = pnand %p5852_p13, %p5851_p12 }
  0x19   : > { %p5854_p3 = pneg %p5853_p0 }
  0x1b   : > { %p5859_p7 = pnand %p5857_p5, %p5854_p3 }
  0x1d   : > { %5862 = shalt.err (!%p5859_p7)
}
  0x1e   : > { %s5863_s10 = scalar_lea.vmem %s6113_s26, 18432  ;;  %p5871_p1 = scmp.lt.s32.totalorder %s6113_s26, %s6113_s26 }
  0x1f   : > { %p5864_p9 = scmp.ne.s32.totalorder %s6113_s26, %s5863_s10  ;;  %p5872_p12 = scmp.lt.s32.totalorder %s5863_s10, %s5863_s10 }
  0x21   : > { %p5866_p10 = pnand %p5864_p9, %p5852_p13  ;;  %p5873_p0 = por %p5872_p12, %p5871_p1 }
  0x23   : > { %p5867_p6 = pneg %p5866_p10 }
  0x25   : > { %p5874_p4 = pnand %p5873_p0, %p5867_p6 }
  0x27   : > { %5877 = shalt.err (!%p5874_p4)
}
  0x28   : > { %s6026_s11 = smov 64   ;;  %s6027_s18 = smov 4  }
  0x29   : > { %5561 = dma.hbm_to_vmem [thread:$0]  (!%p6120_p11), %s10354_s1, 18432, %s6113_s26, [#allocation6], %s6026_s11, %s6026_s11, %s6027_s18  }
  0x2a   : > { %s5878_s4 = scalar_lea.hbm %s10355_s2, 16 }
  0x2b   : > { %p5879_p1 = scmp.ne.s32.totalorder %s10355_s2, %s5878_s4  ;;  %p5885_p10 = scmp.lt.u32.totalorder %s5878_s4, %s10355_s2 }
  0x2d   : > { %p5881_p4 = pnand %p5879_p1, %p5852_p13 }
  0x2f   : > { %p5882_p6 = pneg %p5881_p4 }
  0x31   : > { %p5887_p3 = pnand %p5885_p10, %p5882_p6 }
  0x33   : > { %5890 = shalt.err (!%p5887_p3)
}
  0x34   : > { %s5891_s26 = scalar_lea.vmem %s6124_s29, 16  ;;  %s5898_s9 = scalar_lea.vmem %s6124_s29, 32 }
  0x35   : > { %p5892_p5 = scmp.ne.s32.totalorder %s6124_s29, %s5891_s26  ;;  %p5899_p12 = scmp.lt.s32.totalorder %s6124_s29, %s6124_s29 }
  0x36   : > { %p5900_p0 = scmp.lt.s32.totalorder %s5898_s9, %s5891_s26 }
  0x37   : > { %p5894_p7 = pnand %p5892_p5, %p5852_p13 }
  0x38   : > { %p5901_p1 = por %p5900_p0, %p5899_p12 }
  0x39   : > { %p5895_p9 = pneg %p5894_p7 }
  0x3b   : > { %p5902_p4 = pnand %p5901_p1, %p5895_p9 }
  0x3d   : > { %5905 = shalt.err (!%p5902_p4)
}
  0x3e   : > { %5564 = dma.hbm_to_vmem [thread:$0]  (!%p6120_p11), %s10355_s2, 16, %s6124_s29, [#allocation6]  }
  0x3f   : > { %s39_s18 = sadd.s32 1, %s6018_s16  ;;  %s48_s19 = sadd.s32 1, %s6010_s14 }
  0x40   : > { %p41_p13 = scmp.ge.s32.totalorder %s39_s18, 2  ;;  %p55_p6 = scmp.ne.s32.totalorder %s6010_s14, %s6006_s13 }
  0x41   : > { %p56_p10 = scmp.eq.s32.totalorder %s6022_s17, 0  ;;  %p5575_p3 = scmp.lt.s32.totalorder %s6022_s17, 2 }
  0x42   : > { %s12096_s18 = smov (%p41_p13, %s39_s18), 0  ;;  %p6189_p7 = por %p6093_p2, %p55_p6 }
  0x43   : > { %p57_p5 = por %p56_p10, %p55_p6  ;;  %s43_s25 = ssub.s32 %s6018_s16, %s12096_s18 }
  0x44   : > { %s10763_s27 = scalar_select %p6189_p7, 1, 0 }
  0x45   : > { %s195_s28 = sand.u32 1, %s6010_s14   ;;  %p46_p9 = scmp.eq.s32.totalorder %s43_s25, 0 }
  0x46   : > { %s5543_s29 = smul.u32 1152, %s195_s28  ;;  %p6196_p11 = pnand %p5575_p3, %p57_p5 }
  0x47   : > { %s6201_s4 = scalar_select %p46_p9, %s6010_s14, %s48_s19  }
  0x48   : > { %s5544_s5 = smul.u32 18432, %s6018_s16  ;;  %s199_s6 = scalar_lea.vmem [#allocation2], %s5543_s29 }
  0x49   : > { %s208_s7 = sshll.u32 %s199_s6, 4  ;;  %s6211_s9 = scalar_lea.sflag [#allocation3], %s195_s28  ;;  %s6209_s7 = int_to_ptr.vmem [resolvable:$true] %s208_s7 }
  0x4a   : > { %s6207_s26 = scalar_lea.hbm %s10353_s0, %s5544_s5  ;;  %p5908_p12 = pneg %p6196_p11 }
  0x4b   : > { %s5906_s10 = scalar_lea.hbm %s6207_s26, 18432  ;;  %s5911_s25 = scalar_lea.hbm %s10353_s0, 36864 }
  0x4c   : > { %p5907_p2 = scmp.ne.s32.totalorder %s6207_s26, %s5906_s10  ;;  %p5912_p4 = scmp.lt.u32.totalorder %s6207_s26, %s10353_s0 }
  0x4d   : > { %p5913_p13 = scmp.lt.u32.totalorder %s5911_s25, %s5906_s10  ;;  %p5915_p10 = scmp.lt.u32.totalorder %s5906_s10, %s6207_s26 }
  0x4e   : > { %p5909_p0 = pnand %p5908_p12, %p5907_p2 }
  0x4f   : > { %p5914_p6 = por %p5913_p13, %p5912_p4 }
  0x50   : > { %p5910_p1 = pneg %p5909_p0 }
  0x51   : > { %p5916_p3 = por %p5915_p10, %p5914_p6 }
  0x53   : > { %p5917_p5 = pnand %p5916_p3, %p5910_p1 }
  0x55   : > { %5920 = shalt.err (!%p5917_p5)
}
  0x56   : > { %s5921_s28 = scalar_lea.vmem %s6209_s7, 18432  ;;  %s6028_s6 = smov [#allocation2]  }
  0x57   : > { %p5922_p9 = scmp.ne.s32.totalorder %s6209_s7, %s5921_s28  ;;  %s5926_s21 = sshll.u32 %s6028_s6, 4  ;;  %s5927_s21 = int_to_ptr.vmem [resolvable:$false] %s5926_s21 }
  0x58   : > { %s5928_s8 = scalar_lea.vmem %s5927_s21, 36864  ;;  %p5929_p7 = scmp.lt.s32.totalorder %s6209_s7, %s5927_s21 }
  0x59   : > { %p5924_p2 = pnand %p5922_p9, %p5908_p12  ;;  %p5930_p4 = scmp.lt.s32.totalorder %s5928_s8, %s5921_s28 }
  0x5b   : > { %p5925_p0 = pneg %p5924_p2  ;;  %p5931_p13 = por %p5930_p4, %p5929_p7 }
  0x5d   : > { %p5932_p6 = pnand %p5931_p13, %p5925_p0 }
  0x5f   : > { %5935 = shalt.err (!%p5932_p6)
}
  0x60   : > { %s6029_s10 = smov 256   ;;  %s6030_s11 = smov 16  }
  0x61   : > { %5568 = dma.hbm_to_vmem [thread:$0]  (!%p6196_p11), %s6207_s26, 18432, %s6209_s7, %s6211_s9, %s6029_s10, %s6029_s10, %s6030_s11  }
  0x62   : > { %220 = sbr.rel (%p6109_p8) target bundleno = 1597 (0x63d), region = 32 }
  0x69   : > { %s6242_s19 = sand.u32 1, %s6006_s13   ;;  %p10765_p7 = scmp.ne.s32.totalorder %s10759_s22, 0 }
  0x6a   : > { %s5545_s25 = smul.u32 1152, %s6242_s19  ;;  %s223_s29 = scalar_lea.sflag [#allocation3], %s6242_s19 }
  0x6c   : > { %s6246_s5 = scalar_lea.vmem [#allocation2], %s5545_s25 }
  0x6d   : > { %5989 = dma.done.wait (%p10765_p7), %s223_s29, 18432  }
  0x6e   : > { %5991 = vsyncadd (%p10765_p7), %s223_s29, 4294948864  ;;  %p10766_p11 = scmp.ne.s32.totalorder %s10757_s20, 0 }
  0x70   : > { %5993 = dma.done.wait (%p10766_p11), [#allocation6], 18448  }
  0x71   : > { %5995 = vsyncadd (%p10766_p11), [#allocation6], 4294948848  ;;  %v10367_v0 = vmov 0   ;;  %v5636_v1 = vld [vmem:[#allocation5 + $0x180] sm:$0xff]   ;;  %v5637_v2 = vld [vmem:[#allocation5 + $0x188] sm:$0xff]   ;;  %v547_v33 = vlaneseq  ;;  %s5359_s20 = sshll.u32 %s6242_s19, 9 }
  0x72   : > { %1680 = vmatprep.subr.bf16.mxu0 %v10367_v0  ;;  %5511 = vmatprep.subr.bf16.mxu1 %v10367_v0  ;;  %v5638_v3 = vld [vmem:[#allocation5 + $0x190] sm:$0xff]   ;;  %v5639_v4 = vld [vmem:[#allocation5 + $0x198] sm:$0xff]   ;;  %v5640_v5 = vld [vmem:[#allocation5 + $0x1a0] sm:$0xff]   ;;  %s10002_s22 = scalar_lea.vmem [#allocation8], %s5359_s20  ;;  %s5510_s24 = sshll.u32 %s6014_s15, 13 }
  0x73   : > { %1681 = vmatpush1.bf16.msra.mxu0 %v5636_v1  ;;  %5527 = vmatpush1.bf16.msra.mxu1 %v5636_v1  ;;  %v6267_v6 = vld [vmem:[%s6246_s5 + $0x48] sm:$0xff]  ;;  %v6270_v7 = vld [vmem:[%s6246_s5 + $0x58] sm:$0xff]  ;;  %v5642_v13 = vld [vmem:[#allocation5 + $0x1b0] sm:$0xff]   ;;  %v6359_v53 = vshrl.u32 %v547_v33, 7  ;;  %s5235_s30 = sshll.u32 %s10002_s22, 4  ;;  %s10300_s9 = scalar_lea.hbm %s10356_s3, %s5510_s24  ;;  %s10302_s30 = int_to_ptr.vmem [resolvable:$true] %s5235_s30 }
  0x74   : > { %1682 = vmatprep.subr.bf16.mxu0 %v10367_v0  ;;  %5512 = vmatprep.subr.bf16.mxu1 %v10367_v0  ;;  %10767 = vst [vmem:[#allocation12_spill] sm:$0xff] %v6267_v6  ;;  %v6273_v8 = vld [vmem:[%s6246_s5 + $0x248] sm:$0xff]  ;;  %v334_v9 = vld [vmem:[%s6246_s5 + $0x258] sm:$0xff]  ;;  %v6278_v11 = vpack.c.bf16 %v6270_v7, %v6267_v6  ;;  %v5644_v15 = vld [vmem:[#allocation5 + $0x1c0] sm:$0xff]   ;;  %v10361_v34 = vrot.slane %v6267_v6, 1  ;;  %v414_v35 = vrot.slane %v6270_v7, 1 }
  0x75   : > { %10768 = vst [vmem:[#allocation13_spill] sm:$0xff] %v6273_v8  ;;  %v5641_v10 = vld [vmem:[#allocation5 + $0x1a8] sm:$0xff]   ;;  %v6283_v12 = vpack.c.bf16 %v334_v9, %v6273_v8  ;;  %v5643_v14 = vld [vmem:[#allocation5 + $0x1b8] sm:$0xff]   ;;  %v5646_v17 = vld [vmem:[#allocation5 + $0x1d0] sm:$0xff]   ;;  %v10363_v38 = vrot.slane %v6267_v6, 2  ;;  %v705_v39 = vrot.slane %v6270_v7, 2 }
  0x76   : > { %10769 = vst [vmem:[#allocation14_spill] sm:$0xff] %v6278_v11  ;;  %1712 = vmatprep.mubr.bf16.mxu0 %v6278_v11  ;;  %v5645_v16 = vld [vmem:[#allocation5 + $0x1c8] sm:$0xff]   ;;  %v5647_v18 = vld [vmem:[#allocation5 + $0x1d8] sm:$0xff]   ;;  %v5648_v19 = vld [vmem:[#allocation5 + $0x1e0] sm:$0xff]   ;;  %vm549_vm0 = vcmp.lt.s32.totalorder %v6359_v53, 7  ;;  %vm838_vm1 = vcmp.lt.s32.totalorder %v6359_v53, 6 }
  0x77   : > { %1683 = vmatpush1.bf16.msra.mxu0 %v5637_v2  ;;  %5528 = vmatpush1.bf16.msra.mxu1 %v5637_v2  ;;  %10770 = vst [vmem:[#allocation15_spill] sm:$0xff] %v6283_v12  ;;  %v5649_v20 = vld [vmem:[#allocation5 + $0x1e8] sm:$0xff]   ;;  %v5650_v21 = vld [vmem:[#allocation5 + $0x1f0] sm:$0xff]   ;;  %v5651_v22 = vld [vmem:[#allocation5 + $0x1f8] sm:$0xff]   ;;  %s5218_s28 = scalar_lea.sflag [#allocation4], %s6242_s19  ;;  %s5936_s6 = scalar_lea.vmem %s10302_s30, 8192 }
  0x78   : > { %1684 = vmatprep.subr.bf16.mxu0 %v10367_v0  ;;  %5513 = vmatprep.subr.bf16.mxu1 %v10367_v0  ;;  %v6306_v23 = vld [vmem:[%s6246_s5 + $0x40] sm:$0xff]  ;;  %v6309_v24 = vld [vmem:[%s6246_s5 + $0x50] sm:$0xff]  ;;  %v6318_v27 = vld [vmem:[%s6246_s5 + $0x68] sm:$0xff]  ;;  %10777 = vst [vmem:[#allocation22_spill] sm:$0xff] %v6359_v53  ;;  %p5937_p8 = scmp.ne.s32.totalorder %s10302_s30, %s5936_s6  ;;  %p12087_p12 = scmp.ne.s32.totalorder %s10763_s27, 0 }
  0x79   : > { %1840 = vmatprep.mubr.bf16.mxu1 %v6283_v12  ;;  %10771 = vst [vmem:[#allocation16_spill] sm:$0xff] %v6306_v23  ;;  %v6312_v25 = vld [vmem:[%s6246_s5 + $0x240] sm:$0xff]  ;;  %v333_v26 = vld [vmem:[%s6246_s5 + $0x250] sm:$0xff]  ;;  %v6321_v28 = vld [vmem:[%s6246_s5 + $0x78] sm:$0xff]  ;;  %v6327_v31 = vpack.c.bf16 %v6309_v24, %v6306_v23  ;;  %v10366_v48 = vrot.slane %v6309_v24, 1  ;;  %v10372_v54 = vrot.slane %v6309_v24, 2 }
  0x7a   : > { %10772 = vst [vmem:[#allocation17_spill] sm:$0xff] %v6312_v25  ;;  %v336_v29 = vld [vmem:[%s6246_s5 + $0x268] sm:$0xff]  ;;  %v338_v30 = vld [vmem:[%s6246_s5 + $0x278] sm:$0xff]  ;;  %v6330_v32 = vpack.c.bf16 %v333_v26, %v6312_v25  ;;  %v5652_v36 = vld [vmem:[#allocation5 + $0x200] sm:$0xff]   ;;  %v6340_v40 = vpack.c.bf16 %v6321_v28, %v6318_v27  ;;  %v10364_v55 = vrot.slane %v6318_v27, 1  ;;  %v10362_v63 = vrot.slane %v6318_v27, 2  ;;  %p5938_p1 = pnand %p5937_p8, %p12087_p12 }
  0x7b   : > { %1685 = vmatpush1.bf16.msra.mxu0 %v5638_v3  ;;  %5529 = vmatpush1.bf16.msra.mxu1 %v5638_v3  ;;  %10773 = vst [vmem:[#allocation18_spill] sm:$0xff] %v6327_v31  ;;  %v5653_v37 = vld [vmem:[#allocation5 + $0x280] sm:$0xff]   ;;  %v6342_v41 = vpack.c.bf16 %v338_v30, %v336_v29  ;;  %v6351_v46 = vld [vmem:[%s6246_s5 + $0x70] sm:$0xff]  ;;  %v5654_v51 = vld [vmem:[#allocation5 + $0x208] sm:$0xff]   ;;  %v972_v30 = vsel %vm838_vm1, %v10363_v38, %v705_v39  ;;  %v10796_v49 = vrot.slane %v6309_v24, 1  ;;  %s6032_s15 = smov [#allocation8]  }
  0x7c   : > { %1686 = vmatprep.subr.bf16.mxu0 %v10367_v0  ;;  %5514 = vmatprep.subr.bf16.mxu1 %v10367_v0  ;;  %10774 = vst [vmem:[#allocation19_spill] sm:$0xff] %v6330_v32  ;;  %10775 = vst [vmem:[#allocation20_spill] sm:$0xff] %v6340_v40  ;;  %v6348_v45 = vld [vmem:[%s6246_s5 + $0x60] sm:$0xff]  ;;  %v337_v50 = vld [vmem:[%s6246_s5 + $0x270] sm:$0xff]  ;;  %p5939_p10 = pneg %p5938_p1  ;;  %s5940_s21 = sshll.u32 %s6032_s15, 4  ;;  %s5941_s21 = int_to_ptr.vmem [resolvable:$false] %s5940_s21 }
  0x7d   : > { %10776 = vst [vmem:[#allocation21_spill] sm:$0xff] %v6342_v41  ;;  %v335_v47 = vld [vmem:[%s6246_s5 + $0x260] sm:$0xff]  ;;  %v5655_v52 = vld [vmem:[#allocation5 + $0x288] sm:$0xff]   ;;  %v6367_v57 = vld [vmem:[%s6246_s5 + $0x98] sm:$0xff]  ;;  %v10365_v2 = vrot.slane %v6348_v45, 1  ;;  %v10371_v9 = vrot.slane %v6348_v45, 2  ;;  %p5943_p3 = scmp.lt.s32.totalorder %s10302_s30, %s5941_s21 }
  0x7e   : > { %v6364_v56 = vld [vmem:[%s6246_s5 + $0x88] sm:$0xff]  ;;  %v342_v61 = vld [vmem:[%s6246_s5 + $0x298] sm:$0xff]  ;;  %v5657_v26 = vld [vmem:[#allocation5 + $0x290] sm:$0xff]   ;;  %s5942_s8 = scalar_lea.vmem %s5941_s21, 16384 }
  0x7f   : > { %1687 = vmatpush1.bf16.msra.mxu0 %v5639_v4  ;;  %5530 = vmatpush1.bf16.msra.mxu1 %v5639_v4  ;;  %v340_v60 = vld [vmem:[%s6246_s5 + $0x288] sm:$0xff]  ;;  %v6384_v4 = vpack.c.bf16 %v6351_v46, %v6348_v45  ;;  %v5658_v43 = vld [vmem:[#allocation5 + $0x218] sm:$0xff]   ;;  %v6490_v1 = vld [vmem:[%s6246_s5 + $0xd0] sm:$0xff]  ;;  %p5944_p5 = scmp.lt.s32.totalorder %s5942_s8, %s5936_s6 }
  0x80   : > { %1688 = vmatprep.subr.bf16.mxu0 %v10367_v0  ;;  %5515 = vmatprep.subr.bf16.mxu1 %v10367_v0  ;;  %v6418_v33 = vld [vmem:[%s6246_s5 + $0xa8] sm:$0xff]  ;;  %v5659_v42 = vld [vmem:[#allocation5 + $0x298] sm:$0xff]   ;;  %v347_v7 = vld [vmem:[%s6246_s5 + $0x2c0] sm:$0xff] }
  0x81   : > { %10778 = vst [vmem:[#allocation23_spill] sm:$0xff] %v6384_v4  ;;  %v6478_v29 = vld [vmem:[%s6246_s5 + $0xd8] sm:$0xff]  ;;  %v353_v44 = vld [vmem:[%s6246_s5 + $0x2f0] sm:$0xff]  ;;  %v364_v11 = vld [vmem:[%s6246_s5 + $0x348] sm:$0xff]  ;;  %p5945_p9 = por %p5944_p5, %p5943_p3 }
  0x82   : > { %v354_v38 = vld [vmem:[%s6246_s5 + $0x2f8] sm:$0xff]  ;;  %v5664_v12 = vld [vmem:[#allocation5 + $0x230] sm:$0xff]   ;;  %v6689_v6 = vld [vmem:[%s6246_s5 + $0x140] sm:$0xff] }
  0x83   : > { %1689 = vmatpush1.bf16.msra.mxu0 %v5640_v5  ;;  %5531 = vmatpush1.bf16.msra.mxu1 %v5640_v5  ;;  %v6386_v5 = vpack.c.bf16 %v337_v50, %v335_v47  ;;  %v349_v47 = vld [vmem:[%s6246_s5 + $0x2d0] sm:$0xff]  ;;  %v5668_v25 = vld [vmem:[#allocation5 + $0x240] sm:$0xff]   ;;  %p5946_p2 = pnand %p5945_p9, %p5939_p10 }
  0x84   : > { %1690 = vmatprep.subr.bf16.mxu0 %v10367_v0  ;;  %5516 = vmatprep.subr.bf16.mxu1 %v10367_v0  ;;  %v357_v62 = vld [vmem:[%s6246_s5 + $0x310] sm:$0xff] }
  0x85   : > { %10779 = vst [vmem:[#allocation24_spill] sm:$0xff] %v6386_v5 }
  0x87   : > { %1691 = vmatpush1.bf16.msra.mxu0 %v5641_v10  ;;  %5532 = vmatpush1.bf16.msra.mxu1 %v5641_v10  ;;  %v6392_v10 = vpack.c.bf16 %v6367_v57, %v6364_v56 }
  0x88   : > { %1692 = vmatprep.subr.bf16.mxu0 %v10367_v0  ;;  %5517 = vmatprep.subr.bf16.mxu1 %v10367_v0 }
  0x89   : > { %10780 = vst [vmem:[#allocation25_spill] sm:$0xff] %v6392_v10 }
  0x8b   : > { %1693 = vmatpush1.bf16.msra.mxu0 %v5642_v13  ;;  %5533 = vmatpush1.bf16.msra.mxu1 %v5642_v13  ;;  %v6394_v13 = vpack.c.bf16 %v342_v61, %v340_v60  ;;  %v6440_v61 = vld [vmem:[%s6246_s5 + $0xa0] sm:$0xff]  ;;  %v350_v60 = vld [vmem:[%s6246_s5 + $0x2d8] sm:$0xff] }
  0x8c   : > { %1694 = vmatprep.subr.bf16.mxu0 %v10367_v0  ;;  %5518 = vmatprep.subr.bf16.mxu1 %v10367_v0 }
  0x8d   : > { %10781 = vst [vmem:[#allocation26_spill] sm:$0xff] %v6394_v13 }
  0x8f   : > { %1695 = vmatpush1.bf16.msra.mxu0 %v5643_v14  ;;  %5534 = vmatpush1.bf16.msra.mxu1 %v5643_v14  ;;  %v6397_v14 = vld [vmem:[%s6246_s5 + $0x80] sm:$0xff] }
  0x90   : > { %1696 = vmatprep.subr.bf16.mxu0 %v10367_v0  ;;  %5519 = vmatprep.subr.bf16.mxu1 %v10367_v0 }
  0x93   : > { %1697 = vmatpush1.bf16.msra.mxu0 %v5644_v15  ;;  %5535 = vmatpush1.bf16.msra.mxu1 %v5644_v15  ;;  %v6400_v15 = vld [vmem:[%s6246_s5 + $0x90] sm:$0xff] }
  0x94   : > { %1698 = vmatprep.subr.bf16.mxu0 %v10367_v0  ;;  %5520 = vmatprep.subr.bf16.mxu1 %v10367_v0  ;;  %v6447_v59 = vpack.c.bf16 %v6400_v15, %v6397_v14 }
  0x96   : > { %10782 = vst [vmem:[#allocation27_spill] sm:$0xff] %v6447_v59 }
  0x97   : > { %1699 = vmatpush1.bf16.msra.mxu0 %v5645_v16  ;;  %5536 = vmatpush1.bf16.msra.mxu1 %v5645_v16  ;;  %v339_v16 = vld [vmem:[%s6246_s5 + $0x280] sm:$0xff] }
  0x98   : > { %1700 = vmatprep.subr.bf16.mxu0 %v10367_v0  ;;  %5521 = vmatprep.subr.bf16.mxu1 %v10367_v0 }
  0x9b   : > { %1701 = vmatpush1.bf16.msra.mxu0 %v5646_v17  ;;  %5537 = vmatpush1.bf16.msra.mxu1 %v5646_v17  ;;  %v681_v17 = vsel %vm549_vm0, %v414_v35, %v10364_v55 }
  0x9c   : > { %1702 = vmatprep.subr.bf16.mxu0 %v10367_v0  ;;  %5522 = vmatprep.subr.bf16.mxu1 %v10367_v0 }
  0x9f   : > { %1703 = vmatpush1.bf16.msra.mxu0 %v5647_v18  ;;  %5538 = vmatpush1.bf16.msra.mxu1 %v5647_v18  ;;  %v343_v18 = vld [vmem:[%s6246_s5 + $0x2a0] sm:$0xff] }
  0xa0   : > { %1704 = vmatprep.subr.bf16.mxu0 %v10367_v0  ;;  %5523 = vmatprep.subr.bf16.mxu1 %v10367_v0 }
  0xa3   : > { %1705 = vmatpush1.bf16.msra.mxu0 %v5648_v19  ;;  %5539 = vmatpush1.bf16.msra.mxu1 %v5648_v19  ;;  %v351_v19 = vld [vmem:[%s6246_s5 + $0x2e0] sm:$0xff] }
  0xa4   : > { %1706 = vmatprep.subr.bf16.mxu0 %v10367_v0  ;;  %5524 = vmatprep.subr.bf16.mxu1 %v10367_v0 }
  0xa7   : > { %1707 = vmatpush1.bf16.msra.mxu0 %v5649_v20  ;;  %5540 = vmatpush1.bf16.msra.mxu1 %v5649_v20  ;;  %v5660_v20 = vld [vmem:[#allocation5 + $0x220] sm:$0xff]  }
  0xa8   : > { %1708 = vmatprep.subr.bf16.mxu0 %v10367_v0  ;;  %5525 = vmatprep.subr.bf16.mxu1 %v10367_v0 }
  0xab   : > { %1709 = vmatpush1.bf16.msra.mxu0 %v5650_v21  ;;  %5541 = vmatpush1.bf16.msra.mxu1 %v5650_v21  ;;  %v341_v21 = vld [vmem:[%s6246_s5 + $0x290] sm:$0xff] }
  0xac   : > { %1710 = vmatprep.subr.bf16.mxu0 %v10367_v0  ;;  %5526 = vmatprep.subr.bf16.mxu1 %v10367_v0  ;;  %v6449_v58 = vpack.c.bf16 %v341_v21, %v339_v16  ;;  %v345_v16 = vld [vmem:[%s6246_s5 + $0x2b0] sm:$0xff]  ;;  %v970_v21 = vsel %vm838_vm1, %v705_v39, %v10362_v63  ;;  %v6487_v63 = vld [vmem:[%s6246_s5 + $0xc0] sm:$0xff] }
  0xad   : > { %v5661_v39 = vld [vmem:[#allocation5 + $0x2a0] sm:$0xff]   ;;  %v6558_v55 = vpack.c.bf16 %v6490_v1, %v6487_v63 }
  0xae   : > { %10783 = vst [vmem:[#allocation28_spill] sm:$0xff] %v6449_v58 }
  0xaf   : > { %1711 = vmatpush1.bf16.msra.mxu0 %v5651_v22  ;;  %5542 = vmatpush1.bf16.msra.mxu1 %v5651_v22  ;;  %v5656_v22 = vld [vmem:[#allocation5 + $0x210] sm:$0xff]   ;;  %10792 = vst [vmem:[#allocation37_spill] sm:$0xff] %v6558_v55 }
  0xb0   : > { %1969 = vmatprep.subr.bf16.mxu1 %v10367_v0  ;;  %2258 = vmatprep.subr.bf16.mxu0 %v10367_v0 }
  0xb2   : > { %1713 = vmatmul.mubr.bf16.vlgmr.msra.gmra.mrb[0].mxu0 %v6327_v31  ;;  %1841 = vmatmul.mubr.bf16.vlgmr.msra.gmra.mrb[0].mxu1 %v6330_v32  ;;  %v6596_v32 = vpack.c.bf16 %v353_v44, %v351_v19  ;;  %v10804_v19 = vrot.slane %v6309_v24, 2  ;;  %v10808_v24 = vrot.slane %v6364_v56, 1 }
  0xb3   : > { %1970 = vmatpush1.bf16.msra.mxu1 %v5652_v36  ;;  %2259 = vmatpush1.bf16.msra.mxu0 %v5653_v37  ;;  %v6421_v36 = vld [vmem:[%s6246_s5 + $0xb8] sm:$0xff]  ;;  %v683_v37 = vsel %vm549_vm0, %v10361_v34, %v414_v35  ;;  %v6443_v34 = vld [vmem:[%s6246_s5 + $0xb0] sm:$0xff]  ;;  %v348_v35 = vld [vmem:[%s6246_s5 + $0x2c8] sm:$0xff] }
  0xb4   : > { %1720 = vmatprep.mubr.bf16.mxu0 %v6340_v40  ;;  %1848 = vmatprep.mubr.bf16.mxu1 %v6342_v41  ;;  %v6451_v50 = vpack.c.bf16 %v681_v17, %v683_v37  ;;  %v6462_v17 = vld [vmem:[%s6246_s5 + $0xc8] sm:$0xff]  ;;  %v6500_v37 = vpack.c.bf16 %v6443_v34, %v6440_v61  ;;  %10801 = vst [vmem:[#allocation43_spill] sm:$0xff] %v6596_v32 }
  0xb5   : > { %1971 = vmatprep.subr.bf16.mxu1 %v10367_v0  ;;  %2260 = vmatprep.subr.bf16.mxu0 %v10367_v0  ;;  %v6671_v40 = vld [vmem:[%s6246_s5 + $0x148] sm:$0xff] }
  0xb6   : > { %10784 = vst [vmem:[#allocation29_spill] sm:$0xff] %v6451_v50  ;;  %10787 = vst [vmem:[#allocation32_spill] sm:$0xff] %v6500_v37 }
  0xb7   : > { %1972 = vmatpush1.bf16.msra.mxu1 %v5654_v51  ;;  %2261 = vmatpush1.bf16.msra.mxu0 %v5655_v52  ;;  %v344_v51 = vld [vmem:[%s6246_s5 + $0x2a8] sm:$0xff]  ;;  %v346_v52 = vld [vmem:[%s6246_s5 + $0x2b8] sm:$0xff]  ;;  %10817 = vst [vmem:[#allocation55_spill] sm:$0xff] %v6671_v40 }
  0xb8   : > { %1973 = vmatprep.subr.bf16.mxu1 %v10367_v0  ;;  %2262 = vmatprep.subr.bf16.mxu0 %v10367_v0  ;;  %v6482_v3 = vpack.c.bf16 %v346_v52, %v344_v51  ;;  %v6502_v51 = vpack.c.bf16 %v345_v16, %v343_v18  ;;  %v6512_v18 = vpack.c.bf16 %v6478_v29, %v6462_v17  ;;  %v6522_v16 = vld [vmem:[%s6246_s5 + $0xf8] sm:$0xff] }
  0xb9   : > { %v680_v52 = vsel %vm549_vm0, %v10366_v48, %v10365_v2  ;;  %v969_v2 = vsel %vm838_vm1, %v10372_v54, %v10371_v9  ;;  %v5662_v48 = vld [vmem:[#allocation5 + $0x228] sm:$0xff]   ;;  %v10809_v9 = vrot.slane %v6321_v28, 1 }
  0xba   : > { %1721 = vmatmul.mubr.bf16.gmra.mrb[4].mxu0 %v6384_v4  ;;  %1849 = vmatmul.mubr.bf16.gmra.mrb[4].mxu1 %v6386_v5  ;;  %10786 = vst [vmem:[#allocation31_spill] sm:$0xff] %v6482_v3  ;;  %10788 = vst [vmem:[#allocation33_spill] sm:$0xff] %v6502_v51  ;;  %v358_v5 = vld [vmem:[%s6246_s5 + $0x318] sm:$0xff] }
  0xbb   : > { %1728 = vmatprep.mubr.bf16.mxu0 %v6392_v10  ;;  %1856 = vmatprep.mubr.bf16.mxu1 %v6394_v13  ;;  %10789 = vst [vmem:[#allocation34_spill] sm:$0xff] %v6512_v18  ;;  %v356_v13 = vld [vmem:[%s6246_s5 + $0x308] sm:$0xff]  ;;  %v6643_v10 = vld [vmem:[%s6246_s5 + $0x120] sm:$0xff]  ;;  %v5667_v4 = vld [vmem:[#allocation5 + $0x2b8] sm:$0xff]  }
  0xbc   : > { %1974 = vmatpush1.bf16.msra.mxu1 %v5656_v22  ;;  %2263 = vmatpush1.bf16.msra.mxu0 %v5657_v26  ;;  %v6473_v26 = vpack.c.bf16 %v6421_v36, %v6418_v33  ;;  %v6530_v22 = vpack.c.bf16 %v970_v21, %v972_v30  ;;  %v6544_v30 = vld [vmem:[%s6246_s5 + $0xe0] sm:$0xff]  ;;  %v6547_v21 = vld [vmem:[%s6246_s5 + $0xf0] sm:$0xff]  ;;  %10811 = vst [vmem:[#allocation49_spill] sm:$0xff] %v6643_v10 }
  0xbd   : > { %1975 = vmatprep.subr.bf16.mxu1 %v10367_v0  ;;  %2264 = vmatprep.subr.bf16.mxu0 %v10367_v0  ;;  %v6594_v41 = vpack.c.bf16 %v6547_v21, %v6544_v30 }
  0xbe   : > { %10785 = vst [vmem:[#allocation30_spill] sm:$0xff] %v6473_v26  ;;  %10791 = vst [vmem:[#allocation36_spill] sm:$0xff] %v6530_v22  ;;  %v6706_v22 = vld [vmem:[%s6246_s5 + $0x150] sm:$0xff] }
  0xbf   : > { %10800 = vst [vmem:[#allocation42_spill] sm:$0xff] %v6594_v41  ;;  %10824 = vst [vmem:[#allocation58_spill] sm:$0xff] %v6706_v22 }
  0xc0   : > { %1976 = vmatpush1.bf16.msra.mxu1 %v5658_v43  ;;  %2265 = vmatpush1.bf16.msra.mxu0 %v5659_v42  ;;  %v6514_v43 = vpack.c.bf16 %v350_v60, %v348_v35  ;;  %v6519_v42 = vld [vmem:[%s6246_s5 + $0xe8] sm:$0xff]  ;;  %v10797_v60 = vrot.slane %v6306_v23, 1 }
  0xc1   : > { %1977 = vmatprep.subr.bf16.mxu1 %v10367_v0  ;;  %2266 = vmatprep.subr.bf16.mxu0 %v10367_v0  ;;  %v352_v35 = vld [vmem:[%s6246_s5 + $0x2e8] sm:$0xff] }
  0xc2   : > { %10790 = vst [vmem:[#allocation35_spill] sm:$0xff] %v6514_v43  ;;  %1729 = vmatmul.mubr.bf16.gmra.mrb[8].mxu0 %v6447_v59  ;;  %1857 = vmatmul.mubr.bf16.gmra.mrb[8].mxu1 %v6449_v58  ;;  %v5663_v0 = vld [vmem:[#allocation5 + $0x2a8] sm:$0xff]   ;;  %v10794_v58 = vmov 0   ;;  %v6586_v54 = vpack.c.bf16 %v354_v38, %v352_v35  ;;  %v6601_v38 = vld [vmem:[%s6246_s5 + $0x100] sm:$0xff]  ;;  %v6604_v35 = vld [vmem:[%s6246_s5 + $0x110] sm:$0xff] }
  0xc3   : > { %1736 = vmatprep.mubr.bf16.mxu0 %v6473_v26  ;;  %1864 = vmatprep.mubr.bf16.mxu1 %v6482_v3  ;;  %v6564_v3 = vpack.c.bf16 %v349_v47, %v347_v7  ;;  %v682_v47 = vsel %vm549_vm0, %v10797_v60, %v10796_v49  ;;  %v6584_v7 = vpack.c.bf16 %v6522_v16, %v6519_v42  ;;  %v5665_v26 = vld [vmem:[#allocation5 + $0x2b0] sm:$0xff]   ;;  %v10805_v60 = vrot.slane %v6306_v23, 2  ;;  %v360_v59 = vld [vmem:[%s6246_s5 + $0x328] sm:$0xff] }
  0xc4   : > { %1978 = vmatpush1.bf16.msra.mxu1 %v5660_v20  ;;  %2267 = vmatpush1.bf16.msra.mxu0 %v5661_v39  ;;  %v6571_v20 = vld [vmem:[%s6246_s5 + $0x108] sm:$0xff]  ;;  %v6574_v39 = vld [vmem:[%s6246_s5 + $0x118] sm:$0xff]  ;;  %10799 = vst [vmem:[#allocation41_spill] sm:$0xff] %v6586_v54  ;;  %10802 = vst [vmem:[#allocation44_spill] sm:$0xff] %v6604_v35  ;;  %v6608_v44 = vpack.c.bf16 %v680_v52, %v682_v47  ;;  %v10820_v23 = vrot.slane %v6321_v28, 1 }
  0xc5   : > { %10793 = vst [vmem:[#allocation38_spill] sm:$0xff] %v6564_v3  ;;  %1979 = vmatprep.subr.bf16.mxu1 %v10794_v58  ;;  %2268 = vmatprep.subr.bf16.mxu0 %v10794_v58  ;;  %10795 = vst [vmem:[#allocation39_spill] sm:$0xff] %v6574_v39  ;;  %v971_v49 = vsel %vm838_vm1, %v10805_v60, %v10804_v19  ;;  %v6623_v52 = vld [vmem:[%s6246_s5 + $0x128] sm:$0xff]  ;;  %v677_v60 = vsel %vm549_vm0, %v10809_v9, %v10808_v24  ;;  %v362_v19 = vld [vmem:[%s6246_s5 + $0x338] sm:$0xff] }
  0xc6   : > { %10798 = vst [vmem:[#allocation40_spill] sm:$0xff] %v6584_v7  ;;  %10803 = vst [vmem:[#allocation45_spill] sm:$0xff] %v6608_v44  ;;  %v6625_v47 = vpack.c.bf16 %v969_v2, %v971_v49  ;;  %v6638_v2 = vld [vmem:[%s6246_s5 + $0x138] sm:$0xff]  ;;  %v6649_v9 = vpack.c.bf16 %v6574_v39, %v6571_v20  ;;  %v6651_v24 = vpack.c.bf16 %v358_v5, %v356_v13  ;;  %v359_v49 = vld [vmem:[%s6246_s5 + $0x320] sm:$0xff]  ;;  %v10823_v44 = vrot.slane %v6321_v28, 2 }
  0xc7   : > { %10806 = vst [vmem:[#allocation46_spill] sm:$0xff] %v6623_v52  ;;  %10810 = vst [vmem:[#allocation48_spill] sm:$0xff] %v6638_v2  ;;  %v6675_v31 = vpack.c.bf16 %v6638_v2, %v6623_v52  ;;  %v5669_v28 = vld [vmem:[#allocation5 + $0x2c0] sm:$0xff]  }
  0xc8   : > { %1980 = vmatpush1.bf16.msra.mxu1 %v5662_v48  ;;  %2269 = vmatpush1.bf16.msra.mxu0 %v5663_v0  ;;  %v355_v48 = vld [vmem:[%s6246_s5 + $0x300] sm:$0xff]  ;;  %10807 = vst [vmem:[#allocation47_spill] sm:$0xff] %v6625_v47  ;;  %10812 = vst [vmem:[#allocation50_spill] sm:$0xff] %v6649_v9  ;;  %v361_v0 = vld [vmem:[%s6246_s5 + $0x330] sm:$0xff]  ;;  %v10822_v47 = vrot.slane %v6364_v56, 2 }
  0xc9   : > { %1981 = vmatprep.subr.bf16.mxu1 %v10794_v58  ;;  %2270 = vmatprep.subr.bf16.mxu0 %v10794_v58  ;;  %10813 = vst [vmem:[#allocation51_spill] sm:$0xff] %v6651_v24  ;;  %10818 = vst [vmem:[#allocation56_spill] sm:$0xff] %v6675_v31  ;;  %v367_v52 = vld [vmem:[%s6246_s5 + $0x360] sm:$0xff] }
  0xca   : > { %1737 = vmatmul.mubr.bf16.gmra.mrb[12].mxu0 %v6500_v37  ;;  %1865 = vmatmul.mubr.bf16.gmra.mrb[12].mxu1 %v6502_v51  ;;  %v6658_v51 = vld [vmem:[%s6246_s5 + $0x130] sm:$0xff]  ;;  %v6664_v37 = vpack.c.bf16 %v357_v62, %v355_v48  ;;  %v966_v13 = vsel %vm838_vm1, %v10823_v44, %v10822_v47  ;;  %v366_v48 = vld [vmem:[%s6246_s5 + $0x358] sm:$0xff]  ;;  %v10836_v47 = vrot.slane %v6351_v46, 1 }
  0xcb   : > { %1744 = vmatprep.mubr.bf16.mxu0 %v6512_v18  ;;  %1872 = vmatprep.mubr.bf16.mxu1 %v6514_v43  ;;  %10814 = vst [vmem:[#allocation52_spill] sm:$0xff] %v6658_v51  ;;  %v5666_v18 = vld [vmem:[#allocation5 + $0x238] sm:$0xff]   ;;  %v6662_v43 = vpack.c.bf16 %v6604_v35, %v6601_v38  ;;  %v6758_v50 = vpack.c.bf16 %v366_v48, %v364_v11 }
  0xcc   : > { %10816 = vst [vmem:[#allocation54_spill] sm:$0xff] %v6664_v37  ;;  %1982 = vmatpush1.bf16.msra.mxu1 %v5664_v12  ;;  %2271 = vmatpush1.bf16.msra.mxu0 %v5665_v26  ;;  %v6682_v26 = vld [vmem:[%s6246_s5 + $0x158] sm:$0xff]  ;;  %v10821_v12 = vrot.slane %v6318_v27, 1  ;;  %v10837_v11 = vmov %v10836_v47 }
  0xcd   : > { %10815 = vst [vmem:[#allocation53_spill] sm:$0xff] %v6662_v43  ;;  %1983 = vmatprep.subr.bf16.mxu1 %v10794_v58  ;;  %2272 = vmatprep.subr.bf16.mxu0 %v10794_v58  ;;  %10819 = vst [vmem:[#allocation57_spill] sm:$0xff] %v6682_v26  ;;  %v6756_v5 = vpack.c.bf16 %v6682_v26, %v6671_v40  ;;  %v370_v26 = vld [vmem:[%s6246_s5 + $0x378] sm:$0xff]  ;;  %v6834_v40 = vld [vmem:[%s6246_s5 + $0x1b0] sm:$0xff] }
  0xce   : > { %v679_v62 = vsel %vm549_vm0, %v10821_v12, %v10820_v23  ;;  %v10826_v23 = vmov %v10823_v44  ;;  %v10827_v12 = vrot.slane %v6318_v27, 2  ;;  %v6717_v44 = vpack.c.bf16 %v362_v19, %v360_v59  ;;  %v6726_v27 = vld [vmem:[%s6246_s5 + $0x178] sm:$0xff]  ;;  %10833 = vst [vmem:[#allocation65_spill] sm:$0xff] %v6758_v50 }
  0xcf   : > { %v6709_v8 = vpack.c.bf16 %v677_v60, %v679_v62  ;;  %v6723_v62 = vld [vmem:[%s6246_s5 + $0x168] sm:$0xff]  ;;  %v6730_v59 = vpack.c.bf16 %v6658_v51, %v6643_v10  ;;  %v6732_v19 = vpack.c.bf16 %v361_v0, %v359_v49  ;;  %v363_v0 = vld [vmem:[%s6246_s5 + $0x340] sm:$0xff]  ;;  %v365_v49 = vld [vmem:[%s6246_s5 + $0x350] sm:$0xff]  ;;  %10832 = vst [vmem:[#allocation64_spill] sm:$0xff] %v6756_v5  ;;  %v10835_v60 = vrot.slane %v6397_v14, 1 }
  0xd0   : > { %v968_v2 = vsel %vm838_vm1, %v10827_v12, %v10826_v23  ;;  %10828 = vst [vmem:[#allocation60_spill] sm:$0xff] %v6717_v44  ;;  %1984 = vmatpush1.bf16.msra.mxu1 %v5666_v18  ;;  %2273 = vmatpush1.bf16.msra.mxu0 %v5667_v4  ;;  %v6739_v23 = vld [vmem:[%s6246_s5 + $0x160] sm:$0xff]  ;;  %v6742_v12 = vld [vmem:[%s6246_s5 + $0x170] sm:$0xff]  ;;  %v5670_v4 = vld [vmem:[#allocation5 + $0x248] sm:$0xff]   ;;  %v6813_v39 = vpack.c.bf16 %v365_v49, %v363_v0 }
  0xd1   : > { %10825 = vst [vmem:[#allocation59_spill] sm:$0xff] %v6709_v8  ;;  %10829 = vst [vmem:[#allocation61_spill] sm:$0xff] %v6730_v59  ;;  %1985 = vmatprep.subr.bf16.mxu1 %v10794_v58  ;;  %2274 = vmatprep.subr.bf16.mxu0 %v10794_v58  ;;  %v6764_v18 = vld [vmem:[%s6246_s5 + $0x188] sm:$0xff]  ;;  %v6771_v48 = vpack.c.bf16 %v966_v13, %v968_v2  ;;  %v676_v8 = vsel %vm549_vm0, %v10836_v47, %v10835_v60  ;;  %v6785_v2 = vld [vmem:[%s6246_s5 + $0x180] sm:$0xff]  ;;  %v10839_v60 = vrot.slane %v6397_v14, 2 }
  0xd2   : > { %10830 = vst [vmem:[#allocation62_spill] sm:$0xff] %v6732_v19  ;;  %10831 = vst [vmem:[#allocation63_spill] sm:$0xff] %v6742_v12  ;;  %1745 = vmatmul.mubr.bf16.gmra.mrb[16].mxu0 %v6558_v55  ;;  %1873 = vmatmul.mubr.bf16.gmra.mrb[16].mxu1 %v6564_v3  ;;  %v368_v3 = vld [vmem:[%s6246_s5 + $0x368] sm:$0xff]  ;;  %v6788_v13 = vld [vmem:[%s6246_s5 + $0x190] sm:$0xff]  ;;  %v10838_v55 = vrot.slane %v6348_v45, 1  ;;  %v6822_v35 = vpack.c.bf16 %v6726_v27, %v6723_v62 }
  0xd3   : > { %1752 = vmatprep.mubr.bf16.mxu0 %v6584_v7  ;;  %1880 = vmatprep.mubr.bf16.mxu1 %v6586_v54  ;;  %v5671_v54 = vld [vmem:[#allocation5 + $0x2c8] sm:$0xff]   ;;  %v6767_v7 = vld [vmem:[%s6246_s5 + $0x198] sm:$0xff]  ;;  %10834 = vst [vmem:[#allocation66_spill] sm:$0xff] %v6771_v48  ;;  %v10840_v48 = vrot.slane %v6351_v46, 2  ;;  %v5672_v10 = vld [vmem:[#allocation5 + $0x250] sm:$0xff]  }
  0xd4   : > { %1986 = vmatpush1.bf16.msra.mxu1 %v5668_v25  ;;  %2275 = vmatpush1.bf16.msra.mxu0 %v5669_v28  ;;  %v678_v47 = vsel %vm549_vm0, %v10838_v55, %v10837_v11  ;;  %v6807_v55 = vld [vmem:[%s6246_s5 + $0x1a8] sm:$0xff]  ;;  %v6811_v11 = vpack.c.bf16 %v6706_v22, %v6689_v6  ;;  %10843 = vst [vmem:[#allocation69_spill] sm:$0xff] %v6813_v39  ;;  %10845 = vst [vmem:[#allocation71_spill] sm:$0xff] %v6822_v35  ;;  %v369_v22 = vld [vmem:[%s6246_s5 + $0x370] sm:$0xff] }
  0xd5   : > { %1987 = vmatprep.subr.bf16.mxu1 %v10794_v58  ;;  %2276 = vmatprep.subr.bf16.mxu0 %v10794_v58  ;;  %v965_v25 = vsel %vm838_vm1, %v10840_v48, %v10839_v60  ;;  %10841 = vst [vmem:[#allocation67_spill] sm:$0xff] %v6807_v55  ;;  %v5673_v48 = vld [vmem:[#allocation5 + $0x2d0] sm:$0xff]   ;;  %v6816_v60 = vld [vmem:[%s6246_s5 + $0x1b8] sm:$0xff]  ;;  %v6824_v28 = vpack.c.bf16 %v370_v26, %v368_v3  ;;  %v6831_v51 = vld [vmem:[%s6246_s5 + $0x1a0] sm:$0xff]  ;;  %v10850_v26 = vrot.slane %v6351_v46, 2 }
  0xd6   : > { %10842 = vst [vmem:[#allocation68_spill] sm:$0xff] %v6811_v11  ;;  %10844 = vst [vmem:[#allocation70_spill] sm:$0xff] %v6816_v60  ;;  %v6838_v55 = vpack.c.bf16 %v6742_v12, %v6739_v23  ;;  %v372_v3 = vld [vmem:[%s6246_s5 + $0x388] sm:$0xff]  ;;  %v374_v0 = vld [vmem:[%s6246_s5 + $0x398] sm:$0xff] }
  0xd7   : > { %10846 = vst [vmem:[#allocation72_spill] sm:$0xff] %v6824_v28  ;;  %10847 = vst [vmem:[#allocation73_spill] sm:$0xff] %v6831_v51  ;;  %v6847_v49 = vld [vmem:[%s6246_s5 + $0x1c8] sm:$0xff]  ;;  %v6854_v12 = vld [vmem:[%s6246_s5 + $0x1d8] sm:$0xff]  ;;  %v6904_v60 = vpack.c.bf16 %v374_v0, %v372_v3  ;;  %v10866_v0 = vrot.slane %v6367_v57, 2 }
  0xd8   : > { %1988 = vmatpush1.bf16.msra.mxu1 %v5670_v4  ;;  %2277 = vmatpush1.bf16.msra.mxu0 %v5671_v54  ;;  %10848 = vst [vmem:[#allocation74_spill] sm:$0xff] %v6838_v55  ;;  %v6857_v54 = vpack.c.bf16 %v676_v8, %v678_v47  ;;  %v10851_v4 = vrot.slane %v6348_v45, 2  ;;  %v6870_v55 = vld [vmem:[%s6246_s5 + $0x1c0] sm:$0xff]  ;;  %v6873_v8 = vld [vmem:[%s6246_s5 + $0x1d0] sm:$0xff]  ;;  %v10854_v45 = vrot.slane %v6418_v33, 1  ;;  %v10855_v47 = vrot.slane %v6367_v57, 1 }
  0xd9   : > { %1989 = vmatprep.subr.bf16.mxu1 %v10794_v58  ;;  %2278 = vmatprep.subr.bf16.mxu0 %v10794_v58  ;;  %10852 = vst [vmem:[#allocation76_spill] sm:$0xff] %v6873_v8  ;;  %10860 = vst [vmem:[#allocation82_spill] sm:$0xff] %v6904_v60 }
  0xda   : > { %1753 = vmatmul.mubr.bf16.gmra.mrb[20].mxu0 %v6594_v41  ;;  %1881 = vmatmul.mubr.bf16.gmra.mrb[20].mxu1 %v6596_v32  ;;  %10849 = vst [vmem:[#allocation75_spill] sm:$0xff] %v6857_v54  ;;  %v967_v51 = vsel %vm838_vm1, %v10851_v4, %v10850_v26  ;;  %v5674_v32 = vld [vmem:[#allocation5 + $0x258] sm:$0xff]   ;;  %v673_v26 = vsel %vm549_vm0, %v10855_v47, %v10854_v45  ;;  %v6922_v54 = vld [vmem:[%s6246_s5 + $0x208] sm:$0xff]  ;;  %v10865_v45 = vrot.slane %v6418_v33, 2 }
  0xdb   : > { %1760 = vmatprep.mubr.bf16.mxu0 %v6649_v9  ;;  %1888 = vmatprep.mubr.bf16.mxu1 %v6651_v24  ;;  %v6875_v46 = vpack.c.bf16 %v965_v25, %v967_v51  ;;  %v5675_v4 = vld [vmem:[#allocation5 + $0x2d8] sm:$0xff]   ;;  %v6888_v25 = vld [vmem:[%s6246_s5 + $0x1e8] sm:$0xff]  ;;  %v6890_v9 = vpack.c.bf16 %v369_v22, %v367_v52  ;;  %v6902_v24 = vpack.c.bf16 %v6767_v7, %v6764_v18  ;;  %v5676_v22 = vld [vmem:[#allocation5 + $0x260] sm:$0xff]  }
  0xdc   : > { %1990 = vmatpush1.bf16.msra.mxu1 %v5672_v10  ;;  %2279 = vmatpush1.bf16.msra.mxu0 %v5673_v48  ;;  %10856 = vst [vmem:[#allocation78_spill] sm:$0xff] %v6888_v25  ;;  %v6896_v48 = vld [vmem:[%s6246_s5 + $0x1f8] sm:$0xff]  ;;  %v5677_v52 = vld [vmem:[#allocation5 + $0x2e0] sm:$0xff]   ;;  %v6916_v47 = vpack.c.bf16 %v6788_v13, %v6785_v2  ;;  %v10864_v25 = vrot.slane %v6364_v56, 1  ;;  %v962_v3 = vsel %vm838_vm1, %v10866_v0, %v10865_v45  ;;  %v10870_v45 = vrot.slane %v6440_v61, 1 }
  0xdd   : > { %10853 = vst [vmem:[#allocation77_spill] sm:$0xff] %v6875_v46  ;;  %10857 = vst [vmem:[#allocation79_spill] sm:$0xff] %v6890_v9  ;;  %1991 = vmatprep.subr.bf16.mxu1 %v10794_v58  ;;  %2280 = vmatprep.subr.bf16.mxu0 %v10794_v58  ;;  %v6909_v10 = vld [vmem:[%s6246_s5 + $0x1e0] sm:$0xff]  ;;  %v6912_v46 = vld [vmem:[%s6246_s5 + $0x1f0] sm:$0xff] }
  0xde   : > { %10858 = vst [vmem:[#allocation80_spill] sm:$0xff] %v6896_v48  ;;  %10859 = vst [vmem:[#allocation81_spill] sm:$0xff] %v6902_v24  ;;  %v10863_v48 = vrot.slane %v6367_v57, 1 }
  0xdf   : > { %10861 = vst [vmem:[#allocation83_spill] sm:$0xff] %v6912_v46  ;;  %10862 = vst [vmem:[#allocation84_spill] sm:$0xff] %v6916_v47 }
  0xe0   : > { %1992 = vmatpush1.bf16.msra.mxu1 %v5674_v32  ;;  %2281 = vmatpush1.bf16.msra.mxu0 %v5675_v4  ;;  %v675_v8 = vsel %vm549_vm0, %v10864_v25, %v10863_v48  ;;  %v6941_v32 = vld [vmem:[%s6246_s5 + $0x218] sm:$0xff]  ;;  %v10868_v25 = vmov %v10866_v0  ;;  %v10869_v48 = vrot.slane %v6364_v56, 2  ;;  %v10871_v0 = vrot.slane %v6400_v15, 1 }
  0xe1   : > { %1993 = vmatprep.subr.bf16.mxu1 %v10794_v58  ;;  %2282 = vmatprep.subr.bf16.mxu0 %v10794_v58  ;;  %v6944_v41 = vpack.c.bf16 %v673_v26, %v675_v8  ;;  %v5678_v8 = vld [vmem:[#allocation5 + $0x268] sm:$0xff]  }
  0xe2   : > { %v964_v51 = vsel %vm838_vm1, %v10869_v48, %v10868_v25  ;;  %v672_v46 = vsel %vm549_vm0, %v10871_v0, %v10870_v45  ;;  %1761 = vmatmul.mubr.bf16.gmra.mrb[24].mxu0 %v6662_v43  ;;  %1889 = vmatmul.mubr.bf16.gmra.mrb[24].mxu1 %v6664_v37  ;;  %v5679_v26 = vld [vmem:[#allocation5 + $0x2e8] sm:$0xff]   ;;  %v10873_v25 = vmov %v10871_v0  ;;  %v10874_v48 = vrot.slane %v6397_v14, 1 }
  0xe3   : > { %10867 = vst [vmem:[#allocation85_spill] sm:$0xff] %v6944_v41  ;;  %v6961_v56 = vpack.c.bf16 %v962_v3, %v964_v51  ;;  %v10875_v45 = vrot.slane %v6440_v61, 2  ;;  %v10876_v0 = vrot.slane %v6400_v15, 2  ;;  %1768 = vmatprep.mubr.bf16.mxu0 %v6675_v31  ;;  %1896 = vmatprep.mubr.bf16.mxu1 %v6717_v44  ;;  %v6979_v3 = vld [vmem:[%s6246_s5 + $0x200] sm:$0xff]  ;;  %v6996_v51 = vld [vmem:[%s6246_s5 + $0x210] sm:$0xff]  ;;  %v10884_v15 = vrot.slane %v6418_v33, 1 }
  0xe4   : > { %v674_v4 = vsel %vm549_vm0, %v10874_v48, %v10873_v25  ;;  %v10879_v25 = vrot.slane %v6397_v14, 2  ;;  %1994 = vmatpush1.bf16.msra.mxu1 %v5676_v22  ;;  %2283 = vmatpush1.bf16.msra.mxu0 %v5677_v52  ;;  %v10886_v44 = vrot.slane %v6421_v36, 2 }
  0xe5   : > { %10872 = vst [vmem:[#allocation86_spill] sm:$0xff] %v6961_v56  ;;  %v961_v37 = vsel %vm838_vm1, %v10876_v0, %v10875_v45  ;;  %v6981_v57 = vpack.c.bf16 %v672_v46, %v674_v4  ;;  %v10878_v43 = vmov %v10876_v0  ;;  %v10880_v56 = vrot.slane %v6462_v17, 1  ;;  %1995 = vmatprep.subr.bf16.mxu1 %v10794_v58  ;;  %2284 = vmatprep.subr.bf16.mxu0 %v10794_v58 }
  0xe6   : > { %v963_v48 = vsel %vm838_vm1, %v10879_v25, %v10878_v43  ;;  %v10881_v45 = vrot.slane %v6421_v36, 1  ;;  %v10885_v25 = vrot.slane %v6462_v17, 2 }
  0xe7   : > { %10877 = vst [vmem:[#allocation87_spill] sm:$0xff] %v6981_v57  ;;  %v6999_v4 = vpack.c.bf16 %v961_v37, %v963_v48  ;;  %v10889_v48 = vrot.slane %v6418_v33, 2  ;;  %v10895_v33 = vrot.slane %v6487_v63, 2 }
  0xe8   : > { %v669_v0 = vsel %vm549_vm0, %v10881_v45, %v10880_v56  ;;  %v10883_v14 = vmov %v10881_v45  ;;  %v958_v22 = vsel %vm838_vm1, %v10886_v44, %v10885_v25  ;;  %v10888_v56 = vmov %v10886_v44  ;;  %1996 = vmatpush1.bf16.msra.mxu1 %v5678_v8  ;;  %2285 = vmatpush1.bf16.msra.mxu0 %v5679_v26 }
  0xe9   : > { %10882 = vst [vmem:[#allocation88_spill] sm:$0xff] %v6999_v4  ;;  %v671_v43 = vsel %vm549_vm0, %v10884_v15, %v10883_v14  ;;  %v960_v45 = vsel %vm838_vm1, %v10889_v48, %v10888_v56  ;;  %v10890_v14 = vrot.slane %v6487_v63, 1  ;;  %v10891_v15 = vrot.slane %v6443_v34, 1  ;;  %1997 = vmatprep.subr.bf16.mxu1 %v10794_v58  ;;  %2286 = vmatprep.subr.bf16.mxu0 %v10794_v58 }
  0xea   : > { %v7016_v52 = vpack.c.bf16 %v669_v0, %v671_v43  ;;  %v7030_v25 = vpack.c.bf16 %v958_v22, %v960_v45  ;;  %v10894_v0 = vrot.slane %v6440_v61, 1  ;;  %v10896_v43 = vrot.slane %v6443_v34, 2  ;;  %v5680_v45 = vld [vmem:[#allocation5 + $0x270] sm:$0xff]   ;;  %1769 = vmatmul.mubr.bf16.gmra.mrb[28].mxu0 %v6730_v59  ;;  %1897 = vmatmul.mubr.bf16.gmra.mrb[28].mxu1 %v6732_v19 }
  0xeb   : > { %v668_v44 = vsel %vm549_vm0, %v10891_v15, %v10890_v14  ;;  %v10893_v37 = vmov %v10891_v15  ;;  %v10898_v14 = vrot.slane %v6440_v61, 2  ;;  %v10904_v34 = vrot.slane %v6462_v17, 1  ;;  %1776 = vmatprep.mubr.bf16.mxu0 %v6756_v5  ;;  %1904 = vmatprep.mubr.bf16.mxu1 %v6758_v50  ;;  %v10955_v50 = vld [vmem:[#allocation44_spill] sm:$0xff] }
  0xec   : > { %10887 = vst [vmem:[#allocation89_spill] sm:$0xff] %v7016_v52  ;;  %10892 = vst [vmem:[#allocation90_spill] sm:$0xff] %v7030_v25  ;;  %v670_v36 = vsel %vm549_vm0, %v10894_v0, %v10893_v37  ;;  %v957_v56 = vsel %vm838_vm1, %v10896_v43, %v10895_v33  ;;  %v10897_v48 = vmov %v10896_v43  ;;  %v10901_v37 = vrot.slane %v6519_v42, 1  ;;  %1998 = vmatpush1.bf16.msra.mxu1 %v5680_v45  ;;  %v376_v5 = vld [vmem:[%s6246_s5 + $0x3a8] sm:$0xff] }
  0xed   : > { %v959_v22 = vsel %vm838_vm1, %v10898_v14, %v10897_v48  ;;  %v7050_v15 = vpack.c.bf16 %v668_v44, %v670_v36  ;;  %v10902_v0 = vrot.slane %v6478_v29, 1  ;;  %v5681_v36 = vld [vmem:[#allocation5 + $0x2f0] sm:$0xff]   ;;  %v10907_v48 = vrot.slane %v6478_v29, 2  ;;  %1999 = vmatprep.subr.bf16.mxu1 %v10794_v58  ;;  %v10942_v44 = vld [vmem:[#allocation39_spill] sm:$0xff] }
  0xee   : > { %v7052_v46 = vpack.c.bf16 %v957_v56, %v959_v22  ;;  %v10906_v56 = vrot.slane %v6519_v42, 2  ;;  %v10911_v26 = vrot.slane %v6544_v30, 1  ;;  %2287 = vmatpush1.bf16.msra.mxu0 %v5681_v36  ;;  %v10931_v36 = vrot.slane %v6601_v38, 1 }
  0xef   : > { %10899 = vst [vmem:[#allocation91_spill] sm:$0xff] %v7050_v15  ;;  %v665_v31 = vsel %vm549_vm0, %v10902_v0, %v10901_v37  ;;  %v10903_v33 = vmov %v10902_v0  ;;  %v10908_v22 = vmov %v10907_v48  ;;  %v10909_v37 = vrot.slane %v6462_v17, 2  ;;  %2288 = vmatprep.subr.bf16.mxu0 %v10794_v58 }
  0xf0   : > { %10900 = vst [vmem:[#allocation92_spill] sm:$0xff] %v7052_v46  ;;  %v667_v61 = vsel %vm549_vm0, %v10904_v34, %v10903_v33  ;;  %v954_v14 = vsel %vm838_vm1, %v10907_v48, %v10906_v56  ;;  %v10912_v0 = vrot.slane %v6490_v1, 1  ;;  %v10914_v17 = vrot.slane %v6487_v63, 1  ;;  %v5683_v56 = vld [vmem:[#allocation5 + $0x2f8] sm:$0xff]  }
  0xf1   : > { %v7067_v43 = vpack.c.bf16 %v665_v31, %v667_v61  ;;  %v956_v8 = vsel %vm838_vm1, %v10909_v37, %v10908_v22  ;;  %v5682_v61 = vld [vmem:[#allocation5 + $0x278] sm:$0xff]   ;;  %v10917_v22 = vrot.slane %v6490_v1, 2  ;;  %v10956_v19 = vrot.slane %v10955_v50, 1 }
  0xf2   : > { %v7083_v31 = vpack.c.bf16 %v954_v14, %v956_v8  ;;  %v664_v33 = vsel %vm549_vm0, %v10912_v0, %v10911_v26  ;;  %v10913_v29 = vmov %v10912_v0  ;;  %v10916_v14 = vrot.slane %v6544_v30, 2  ;;  %2000 = vmatpush1.bf16.msra.mxu1 %v5682_v61  ;;  %2289 = vmatpush1.bf16.msra.mxu0 %v5683_v56 }
  0xf3   : > { %10905 = vst [vmem:[#allocation93_spill] sm:$0xff] %v7067_v43  ;;  %v666_v34 = vsel %vm549_vm0, %v10914_v17, %v10913_v29  ;;  %v10918_v8 = vmov %v10917_v22  ;;  %v10919_v26 = vrot.slane %v6487_v63, 2  ;;  %v10921_v29 = vrot.slane %v6571_v20, 1  ;;  %2835 = vmatprep.subr.bf16.mxu1 %v10794_v58  ;;  %3124 = vmatprep.subr.bf16.mxu0 %v10794_v58 }
  0xf4   : > { %10910 = vst [vmem:[#allocation94_spill] sm:$0xff] %v7083_v31  ;;  %v7099_v48 = vpack.c.bf16 %v664_v33, %v666_v34  ;;  %v953_v37 = vsel %vm838_vm1, %v10917_v22, %v10916_v14  ;;  %v10922_v17 = vrot.slane %v6522_v16, 1  ;;  %v10924_v63 = vrot.slane %v6519_v42, 1  ;;  %1777 = vmatmul.mubr.bf16.gmra.mrb[32].mxu0 %v6811_v11  ;;  %1905 = vmatmul.mubr.bf16.gmra.mrb[32].mxu1 %v6813_v39 }
  0xf5   : > { %v955_v0 = vsel %vm838_vm1, %v10919_v26, %v10918_v8  ;;  %v10927_v8 = vrot.slane %v6522_v16, 2  ;;  %1784 = vmatprep.mubr.bf16.mxu0 %v6822_v35  ;;  %1912 = vmatprep.mubr.bf16.mxu1 %v6824_v28 }
  0xf6   : > { %10915 = vst [vmem:[#allocation95_spill] sm:$0xff] %v7099_v48  ;;  %v7115_v33 = vpack.c.bf16 %v953_v37, %v955_v0  ;;  %v661_v34 = vsel %vm549_vm0, %v10922_v17, %v10921_v29  ;;  %v10923_v1 = vmov %v10922_v17  ;;  %v10926_v37 = vrot.slane %v6571_v20, 2 }
  0xf7   : > { %v663_v14 = vsel %vm549_vm0, %v10924_v63, %v10923_v1  ;;  %v10928_v0 = vmov %v10927_v8  ;;  %v10929_v29 = vrot.slane %v6519_v42, 2  ;;  %v10934_v42 = vrot.slane %v6544_v30, 1 }
  0xf8   : > { %10920 = vst [vmem:[#allocation96_spill] sm:$0xff] %v7115_v33  ;;  %v7129_v22 = vpack.c.bf16 %v661_v34, %v663_v14  ;;  %v950_v26 = vsel %vm838_vm1, %v10927_v8, %v10926_v37  ;;  %v10932_v34 = vrot.slane %v6547_v21, 1  ;;  %v10936_v37 = vrot.slane %v6601_v38, 2 }
  0xf9   : > { %v952_v17 = vsel %vm838_vm1, %v10929_v29, %v10928_v0  ;;  %v10937_v8 = vrot.slane %v6547_v21, 2  ;;  %v10939_v29 = vrot.slane %v6544_v30, 2 }
  0xfa   : > { %10925 = vst [vmem:[#allocation97_spill] sm:$0xff] %v7129_v22  ;;  %v7145_v45 = vpack.c.bf16 %v950_v26, %v952_v17  ;;  %v660_v1 = vsel %vm549_vm0, %v10932_v34, %v10931_v36  ;;  %v10933_v16 = vmov %v10932_v34  ;;  %v10940_v36 = vld [vmem:[#allocation46_spill] sm:$0xff] }
  0xfb   : > { %v662_v63 = vsel %vm549_vm0, %v10934_v42, %v10933_v16  ;;  %v949_v26 = vsel %vm838_vm1, %v10937_v8, %v10936_v37  ;;  %v10938_v0 = vmov %v10937_v8  ;;  %v10941_v34 = vrot.slane %v10940_v36, 1 }
  0xfc   : > { %10930 = vst [vmem:[#allocation98_spill] sm:$0xff] %v7145_v45  ;;  %v7159_v14 = vpack.c.bf16 %v660_v1, %v662_v63  ;;  %v951_v17 = vsel %vm838_vm1, %v10939_v29, %v10938_v0  ;;  %v10943_v16 = vrot.slane %v10942_v44, 1  ;;  %v10946_v37 = vrot.slane %v6571_v20, 1  ;;  %1913 = vmatmul.mubr.bf16.gmra.mrb[36].mxu1 %v6890_v9 }
  0xfd   : > { %v7179_v42 = vpack.c.bf16 %v949_v26, %v951_v17  ;;  %v10947_v30 = vrot.slane %v10940_v36, 2  ;;  %v10948_v8 = vrot.slane %v10942_v44, 2  ;;  %v10958_v44 = vrot.slane %v6601_v38, 1  ;;  %1920 = vmatprep.mubr.bf16.mxu1 %v6904_v60 }
  0xfe   : > { %10935 = vst [vmem:[#allocation99_spill] sm:$0xff] %v7159_v14  ;;  %v657_v1 = vsel %vm549_vm0, %v10943_v16, %v10941_v34  ;;  %v10945_v63 = vmov %v10943_v16  ;;  %v10950_v34 = vrot.slane %v6571_v20, 2  ;;  %v10957_v20 = vmov %v10956_v19 }
  0xff   : > { %10944 = vst [vmem:[#allocation46_spill] sm:$0xff] %v7179_v42  ;;  %v659_v21 = vsel %vm549_vm0, %v10946_v37, %v10945_v63  ;;  %v946_v0 = vsel %vm838_vm1, %v10948_v8, %v10947_v30  ;;  %v10949_v29 = vmov %v10948_v8  ;;  %v10953_v63 = vld [vmem:[#allocation49_spill] sm:$0xff]  ;;  %v658_v61 = vsel %vm549_vm0, %v10958_v44, %v10957_v20  ;;  %v10967_v44 = vld [vmem:[#allocation48_spill] sm:$0xff] }
 0x100   : > { %v948_v26 = vsel %vm838_vm1, %v10950_v34, %v10949_v29  ;;  %v7199_v17 = vpack.c.bf16 %v657_v1, %v659_v21  ;;  %v10954_v37 = vrot.slane %v10953_v63, 1  ;;  %v10959_v56 = vrot.slane %v10953_v63, 2 }
 0x101   : > { %v7201_v16 = vpack.c.bf16 %v946_v0, %v948_v26  ;;  %v10960_v1 = vrot.slane %v10955_v50, 2  ;;  %v10962_v8 = vrot.slane %v6601_v38, 2 }
 0x102   : > { %10951 = vst [vmem:[#allocation39_spill] sm:$0xff] %v7199_v17  ;;  %v656_v30 = vsel %vm549_vm0, %v10956_v19, %v10954_v37  ;;  %v10965_v37 = vld [vmem:[#allocation55_spill] sm:$0xff] }
 0x103   : > { %10952 = vst [vmem:[#allocation100_spill] sm:$0xff] %v7201_v16  ;;  %v945_v21 = vsel %vm838_vm1, %v10960_v1, %v10959_v56  ;;  %v10961_v19 = vmov %v10960_v1  ;;  %v7232_v34 = vpack.c.bf16 %v656_v30, %v658_v61  ;;  %v10966_v20 = vrot.slane %v10965_v37, 1 }
 0x104   : > { %v947_v0 = vsel %vm838_vm1, %v10962_v8, %v10961_v19  ;;  %v10968_v56 = vrot.slane %v10967_v44, 1  ;;  %v10970_v1 = vrot.slane %v10940_v36, 1  ;;  %v10971_v61 = vrot.slane %v10965_v37, 2 }
 0x105   : > { %10963 = vst [vmem:[#allocation49_spill] sm:$0xff] %v7232_v34  ;;  %v7234_v26 = vpack.c.bf16 %v945_v21, %v947_v0  ;;  %v10972_v21 = vrot.slane %v10967_v44, 2  ;;  %v10974_v0 = vrot.slane %v10940_v36, 2  ;;  %v10981_v44 = vrot.slane %v10953_v63, 1 }
 0x106   : > { %v653_v50 = vsel %vm549_vm0, %v10968_v56, %v10966_v20  ;;  %v10969_v38 = vmov %v10968_v56 }
 0x107   : > { %10964 = vst [vmem:[#allocation44_spill] sm:$0xff] %v7234_v26  ;;  %v655_v30 = vsel %vm549_vm0, %v10970_v1, %v10969_v38  ;;  %v942_v19 = vsel %vm838_vm1, %v10972_v21, %v10971_v61  ;;  %v10973_v8 = vmov %v10972_v21  ;;  %v10977_v38 = vrot.slane %v6689_v6, 1  ;;  %v10978_v1 = vld [vmem:[#allocation52_spill] sm:$0xff] }
 0x108   : > { %v944_v20 = vsel %vm838_vm1, %v10974_v0, %v10973_v8  ;;  %v7262_v56 = vpack.c.bf16 %v653_v50, %v655_v30  ;;  %v10979_v28 = vrot.slane %v10978_v1, 1  ;;  %v10983_v50 = vrot.slane %v6689_v6, 2 }
 0x109   : > { %v7264_v29 = vpack.c.bf16 %v942_v19, %v944_v20  ;;  %v10984_v30 = vrot.slane %v10978_v1, 2  ;;  %v10987_v20 = vrot.slane %v6723_v62, 1  ;;  %v10993_v1 = vrot.slane %v6723_v62, 2 }
 0x10a   : > { %10975 = vst [vmem:[#allocation55_spill] sm:$0xff] %v7262_v56  ;;  %v652_v39 = vsel %vm549_vm0, %v10979_v28, %v10977_v38  ;;  %v10980_v61 = vmov %v10979_v28  ;;  %v10986_v28 = vrot.slane %v10953_v63, 2 }
 0x10b   : > { %10976 = vst [vmem:[#allocation48_spill] sm:$0xff] %v7264_v29  ;;  %v654_v36 = vsel %vm549_vm0, %v10981_v44, %v10980_v61  ;;  %v941_v19 = vsel %vm838_vm1, %v10984_v30, %v10983_v50  ;;  %v10985_v8 = vmov %v10984_v30  ;;  %v10992_v50 = vrot.slane %v10965_v37, 1 }
 0x10c   : > { %v7278_v21 = vpack.c.bf16 %v652_v39, %v654_v36  ;;  %v943_v0 = vsel %vm838_vm1, %v10986_v28, %v10985_v8  ;;  %v10988_v39 = vld [vmem:[#allocation57_spill] sm:$0xff] }
 0x10d   : > { %v10989_v38 = vrot.slane %v10988_v39, 1  ;;  %v7298_v44 = vpack.c.bf16 %v941_v19, %v943_v0  ;;  %v10994_v30 = vrot.slane %v10988_v39, 2 }
 0x10e   : > { %10982 = vst [vmem:[#allocation52_spill] sm:$0xff] %v7278_v21 }
 0x10f   : > { %v649_v61 = vsel %vm549_vm0, %v10989_v38, %v10987_v20  ;;  %10990 = vst [vmem:[#allocation57_spill] sm:$0xff] %v7298_v44  ;;  %v10991_v36 = vmov %v10989_v38  ;;  %v938_v8 = vsel %vm838_vm1, %v10994_v30, %v10993_v1  ;;  %v10995_v28 = vmov %v10994_v30 }
 0x110   : > { %v651_v63 = vsel %vm549_vm0, %v10992_v50, %v10991_v36  ;;  %v10996_v20 = vrot.slane %v10965_v37, 2  ;;  %v10999_v36 = vrot.slane %v6739_v23, 1  ;;  %v11000_v50 = vld [vmem:[#allocation58_spill] sm:$0xff]  ;;  %v11003_v37 = vrot.slane %v6689_v6, 1 }
 0x111   : > { %v7318_v0 = vpack.c.bf16 %v649_v61, %v651_v63  ;;  %v11001_v35 = vrot.slane %v11000_v50, 1  ;;  %v11005_v63 = vrot.slane %v6739_v23, 2 }
 0x112   : > { %v940_v19 = vsel %vm838_vm1, %v10996_v20, %v10995_v28 }
 0x113   : > { %10997 = vst [vmem:[#allocation101_spill] sm:$0xff] %v7318_v0  ;;  %v7320_v38 = vpack.c.bf16 %v938_v8, %v940_v19  ;;  %v648_v1 = vsel %vm549_vm0, %v11001_v35, %v10999_v36  ;;  %v11002_v39 = vmov %v11001_v35  ;;  %v11006_v8 = vrot.slane %v11000_v50, 2 }
 0x114   : > { %v650_v30 = vsel %vm549_vm0, %v11003_v37, %v11002_v39  ;;  %v11008_v35 = vrot.slane %v6689_v6, 2  ;;  %v11009_v36 = vrot.slane %v6764_v18, 1  ;;  %v11010_v39 = vrot.slane %v6726_v27, 1  ;;  %v371_v37 = vld [vmem:[%s6246_s5 + $0x380] sm:$0xff] }
 0x115   : > { %10998 = vst [vmem:[#allocation102_spill] sm:$0xff] %v7320_v38  ;;  %v7334_v61 = vpack.c.bf16 %v648_v1, %v650_v30  ;;  %v937_v28 = vsel %vm838_vm1, %v11006_v8, %v11005_v63  ;;  %v11007_v20 = vmov %v11006_v8  ;;  %v373_v30 = vld [vmem:[%s6246_s5 + $0x390] sm:$0xff]  ;;  %v11013_v50 = vrot.slane %v6723_v62, 1 }
 0x116   : > { %v939_v19 = vsel %vm838_vm1, %v11008_v35, %v11007_v20  ;;  %v645_v1 = vsel %vm549_vm0, %v11010_v39, %v11009_v36  ;;  %v11012_v63 = vmov %v11010_v39  ;;  %v11014_v8 = vrot.slane %v6764_v18, 2 }
 0x117   : > { %11004 = vst [vmem:[#allocation58_spill] sm:$0xff] %v7334_v61  ;;  %v7356_v11 = vpack.c.bf16 %v937_v28, %v939_v19  ;;  %v647_v6 = vsel %vm549_vm0, %v11013_v50, %v11012_v63  ;;  %v11015_v20 = vrot.slane %v6726_v27, 2  ;;  %v11017_v39 = vrot.slane %v6723_v62, 2  ;;  %v11018_v19 = vld [vmem:[#allocation74_spill] sm:$0xff] }
 0x118   : > { %1785 = vmatmul.mubr.bf16.gmra.mrb[36].mxu0 %v11018_v19  ;;  %v378_v63 = vld [vmem:[%s6246_s5 + $0x3b8] sm:$0xff]  ;;  %v7380_v50 = vpack.c.bf16 %v645_v1, %v647_v6  ;;  %v11026_v6 = vrot.slane %v6785_v2, 2 }
 0x119   : > { %11011 = vst [vmem:[#allocation103_spill] sm:$0xff] %v7356_v11  ;;  %v934_v35 = vsel %vm838_vm1, %v11015_v20, %v11014_v8  ;;  %v11016_v36 = vmov %v11015_v20  ;;  %v11021_v11 = vrot.slane %v6785_v2, 1  ;;  %v11022_v8 = vld [vmem:[#allocation63_spill] sm:$0xff]  ;;  %1792 = vmatprep.mubr.bf16.mxu0 %v6902_v24  ;;  %v11034_v24 = vrot.slane %v6767_v7, 1  ;;  %v11046_v19 = vld [vmem:[#allocation70_spill] sm:$0xff] }
 0x11a   : > { %v936_v28 = vsel %vm838_vm1, %v11017_v39, %v11016_v36  ;;  %11019 = vst [vmem:[#allocation104_spill] sm:$0xff] %v7380_v50  ;;  %v11023_v20 = vrot.slane %v11022_v8, 1  ;;  %v11025_v36 = vrot.slane %v6739_v23, 1 }
 0x11b   : > { %v7382_v59 = vpack.c.bf16 %v934_v35, %v936_v28  ;;  %v11027_v35 = vrot.slane %v11022_v8, 2  ;;  %v11029_v28 = vrot.slane %v6739_v23, 2  ;;  %v11035_v8 = vmov %v11034_v24 }
 0x11c   : > { %v644_v62 = vsel %vm549_vm0, %v11023_v20, %v11021_v11  ;;  %v11024_v27 = vmov %v11023_v20  ;;  %v11036_v23 = vrot.slane %v6764_v18, 1 }
 0x11d   : > { %11020 = vst [vmem:[#allocation105_spill] sm:$0xff] %v7382_v59  ;;  %v646_v1 = vsel %vm549_vm0, %v11025_v36, %v11024_v27  ;;  %v933_v39 = vsel %vm838_vm1, %v11027_v35, %v11026_v6  ;;  %v11028_v11 = vmov %v11027_v35  ;;  %v11032_v36 = vld [vmem:[#allocation67_spill] sm:$0xff] }
 0x11e   : > { %v935_v20 = vsel %vm838_vm1, %v11029_v28, %v11028_v11  ;;  %v7410_v60 = vpack.c.bf16 %v644_v62, %v646_v1  ;;  %v11033_v9 = vrot.slane %v11032_v36, 1  ;;  %v643_v35 = vsel %vm549_vm0, %v11036_v23, %v11035_v8 }
 0x11f   : > { %v7412_v27 = vpack.c.bf16 %v933_v39, %v935_v20  ;;  %v11038_v62 = vrot.slane %v11032_v36, 2  ;;  %v11039_v1 = vrot.slane %v6767_v7, 2  ;;  %v11042_v20 = vld [vmem:[#allocation73_spill] sm:$0xff] }
 0x120   : > { %11030 = vst [vmem:[#allocation63_spill] sm:$0xff] %v7410_v60  ;;  %v641_v6 = vsel %vm549_vm0, %v11034_v24, %v11033_v9  ;;  %v11041_v24 = vrot.slane %v6764_v18, 2  ;;  %v11043_v8 = vrot.slane %v11042_v20, 1  ;;  %1793 = vmatmul.mubr.bf16.gmra.mrb[40].mxu0 %v6916_v47 }
 0x121   : > { %11031 = vst [vmem:[#allocation106_spill] sm:$0xff] %v7412_v27  ;;  %v7426_v11 = vpack.c.bf16 %v641_v6, %v643_v35  ;;  %v930_v39 = vsel %vm838_vm1, %v11039_v1, %v11038_v62  ;;  %v11040_v9 = vmov %v11039_v1  ;;  %v11044_v6 = vrot.slane %v6788_v13, 1 }
 0x122   : > { %v932_v28 = vsel %vm838_vm1, %v11041_v24, %v11040_v9  ;;  %v7446_v35 = vpack.c.bf16 %v373_v30, %v371_v37  ;;  %v7450_v62 = vpack.c.bf16 %v11046_v19, %v11032_v36  ;;  %v11050_v1 = vrot.slane %v6785_v2, 1  ;;  %v7465_v37 = vld [vmem:[%s6246_s5 + $0x228] sm:$0xff] }
 0x123   : > { %11037 = vst [vmem:[#allocation67_spill] sm:$0xff] %v7426_v11  ;;  %v640_v23 = vsel %vm549_vm0, %v11044_v6, %v11043_v8  ;;  %v7452_v7 = vpack.c.bf16 %v930_v39, %v932_v28  ;;  %v11049_v18 = vmov %v11044_v6  ;;  %v7460_v24 = vpack.c.bf16 %v378_v63, %v376_v5  ;;  %v375_v11 = vld [vmem:[%s6246_s5 + $0x3a0] sm:$0xff]  ;;  %v377_v8 = vld [vmem:[%s6246_s5 + $0x3b0] sm:$0xff]  ;;  %v380_v63 = vld [vmem:[%s6246_s5 + $0x3c8] sm:$0xff] }
 0x124   : > { %11045 = vst [vmem:[#allocation73_spill] sm:$0xff] %v7446_v35  ;;  %11047 = vst [vmem:[#allocation70_spill] sm:$0xff] %v7450_v62  ;;  %v642_v9 = vsel %vm549_vm0, %v11050_v1, %v11049_v18  ;;  %v11053_v6 = vrot.slane %v11042_v20, 2  ;;  %v11054_v39 = vrot.slane %v6788_v13, 2  ;;  %v11056_v27 = vrot.slane %v6785_v2, 2  ;;  %v382_v18 = vld [vmem:[%s6246_s5 + $0x3d8] sm:$0xff]  ;;  %1921 = vmatmul.mubr.bf16.gmra.mrb[40].mxu1 %v7446_v35  ;;  %1800 = vmatprep.mubr.bf16.mxu0 %v7450_v62 }
 0x125   : > { %11048 = vst [vmem:[#allocation107_spill] sm:$0xff] %v7452_v7  ;;  %11051 = vst [vmem:[#allocation108_spill] sm:$0xff] %v7460_v24  ;;  %v7467_v30 = vpack.c.bf16 %v640_v23, %v642_v9  ;;  %v7488_v23 = vld [vmem:[%s6246_s5 + $0x238] sm:$0xff]  ;;  %1928 = vmatprep.mubr.bf16.mxu1 %v7460_v24  ;;  %v7495_v2 = vpack.c.bf16 %v6834_v40, %v11042_v20  ;;  %v7497_v13 = vpack.c.bf16 %v377_v8, %v375_v11 }
 0x126   : > { %v929_v28 = vsel %vm838_vm1, %v11054_v39, %v11053_v6  ;;  %v11055_v7 = vmov %v11054_v39  ;;  %v11065_v8 = vrot.slane %v11032_v36, 1  ;;  %v11069_v35 = vrot.slane %v11032_v36, 2 }
 0x127   : > { %11052 = vst [vmem:[#allocation109_spill] sm:$0xff] %v7467_v30  ;;  %v931_v5 = vsel %vm838_vm1, %v11056_v27, %v11055_v7  ;;  %11058 = vst [vmem:[#allocation111_spill] sm:$0xff] %v7495_v2  ;;  %v7501_v27 = vpack.c.bf16 %v6854_v12, %v6847_v49  ;;  %v7503_v7 = vpack.c.bf16 %v382_v18, %v380_v63  ;;  %v11066_v63 = vrot.slane %v6847_v49, 2 }
 0x128   : > { %v7483_v1 = vpack.c.bf16 %v929_v28, %v931_v5  ;;  %11059 = vst [vmem:[#allocation112_spill] sm:$0xff] %v7497_v13  ;;  %v11062_v28 = vrot.slane %v6847_v49, 1  ;;  %v11063_v5 = vrot.slane %v11046_v19, 1  ;;  %v11067_v18 = vrot.slane %v11046_v19, 2  ;;  %1801 = vmatmul.mubr.bf16.gmra.mrb[44].mxu0 %v7495_v2 }
 0x129   : > { %11060 = vst [vmem:[#allocation113_spill] sm:$0xff] %v7501_v27  ;;  %11061 = vst [vmem:[#allocation114_spill] sm:$0xff] %v7503_v7  ;;  %v11075_v19 = vrot.slane %v11042_v20, 1  ;;  %1808 = vmatprep.mubr.bf16.mxu0 %v7501_v27  ;;  %v11094_v27 = vrot.slane %v6854_v12, 2  ;;  %v11096_v2 = vrot.slane %v6847_v49, 2 }
 0x12a   : > { %11057 = vst [vmem:[#allocation110_spill] sm:$0xff] %v7483_v1  ;;  %v637_v9 = vsel %vm549_vm0, %v11063_v5, %v11062_v28  ;;  %v11064_v11 = vmov %v11063_v5  ;;  %v926_v6 = vsel %vm838_vm1, %v11067_v18, %v11066_v63  ;;  %v11068_v39 = vmov %v11067_v18  ;;  %v379_v18 = vld [vmem:[%s6246_s5 + $0x3c0] sm:$0xff] }
 0x12b   : > { %v639_v24 = vsel %vm549_vm0, %v11065_v8, %v11064_v11  ;;  %v928_v28 = vsel %vm838_vm1, %v11069_v35, %v11068_v39  ;;  %v11072_v11 = vrot.slane %v6870_v55, 1  ;;  %v11073_v8 = vrot.slane %v6834_v40, 1  ;;  %v381_v35 = vld [vmem:[%s6246_s5 + $0x3d0] sm:$0xff] }
 0x12c   : > { %v7531_v5 = vpack.c.bf16 %v637_v9, %v639_v24  ;;  %v7533_v62 = vpack.c.bf16 %v926_v6, %v928_v28  ;;  %v384_v24 = vld [vmem:[%s6246_s5 + $0x3e8] sm:$0xff]  ;;  %v386_v9 = vld [vmem:[%s6246_s5 + $0x3f8] sm:$0xff]  ;;  %v11077_v39 = vrot.slane %v6870_v55, 2  ;;  %v11078_v28 = vrot.slane %v6834_v40, 2  ;;  %1929 = vmatmul.mubr.bf16.gmra.mrb[44].mxu1 %v7497_v13 }
 0x12d   : > { %v636_v47 = vsel %vm549_vm0, %v11073_v8, %v11072_v11  ;;  %v11074_v63 = vmov %v11073_v8  ;;  %1936 = vmatprep.mubr.bf16.mxu1 %v7503_v7  ;;  %v11092_v13 = vrot.slane %v6847_v49, 1  ;;  %v11102_v49 = vrot.slane %v6870_v55, 1 }
 0x12e   : > { %11070 = vst [vmem:[#allocation115_spill] sm:$0xff] %v7531_v5  ;;  %11071 = vst [vmem:[#allocation116_spill] sm:$0xff] %v7533_v62  ;;  %v638_v36 = vsel %vm549_vm0, %v11075_v19, %v11074_v63  ;;  %v925_v11 = vsel %vm838_vm1, %v11078_v28, %v11077_v39  ;;  %v11079_v8 = vmov %v11078_v28  ;;  %v11080_v62 = vrot.slane %v11042_v20, 2 }
 0x12f   : > { %v7551_v6 = vpack.c.bf16 %v636_v47, %v638_v36  ;;  %v11082_v47 = vld [vmem:[#allocation76_spill] sm:$0xff]  ;;  %v7575_v20 = vpack.c.bf16 %v381_v35, %v379_v18  ;;  %v11085_v36 = vld [vmem:[#allocation78_spill] sm:$0xff]  ;;  %v7581_v28 = vpack.c.bf16 %v386_v9, %v384_v24  ;;  %v11095_v9 = vmov %v11094_v27 }
 0x130   : > { %v927_v63 = vsel %vm838_vm1, %v11080_v62, %v11079_v8  ;;  %v7573_v40 = vpack.c.bf16 %v11082_v47, %v6870_v55  ;;  %v11086_v62 = vld [vmem:[#allocation80_spill] sm:$0xff]  ;;  %v11090_v8 = vrot.slane %v6854_v12, 1  ;;  %v11093_v35 = vrot.slane %v11085_v36, 2 }
 0x131   : > { %11076 = vst [vmem:[#allocation117_spill] sm:$0xff] %v7551_v6  ;;  %v7565_v19 = vpack.c.bf16 %v925_v11, %v927_v63  ;;  %11084 = vst [vmem:[#allocation119_spill] sm:$0xff] %v7575_v20  ;;  %v7579_v39 = vpack.c.bf16 %v11086_v62, %v11085_v36  ;;  %v11089_v11 = vrot.slane %v11085_v36, 1  ;;  %v11100_v5 = vrot.slane %v11082_v47, 1 }
 0x132   : > { %11083 = vst [vmem:[#allocation76_spill] sm:$0xff] %v7573_v40  ;;  %11088 = vst [vmem:[#allocation80_spill] sm:$0xff] %v7581_v28  ;;  %v11091_v7 = vmov %v11090_v8  ;;  %v922_v24 = vsel %vm838_vm1, %v11094_v27, %v11093_v35  ;;  %v388_v35 = vld [vmem:[%s6246_s5 + $0x408] sm:$0xff]  ;;  %1809 = vmatmul.mubr.bf16.gmra.mrb[48].mxu0 %v7573_v40  ;;  %v11121_v40 = vrot.slane %v11085_v36, 2 }
 0x133   : > { %11081 = vst [vmem:[#allocation118_spill] sm:$0xff] %v7565_v19  ;;  %11087 = vst [vmem:[#allocation78_spill] sm:$0xff] %v7579_v39  ;;  %v633_v63 = vsel %vm549_vm0, %v11090_v8, %v11089_v11  ;;  %v635_v18 = vsel %vm549_vm0, %v11092_v13, %v11091_v7  ;;  %v924_v11 = vsel %vm838_vm1, %v11096_v2, %v11095_v9  ;;  %v383_v8 = vld [vmem:[%s6246_s5 + $0x3e0] sm:$0xff]  ;;  %v385_v19 = vld [vmem:[%s6246_s5 + $0x3f0] sm:$0xff]  ;;  %v11099_v7 = vrot.slane %v6909_v10, 1 }
 0x134   : > { %v7609_v6 = vpack.c.bf16 %v633_v63, %v635_v18  ;;  %v7611_v13 = vpack.c.bf16 %v922_v24, %v924_v11  ;;  %v11101_v12 = vmov %v11100_v5  ;;  %v390_v9 = vld [vmem:[%s6246_s5 + $0x418] sm:$0xff]  ;;  %v11104_v18 = vrot.slane %v6909_v10, 2  ;;  %1937 = vmatmul.mubr.bf16.gmra.mrb[48].mxu1 %v7575_v20  ;;  %1816 = vmatprep.mubr.bf16.mxu0 %v7579_v39 }
 0x135   : > { %v632_v27 = vsel %vm549_vm0, %v11100_v5, %v11099_v7  ;;  %v634_v2 = vsel %vm549_vm0, %v11102_v49, %v11101_v12  ;;  %v11105_v24 = vrot.slane %v11082_v47, 2  ;;  %v11107_v7 = vrot.slane %v6870_v55, 2  ;;  %v7647_v12 = vld [vmem:[%s6246_s5 + $0x220] sm:$0xff]  ;;  %1944 = vmatprep.mubr.bf16.mxu1 %v7581_v28 }
 0x136   : > { %11097 = vst [vmem:[#allocation120_spill] sm:$0xff] %v7609_v6  ;;  %11098 = vst [vmem:[#allocation121_spill] sm:$0xff] %v7611_v13  ;;  %v7627_v63 = vpack.c.bf16 %v632_v27, %v634_v2  ;;  %v765_v27 = vrot.slane %v7488_v23, 2  ;;  %v11109_v55 = vld [vmem:[#allocation83_spill] sm:$0xff]  ;;  %v7659_v49 = vpack.c.bf16 %v6941_v32, %v6922_v54  ;;  %v7661_v2 = vpack.c.bf16 %v390_v9, %v388_v35 }
 0x137   : > { %v921_v11 = vsel %vm838_vm1, %v11105_v24, %v11104_v18  ;;  %v11106_v5 = vmov %v11105_v24  ;;  %v7653_v47 = vpack.c.bf16 %v11109_v55, %v6909_v10  ;;  %v471_v18 = vrot.slane %v7647_v12, 1 }
 0x138   : > { %11103 = vst [vmem:[#allocation122_spill] sm:$0xff] %v7627_v63  ;;  %v923_v13 = vsel %vm838_vm1, %v11107_v7, %v11106_v5  ;;  %11112 = vst [vmem:[#allocation125_spill] sm:$0xff] %v7659_v49  ;;  %v762_v24 = vrot.slane %v7647_v12, 2  ;;  %v11115_v5 = vrot.slane %v11086_v62, 1  ;;  %v11118_v35 = vrot.slane %v6922_v54, 2 }
 0x139   : > { %v7641_v6 = vpack.c.bf16 %v921_v11, %v923_v13  ;;  %11110 = vst [vmem:[#allocation83_spill] sm:$0xff] %v7653_v47  ;;  %v7655_v13 = vpack.c.bf16 %v385_v19, %v383_v8  ;;  %11113 = vst [vmem:[#allocation126_spill] sm:$0xff] %v7661_v2  ;;  %v11114_v11 = vrot.slane %v6922_v54, 1  ;;  %v11117_v8 = vrot.slane %v11085_v36, 1 }
 0x13a   : > { %v11116_v19 = vmov %v11115_v5  ;;  %v11119_v9 = vrot.slane %v11086_v62, 2  ;;  %v11127_v62 = vrot.slane %v6909_v10, 1  ;;  %1817 = vmatmul.mubr.bf16.gmra.mrb[52].mxu0 %v7653_v47 }
 0x13b   : > { %11108 = vst [vmem:[#allocation123_spill] sm:$0xff] %v7641_v6  ;;  %11111 = vst [vmem:[#allocation124_spill] sm:$0xff] %v7655_v13  ;;  %v629_v7 = vsel %vm549_vm0, %v11115_v5, %v11114_v11  ;;  %v631_v28 = vsel %vm549_vm0, %v11117_v8, %v11116_v19  ;;  %v11124_v19 = vrot.slane %v6979_v3, 1  ;;  %v11125_v8 = vrot.slane %v11109_v55, 1  ;;  %1824 = vmatprep.mubr.bf16.mxu0 %v7659_v49 }
 0x13c   : > { %v918_v20 = vsel %vm838_vm1, %v11119_v9, %v11118_v35  ;;  %v11120_v39 = vmov %v11119_v9  ;;  %v7689_v5 = vpack.c.bf16 %v629_v7, %v631_v28  ;;  %v7706_v9 = vld [vmem:[%s6246_s5 + $0x400] sm:$0xff]  ;;  %v11129_v7 = vrot.slane %v6979_v3, 2  ;;  %1945 = vmatmul.mubr.bf16.gmra.mrb[52].mxu1 %v7655_v13 }
 0x13d   : > { %v920_v11 = vsel %vm838_vm1, %v11121_v40, %v11120_v39  ;;  %v628_v63 = vsel %vm549_vm0, %v11125_v8, %v11124_v19  ;;  %v11126_v35 = vmov %v11125_v8  ;;  %v389_v40 = vld [vmem:[%s6246_s5 + $0x410] sm:$0xff]  ;;  %v392_v39 = vld [vmem:[%s6246_s5 + $0x428] sm:$0xff]  ;;  %1952 = vmatprep.mubr.bf16.mxu1 %v7661_v2  ;;  %v11143_v2 = vrot.slane %v6941_v32, 2 }
 0x13e   : > { %11122 = vst [vmem:[#allocation127_spill] sm:$0xff] %v7689_v5  ;;  %v7691_v6 = vpack.c.bf16 %v918_v20, %v920_v11  ;;  %v630_v36 = vsel %vm549_vm0, %v11127_v62, %v11126_v35  ;;  %v394_v20 = vld [vmem:[%s6246_s5 + $0x438] sm:$0xff]  ;;  %v11130_v11 = vrot.slane %v11109_v55, 2  ;;  %v11145_v13 = vrot.slane %v6922_v54, 2 }
 0x13f   : > { %v7711_v28 = vpack.c.bf16 %v628_v63, %v630_v36  ;;  %v7733_v63 = vpack.c.bf16 %v6996_v51, %v6979_v3  ;;  %v7742_v55 = vpack.c.bf16 %v394_v20, %v392_v39  ;;  %v11138_v36 = vrot.slane %v7465_v37, 1 }
 0x140   : > { %11123 = vst [vmem:[#allocation128_spill] sm:$0xff] %v7691_v6  ;;  %v917_v19 = vsel %vm838_vm1, %v11130_v11, %v11129_v7  ;;  %v11131_v8 = vmov %v11130_v11  ;;  %v11132_v6 = vrot.slane %v6909_v10, 2  ;;  %v7736_v10 = vpack.c.bf16 %v389_v40, %v7706_v9 }
 0x141   : > { %11128 = vst [vmem:[#allocation129_spill] sm:$0xff] %v7711_v28  ;;  %11134 = vst [vmem:[#allocation131_spill] sm:$0xff] %v7733_v63  ;;  %v11139_v7 = vrot.slane %v6941_v32, 1  ;;  %v11144_v20 = vmov %v11143_v2  ;;  %v7784_v32 = vld [vmem:[%s6246_s5 + $0x420] sm:$0xff] }
 0x142   : > { %v919_v35 = vsel %vm838_vm1, %v11132_v6, %v11131_v8  ;;  %11135 = vst [vmem:[#allocation132_spill] sm:$0xff] %v7736_v10  ;;  %v7740_v6 = vpack.c.bf16 %v7488_v23, %v7465_v37  ;;  %11137 = vst [vmem:[#allocation134_spill] sm:$0xff] %v7742_v55  ;;  %v11141_v8 = vrot.slane %v6922_v54, 1  ;;  %1825 = vmatmul.mubr.bf16.gmra.mrb[56].mxu0 %v7733_v63 }
 0x143   : > { %v7725_v62 = vpack.c.bf16 %v917_v19, %v919_v35  ;;  %v625_v11 = vsel %vm549_vm0, %v11139_v7, %v11138_v36  ;;  %v11140_v19 = vmov %v11139_v7  ;;  %v11142_v35 = vrot.slane %v7465_v37, 2  ;;  %v329_v7 = vld [vmem:[%s6246_s5 + $0x230] sm:$0xff] }
 0x144   : > { %11136 = vst [vmem:[#allocation133_spill] sm:$0xff] %v7740_v6  ;;  %v627_v40 = vsel %vm549_vm0, %v11141_v8, %v11140_v19  ;;  %v916_v36 = vsel %vm838_vm1, %v11145_v13, %v11144_v20  ;;  %v11148_v19 = vrot.slane %v6996_v51, 1  ;;  %v393_v13 = vld [vmem:[%s6246_s5 + $0x430] sm:$0xff]  ;;  %v11154_v20 = vrot.slane %v6979_v3, 2  ;;  %1953 = vmatmul.mubr.bf16.gmra.mrb[56].mxu1 %v7736_v10  ;;  %1832 = vmatprep.mubr.bf16.mxu0 %v7740_v6 }
 0x145   : > { %11133 = vst [vmem:[#allocation130_spill] sm:$0xff] %v7725_v62  ;;  %v914_v39 = vsel %vm838_vm1, %v11143_v2, %v11142_v35  ;;  %v7769_v49 = vpack.c.bf16 %v625_v11, %v627_v40  ;;  %v11150_v2 = vrot.slane %v6979_v3, 1  ;;  %v11152_v11 = vrot.slane %v6996_v51, 2  ;;  %1960 = vmatprep.mubr.bf16.mxu1 %v7742_v55 }
 0x146   : > { %v7771_v47 = vpack.c.bf16 %v914_v39, %v916_v36  ;;  %v624_v8 = vsel %vm549_vm0, %v11148_v19, %v471_v18  ;;  %v11149_v62 = vmov %v11148_v19  ;;  %v7806_v51 = vpack.c.bf16 %v329_v7, %v7647_v12 }
 0x147   : > { %11146 = vst [vmem:[#allocation135_spill] sm:$0xff] %v7769_v49  ;;  %v626_v54 = vsel %vm549_vm0, %v11150_v2, %v11149_v62  ;;  %v913_v40 = vsel %vm838_vm1, %v11152_v11, %v762_v24  ;;  %v11153_v39 = vmov %v11152_v11  ;;  %v473_v62 = vrot.slane %v329_v7, 1  ;;  %v11158_v2 = vld [vmem:[#allocation13_spill] sm:$0xff] }
 0x148   : > { %11147 = vst [vmem:[#allocation136_spill] sm:$0xff] %v7771_v47  ;;  %v7787_v35 = vpack.c.bf16 %v624_v8, %v626_v54  ;;  %v915_v36 = vsel %vm838_vm1, %v11154_v20, %v11153_v39  ;;  %v764_v8 = vrot.slane %v329_v7, 2  ;;  %11156 = vst [vmem:[#allocation139_spill] sm:$0xff] %v7806_v51  ;;  %v7809_v3 = vpack.c.bf16 %v393_v13, %v7784_v32 }
 0x149   : > { %v7799_v19 = vpack.c.bf16 %v913_v40, %v915_v36  ;;  %v11159_v54 = vrot.slane %v11158_v2, 1  ;;  %v11160_v11 = vrot.slane %v7488_v23, 1  ;;  %v11162_v20 = vrot.slane %v7465_v37, 1  ;;  %v11167_v23 = vld [vmem:[#allocation17_spill] sm:$0xff] }
 0x14a   : > { %11151 = vst [vmem:[#allocation137_spill] sm:$0xff] %v7787_v35  ;;  %11157 = vst [vmem:[#allocation140_spill] sm:$0xff] %v7809_v3  ;;  %v11163_v12 = vrot.slane %v11158_v2, 2  ;;  %v11164_v13 = vrot.slane %v7465_v37, 2  ;;  %v11170_v37 = vrot.slane %v11167_v23, 2  ;;  %1833 = vmatmul.mubr.bf16.gmra.mrb[60].mxu0 %v7806_v51  ;;  %v5685_v51 = vld [vmem:[#allocation5 + $0x80] sm:$0xff]  }
 0x14b   : > { %11155 = vst [vmem:[#allocation138_spill] sm:$0xff] %v7799_v19  ;;  %v621_v40 = vsel %vm549_vm0, %v11160_v11, %v11159_v54  ;;  %v11161_v39 = vmov %v11160_v11  ;;  %v11168_v11 = vrot.slane %v11167_v23, 1 }
 0x14c   : > { %v623_v36 = vsel %vm549_vm0, %v11162_v20, %v11161_v39  ;;  %v910_v7 = vsel %vm838_vm1, %v765_v27, %v11163_v12  ;;  %v912_v55 = vsel %vm838_vm1, %v11164_v13, %v765_v27  ;;  %v622_v20 = vsel %vm549_vm0, %v471_v18, %v473_v62  ;;  %1961 = vmatmul.mubr.bf16.gmra.mrb[60].mxu1 %v7809_v3  ;;  %v5782_v18 = vld [vmem:[%s6246_s5 + $0x250] sm:$0xff] }
 0x14d   : > { %v7831_v10 = vpack.c.bf16 %v621_v40, %v623_v36  ;;  %v7833_v54 = vpack.c.bf16 %v910_v7, %v912_v55  ;;  %v620_v39 = vsel %vm549_vm0, %v473_v62, %v11168_v11  ;;  %v909_v27 = vsel %vm838_vm1, %v764_v8, %v11170_v37  ;;  %v5780_v36 = vld [vmem:[%s6246_s5 + $0x258] sm:$0xff]  ;;  %v5781_v11 = vld [vmem:[%s6246_s5 + $0x268] sm:$0xff] }
 0x14e   : > { %v7841_v12 = vpack.c.bf16 %v620_v39, %v622_v20  ;;  %v911_v55 = vsel %vm838_vm1, %v762_v24, %v764_v8  ;;  %v478_v7 = vrot.slane %v5780_v36, 1  ;;  %v769_v13 = vrot.slane %v5780_v36, 2  ;;  %v5783_v39 = vld [vmem:[%s6246_s5 + $0x260] sm:$0xff]  ;;  %v11172_v37 = vld [vmem:[#allocation29_spill] sm:$0xff] }
 0x14f   : > { %11165 = vst [vmem:[#allocation13_spill] sm:$0xff] %v7831_v10  ;;  %11166 = vst [vmem:[#allocation141_spill] sm:$0xff] %v7833_v54  ;;  %v7849_v40 = vpack.c.bf16 %v909_v27, %v911_v55  ;;  %v480_v6 = vrot.slane %v5781_v11, 1  ;;  %v771_v63 = vrot.slane %v5781_v11, 2  ;;  %v477_v62 = vrot.slane %v5782_v18, 1  ;;  %2001 = vmatprep.mubr.bf16.mxu1 %v11172_v37  ;;  %v5790_v10 = vld [vmem:[%s6246_s5 + $0x290] sm:$0xff] }
 0x150   : > { %11169 = vst [vmem:[#allocation17_spill] sm:$0xff] %v7841_v12  ;;  %v479_v20 = vrot.slane %v5783_v39, 1  ;;  %v11173_v12 = vld [vmem:[#allocation36_spill] sm:$0xff]  ;;  %v768_v24 = vrot.slane %v5782_v18, 2  ;;  %v770_v8 = vrot.slane %v5783_v39, 2  ;;  %v11174_v55 = vrot.slane %v11158_v2, 1 }
 0x151   : > { %11171 = vst [vmem:[#allocation142_spill] sm:$0xff] %v7849_v40  ;;  %2290 = vmatprep.mubr.bf16.mxu0 %v11173_v12  ;;  %v617_v27 = vsel %vm549_vm0, %v478_v7, %v480_v6  ;;  %v906_v11 = vsel %vm838_vm1, %v769_v13, %v771_v63  ;;  %v11175_v3 = vrot.slane %v11158_v2, 2  ;;  %v5684_v18 = vld [vmem:[#allocation5] sm:$0xff]   ;;  %v485_v19 = vrot.slane %v5790_v10, 1 }
 0x152   : > { %v619_v36 = vsel %vm549_vm0, %v11174_v55, %v478_v7  ;;  %v616_v40 = vsel %vm549_vm0, %v477_v62, %v479_v20  ;;  %v11178_v7 = vrot.slane %v11167_v23, 1 }
 0x153   : > { %v908_v12 = vsel %vm838_vm1, %v11175_v3, %v769_v13  ;;  %v7871_v39 = vpack.c.bf16 %v617_v27, %v619_v36  ;;  %v905_v3 = vsel %vm838_vm1, %v768_v24, %v770_v8  ;;  %v11180_v13 = vrot.slane %v11167_v23, 2  ;;  %v5784_v36 = vld [vmem:[%s6246_s5 + $0x278] sm:$0xff] }
 0x154   : > { %v7873_v37 = vpack.c.bf16 %v906_v11, %v908_v12  ;;  %v618_v55 = vsel %vm549_vm0, %v11178_v7, %v477_v62  ;;  %v482_v11 = vrot.slane %v5784_v36, 1  ;;  %v11182_v62 = vld [vmem:[#allocation45_spill] sm:$0xff]  ;;  %v11183_v7 = vld [vmem:[#allocation47_spill] sm:$0xff] }
 0x155   : > { %11176 = vst [vmem:[#allocation143_spill] sm:$0xff] %v7871_v39  ;;  %v7881_v2 = vpack.c.bf16 %v616_v40, %v618_v55  ;;  %v907_v12 = vsel %vm838_vm1, %v11180_v13, %v768_v24  ;;  %v7893_v39 = vld [vmem:[%s6246_s5 + $0x288] sm:$0xff]  ;;  %2002 = vmatmul.mubr.bf16.vlgmr.msra.gmra.mrb[64].mxu1 %v11182_v62  ;;  %2291 = vmatmul.mubr.bf16.vlgmr.msra.gmra.mrb[64].mxu0 %v11183_v7  ;;  %v5786_v55 = vld [vmem:[%s6246_s5 + $0x270] sm:$0xff] }
 0x156   : > { %11177 = vst [vmem:[#allocation144_spill] sm:$0xff] %v7873_v37  ;;  %v7889_v27 = vpack.c.bf16 %v905_v3, %v907_v12  ;;  %v773_v37 = vrot.slane %v5784_v36, 2  ;;  %v484_v54 = vrot.slane %v7893_v39, 1  ;;  %v775_v40 = vrot.slane %v7893_v39, 2  ;;  %2836 = vmatpush1.bf16.msra.mxu1 %v5684_v18  ;;  %3125 = vmatpush1.bf16.msra.mxu0 %v5685_v51  ;;  %v5686_v3 = vld [vmem:[#allocation5 + $0x8] sm:$0xff]   ;;  %v11185_v39 = vld [vmem:[#allocation66_spill] sm:$0xff] }
 0x157   : > { %11179 = vst [vmem:[#allocation145_spill] sm:$0xff] %v7881_v2  ;;  %v481_v23 = vrot.slane %v5786_v55, 1  ;;  %v7901_v2 = vld [vmem:[%s6246_s5 + $0x280] sm:$0xff]  ;;  %v5687_v13 = vld [vmem:[#allocation5 + $0x88] sm:$0xff]   ;;  %v772_v12 = vrot.slane %v5786_v55, 2  ;;  %2298 = vmatprep.mubr.bf16.mxu0 %v11185_v39  ;;  %2837 = vmatprep.subr.bf16.mxu1 %v10794_v58  ;;  %v615_v18 = vsel %vm549_vm0, %v480_v6, %v482_v11  ;;  %v5688_v6 = vld [vmem:[#allocation5 + $0x10] sm:$0xff]  }
 0x158   : > { %11181 = vst [vmem:[#allocation146_spill] sm:$0xff] %v7889_v27  ;;  %v483_v24 = vrot.slane %v7901_v2, 1  ;;  %v774_v36 = vrot.slane %v7901_v2, 2  ;;  %v11184_v27 = vld [vmem:[#allocation59_spill] sm:$0xff]  ;;  %3126 = vmatprep.subr.bf16.mxu0 %v10794_v58  ;;  %v613_v7 = vsel %vm549_vm0, %v482_v11, %v484_v54  ;;  %v902_v51 = vsel %vm838_vm1, %v773_v37, %v775_v40  ;;  %v5689_v11 = vld [vmem:[#allocation5 + $0x90] sm:$0xff]   ;;  %v7937_v62 = vld [vmem:[%s6246_s5 + $0x2a8] sm:$0xff] }
 0x159   : > { %2009 = vmatprep.mubr.bf16.mxu1 %v11184_v27  ;;  %v904_v2 = vsel %vm838_vm1, %v771_v63, %v773_v37  ;;  %v7917_v55 = vpack.c.bf16 %v613_v7, %v615_v18  ;;  %v614_v63 = vsel %vm549_vm0, %v479_v20, %v481_v23  ;;  %v903_v7 = vsel %vm838_vm1, %v770_v8, %v772_v12  ;;  %v5788_v18 = vld [vmem:[%s6246_s5 + $0x298] sm:$0xff]  ;;  %v7945_v8 = vld [vmem:[%s6246_s5 + $0x2a0] sm:$0xff] }
 0x15a   : > { %2838 = vmatpush1.bf16.msra.mxu1 %v5686_v3  ;;  %3127 = vmatpush1.bf16.msra.mxu0 %v5687_v13  ;;  %v7919_v39 = vpack.c.bf16 %v902_v51, %v904_v2  ;;  %v612_v27 = vsel %vm549_vm0, %v481_v23, %v483_v24  ;;  %v901_v37 = vsel %vm838_vm1, %v772_v12, %v774_v36  ;;  %v486_v51 = vrot.slane %v5788_v18, 1  ;;  %v11190_v20 = vld [vmem:[#allocation75_spill] sm:$0xff]  ;;  %v11191_v23 = vld [vmem:[#allocation77_spill] sm:$0xff]  ;;  %v11192_v12 = vld [vmem:[#allocation86_spill] sm:$0xff] }
 0x15b   : > { %11186 = vst [vmem:[#allocation147_spill] sm:$0xff] %v7917_v55  ;;  %2839 = vmatprep.subr.bf16.mxu1 %v10794_v58  ;;  %3128 = vmatprep.subr.bf16.mxu0 %v10794_v58  ;;  %v7931_v3 = vpack.c.bf16 %v612_v27, %v614_v63  ;;  %v7933_v13 = vpack.c.bf16 %v901_v37, %v903_v7  ;;  %v777_v2 = vrot.slane %v5788_v18, 2  ;;  %v779_v55 = vrot.slane %v7937_v62, 2  ;;  %v5691_v7 = vld [vmem:[#allocation5 + $0x98] sm:$0xff]  }
 0x15c   : > { %11187 = vst [vmem:[#allocation148_spill] sm:$0xff] %v7919_v39  ;;  %v488_v39 = vrot.slane %v7937_v62, 1  ;;  %v487_v27 = vrot.slane %v7945_v8, 1  ;;  %v776_v63 = vrot.slane %v5790_v10, 2  ;;  %v778_v37 = vrot.slane %v7945_v8, 2  ;;  %v5690_v62 = vld [vmem:[#allocation5 + $0x18] sm:$0xff]  }
 0x15d   : > { %11188 = vst [vmem:[#allocation149_spill] sm:$0xff] %v7931_v3  ;;  %11189 = vst [vmem:[#allocation150_spill] sm:$0xff] %v7933_v13  ;;  %2010 = vmatmul.mubr.bf16.gmra.mrb[68].mxu1 %v11190_v20  ;;  %2299 = vmatmul.mubr.bf16.gmra.mrb[68].mxu0 %v11191_v23  ;;  %v611_v23 = vsel %vm549_vm0, %v484_v54, %v486_v51  ;;  %v900_v10 = vsel %vm838_vm1, %v775_v40, %v777_v2  ;;  %v5692_v54 = vld [vmem:[#allocation5 + $0x20] sm:$0xff]  }
 0x15e   : > { %2017 = vmatprep.mubr.bf16.mxu1 %v6944_v41  ;;  %2306 = vmatprep.mubr.bf16.mxu0 %v11192_v12  ;;  %v609_v18 = vsel %vm549_vm0, %v486_v51, %v488_v39  ;;  %v898_v12 = vsel %vm838_vm1, %v777_v2, %v779_v55  ;;  %v608_v8 = vsel %vm549_vm0, %v485_v19, %v487_v27  ;;  %v5693_v51 = vld [vmem:[#allocation5 + $0xa0] sm:$0xff]  }
 0x15f   : > { %2840 = vmatpush1.bf16.msra.mxu1 %v5688_v6  ;;  %3129 = vmatpush1.bf16.msra.mxu0 %v5689_v11  ;;  %v7961_v6 = vpack.c.bf16 %v609_v18, %v611_v23  ;;  %v7963_v11 = vpack.c.bf16 %v898_v12, %v900_v10  ;;  %v610_v41 = vsel %vm549_vm0, %v483_v24, %v485_v19  ;;  %v5792_v19 = vld [vmem:[%s6246_s5 + $0x2b8] sm:$0xff]  ;;  %v7989_v18 = vld [vmem:[%s6246_s5 + $0x2c0] sm:$0xff] }
 0x160   : > { %2841 = vmatprep.subr.bf16.mxu1 %v10794_v58  ;;  %3130 = vmatprep.subr.bf16.mxu0 %v10794_v58  ;;  %v7969_v20 = vpack.c.bf16 %v608_v8, %v610_v41  ;;  %v897_v40 = vsel %vm838_vm1, %v776_v63, %v778_v37  ;;  %v899_v2 = vsel %vm838_vm1, %v774_v36, %v776_v63  ;;  %v490_v24 = vrot.slane %v5792_v19, 1  ;;  %v5794_v36 = vld [vmem:[%s6246_s5 + $0x2b0] sm:$0xff] }
 0x161   : > { %11193 = vst [vmem:[#allocation151_spill] sm:$0xff] %v7961_v6  ;;  %11194 = vst [vmem:[#allocation152_spill] sm:$0xff] %v7963_v11  ;;  %v7977_v23 = vpack.c.bf16 %v897_v40, %v899_v2  ;;  %v781_v12 = vrot.slane %v5792_v19, 2  ;;  %v489_v63 = vrot.slane %v5794_v36, 1  ;;  %v491_v10 = vrot.slane %v7989_v18, 1  ;;  %v5694_v2 = vld [vmem:[#allocation5 + $0x28] sm:$0xff]  }
 0x162   : > { %11195 = vst [vmem:[#allocation153_spill] sm:$0xff] %v7969_v20  ;;  %v780_v8 = vrot.slane %v5794_v36, 2  ;;  %v782_v40 = vrot.slane %v7989_v18, 2  ;;  %v5695_v19 = vld [vmem:[#allocation5 + $0xa8] sm:$0xff]  }
 0x163   : > { %2842 = vmatpush1.bf16.msra.mxu1 %v5690_v62  ;;  %3131 = vmatpush1.bf16.msra.mxu0 %v5691_v7  ;;  %11196 = vst [vmem:[#allocation154_spill] sm:$0xff] %v7977_v23  ;;  %v7981_v62 = vld [vmem:[%s6246_s5 + $0x2c8] sm:$0xff]  ;;  %v604_v18 = vsel %vm549_vm0, %v489_v63, %v491_v10 }
 0x164   : > { %2843 = vmatprep.subr.bf16.mxu1 %v10794_v58  ;;  %3132 = vmatprep.subr.bf16.mxu0 %v10794_v58  ;;  %v492_v41 = vrot.slane %v7981_v62, 1  ;;  %v783_v7 = vrot.slane %v7981_v62, 2 }
 0x165   : > { %2018 = vmatmul.mubr.bf16.gmra.mrb[72].mxu1 %v6981_v57  ;;  %2307 = vmatmul.mubr.bf16.gmra.mrb[72].mxu0 %v6999_v4  ;;  %v607_v4 = vsel %vm549_vm0, %v488_v39, %v490_v24  ;;  %v5696_v39 = vld [vmem:[#allocation5 + $0x30] sm:$0xff]  }
 0x166   : > { %2025 = vmatprep.mubr.bf16.mxu1 %v7016_v52  ;;  %2314 = vmatprep.mubr.bf16.mxu0 %v7030_v25  ;;  %v605_v62 = vsel %vm549_vm0, %v490_v24, %v492_v41  ;;  %v894_v25 = vsel %vm838_vm1, %v781_v12, %v783_v7  ;;  %v606_v52 = vsel %vm549_vm0, %v487_v27, %v489_v63  ;;  %v5697_v24 = vld [vmem:[#allocation5 + $0xb0] sm:$0xff]   ;;  %v5796_v27 = vld [vmem:[%s6246_s5 + $0x2d8] sm:$0xff] }
 0x167   : > { %2844 = vmatpush1.bf16.msra.mxu1 %v5692_v54  ;;  %3133 = vmatpush1.bf16.msra.mxu0 %v5693_v51  ;;  %v896_v54 = vsel %vm838_vm1, %v779_v55, %v781_v12  ;;  %v8005_v51 = vpack.c.bf16 %v605_v62, %v607_v4  ;;  %v8013_v57 = vpack.c.bf16 %v604_v18, %v606_v52  ;;  %v494_v12 = vrot.slane %v5796_v27, 1  ;;  %v8033_v62 = vld [vmem:[%s6246_s5 + $0x2e0] sm:$0xff] }
 0x168   : > { %2845 = vmatprep.subr.bf16.mxu1 %v10794_v58  ;;  %3134 = vmatprep.subr.bf16.mxu0 %v10794_v58  ;;  %v8007_v36 = vpack.c.bf16 %v894_v25, %v896_v54  ;;  %v893_v4 = vsel %vm838_vm1, %v780_v8, %v782_v40  ;;  %v895_v25 = vsel %vm838_vm1, %v778_v37, %v780_v8  ;;  %v785_v63 = vrot.slane %v5796_v27, 2  ;;  %v5798_v37 = vld [vmem:[%s6246_s5 + $0x2d0] sm:$0xff]  ;;  %v5699_v27 = vld [vmem:[#allocation5 + $0xb8] sm:$0xff]  }
 0x169   : > { %11197 = vst [vmem:[#allocation155_spill] sm:$0xff] %v8005_v51  ;;  %11199 = vst [vmem:[#allocation157_spill] sm:$0xff] %v8013_v57  ;;  %v8021_v55 = vpack.c.bf16 %v893_v4, %v895_v25  ;;  %v493_v8 = vrot.slane %v5798_v37, 1  ;;  %v495_v54 = vrot.slane %v8033_v62, 1  ;;  %v784_v18 = vrot.slane %v5798_v37, 2  ;;  %v5698_v25 = vld [vmem:[#allocation5 + $0x38] sm:$0xff]  }
 0x16a   : > { %11198 = vst [vmem:[#allocation156_spill] sm:$0xff] %v8007_v36  ;;  %v786_v4 = vrot.slane %v8033_v62, 2 }
 0x16b   : > { %2846 = vmatpush1.bf16.msra.mxu1 %v5694_v2  ;;  %3135 = vmatpush1.bf16.msra.mxu0 %v5695_v19  ;;  %11200 = vst [vmem:[#allocation158_spill] sm:$0xff] %v8021_v55  ;;  %v8025_v2 = vld [vmem:[%s6246_s5 + $0x2e8] sm:$0xff]  ;;  %v600_v62 = vsel %vm549_vm0, %v493_v8, %v495_v54 }
 0x16c   : > { %2847 = vmatprep.subr.bf16.mxu1 %v10794_v58  ;;  %3136 = vmatprep.subr.bf16.mxu0 %v10794_v58  ;;  %v496_v52 = vrot.slane %v8025_v2, 1  ;;  %v787_v19 = vrot.slane %v8025_v2, 2 }
 0x16d   : > { %2026 = vmatmul.mubr.bf16.gmra.mrb[76].mxu1 %v7050_v15  ;;  %2315 = vmatmul.mubr.bf16.gmra.mrb[76].mxu0 %v7052_v46  ;;  %v603_v46 = vsel %vm549_vm0, %v492_v41, %v494_v12  ;;  %v5700_v41 = vld [vmem:[#allocation5 + $0x40] sm:$0xff]  }
 0x16e   : > { %2033 = vmatprep.mubr.bf16.mxu1 %v7067_v43  ;;  %2322 = vmatprep.mubr.bf16.mxu0 %v7083_v31  ;;  %v601_v2 = vsel %vm549_vm0, %v494_v12, %v496_v52  ;;  %v890_v31 = vsel %vm838_vm1, %v785_v63, %v787_v19  ;;  %v602_v43 = vsel %vm549_vm0, %v491_v10, %v493_v8  ;;  %v5701_v12 = vld [vmem:[#allocation5 + $0xc0] sm:$0xff]   ;;  %v5800_v10 = vld [vmem:[%s6246_s5 + $0x2f8] sm:$0xff] }
 0x16f   : > { %2848 = vmatpush1.bf16.msra.mxu1 %v5696_v39  ;;  %3137 = vmatpush1.bf16.msra.mxu0 %v5697_v24  ;;  %v892_v39 = vsel %vm838_vm1, %v783_v7, %v785_v63  ;;  %v8049_v24 = vpack.c.bf16 %v601_v2, %v603_v46  ;;  %v8057_v15 = vpack.c.bf16 %v600_v62, %v602_v43  ;;  %v498_v63 = vrot.slane %v5800_v10, 1  ;;  %v5802_v2 = vld [vmem:[%s6246_s5 + $0x2f0] sm:$0xff]  ;;  %v5803_v62 = vld [vmem:[%s6246_s5 + $0x300] sm:$0xff] }
 0x170   : > { %2849 = vmatprep.subr.bf16.mxu1 %v10794_v58  ;;  %3138 = vmatprep.subr.bf16.mxu0 %v10794_v58  ;;  %v8051_v37 = vpack.c.bf16 %v890_v31, %v892_v39  ;;  %v889_v46 = vsel %vm838_vm1, %v784_v18, %v786_v4  ;;  %v891_v31 = vsel %vm838_vm1, %v782_v40, %v784_v18  ;;  %v789_v8 = vrot.slane %v5800_v10, 2  ;;  %v5703_v10 = vld [vmem:[#allocation5 + $0xc8] sm:$0xff]  }
 0x171   : > { %11201 = vst [vmem:[#allocation159_spill] sm:$0xff] %v8049_v24  ;;  %11203 = vst [vmem:[#allocation161_spill] sm:$0xff] %v8057_v15  ;;  %v8065_v7 = vpack.c.bf16 %v889_v46, %v891_v31  ;;  %v497_v39 = vrot.slane %v5802_v2, 1  ;;  %v499_v40 = vrot.slane %v5803_v62, 1  ;;  %v788_v18 = vrot.slane %v5802_v2, 2  ;;  %v5702_v31 = vld [vmem:[#allocation5 + $0x48] sm:$0xff]  }
 0x172   : > { %11202 = vst [vmem:[#allocation160_spill] sm:$0xff] %v8051_v37  ;;  %v790_v46 = vrot.slane %v5803_v62, 2 }
 0x173   : > { %2850 = vmatpush1.bf16.msra.mxu1 %v5698_v25  ;;  %3139 = vmatpush1.bf16.msra.mxu0 %v5699_v27  ;;  %11204 = vst [vmem:[#allocation162_spill] sm:$0xff] %v8065_v7  ;;  %v5801_v25 = vld [vmem:[%s6246_s5 + $0x308] sm:$0xff]  ;;  %v596_v62 = vsel %vm549_vm0, %v497_v39, %v499_v40 }
 0x174   : > { %2851 = vmatprep.subr.bf16.mxu1 %v10794_v58  ;;  %3140 = vmatprep.subr.bf16.mxu0 %v10794_v58  ;;  %v500_v27 = vrot.slane %v5801_v25, 1  ;;  %v791_v43 = vrot.slane %v5801_v25, 2 }
 0x175   : > { %2034 = vmatmul.mubr.bf16.gmra.mrb[80].mxu1 %v7099_v48  ;;  %2323 = vmatmul.mubr.bf16.gmra.mrb[80].mxu0 %v7115_v33  ;;  %v599_v33 = vsel %vm549_vm0, %v496_v52, %v498_v63  ;;  %v5704_v52 = vld [vmem:[#allocation5 + $0x50] sm:$0xff]  }
 0x176   : > { %2041 = vmatprep.mubr.bf16.mxu1 %v7129_v22  ;;  %2330 = vmatprep.mubr.bf16.mxu0 %v7145_v45  ;;  %v597_v25 = vsel %vm549_vm0, %v498_v63, %v500_v27  ;;  %v886_v22 = vsel %vm838_vm1, %v789_v8, %v791_v43  ;;  %v598_v45 = vsel %vm549_vm0, %v495_v54, %v497_v39  ;;  %v5705_v63 = vld [vmem:[#allocation5 + $0xd0] sm:$0xff]   ;;  %v5804_v54 = vld [vmem:[%s6246_s5 + $0x318] sm:$0xff] }
 0x177   : > { %2852 = vmatpush1.bf16.msra.mxu1 %v5700_v41  ;;  %3141 = vmatpush1.bf16.msra.mxu0 %v5701_v12  ;;  %v888_v41 = vsel %vm838_vm1, %v787_v19, %v789_v8  ;;  %v8085_v12 = vpack.c.bf16 %v597_v25, %v599_v33  ;;  %v8093_v48 = vpack.c.bf16 %v596_v62, %v598_v45  ;;  %v502_v8 = vrot.slane %v5804_v54, 1  ;;  %v5806_v25 = vld [vmem:[%s6246_s5 + $0x310] sm:$0xff]  ;;  %v5807_v62 = vld [vmem:[%s6246_s5 + $0x320] sm:$0xff] }
 0x178   : > { %2853 = vmatprep.subr.bf16.mxu1 %v10794_v58  ;;  %3142 = vmatprep.subr.bf16.mxu0 %v10794_v58  ;;  %v8087_v2 = vpack.c.bf16 %v886_v22, %v888_v41  ;;  %v885_v33 = vsel %vm838_vm1, %v788_v18, %v790_v46  ;;  %v887_v22 = vsel %vm838_vm1, %v786_v4, %v788_v18  ;;  %v793_v39 = vrot.slane %v5804_v54, 2 }
 0x179   : > { %11205 = vst [vmem:[#allocation163_spill] sm:$0xff] %v8085_v12  ;;  %11207 = vst [vmem:[#allocation165_spill] sm:$0xff] %v8093_v48  ;;  %v8101_v19 = vpack.c.bf16 %v885_v33, %v887_v22  ;;  %v501_v41 = vrot.slane %v5806_v25, 1  ;;  %v503_v4 = vrot.slane %v5807_v62, 1  ;;  %v792_v18 = vrot.slane %v5806_v25, 2 }
 0x17a   : > { %11206 = vst [vmem:[#allocation164_spill] sm:$0xff] %v8087_v2  ;;  %v794_v33 = vrot.slane %v5807_v62, 2  ;;  %v595_v54 = vsel %vm549_vm0, %v500_v27, %v502_v8  ;;  %v884_v25 = vsel %vm838_vm1, %v791_v43, %v793_v39 }
 0x17b   : > { %2854 = vmatpush1.bf16.msra.mxu1 %v5702_v31  ;;  %3143 = vmatpush1.bf16.msra.mxu0 %v5703_v10  ;;  %11208 = vst [vmem:[#allocation166_spill] sm:$0xff] %v8101_v19  ;;  %v5805_v31 = vld [vmem:[%s6246_s5 + $0x328] sm:$0xff]  ;;  %v592_v62 = vsel %vm549_vm0, %v501_v41, %v503_v4  ;;  %v883_v43 = vsel %vm838_vm1, %v790_v46, %v792_v18 }
 0x17c   : > { %2855 = vmatprep.subr.bf16.mxu1 %v10794_v58  ;;  %3144 = vmatprep.subr.bf16.mxu0 %v10794_v58  ;;  %v504_v10 = vrot.slane %v5805_v31, 1  ;;  %v795_v45 = vrot.slane %v5805_v31, 2  ;;  %v881_v27 = vsel %vm838_vm1, %v792_v18, %v794_v33 }
 0x17d   : > { %2042 = vmatmul.mubr.bf16.gmra.mrb[84].mxu1 %v7159_v14  ;;  %2331 = vmatmul.mubr.bf16.gmra.mrb[84].mxu0 %v7179_v42 }
 0x17e   : > { %2049 = vmatprep.mubr.bf16.mxu1 %v7199_v17  ;;  %2338 = vmatprep.mubr.bf16.mxu0 %v7201_v16  ;;  %v593_v22 = vsel %vm549_vm0, %v502_v8, %v504_v10  ;;  %v882_v31 = vsel %vm838_vm1, %v793_v39, %v795_v45  ;;  %v594_v16 = vsel %vm549_vm0, %v499_v40, %v501_v41  ;;  %v5808_v39 = vld [vmem:[%s6246_s5 + $0x338] sm:$0xff]  ;;  %v5810_v40 = vld [vmem:[%s6246_s5 + $0x330] sm:$0xff] }
 0x17f   : > { %2856 = vmatpush1.bf16.msra.mxu1 %v5704_v52  ;;  %3145 = vmatpush1.bf16.msra.mxu0 %v5705_v63  ;;  %v8121_v52 = vpack.c.bf16 %v593_v22, %v595_v54  ;;  %v8123_v63 = vpack.c.bf16 %v882_v31, %v884_v25  ;;  %v8129_v42 = vpack.c.bf16 %v592_v62, %v594_v16  ;;  %v506_v22 = vrot.slane %v5808_v39, 1  ;;  %v5809_v31 = vld [vmem:[%s6246_s5 + $0x348] sm:$0xff]  ;;  %v5706_v16 = vld [vmem:[#allocation5 + $0x58] sm:$0xff]   ;;  %v5811_v62 = vld [vmem:[%s6246_s5 + $0x340] sm:$0xff] }
 0x180   : > { %2857 = vmatprep.subr.bf16.mxu1 %v10794_v58  ;;  %3146 = vmatprep.subr.bf16.mxu0 %v10794_v58  ;;  %v8135_v8 = vpack.c.bf16 %v881_v27, %v883_v43  ;;  %v797_v54 = vrot.slane %v5808_v39, 2  ;;  %v508_v25 = vrot.slane %v5809_v31, 1  ;;  %v799_v17 = vrot.slane %v5809_v31, 2  ;;  %v5707_v27 = vld [vmem:[#allocation5 + $0xd8] sm:$0xff]  }
 0x181   : > { %11209 = vst [vmem:[#allocation167_spill] sm:$0xff] %v8121_v52  ;;  %11210 = vst [vmem:[#allocation168_spill] sm:$0xff] %v8123_v63  ;;  %v505_v41 = vrot.slane %v5810_v40, 1  ;;  %v507_v14 = vrot.slane %v5811_v62, 1  ;;  %v796_v46 = vrot.slane %v5810_v40, 2  ;;  %v798_v18 = vrot.slane %v5811_v62, 2 }
 0x182   : > { %11211 = vst [vmem:[#allocation169_spill] sm:$0xff] %v8129_v42  ;;  %11212 = vst [vmem:[#allocation170_spill] sm:$0xff] %v8135_v8  ;;  %v589_v43 = vsel %vm549_vm0, %v506_v22, %v508_v25  ;;  %v591_v39 = vsel %vm549_vm0, %v504_v10, %v506_v22  ;;  %v878_v31 = vsel %vm838_vm1, %v797_v54, %v799_v17 }
 0x183   : > { %2858 = vmatpush1.bf16.msra.mxu1 %v5706_v16  ;;  %3147 = vmatpush1.bf16.msra.mxu0 %v5707_v27  ;;  %v8154_v40 = vpack.c.bf16 %v589_v43, %v591_v39  ;;  %v588_v62 = vsel %vm549_vm0, %v505_v41, %v507_v14  ;;  %v877_v22 = vsel %vm838_vm1, %v796_v46, %v798_v18  ;;  %v5813_v39 = vld [vmem:[%s6246_s5 + $0x368] sm:$0xff] }
 0x184   : > { %2859 = vmatprep.subr.bf16.mxu1 %v10794_v58  ;;  %3148 = vmatprep.subr.bf16.mxu0 %v10794_v58 }
 0x185   : > { %2050 = vmatmul.mubr.bf16.gmra.mrb[88].mxu1 %v7232_v34  ;;  %2339 = vmatmul.mubr.bf16.gmra.mrb[88].mxu0 %v7234_v26  ;;  %11213 = vst [vmem:[#allocation171_spill] sm:$0xff] %v8154_v40  ;;  %v590_v26 = vsel %vm549_vm0, %v503_v4, %v505_v41  ;;  %v5815_v41 = vld [vmem:[%s6246_s5 + $0x360] sm:$0xff] }
 0x186   : > { %2057 = vmatprep.mubr.bf16.mxu1 %v7262_v56  ;;  %2346 = vmatprep.mubr.bf16.mxu0 %v7264_v29  ;;  %v880_v29 = vsel %vm838_vm1, %v795_v45, %v797_v54  ;;  %v8162_v10 = vpack.c.bf16 %v588_v62, %v590_v26  ;;  %v879_v45 = vsel %vm838_vm1, %v794_v33, %v796_v46  ;;  %v5812_v54 = vld [vmem:[%s6246_s5 + $0x358] sm:$0xff]  ;;  %v803_v56 = vrot.slane %v5813_v39, 2  ;;  %v5814_v26 = vld [vmem:[%s6246_s5 + $0x350] sm:$0xff]  ;;  %v5819_v34 = vld [vmem:[%s6246_s5 + $0x380] sm:$0xff] }
 0x187   : > { %v8156_v16 = vpack.c.bf16 %v878_v31, %v880_v29  ;;  %v8169_v29 = vpack.c.bf16 %v877_v22, %v879_v45  ;;  %v510_v27 = vrot.slane %v5812_v54, 1  ;;  %v801_v43 = vrot.slane %v5812_v54, 2 }
 0x188   : > { %11215 = vst [vmem:[#allocation173_spill] sm:$0xff] %v8162_v10  ;;  %v512_v31 = vrot.slane %v5813_v39, 1  ;;  %v509_v4 = vrot.slane %v5814_v26, 1  ;;  %v511_v62 = vrot.slane %v5815_v41, 1  ;;  %v800_v33 = vrot.slane %v5814_v26, 2 }
 0x189   : > { %11214 = vst [vmem:[#allocation172_spill] sm:$0xff] %v8156_v16  ;;  %11216 = vst [vmem:[#allocation174_spill] sm:$0xff] %v8169_v29  ;;  %v802_v46 = vrot.slane %v5815_v41, 2  ;;  %v587_v45 = vsel %vm549_vm0, %v508_v25, %v510_v27  ;;  %v874_v54 = vsel %vm838_vm1, %v801_v43, %v803_v56  ;;  %v876_v39 = vsel %vm838_vm1, %v799_v17, %v801_v43  ;;  %v5816_v43 = vld [vmem:[%s6246_s5 + $0x378] sm:$0xff] }
 0x18a   : > { %v585_v22 = vsel %vm549_vm0, %v510_v27, %v512_v31  ;;  %v584_v26 = vsel %vm549_vm0, %v509_v4, %v511_v62  ;;  %v586_v41 = vsel %vm549_vm0, %v507_v14, %v509_v4  ;;  %v875_v17 = vsel %vm838_vm1, %v798_v18, %v800_v33  ;;  %v11221_v14 = vld [vmem:[#allocation103_spill] sm:$0xff] }
 0x18b   : > { %v873_v25 = vsel %vm838_vm1, %v800_v33, %v802_v46  ;;  %v5708_v4 = vld [vmem:[#allocation5 + $0x60] sm:$0xff]   ;;  %v806_v33 = vrot.slane %v5819_v34, 2 }
 0x18c   : > { %v8201_v27 = vpack.c.bf16 %v873_v25, %v875_v17  ;;  %2860 = vmatpush1.bf16.msra.mxu1 %v5708_v4  ;;  %v5709_v25 = vld [vmem:[#allocation5 + $0xe0] sm:$0xff]  }
 0x18d   : > { %2058 = vmatmul.mubr.bf16.gmra.mrb[92].mxu1 %v7278_v21  ;;  %2347 = vmatmul.mubr.bf16.gmra.mrb[92].mxu0 %v7298_v44  ;;  %v8187_v44 = vpack.c.bf16 %v585_v22, %v587_v45  ;;  %v514_v22 = vrot.slane %v5816_v43, 1  ;;  %v805_v45 = vrot.slane %v5816_v43, 2 }
 0x18e   : > { %2065 = vmatprep.mubr.bf16.mxu1 %v7318_v0  ;;  %2354 = vmatprep.mubr.bf16.mxu0 %v7320_v38  ;;  %v8189_v0 = vpack.c.bf16 %v874_v54, %v876_v39  ;;  %v8195_v38 = vpack.c.bf16 %v584_v26, %v586_v41  ;;  %11220 = vst [vmem:[#allocation178_spill] sm:$0xff] %v8201_v27  ;;  %v5817_v54 = vld [vmem:[%s6246_s5 + $0x388] sm:$0xff]  ;;  %v5818_v26 = vld [vmem:[%s6246_s5 + $0x370] sm:$0xff] }
 0x18f   : > { %11217 = vst [vmem:[#allocation175_spill] sm:$0xff] %v8187_v44  ;;  %v516_v39 = vrot.slane %v5817_v54, 1  ;;  %v807_v21 = vrot.slane %v5817_v54, 2  ;;  %v513_v41 = vrot.slane %v5818_v26, 1  ;;  %v804_v18 = vrot.slane %v5818_v26, 2  ;;  %2861 = vmatprep.subr.bf16.mxu1 %v10794_v58  ;;  %3149 = vmatpush1.bf16.msra.mxu0 %v5709_v25 }
 0x190   : > { %11218 = vst [vmem:[#allocation176_spill] sm:$0xff] %v8189_v0  ;;  %11219 = vst [vmem:[#allocation177_spill] sm:$0xff] %v8195_v38  ;;  %v515_v38 = vrot.slane %v5819_v34, 1  ;;  %v583_v43 = vsel %vm549_vm0, %v512_v31, %v514_v22  ;;  %3150 = vmatprep.subr.bf16.mxu0 %v10794_v58 }
 0x191   : > { %v581_v17 = vsel %vm549_vm0, %v514_v22, %v516_v39  ;;  %v870_v54 = vsel %vm838_vm1, %v805_v45, %v807_v21  ;;  %v869_v22 = vsel %vm838_vm1, %v804_v18, %v806_v33 }
 0x192   : > { %v8220_v34 = vpack.c.bf16 %v581_v17, %v583_v43  ;;  %v580_v26 = vsel %vm549_vm0, %v513_v41, %v515_v38  ;;  %v5821_v43 = vld [vmem:[%s6246_s5 + $0x3a8] sm:$0xff] }
 0x194   : > { %11222 = vst [vmem:[#allocation179_spill] sm:$0xff] %v8220_v34 }
 0x195   : > { %2066 = vmatmul.mubr.bf16.gmra.mrb[96].mxu1 %v7334_v61  ;;  %2355 = vmatmul.mubr.bf16.gmra.mrb[96].mxu0 %v11221_v14  ;;  %v582_v14 = vsel %vm549_vm0, %v511_v62, %v513_v41  ;;  %v11226_v62 = vld [vmem:[#allocation106_spill] sm:$0xff] }
 0x196   : > { %2073 = vmatprep.mubr.bf16.mxu1 %v7380_v50  ;;  %2362 = vmatprep.mubr.bf16.mxu0 %v7382_v59  ;;  %v872_v59 = vsel %vm838_vm1, %v803_v56, %v805_v45  ;;  %v8228_v31 = vpack.c.bf16 %v580_v26, %v582_v14  ;;  %v871_v56 = vsel %vm838_vm1, %v802_v46, %v804_v18  ;;  %v5820_v45 = vld [vmem:[%s6246_s5 + $0x398] sm:$0xff]  ;;  %v811_v50 = vrot.slane %v5821_v43, 2  ;;  %v5822_v14 = vld [vmem:[%s6246_s5 + $0x390] sm:$0xff]  ;;  %v5823_v26 = vld [vmem:[%s6246_s5 + $0x3a0] sm:$0xff] }
 0x197   : > { %v8222_v4 = vpack.c.bf16 %v870_v54, %v872_v59  ;;  %v8235_v59 = vpack.c.bf16 %v869_v22, %v871_v56  ;;  %v518_v25 = vrot.slane %v5820_v45, 1  ;;  %v809_v17 = vrot.slane %v5820_v45, 2  ;;  %v11228_v46 = vld [vmem:[#allocation107_spill] sm:$0xff] }
 0x198   : > { %11224 = vst [vmem:[#allocation181_spill] sm:$0xff] %v8228_v31  ;;  %v520_v54 = vrot.slane %v5821_v43, 1  ;;  %v517_v41 = vrot.slane %v5822_v14, 1  ;;  %v519_v61 = vrot.slane %v5823_v26, 1  ;;  %v11227_v31 = vld [vmem:[#allocation67_spill] sm:$0xff]  ;;  %v808_v18 = vrot.slane %v5822_v14, 2 }
 0x199   : > { %11223 = vst [vmem:[#allocation180_spill] sm:$0xff] %v8222_v4  ;;  %11225 = vst [vmem:[#allocation182_spill] sm:$0xff] %v8235_v59  ;;  %v810_v22 = vrot.slane %v5823_v26, 2  ;;  %v579_v45 = vsel %vm549_vm0, %v516_v39, %v518_v25  ;;  %v866_v43 = vsel %vm838_vm1, %v809_v17, %v811_v50 }
 0x19a   : > { %v577_v56 = vsel %vm549_vm0, %v518_v25, %v520_v54  ;;  %v576_v14 = vsel %vm549_vm0, %v517_v41, %v519_v61  ;;  %v578_v26 = vsel %vm549_vm0, %v515_v38, %v517_v41  ;;  %v5710_v41 = vld [vmem:[#allocation5 + $0x68] sm:$0xff]  }
 0x19b   : > { %v865_v39 = vsel %vm838_vm1, %v808_v18, %v810_v22  ;;  %2862 = vmatpush1.bf16.msra.mxu1 %v5710_v41 }
 0x19c   : > { %2863 = vmatprep.subr.bf16.mxu1 %v10794_v58 }
 0x19d   : > { %2074 = vmatmul.mubr.bf16.gmra.mrb[100].mxu1 %v7410_v60  ;;  %2363 = vmatmul.mubr.bf16.gmra.mrb[100].mxu0 %v11226_v62  ;;  %v868_v62 = vsel %vm838_vm1, %v807_v21, %v809_v17  ;;  %v8253_v60 = vpack.c.bf16 %v577_v56, %v579_v45  ;;  %v867_v21 = vsel %vm838_vm1, %v806_v33, %v808_v18  ;;  %v5824_v17 = vld [vmem:[%s6246_s5 + $0x3b8] sm:$0xff]  ;;  %v8271_v45 = vld [vmem:[%s6246_s5 + $0x3c8] sm:$0xff] }
 0x19e   : > { %2081 = vmatprep.mubr.bf16.mxu1 %v11227_v31  ;;  %2370 = vmatprep.mubr.bf16.mxu0 %v11228_v46  ;;  %v8255_v31 = vpack.c.bf16 %v866_v43, %v868_v62  ;;  %v8261_v46 = vpack.c.bf16 %v576_v14, %v578_v26  ;;  %v8267_v25 = vpack.c.bf16 %v865_v39, %v867_v21  ;;  %v522_v62 = vrot.slane %v5824_v17, 1  ;;  %v5826_v14 = vld [vmem:[%s6246_s5 + $0x3b0] sm:$0xff]  ;;  %v11233_v18 = vld [vmem:[#allocation115_spill] sm:$0xff]  ;;  %v11234_v39 = vld [vmem:[#allocation116_spill] sm:$0xff] }
 0x19f   : > { %11229 = vst [vmem:[#allocation183_spill] sm:$0xff] %v8253_v60  ;;  %v813_v56 = vrot.slane %v5824_v17, 2  ;;  %v524_v43 = vrot.slane %v8271_v45, 1  ;;  %v815_v38 = vrot.slane %v8271_v45, 2  ;;  %v521_v26 = vrot.slane %v5826_v14, 1  ;;  %v8285_v45 = vpop.f32.mrb[0].mxu0 }
 0x1a0   : > { %11230 = vst [vmem:[#allocation184_spill] sm:$0xff] %v8255_v31  ;;  %11231 = vst [vmem:[#allocation185_spill] sm:$0xff] %v8261_v46  ;;  %v8279_v46 = vld [vmem:[%s6246_s5 + $0x3c0] sm:$0xff]  ;;  %v812_v21 = vrot.slane %v5826_v14, 2 }
 0x1a1   : > { %11232 = vst [vmem:[#allocation186_spill] sm:$0xff] %v8267_v25  ;;  %v523_v33 = vrot.slane %v8279_v46, 1  ;;  %v814_v17 = vrot.slane %v8279_v46, 2  ;;  %11235 = vst [vmem:[#allocation187_spill] sm:$0xff] %v8285_v45  ;;  %v573_v31 = vsel %vm549_vm0, %v522_v62, %v524_v43  ;;  %v862_v14 = vsel %vm838_vm1, %v813_v56, %v815_v38 }
 0x1a2   : > { %v864_v46 = vsel %vm838_vm1, %v811_v50, %v813_v56  ;;  %v5711_v50 = vld [vmem:[#allocation5 + $0xe8] sm:$0xff]  }
 0x1a3   : > { %3151 = vmatpush1.bf16.msra.mxu0 %v5711_v50 }
 0x1a4   : > { %3152 = vmatprep.subr.bf16.mxu0 %v10794_v58 }
 0x1a5   : > { %2082 = vmatmul.mubr.bf16.gmra.mrb[104].mxu1 %v7467_v30  ;;  %2371 = vmatmul.mubr.bf16.gmra.mrb[104].mxu0 %v7483_v1  ;;  %v8287_v30 = vpop.f32.mrb[0].mxu1  ;;  %v1716_v1 = vpop.f32.mrb[1].mxu0 }
 0x1a6   : > { %2089 = vmatprep.mubr.bf16.mxu1 %v11233_v18  ;;  %2378 = vmatprep.mubr.bf16.mxu0 %v11234_v39  ;;  %11236 = vst [vmem:[#allocation188_spill] sm:$0xff] %v8287_v30  ;;  %v1844_v25 = vpop.f32.mrb[1].mxu1  ;;  %v575_v18 = vsel %vm549_vm0, %v520_v54, %v522_v62  ;;  %v8298_v41 = vpop.f32.mrb[2].mxu0  ;;  %v572_v30 = vsel %vm549_vm0, %v521_v26, %v523_v33 }
 0x1a7   : > { %11237 = vst [vmem:[#allocation189_spill] sm:$0xff] %v8298_v41  ;;  %v8300_v39 = vpop.f32.mrb[2].mxu1  ;;  %v8302_v1 = vpack.c.bf16 %v573_v31, %v575_v18  ;;  %v8304_v25 = vpack.c.bf16 %v862_v14, %v864_v46  ;;  %v574_v54 = vsel %vm549_vm0, %v519_v61, %v521_v26  ;;  %v1719_v62 = vpop.f32.mrb[3].mxu0  ;;  %v863_v31 = vsel %vm838_vm1, %v810_v22, %v812_v21  ;;  %v5828_v14 = vld [vmem:[%s6246_s5 + $0x3d8] sm:$0xff] }
 0x1a8   : > { %11238 = vst [vmem:[#allocation190_spill] sm:$0xff] %v8300_v39  ;;  %v1847_v45 = vpop.f32.mrb[3].mxu1  ;;  %v8310_v56 = vpack.c.bf16 %v572_v30, %v574_v54  ;;  %v861_v39 = vsel %vm838_vm1, %v812_v21, %v814_v17  ;;  %v526_v46 = vrot.slane %v5828_v14, 1  ;;  %v817_v41 = vrot.slane %v5828_v14, 2  ;;  %v11244_v30 = vld [vmem:[#allocation118_spill] sm:$0xff]  ;;  %v11246_v21 = vld [vmem:[#allocation121_spill] sm:$0xff] }
 0x1a9   : > { %11239 = vst [vmem:[#allocation191_spill] sm:$0xff] %v8302_v1  ;;  %11240 = vst [vmem:[#allocation192_spill] sm:$0xff] %v8304_v25  ;;  %v8316_v18 = vpack.c.bf16 %v861_v39, %v863_v31  ;;  %v8320_v25 = vld [vmem:[%s6246_s5 + $0x3e8] sm:$0xff]  ;;  %v5830_v54 = vld [vmem:[%s6246_s5 + $0x3d0] sm:$0xff] }
 0x1aa   : > { %11241 = vst [vmem:[#allocation193_spill] sm:$0xff] %v8310_v56  ;;  %v528_v61 = vrot.slane %v8320_v25, 1  ;;  %v819_v26 = vrot.slane %v8320_v25, 2  ;;  %v11243_v45 = vld [vmem:[#allocation117_spill] sm:$0xff]  ;;  %v525_v62 = vrot.slane %v5830_v54, 1  ;;  %v8328_v56 = vld [vmem:[%s6246_s5 + $0x3e0] sm:$0xff]  ;;  %v860_v50 = vsel %vm838_vm1, %v815_v38, %v817_v41 }
 0x1ab   : > { %11242 = vst [vmem:[#allocation194_spill] sm:$0xff] %v8316_v18  ;;  %v527_v22 = vrot.slane %v8328_v56, 1  ;;  %v11245_v39 = vld [vmem:[#allocation120_spill] sm:$0xff]  ;;  %v816_v31 = vrot.slane %v5830_v54, 2  ;;  %v818_v14 = vrot.slane %v8328_v56, 2  ;;  %v8334_v18 = vpop.f32.mrb[4].mxu0 }
 0x1ac   : > { %11247 = vst [vmem:[#allocation195_spill] sm:$0xff] %v8334_v18  ;;  %v8336_v25 = vpop.f32.mrb[4].mxu1  ;;  %v569_v1 = vsel %vm549_vm0, %v526_v46, %v528_v61  ;;  %v858_v54 = vsel %vm838_vm1, %v817_v41, %v819_v26 }
 0x1ad   : > { %2090 = vmatmul.mubr.bf16.gmra.mrb[108].mxu1 %v11243_v45  ;;  %2379 = vmatmul.mubr.bf16.gmra.mrb[108].mxu0 %v11244_v30  ;;  %11248 = vst [vmem:[#allocation196_spill] sm:$0xff] %v8336_v25  ;;  %v1724_v30 = vpop.f32.mrb[5].mxu0  ;;  %v1852_v45 = vpop.f32.mrb[5].mxu1  ;;  %v568_v25 = vsel %vm549_vm0, %v525_v62, %v527_v22  ;;  %v857_v38 = vsel %vm838_vm1, %v816_v31, %v818_v14 }
 0x1ae   : > { %2097 = vmatprep.mubr.bf16.mxu1 %v11245_v39  ;;  %2386 = vmatprep.mubr.bf16.mxu0 %v11246_v21  ;;  %v571_v39 = vsel %vm549_vm0, %v524_v43, %v526_v46  ;;  %v8347_v56 = vpop.f32.mrb[6].mxu0  ;;  %v8349_v21 = vpop.f32.mrb[6].mxu1  ;;  %v8353_v45 = vpack.c.bf16 %v858_v54, %v860_v50  ;;  %v570_v43 = vsel %vm549_vm0, %v523_v33, %v525_v62  ;;  %v11255_v62 = vld [vmem:[#allocation122_spill] sm:$0xff] }
 0x1af   : > { %11249 = vst [vmem:[#allocation197_spill] sm:$0xff] %v8347_v56  ;;  %11250 = vst [vmem:[#allocation198_spill] sm:$0xff] %v8349_v21  ;;  %v8351_v30 = vpack.c.bf16 %v569_v1, %v571_v39  ;;  %v1727_v46 = vpop.f32.mrb[7].mxu0  ;;  %v1855_v18 = vpop.f32.mrb[7].mxu1  ;;  %v8359_v60 = vpack.c.bf16 %v568_v25, %v570_v43  ;;  %v859_v41 = vsel %vm838_vm1, %v814_v17, %v816_v31  ;;  %v5832_v39 = vld [vmem:[%s6246_s5 + $0x3f8] sm:$0xff]  ;;  %v8369_v21 = vld [vmem:[%s6246_s5 + $0x408] sm:$0xff] }
 0x1b0   : > { %11252 = vst [vmem:[#allocation200_spill] sm:$0xff] %v8353_v45  ;;  %v8365_v1 = vpack.c.bf16 %v857_v38, %v859_v41  ;;  %v530_v54 = vrot.slane %v5832_v39, 1  ;;  %v821_v50 = vrot.slane %v5832_v39, 2  ;;  %v532_v33 = vrot.slane %v8369_v21, 1  ;;  %v11256_v25 = vld [vmem:[#allocation123_spill] sm:$0xff]  ;;  %v5712_v43 = vld [vmem:[#allocation5 + $0x70] sm:$0xff]  }
 0x1b1   : > { %11251 = vst [vmem:[#allocation199_spill] sm:$0xff] %v8351_v30  ;;  %11253 = vst [vmem:[#allocation201_spill] sm:$0xff] %v8359_v60  ;;  %v823_v18 = vrot.slane %v8369_v21, 2  ;;  %v5834_v46 = vld [vmem:[%s6246_s5 + $0x3f0] sm:$0xff]  ;;  %v531_v17 = vrot.slane %v7706_v9, 1  ;;  %v11257_v31 = vld [vmem:[#allocation128_spill] sm:$0xff]  ;;  %2864 = vmatpush1.bf16.msra.mxu1 %v5712_v43 }
 0x1b2   : > { %11254 = vst [vmem:[#allocation202_spill] sm:$0xff] %v8365_v1  ;;  %v529_v60 = vrot.slane %v5834_v46, 1  ;;  %v820_v38 = vrot.slane %v5834_v46, 2  ;;  %v5835_v41 = vld [vmem:[%s6246_s5 + $0x400] sm:$0xff]  ;;  %v8380_v1 = vpop.f32.mrb[8].mxu0  ;;  %v8382_v21 = vpop.f32.mrb[8].mxu1  ;;  %2865 = vmatprep.subr.bf16.mxu1 %v10794_v58  ;;  %v565_v56 = vsel %vm549_vm0, %v530_v54, %v532_v33  ;;  %v567_v9 = vsel %vm549_vm0, %v528_v61, %v530_v54 }
 0x1b3   : > { %v822_v39 = vrot.slane %v5835_v41, 2  ;;  %11258 = vst [vmem:[#allocation203_spill] sm:$0xff] %v8380_v1  ;;  %11259 = vst [vmem:[#allocation204_spill] sm:$0xff] %v8382_v21  ;;  %v854_v46 = vsel %vm838_vm1, %v821_v50, %v823_v18  ;;  %v856_v43 = vsel %vm838_vm1, %v819_v26, %v821_v50  ;;  %v5713_v1 = vld [vmem:[#allocation5 + $0xf0] sm:$0xff]  }
 0x1b4   : > { %v566_v61 = vsel %vm549_vm0, %v527_v22, %v529_v60  ;;  %v11266_v22 = vld [vmem:[#allocation130_spill] sm:$0xff]  ;;  %3153 = vmatpush1.bf16.msra.mxu0 %v5713_v1 }
 0x1b5   : > { %2098 = vmatmul.mubr.bf16.gmra.mrb[112].mxu1 %v11255_v62  ;;  %2387 = vmatmul.mubr.bf16.gmra.mrb[112].mxu0 %v11256_v25  ;;  %v1732_v25 = vpop.f32.mrb[9].mxu0  ;;  %v1860_v62 = vpop.f32.mrb[9].mxu1  ;;  %v853_v50 = vsel %vm838_vm1, %v820_v38, %v822_v39 }
 0x1b6   : > { %2105 = vmatprep.mubr.bf16.mxu1 %v7689_v5  ;;  %2394 = vmatprep.mubr.bf16.mxu0 %v11257_v31  ;;  %v8393_v41 = vpop.f32.mrb[10].mxu0  ;;  %v8395_v31 = vpop.f32.mrb[10].mxu1  ;;  %v8397_v25 = vpack.c.bf16 %v565_v56, %v567_v9  ;;  %v8399_v62 = vpack.c.bf16 %v854_v46, %v856_v43  ;;  %v564_v5 = vsel %vm549_vm0, %v529_v60, %v531_v17  ;;  %v5836_v46 = vld [vmem:[%s6246_s5 + $0x418] sm:$0xff] }
 0x1b7   : > { %11260 = vst [vmem:[#allocation205_spill] sm:$0xff] %v8393_v41  ;;  %11261 = vst [vmem:[#allocation206_spill] sm:$0xff] %v8395_v31  ;;  %v1735_v54 = vpop.f32.mrb[11].mxu0  ;;  %v1863_v21 = vpop.f32.mrb[11].mxu1  ;;  %v8405_v26 = vpack.c.bf16 %v564_v5, %v566_v61  ;;  %v855_v56 = vsel %vm838_vm1, %v818_v14, %v820_v38  ;;  %v534_v43 = vrot.slane %v5836_v46, 1  ;;  %v825_v31 = vrot.slane %v5836_v46, 2  ;;  %3154 = vmatprep.subr.bf16.mxu0 %v10794_v58 }
 0x1b8   : > { %11262 = vst [vmem:[#allocation207_spill] sm:$0xff] %v8397_v25  ;;  %11263 = vst [vmem:[#allocation208_spill] sm:$0xff] %v8399_v62  ;;  %v8411_v9 = vpack.c.bf16 %v853_v50, %v855_v56  ;;  %v5837_v41 = vld [vmem:[%s6246_s5 + $0x428] sm:$0xff]  ;;  %v5838_v5 = vld [vmem:[%s6246_s5 + $0x410] sm:$0xff]  ;;  %v535_v61 = vrot.slane %v7784_v32, 1  ;;  %v826_v38 = vrot.slane %v7784_v32, 2 }
 0x1b9   : > { %11264 = vst [vmem:[#allocation209_spill] sm:$0xff] %v8405_v26  ;;  %v536_v62 = vrot.slane %v5837_v41, 1  ;;  %v827_v60 = vrot.slane %v5837_v41, 2  ;;  %v533_v21 = vrot.slane %v5838_v5, 1  ;;  %v824_v14 = vrot.slane %v5838_v5, 2  ;;  %v8422_v54 = vpop.f32.mrb[12].mxu0 }
 0x1ba   : > { %11265 = vst [vmem:[#allocation210_spill] sm:$0xff] %v8411_v9  ;;  %v8424_v50 = vpop.f32.mrb[12].mxu1  ;;  %v1740_v41 = vpop.f32.mrb[13].mxu0  ;;  %v852_v32 = vsel %vm838_vm1, %v823_v18, %v825_v31 }
 0x1bb   : > { %11267 = vst [vmem:[#allocation211_spill] sm:$0xff] %v8424_v50  ;;  %v1868_v56 = vpop.f32.mrb[13].mxu1  ;;  %v561_v46 = vsel %vm549_vm0, %v534_v43, %v536_v62  ;;  %v850_v5 = vsel %vm838_vm1, %v825_v31, %v827_v60  ;;  %v8435_v1 = vpop.f32.mrb[14].mxu0  ;;  %v849_v18 = vsel %vm838_vm1, %v824_v14, %v826_v38  ;;  %v851_v31 = vsel %vm838_vm1, %v822_v39, %v824_v14 }
 0x1bc   : > { %v8441_v41 = vpack.c.bf16 %v850_v5, %v852_v32  ;;  %v560_v56 = vsel %vm549_vm0, %v533_v21, %v535_v61 }
 0x1bd   : > { %2106 = vmatmul.mubr.bf16.gmra.mrb[116].mxu1 %v7711_v28  ;;  %2395 = vmatmul.mubr.bf16.gmra.mrb[116].mxu0 %v11266_v22  ;;  %v563_v22 = vsel %vm549_vm0, %v532_v33, %v534_v43  ;;  %v562_v33 = vsel %vm549_vm0, %v531_v17, %v533_v21  ;;  %v1743_v43 = vpop.f32.mrb[15].mxu0  ;;  %v11273_v17 = vld [vmem:[#allocation138_spill] sm:$0xff] }
 0x1be   : > { %2113 = vmatprep.mubr.bf16.mxu1 %v7769_v49  ;;  %2402 = vmatprep.mubr.bf16.mxu0 %v7771_v47  ;;  %v8437_v47 = vpop.f32.mrb[14].mxu1  ;;  %v8439_v49 = vpack.c.bf16 %v561_v46, %v563_v22  ;;  %11270 = vst [vmem:[#allocation214_spill] sm:$0xff] %v8441_v41  ;;  %v8447_v50 = vpack.c.bf16 %v560_v56, %v562_v33  ;;  %v5839_v46 = vld [vmem:[%s6246_s5 + $0x438] sm:$0xff]  ;;  %v11274_v33 = vld [vmem:[#allocation13_spill] sm:$0xff] }
 0x1bf   : > { %11268 = vst [vmem:[#allocation212_spill] sm:$0xff] %v8437_v47  ;;  %v1871_v28 = vpop.f32.mrb[15].mxu1  ;;  %v8453_v22 = vpack.c.bf16 %v849_v18, %v851_v31  ;;  %v538_v5 = vrot.slane %v5839_v46, 1  ;;  %v829_v32 = vrot.slane %v5839_v46, 2  ;;  %v5714_v21 = vld [vmem:[#allocation5 + $0x78] sm:$0xff]   ;;  %v11275_v43 = vld [vmem:[#allocation141_spill] sm:$0xff] }
 0x1c0   : > { %11269 = vst [vmem:[#allocation213_spill] sm:$0xff] %v8439_v49  ;;  %11271 = vst [vmem:[#allocation215_spill] sm:$0xff] %v8447_v50  ;;  %v5840_v28 = vld [vmem:[%s6246_s5 + $0x430] sm:$0xff]  ;;  %v8462_v47 = vld [vmem:[%s6246_s5 + $0x448] sm:$0xff]  ;;  %2866 = vmatpush1.bf16.msra.mxu1 %v5714_v21  ;;  %v8467_v46 = vpop.f32.mrb[16].mxu0 }
 0x1c1   : > { %11272 = vst [vmem:[#allocation216_spill] sm:$0xff] %v8453_v22  ;;  %v537_v56 = vrot.slane %v5840_v28, 1  ;;  %11276 = vst [vmem:[#allocation217_spill] sm:$0xff] %v8462_v47  ;;  %v828_v39 = vrot.slane %v5840_v28, 2  ;;  %v10653_v14 = vrot.slane %v8462_v47, 1  ;;  %v10654_v18 = vrot.slane %v8462_v47, 2  ;;  %3413 = vmatprep.subr.bf16.mxu1 %v10794_v58 }
 0x1c2   : > { %v395_v31 = vld [vmem:[%s6246_s5 + $0x440] sm:$0xff]  ;;  %11277 = vst [vmem:[#allocation218_spill] sm:$0xff] %v8467_v46  ;;  %v559_v28 = vsel %vm549_vm0, %v536_v62, %v538_v5  ;;  %v5715_v46 = vld [vmem:[#allocation5 + $0xf8] sm:$0xff]  }
 0x1c3   : > { %v830_v22 = vrot.slane %v395_v31, 2  ;;  %v557_v21 = vsel %vm549_vm0, %v538_v5, %v10653_v14  ;;  %v558_v5 = vsel %vm549_vm0, %v535_v61, %v537_v56  ;;  %v11288_v61 = vld [vmem:[#allocation143_spill] sm:$0xff]  ;;  %3155 = vmatpush1.bf16.msra.mxu0 %v5715_v46 }
 0x1c4   : > { %4087 = vmatprep.subr.bf16.mxu0 %v10794_v58 }
 0x1c5   : > { %2114 = vmatmul.mubr.bf16.gmra.mrb[120].mxu1 %v7787_v35  ;;  %2403 = vmatmul.mubr.bf16.gmra.mrb[120].mxu0 %v11273_v17  ;;  %v8469_v35 = vpop.f32.mrb[16].mxu1  ;;  %v539_v17 = vrot.slane %v395_v31, 1  ;;  %v848_v31 = vsel %vm838_vm1, %v827_v60, %v829_v32 }
 0x1c6   : > { %2121 = vmatprep.mubr.bf16.mxu1 %v11274_v33  ;;  %2410 = vmatprep.mubr.bf16.mxu0 %v11275_v43  ;;  %11278 = vst [vmem:[#allocation219_spill] sm:$0xff] %v8469_v35  ;;  %v1748_v33 = vpop.f32.mrb[17].mxu0  ;;  %v1876_v50 = vpop.f32.mrb[17].mxu1  ;;  %v846_v43 = vsel %vm838_vm1, %v829_v32, %v10654_v18  ;;  %v845_v32 = vsel %vm838_vm1, %v828_v39, %v830_v22 }
 0x1c7   : > { %v8484_v35 = vpop.f32.mrb[18].mxu0  ;;  %v8486_v50 = vpop.f32.mrb[18].mxu1  ;;  %v8488_v33 = vpack.c.bf16 %v557_v21, %v559_v28  ;;  %v8490_v14 = vpack.c.bf16 %v846_v43, %v848_v31  ;;  %v556_v62 = vsel %vm549_vm0, %v537_v56, %v539_v17  ;;  %v847_v21 = vsel %vm838_vm1, %v826_v38, %v828_v39  ;;  %v11285_v43 = vld [vmem:[#allocation17_spill] sm:$0xff]  ;;  %v11286_v31 = vld [vmem:[#allocation142_spill] sm:$0xff] }
 0x1c8   : > { %11279 = vst [vmem:[#allocation220_spill] sm:$0xff] %v8484_v35  ;;  %11280 = vst [vmem:[#allocation221_spill] sm:$0xff] %v8486_v50  ;;  %v1751_v18 = vpop.f32.mrb[19].mxu0  ;;  %v1879_v47 = vpop.f32.mrb[19].mxu1  ;;  %v8496_v60 = vpack.c.bf16 %v556_v62, %v558_v5  ;;  %v8502_v28 = vpack.c.bf16 %v845_v32, %v847_v21  ;;  %v397_v50 = vld [vmem:[%s6246_s5 + $0x450] sm:$0xff]  ;;  %v8508_v35 = vld [vmem:[%s6246_s5 + $0x460] sm:$0xff] }
 0x1c9   : > { %11281 = vst [vmem:[#allocation222_spill] sm:$0xff] %v8488_v33  ;;  %11282 = vst [vmem:[#allocation223_spill] sm:$0xff] %v8490_v14  ;;  %v11289_v47 = vld [vmem:[#allocation144_spill] sm:$0xff]  ;;  %v541_v56 = vrot.slane %v397_v50, 1  ;;  %v10657_v18 = vrot.slane %v8508_v35, 1  ;;  %v832_v62 = vrot.slane %v397_v50, 2 }
 0x1ca   : > { %11283 = vst [vmem:[#allocation224_spill] sm:$0xff] %v8496_v60  ;;  %11284 = vst [vmem:[#allocation225_spill] sm:$0xff] %v8502_v28  ;;  %v8514_v39 = vpop.f32.mrb[20].mxu0  ;;  %v8516_v5 = vpop.f32.mrb[20].mxu1 }
 0x1cb   : > { %11287 = vst [vmem:[#allocation226_spill] sm:$0xff] %v8508_v35  ;;  %11290 = vst [vmem:[#allocation227_spill] sm:$0xff] %v8516_v5  ;;  %v8522_v32 = vsel %vm549_vm0, %v541_v56, %v10657_v18  ;;  %v8526_v21 = vsel %vm549_vm0, %v539_v17, %v541_v56  ;;  %v8530_v46 = vsel %vm838_vm1, %v830_v22, %v832_v62  ;;  %v1756_v50 = vpop.f32.mrb[21].mxu0  ;;  %v1884_v38 = vpop.f32.mrb[21].mxu1  ;;  %v8574_v5 = vld [vmem:[%s6246_s5 + $0x20] sm:$0xff] }
 0x1cc   : > { %11291 = vst [vmem:[#allocation228_spill] sm:$0xff] %v8522_v32  ;;  %11292 = vst [vmem:[#allocation229_spill] sm:$0xff] %v8526_v21  ;;  %v8543_v17 = vpop.f32.mrb[22].mxu1  ;;  %v8548_v50 = vld [vmem:[%s6246_s5] sm:$0xff]  ;;  %v8551_v38 = vld [vmem:[%s6246_s5 + $0x10] sm:$0xff] }
 0x1cd   : > { %2122 = vmatmul.mubr.bf16.gmra.mrb[124].mxu1 %v11285_v43  ;;  %2411 = vmatmul.mubr.bf16.gmra.mrb[124].mxu0 %v11286_v31  ;;  %11293 = vst [vmem:[#allocation230_spill] sm:$0xff] %v8530_v46  ;;  %v11294_v31 = vrot.slane %v8508_v35, 2  ;;  %11296 = vst [vmem:[#allocation232_spill] sm:$0xff] %v8543_v17  ;;  %v1887_v43 = vpop.f32.mrb[23].mxu1  ;;  %v11299_v21 = vld [vmem:[#allocation146_spill] sm:$0xff]  ;;  %v11300_v32 = vld [vmem:[#allocation147_spill] sm:$0xff] }
 0x1ce   : > { %2129 = vmatprep.mubr.bf16.mxu1 %v11288_v61  ;;  %2418 = vmatprep.mubr.bf16.mxu0 %v11289_v47  ;;  %v8541_v61 = vpop.f32.mrb[22].mxu0  ;;  %11297 = vst [vmem:[#allocation233_spill] sm:$0xff] %v8548_v50  ;;  %v11298_v47 = vld [vmem:[#allocation145_spill] sm:$0xff]  ;;  %v11301_v35 = vld [vmem:[#allocation148_spill] sm:$0xff]  ;;  %v8567_v22 = vpop.f32.mrb[24].mxu1 }
 0x1cf   : > { %v8539_v18 = vsel %vm838_vm1, %v832_v62, %v11294_v31  ;;  %v1759_v56 = vpop.f32.mrb[23].mxu0  ;;  %v10664_v31 = vrot.slane %v8548_v50, 2  ;;  %v696_v62 = vrot.slane %v8551_v38, 2  ;;  %11304 = vst [vmem:[#allocation236_spill] sm:$0xff] %v8567_v22 }
 0x1d0   : > { %11295 = vst [vmem:[#allocation231_spill] sm:$0xff] %v8539_v18  ;;  %v8565_v56 = vpop.f32.mrb[24].mxu0  ;;  %v1892_v18 = vpop.f32.mrb[25].mxu1 }
 0x1d1   : > { %v8563_v43 = vsel %vm838_vm1, %v10664_v31, %v696_v62  ;;  %11303 = vst [vmem:[#allocation235_spill] sm:$0xff] %v8565_v56  ;;  %v1764_v46 = vpop.f32.mrb[25].mxu0  ;;  %v698_v31 = vrot.slane %v8574_v5, 2  ;;  %v11307_v18 = vld [vmem:[#allocation16_spill] sm:$0xff] }
 0x1d2   : > { %11302 = vst [vmem:[#allocation234_spill] sm:$0xff] %v8563_v43  ;;  %v11308_v46 = vrot.slane %v11307_v18, 2 }
 0x1d5   : > { %2130 = vmatmul.mubr.bf16.gmra.mrb[128].mxu1 %v11298_v47  ;;  %2419 = vmatmul.mubr.bf16.gmra.mrb[128].mxu0 %v11299_v21  ;;  %v8569_v21 = vpop.f32.mrb[26].mxu0  ;;  %v8571_v47 = vpop.f32.mrb[26].mxu1 }
 0x1d6   : > { %2137 = vmatprep.mubr.bf16.mxu1 %v11300_v32  ;;  %2426 = vmatprep.mubr.bf16.mxu0 %v11301_v35  ;;  %11305 = vst [vmem:[#allocation237_spill] sm:$0xff] %v8569_v21  ;;  %11306 = vst [vmem:[#allocation238_spill] sm:$0xff] %v8571_v47  ;;  %v1767_v17 = vpop.f32.mrb[27].mxu0  ;;  %v1895_v32 = vpop.f32.mrb[27].mxu1  ;;  %v8577_v35 = vld [vmem:[%s6246_s5 + $0x30] sm:$0xff] }
 0x1d7   : > { %v700_v22 = vrot.slane %v8577_v35, 2  ;;  %v8601_v47 = vpop.f32.mrb[28].mxu1 }
 0x1d8   : > { %v1900_v21 = vpop.f32.mrb[29].mxu1 }
 0x1d9   : > { %v8589_v32 = vsel %vm838_vm1, %v700_v22, %v11308_v46  ;;  %v8593_v17 = vsel %vm838_vm1, %v698_v31, %v700_v22  ;;  %v8609_v22 = vpop.f32.mrb[30].mxu1 }
 0x1da   : > { %11309 = vst [vmem:[#allocation239_spill] sm:$0xff] %v8589_v32  ;;  %11310 = vst [vmem:[#allocation240_spill] sm:$0xff] %v8593_v17  ;;  %v1903_v18 = vpop.f32.mrb[31].mxu1 }
 0x1dd   : > { %2138 = vmatmul.mubr.bf16.gmra.mrb[132].mxu1 %v7931_v3  ;;  %2427 = vmatmul.mubr.bf16.gmra.mrb[132].mxu0 %v7933_v13  ;;  %v8597_v13 = vsel %vm838_vm1, %v696_v62, %v698_v31  ;;  %v8599_v3 = vpop.f32.mrb[28].mxu0  ;;  %v8617_v62 = vpop.f32.mrb[32].mxu1 }
 0x1de   : > { %2145 = vmatprep.mubr.bf16.mxu1 %v7961_v6  ;;  %2434 = vmatprep.mubr.bf16.mxu0 %v7963_v11  ;;  %11311 = vst [vmem:[#allocation241_spill] sm:$0xff] %v8597_v13  ;;  %v1772_v46 = vpop.f32.mrb[29].mxu0  ;;  %v1908_v21 = vpop.f32.mrb[33].mxu1 }
 0x1df   : > { %v8607_v56 = vpop.f32.mrb[30].mxu0  ;;  %v8621_v11 = vpop.f32.mrb[34].mxu1 }
 0x1e0   : > { %v1775_v58 = vpop.f32.mrb[31].mxu0  ;;  %v1911_v18 = vpop.f32.mrb[35].mxu1 }
 0x1e1   : > { %v8615_v31 = vpop.f32.mrb[32].mxu0 }
 0x1e2   : > { %v1780_v46 = vpop.f32.mrb[33].mxu0 }
 0x1e3   : > { %v8619_v6 = vpop.f32.mrb[34].mxu0 }
 0x1e4   : > { %v1783_v58 = vpop.f32.mrb[35].mxu0 }
 0x1e5   : > { %2146 = vmatmul.mubr.bf16.gmra.mrb[136].mxu1 %v7969_v20  ;;  %2435 = vmatmul.mubr.bf16.gmra.mrb[136].mxu0 %v7977_v23  ;;  %v8629_v23 = vpop.f32.mrb[36].mxu1 }
 0x1e6   : > { %2153 = vmatprep.mubr.bf16.mxu1 %v8005_v51  ;;  %2442 = vmatprep.mubr.bf16.mxu0 %v8007_v36  ;;  %v1916_v21 = vpop.f32.mrb[37].mxu1 }
 0x1e7   : > { %v8633_v32 = vpop.f32.mrb[38].mxu1 }
 0x1e8   : > { %v1919_v18 = vpop.f32.mrb[39].mxu1 }
 0x1eb   : > { %v8627_v36 = vpop.f32.mrb[36].mxu0 }
 0x1ec   : > { %v1788_v46 = vpop.f32.mrb[37].mxu0 }
 0x1ed   : > { %2154 = vmatmul.mubr.bf16.gmra.mrb[140].mxu1 %v8013_v57  ;;  %2443 = vmatmul.mubr.bf16.gmra.mrb[140].mxu0 %v8021_v55  ;;  %v8631_v17 = vpop.f32.mrb[38].mxu0 }
 0x1ee   : > { %2161 = vmatprep.mubr.bf16.mxu1 %v8049_v24  ;;  %2450 = vmatprep.mubr.bf16.mxu0 %v8051_v37  ;;  %v1791_v58 = vpop.f32.mrb[39].mxu0 }
 0x1f3   : > { %v8639_v37 = vpop.f32.mrb[40].mxu0 }
 0x1f4   : > { %v1796_v46 = vpop.f32.mrb[41].mxu0 }
 0x1f5   : > { %2162 = vmatmul.mubr.bf16.gmra.mrb[144].mxu1 %v8057_v15  ;;  %2451 = vmatmul.mubr.bf16.gmra.mrb[144].mxu0 %v8065_v7  ;;  %v8643_v43 = vpop.f32.mrb[42].mxu0 }
 0x1f6   : > { %2169 = vmatprep.mubr.bf16.mxu1 %v8085_v12  ;;  %2458 = vmatprep.mubr.bf16.mxu0 %v8087_v2  ;;  %v1799_v58 = vpop.f32.mrb[43].mxu0 }
 0x1f7   : > { %v8641_v55 = vpop.f32.mrb[40].mxu1 }
 0x1f8   : > { %v1924_v21 = vpop.f32.mrb[41].mxu1 }
 0x1f9   : > { %v8645_v13 = vpop.f32.mrb[42].mxu1 }
 0x1fa   : > { %11312 = vst [vmem:[#allocation242_spill] sm:$0xff] %v8645_v13  ;;  %v1927_v18 = vpop.f32.mrb[43].mxu1 }
 0x1fb   : > { %v8651_v2 = vpop.f32.mrb[44].mxu0 }
 0x1fc   : > { %v1804_v46 = vpop.f32.mrb[45].mxu0 }
 0x1fd   : > { %2170 = vmatmul.mubr.bf16.gmra.mrb[148].mxu1 %v8093_v48  ;;  %2459 = vmatmul.mubr.bf16.gmra.mrb[148].mxu0 %v8101_v19  ;;  %v8655_v12 = vpop.f32.mrb[46].mxu0 }
 0x1fe   : > { %2177 = vmatprep.mubr.bf16.mxu1 %v8121_v52  ;;  %2466 = vmatprep.mubr.bf16.mxu0 %v8123_v63  ;;  %v1807_v58 = vpop.f32.mrb[47].mxu0 }
 0x1ff   : > { %v8653_v7 = vpop.f32.mrb[44].mxu1 }
 0x200   : > { %11313 = vst [vmem:[#allocation243_spill] sm:$0xff] %v8653_v7  ;;  %v1932_v21 = vpop.f32.mrb[45].mxu1 }
 0x201   : > { %v8657_v15 = vpop.f32.mrb[46].mxu1 }
 0x202   : > { %11314 = vst [vmem:[#allocation244_spill] sm:$0xff] %v8657_v15  ;;  %v1935_v18 = vpop.f32.mrb[47].mxu1  ;;  %v11331_v15 = vld [vmem:[#allocation187_spill] sm:$0xff] }
 0x205   : > { %2178 = vmatmul.mubr.bf16.gmra.mrb[152].mxu1 %v8129_v42  ;;  %2467 = vmatmul.mubr.bf16.gmra.mrb[152].mxu0 %v8135_v8  ;;  %v8663_v63 = vpop.f32.mrb[48].mxu0 }
 0x206   : > { %2185 = vmatprep.mubr.bf16.mxu1 %v8154_v40  ;;  %2474 = vmatprep.mubr.bf16.mxu0 %v8156_v16  ;;  %v1812_v46 = vpop.f32.mrb[49].mxu0 }
 0x207   : > { %v8665_v19 = vpop.f32.mrb[48].mxu1  ;;  %v8667_v52 = vpop.f32.mrb[50].mxu0 }
 0x208   : > { %11315 = vst [vmem:[#allocation245_spill] sm:$0xff] %v8665_v19  ;;  %v1940_v21 = vpop.f32.mrb[49].mxu1  ;;  %v1815_v58 = vpop.f32.mrb[51].mxu0 }
 0x209   : > { %v8669_v48 = vpop.f32.mrb[50].mxu1 }
 0x20a   : > { %11316 = vst [vmem:[#allocation246_spill] sm:$0xff] %v8669_v48  ;;  %v1943_v18 = vpop.f32.mrb[51].mxu1  ;;  %v11319_v48 = vld [vmem:[#allocation177_spill] sm:$0xff] }
 0x20d   : > { %2186 = vmatmul.mubr.bf16.gmra.mrb[156].mxu1 %v8162_v10  ;;  %2475 = vmatmul.mubr.bf16.gmra.mrb[156].mxu0 %v8169_v29  ;;  %v8675_v16 = vpop.f32.mrb[52].mxu0 }
 0x20e   : > { %2193 = vmatprep.mubr.bf16.mxu1 %v8187_v44  ;;  %2482 = vmatprep.mubr.bf16.mxu0 %v8189_v0  ;;  %v1820_v46 = vpop.f32.mrb[53].mxu0 }
 0x20f   : > { %v8677_v8 = vpop.f32.mrb[52].mxu1  ;;  %v8679_v40 = vpop.f32.mrb[54].mxu0 }
 0x210   : > { %11317 = vst [vmem:[#allocation247_spill] sm:$0xff] %v8677_v8  ;;  %v1948_v21 = vpop.f32.mrb[53].mxu1  ;;  %v1823_v58 = vpop.f32.mrb[55].mxu0 }
 0x211   : > { %v8681_v42 = vpop.f32.mrb[54].mxu1 }
 0x212   : > { %11318 = vst [vmem:[#allocation248_spill] sm:$0xff] %v8681_v42  ;;  %v1951_v18 = vpop.f32.mrb[55].mxu1  ;;  %v11322_v42 = vld [vmem:[#allocation181_spill] sm:$0xff] }
 0x215   : > { %2194 = vmatmul.mubr.bf16.gmra.mrb[160].mxu1 %v11319_v48  ;;  %2483 = vmatmul.mubr.bf16.gmra.mrb[160].mxu0 %v8201_v27  ;;  %v8687_v0 = vpop.f32.mrb[56].mxu0  ;;  %v11323_v27 = vld [vmem:[#allocation183_spill] sm:$0xff] }
 0x216   : > { %2201 = vmatprep.mubr.bf16.mxu1 %v8220_v34  ;;  %2490 = vmatprep.mubr.bf16.mxu0 %v8222_v4  ;;  %v1828_v46 = vpop.f32.mrb[57].mxu0  ;;  %v11324_v34 = vld [vmem:[#allocation184_spill] sm:$0xff] }
 0x217   : > { %v8689_v29 = vpop.f32.mrb[56].mxu1  ;;  %v8691_v44 = vpop.f32.mrb[58].mxu0 }
 0x218   : > { %11320 = vst [vmem:[#allocation249_spill] sm:$0xff] %v8689_v29  ;;  %v1956_v21 = vpop.f32.mrb[57].mxu1  ;;  %v1831_v58 = vpop.f32.mrb[59].mxu0 }
 0x219   : > { %v8693_v10 = vpop.f32.mrb[58].mxu1 }
 0x21a   : > { %11321 = vst [vmem:[#allocation250_spill] sm:$0xff] %v8693_v10  ;;  %v1959_v18 = vpop.f32.mrb[59].mxu1  ;;  %v11327_v10 = vld [vmem:[#allocation185_spill] sm:$0xff] }
 0x21d   : > { %2202 = vmatmul.mubr.bf16.gmra.mrb[164].mxu1 %v11322_v42  ;;  %2491 = vmatmul.mubr.bf16.gmra.mrb[164].mxu0 %v8235_v59  ;;  %v8699_v4 = vpop.f32.mrb[60].mxu0  ;;  %v11328_v42 = vld [vmem:[#allocation186_spill] sm:$0xff]  ;;  %v11329_v59 = vld [vmem:[#allocation191_spill] sm:$0xff] }
 0x21e   : > { %2209 = vmatprep.mubr.bf16.mxu1 %v11323_v27  ;;  %2498 = vmatprep.mubr.bf16.mxu0 %v11324_v34  ;;  %v1836_v46 = vpop.f32.mrb[61].mxu0  ;;  %v11330_v27 = vld [vmem:[#allocation192_spill] sm:$0xff] }
 0x21f   : > { %v8701_v48 = vpop.f32.mrb[60].mxu1  ;;  %v8703_v29 = vpop.f32.mrb[62].mxu0 }
 0x220   : > { %11325 = vst [vmem:[#allocation251_spill] sm:$0xff] %v8701_v48  ;;  %v1964_v21 = vpop.f32.mrb[61].mxu1  ;;  %v1839_v58 = vpop.f32.mrb[63].mxu0 }
 0x221   : > { %v8705_v8 = vpop.f32.mrb[62].mxu1  ;;  %v11332_v58 = vld [vmem:[#allocation189_spill] sm:$0xff] }
 0x222   : > { %11326 = vst [vmem:[#allocation252_spill] sm:$0xff] %v8705_v8  ;;  %v1967_v18 = vpop.f32.mrb[63].mxu1 }
 0x225   : > { %2210 = vmatmul.mubr.bf16.gmra.mrb[168].mxu1 %v11327_v10  ;;  %2499 = vmatmul.mubr.bf16.gmra.mrb[168].mxu0 %v11328_v42  ;;  %v11333_v42 = vld [vmem:[#allocation193_spill] sm:$0xff] }
 0x226   : > { %2217 = vmatprep.mubr.bf16.mxu1 %v11329_v59  ;;  %2506 = vmatprep.mubr.bf16.mxu0 %v11330_v27  ;;  %v11334_v59 = vld [vmem:[#allocation194_spill] sm:$0xff] }
 0x228   : > { %v2003_v34 = vpop.f32.mrb[64].mxu1  ;;  %v2292_v19 = vpop.f32.mrb[64].mxu0 }
 0x229   : > { %v2004_v48 = vadd.f32 %v2003_v34, %v11331_v15  ;;  %v2005_v46 = vpop.f32.mrb[65].mxu1  ;;  %v2294_v21 = vpop.f32.mrb[65].mxu0 }
 0x22a   : > { %v2006_v7 = vpop.f32.mrb[66].mxu1  ;;  %v2295_v24 = vpop.f32.mrb[66].mxu0  ;;  %v11335_v46 = vld [vmem:[#allocation195_spill] sm:$0xff] }
 0x22b   : > { %v8712_v57 = vadd.f32 %v2292_v19, %v2004_v48  ;;  %v2007_v18 = vadd.f32 %v2006_v7, %v11332_v58  ;;  %v2008_v8 = vpop.f32.mrb[67].mxu1  ;;  %v2297_v10 = vpop.f32.mrb[67].mxu0 }
 0x22d   : > { %v8715_v13 = vadd.f32 %v2295_v24, %v2007_v18  ;;  %2218 = vmatmul.mubr.bf16.gmra.mrb[172].mxu1 %v11333_v42  ;;  %2507 = vmatmul.mubr.bf16.gmra.mrb[172].mxu0 %v11334_v59  ;;  %v11336_v24 = vld [vmem:[#allocation197_spill] sm:$0xff] }
 0x22e   : > { %2225 = vmatprep.mubr.bf16.mxu1 %v8351_v30  ;;  %2514 = vmatprep.mubr.bf16.mxu0 %v8353_v45  ;;  %v11337_v59 = vld [vmem:[#allocation201_spill] sm:$0xff]  ;;  %v11338_v30 = vld [vmem:[#allocation202_spill] sm:$0xff]  ;;  %v11339_v45 = vld [vmem:[#allocation208_spill] sm:$0xff] }
 0x230   : > { %v2011_v15 = vpop.f32.mrb[68].mxu1  ;;  %v2300_v34 = vpop.f32.mrb[68].mxu0 }
 0x231   : > { %v2012_v21 = vadd.f32 %v2011_v15, %v11335_v46  ;;  %v2013_v48 = vpop.f32.mrb[69].mxu1  ;;  %v2302_v19 = vpop.f32.mrb[69].mxu0 }
 0x232   : > { %v2014_v27 = vpop.f32.mrb[70].mxu1  ;;  %v2303_v7 = vpop.f32.mrb[70].mxu0  ;;  %v11340_v48 = vld [vmem:[#allocation203_spill] sm:$0xff] }
 0x233   : > { %v8722_v8 = vadd.f32 %v2300_v34, %v2012_v21  ;;  %v2015_v10 = vadd.f32 %v2014_v27, %v11336_v24  ;;  %v2016_v58 = vpop.f32.mrb[71].mxu1  ;;  %v2305_v18 = vpop.f32.mrb[71].mxu0 }
 0x235   : > { %v8725_v42 = vadd.f32 %v2303_v7, %v2015_v10  ;;  %2226 = vmatmul.mubr.bf16.gmra.mrb[176].mxu1 %v11337_v59  ;;  %2515 = vmatmul.mubr.bf16.gmra.mrb[176].mxu0 %v11338_v30  ;;  %v11342_v10 = vld [vmem:[#allocation205_spill] sm:$0xff] }
 0x236   : > { %2233 = vmatprep.mubr.bf16.mxu1 %v8397_v25  ;;  %2522 = vmatprep.mubr.bf16.mxu0 %v11339_v45 }
 0x238   : > { %v2019_v15 = vpop.f32.mrb[72].mxu1  ;;  %v2308_v46 = vpop.f32.mrb[72].mxu0 }
 0x239   : > { %v2020_v34 = vadd.f32 %v2019_v15, %v11340_v48  ;;  %v2021_v21 = vpop.f32.mrb[73].mxu1  ;;  %v2310_v27 = vpop.f32.mrb[73].mxu0  ;;  %v8742_v15 = vld [vmem:[%s6246_s5 + $0x8] sm:$0xff] }
 0x23a   : > { %v2022_v19 = vpop.f32.mrb[74].mxu1  ;;  %v2311_v7 = vpop.f32.mrb[74].mxu0  ;;  %11344 = vst [vmem:[#allocation195_spill] sm:$0xff] %v8742_v15 }
 0x23b   : > { %v8732_v24 = vadd.f32 %v2308_v46, %v2020_v34  ;;  %v2023_v58 = vadd.f32 %v2022_v19, %v11342_v10  ;;  %v2024_v18 = vpop.f32.mrb[75].mxu1  ;;  %v2313_v30 = vpop.f32.mrb[75].mxu0  ;;  %v262_v46 = vld [vmem:[%s6246_s5 + $0x18] sm:$0xff]  ;;  %v8746_v34 = vld [vmem:[%s6246_s5 + $0x28] sm:$0xff] }
 0x23c   : > { %v406_v45 = vrot.slane %v262_v46, 1 }
 0x23d   : > { %11341 = vst [vmem:[#allocation187_spill] sm:$0xff] %v8732_v24  ;;  %v8735_v25 = vadd.f32 %v2311_v7, %v2023_v58  ;;  %2234 = vmatmul.mubr.bf16.gmra.mrb[180].mxu1 %v8405_v26  ;;  %2523 = vmatmul.mubr.bf16.gmra.mrb[180].mxu0 %v8411_v9  ;;  %v10744_v58 = vrot.slane %v8742_v15, 1  ;;  %v408_v26 = vrot.slane %v8746_v34, 1 }
 0x23e   : > { %2241 = vmatprep.mubr.bf16.mxu1 %v8439_v49  ;;  %2530 = vmatprep.mubr.bf16.mxu0 %v8441_v41 }
 0x23f   : > { %11343 = vst [vmem:[#allocation189_spill] sm:$0xff] %v8735_v25  ;;  %v11347_v25 = vld [vmem:[#allocation215_spill] sm:$0xff] }
 0x240   : > { %v2027_v48 = vpop.f32.mrb[76].mxu1  ;;  %v2316_v21 = vpop.f32.mrb[76].mxu0 }
 0x241   : > { %v2028_v27 = vadd.f32 %v2027_v48, %v8422_v54  ;;  %v2029_v30 = vpop.f32.mrb[77].mxu1  ;;  %v2318_v19 = vpop.f32.mrb[77].mxu0  ;;  %v11348_v54 = vld [vmem:[#allocation216_spill] sm:$0xff]  ;;  %v689_v48 = vsel %vm549_vm0, %v406_v45, %v408_v26 }
 0x242   : > { %v2030_v7 = vpop.f32.mrb[78].mxu1  ;;  %v2319_v10 = vpop.f32.mrb[78].mxu0  ;;  %v10745_v19 = vrot.slane %v8548_v50, 1 }
 0x243   : > { %v8750_v18 = vadd.f32 %v2316_v21, %v2028_v27  ;;  %v2031_v49 = vadd.f32 %v2030_v7, %v8435_v1  ;;  %v2032_v41 = vpop.f32.mrb[79].mxu1  ;;  %v2321_v9 = vpop.f32.mrb[79].mxu0  ;;  %v266_v7 = vld [vmem:[%s6246_s5 + $0x38] sm:$0xff] }
 0x244   : > { %v691_v9 = vsel %vm549_vm0, %v10744_v58, %v406_v45  ;;  %v11350_v45 = vld [vmem:[#allocation220_spill] sm:$0xff] }
 0x245   : > { %11345 = vst [vmem:[#allocation197_spill] sm:$0xff] %v8750_v18  ;;  %v8754_v59 = vadd.f32 %v2319_v10, %v2031_v49  ;;  %2242 = vmatmul.mubr.bf16.gmra.mrb[184].mxu1 %v11347_v25  ;;  %2531 = vmatmul.mubr.bf16.gmra.mrb[184].mxu0 %v11348_v54  ;;  %v11349_v49 = vld [vmem:[#allocation218_spill] sm:$0xff]  ;;  %v1056_v54 = vpack.c.bf16 %v689_v48, %v691_v9  ;;  %v405_v25 = vrot.slane %v8551_v38, 1 }
 0x246   : > { %2249 = vmatprep.mubr.bf16.mxu1 %v8488_v33  ;;  %2538 = vmatprep.mubr.bf16.mxu0 %v8490_v14  ;;  %v984_v14 = vpack.c.bf16 %v262_v46, %v8742_v15 }
 0x247   : > { %11346 = vst [vmem:[#allocation203_spill] sm:$0xff] %v8754_v59  ;;  %v407_v59 = vrot.slane %v8574_v5, 1  ;;  %v690_v48 = vsel %vm549_vm0, %v10745_v19, %v405_v25  ;;  %v5716_v19 = vld [vmem:[#allocation5 + $0x100] sm:$0xff]  }
 0x248   : > { %v2035_v1 = vpop.f32.mrb[80].mxu1  ;;  %v2324_v41 = vpop.f32.mrb[80].mxu0 }
 0x249   : > { %v2036_v21 = vadd.f32 %v2035_v1, %v11349_v49  ;;  %v2037_v27 = vpop.f32.mrb[81].mxu1  ;;  %v2326_v30 = vpop.f32.mrb[81].mxu0  ;;  %v410_v49 = vrot.slane %v266_v7, 1  ;;  %v688_v46 = vsel %vm549_vm0, %v405_v25, %v407_v59 }
 0x24a   : > { %v2038_v10 = vpop.f32.mrb[82].mxu1  ;;  %v2327_v33 = vpop.f32.mrb[82].mxu0 }
 0x24b   : > { %v8772_v18 = vadd.f32 %v2324_v41, %v2036_v21  ;;  %v2039_v58 = vadd.f32 %v2038_v10, %v11350_v45  ;;  %v2040_v24 = vpop.f32.mrb[83].mxu1  ;;  %v2329_v1 = vpop.f32.mrb[83].mxu0  ;;  %v11351_v41 = vld [vmem:[#allocation12_spill] sm:$0xff]  ;;  %v983_v10 = vpack.c.bf16 %v8551_v38, %v8548_v50  ;;  %v1055_v45 = vpack.c.bf16 %v688_v46, %v690_v48  ;;  %v5738_v50 = vld [vmem:[#allocation5 + $0x158] sm:$0xff]  }
 0x24c   : > { %v11352_v21 = vrot.slane %v11351_v41, 1  ;;  %v11353_v38 = vld [vmem:[#allocation16_spill] sm:$0xff] }
 0x24d   : > { %v8775_v27 = vadd.f32 %v2327_v33, %v2039_v58  ;;  %2250 = vmatmul.mubr.bf16.gmra.mrb[188].mxu1 %v8496_v60  ;;  %2539 = vmatmul.mubr.bf16.gmra.mrb[188].mxu0 %v8502_v28  ;;  %v687_v58 = vsel %vm549_vm0, %v408_v26, %v410_v49  ;;  %v5717_v28 = vld [vmem:[#allocation5 + $0x300] sm:$0xff]   ;;  %v409_v60 = vrot.slane %v8577_v35, 1  ;;  %v11354_v46 = vrot.slane %v11353_v38, 1  ;;  %v5722_v38 = vld [vmem:[#allocation5 + $0x118] sm:$0xff]  }
 0x24e   : > { %2867 = vmatprep.mubr.bf16.mxu1 %v984_v14  ;;  %3156 = vmatprep.mubr.bf16.mxu0 %v1056_v54  ;;  %v685_v33 = vsel %vm549_vm0, %v410_v49, %v11352_v21 }
 0x24f   : > { %v1058_v49 = vpack.c.bf16 %v685_v33, %v687_v58  ;;  %v684_v48 = vsel %vm549_vm0, %v409_v60, %v11354_v46  ;;  %v11355_v33 = vmov 0   ;;  %v5723_v46 = vld [vmem:[#allocation5 + $0x318] sm:$0xff]  }
 0x250   : > { %v2043_v9 = vpop.f32.mrb[84].mxu1  ;;  %v2332_v24 = vpop.f32.mrb[84].mxu0 }
 0x251   : > { %v2044_v14 = vadd.f32 %v2043_v9, %v8514_v39  ;;  %v2045_v54 = vpop.f32.mrb[85].mxu1  ;;  %v2334_v30 = vpop.f32.mrb[85].mxu0  ;;  %v986_v39 = vpack.c.bf16 %v266_v7, %v8746_v34 }
 0x252   : > { %v2046_v1 = vpop.f32.mrb[86].mxu1  ;;  %v2335_v25 = vpop.f32.mrb[86].mxu0  ;;  %v985_v54 = vpack.c.bf16 %v8577_v35, %v8574_v5  ;;  %v11358_v35 = vld [vmem:[#allocation14_spill] sm:$0xff]  ;;  %v11359_v5 = vld [vmem:[#allocation29_spill] sm:$0xff] }
 0x253   : > { %v8795_v15 = vadd.f32 %v2332_v24, %v2044_v14  ;;  %v2047_v21 = vadd.f32 %v2046_v1, %v8541_v61  ;;  %v2048_v41 = vpop.f32.mrb[87].mxu1  ;;  %v2337_v26 = vpop.f32.mrb[87].mxu0  ;;  %v686_v24 = vsel %vm549_vm0, %v407_v59, %v409_v60  ;;  %v5718_v61 = vld [vmem:[#allocation5 + $0x108] sm:$0xff]  }
 0x254   : > { %v5719_v41 = vld [vmem:[#allocation5 + $0x308] sm:$0xff]   ;;  %v1057_v30 = vpack.c.bf16 %v684_v48, %v686_v24  ;;  %v5720_v26 = vld [vmem:[#allocation5 + $0x110] sm:$0xff]  }
 0x255   : > { %v8799_v9 = vadd.f32 %v2335_v25, %v2047_v21  ;;  %2868 = vmatmul.mubr.bf16.vlgmr.msra.gmra.mrb[192].mxu1 %v983_v10  ;;  %3157 = vmatmul.mubr.bf16.vlgmr.msra.gmra.mrb[192].mxu0 %v1055_v45  ;;  %v11357_v45 = vld [vmem:[#allocation237_spill] sm:$0xff] }
 0x256   : > { %3414 = vmatpush1.bf16.msra.mxu1 %v5716_v19  ;;  %4088 = vmatpush1.bf16.msra.mxu0 %v5717_v28  ;;  %v11356_v19 = vld [vmem:[#allocation235_spill] sm:$0xff] }
 0x257   : > { %2875 = vmatprep.mubr.bf16.mxu1 %v986_v39  ;;  %3164 = vmatprep.mubr.bf16.mxu0 %v1058_v49  ;;  %v5721_v39 = vld [vmem:[#allocation5 + $0x310] sm:$0xff]  }
 0x258   : > { %v2051_v34 = vpop.f32.mrb[88].mxu1  ;;  %v2340_v7 = vpop.f32.mrb[88].mxu0  ;;  %3415 = vmatprep.subr.bf16.mxu1 %v11355_v33  ;;  %4089 = vmatprep.subr.bf16.mxu0 %v11355_v33 }
 0x259   : > { %v2052_v28 = vadd.f32 %v2051_v34, %v11356_v19  ;;  %v2053_v58 = vpop.f32.mrb[89].mxu1  ;;  %v2342_v14 = vpop.f32.mrb[89].mxu0 }
 0x25a   : > { %v2054_v10 = vpop.f32.mrb[90].mxu1  ;;  %v2343_v59 = vpop.f32.mrb[90].mxu0  ;;  %3416 = vmatpush1.bf16.msra.mxu1 %v5718_v61  ;;  %4090 = vmatpush1.bf16.msra.mxu0 %v5719_v41 }
 0x25b   : > { %v8812_v60 = vadd.f32 %v2340_v7, %v2052_v28  ;;  %v2055_v1 = vadd.f32 %v2054_v10, %v11357_v45  ;;  %v2056_v25 = vpop.f32.mrb[91].mxu1  ;;  %v2345_v21 = vpop.f32.mrb[91].mxu0  ;;  %3417 = vmatprep.subr.bf16.mxu1 %v11355_v33  ;;  %4091 = vmatprep.subr.bf16.mxu0 %v11355_v33  ;;  %v5725_v10 = vld [vmem:[#allocation5 + $0x320] sm:$0xff]   ;;  %v11361_v45 = vld [vmem:[#allocation45_spill] sm:$0xff] }
 0x25c   : > { %v11363_v25 = vld [vmem:[#allocation59_spill] sm:$0xff]  ;;  %v5727_v21 = vld [vmem:[#allocation5 + $0x328] sm:$0xff]  }
 0x25d   : > { %v8817_v49 = vadd.f32 %v2343_v59, %v2055_v1  ;;  %2876 = vmatmul.mubr.bf16.gmra.mrb[196].mxu1 %v985_v54  ;;  %3165 = vmatmul.mubr.bf16.gmra.mrb[196].mxu0 %v1057_v30  ;;  %v5724_v30 = vld [vmem:[#allocation5 + $0x120] sm:$0xff]  }
 0x25e   : > { %2883 = vmatprep.mubr.bf16.mxu1 %v11358_v35  ;;  %3172 = vmatprep.mubr.bf16.mxu0 %v11359_v5  ;;  %v11362_v1 = vld [vmem:[#allocation20_spill] sm:$0xff] }
 0x25f   : > { %3418 = vmatpush1.bf16.msra.mxu1 %v5720_v26  ;;  %4092 = vmatpush1.bf16.msra.mxu0 %v5721_v39 }
 0x260   : > { %v2059_v48 = vpop.f32.mrb[92].mxu1  ;;  %v2348_v24 = vpop.f32.mrb[92].mxu0  ;;  %3419 = vmatprep.subr.bf16.mxu1 %v11355_v33  ;;  %4093 = vmatprep.subr.bf16.mxu0 %v11355_v33 }
 0x261   : > { %v2060_v61 = vadd.f32 %v2059_v48, %v8599_v3  ;;  %v2061_v41 = vpop.f32.mrb[93].mxu1  ;;  %v2350_v34 = vpop.f32.mrb[93].mxu0  ;;  %v11360_v3 = vld [vmem:[#allocation18_spill] sm:$0xff] }
 0x262   : > { %v2062_v7 = vpop.f32.mrb[94].mxu1  ;;  %v2351_v19 = vpop.f32.mrb[94].mxu0 }
 0x263   : > { %v8824_v28 = vadd.f32 %v2348_v24, %v2060_v61  ;;  %v2063_v58 = vadd.f32 %v2062_v7, %v8607_v56  ;;  %v2064_v14 = vpop.f32.mrb[95].mxu1  ;;  %v2353_v54 = vpop.f32.mrb[95].mxu0  ;;  %3420 = vmatpush1.bf16.msra.mxu1 %v5722_v38  ;;  %4094 = vmatpush1.bf16.msra.mxu0 %v5723_v46  ;;  %v5726_v56 = vld [vmem:[#allocation5 + $0x128] sm:$0xff]   ;;  %v5728_v7 = vld [vmem:[#allocation5 + $0x130] sm:$0xff]  }
 0x264   : > { %3421 = vmatprep.subr.bf16.mxu1 %v11355_v33  ;;  %4095 = vmatprep.subr.bf16.mxu0 %v11355_v33  ;;  %v11365_v14 = vld [vmem:[#allocation75_spill] sm:$0xff]  ;;  %v11366_v54 = vld [vmem:[#allocation25_spill] sm:$0xff] }
 0x265   : > { %v8829_v59 = vadd.f32 %v2351_v19, %v2063_v58  ;;  %2884 = vmatmul.mubr.bf16.gmra.mrb[200].mxu1 %v11360_v3  ;;  %3173 = vmatmul.mubr.bf16.gmra.mrb[200].mxu0 %v11361_v45  ;;  %v5729_v19 = vld [vmem:[#allocation5 + $0x330] sm:$0xff]  }
 0x266   : > { %2891 = vmatprep.mubr.bf16.mxu1 %v11362_v1  ;;  %3180 = vmatprep.mubr.bf16.mxu0 %v11363_v25 }
 0x267   : > { %3422 = vmatpush1.bf16.msra.mxu1 %v5724_v30  ;;  %4096 = vmatpush1.bf16.msra.mxu0 %v5725_v10  ;;  %v11367_v30 = vld [vmem:[#allocation85_spill] sm:$0xff]  ;;  %v5731_v10 = vld [vmem:[#allocation5 + $0x338] sm:$0xff]  }
 0x268   : > { %v2067_v26 = vpop.f32.mrb[96].mxu1  ;;  %v2356_v39 = vpop.f32.mrb[96].mxu0  ;;  %3423 = vmatprep.subr.bf16.mxu1 %v11355_v33  ;;  %4097 = vmatprep.subr.bf16.mxu0 %v11355_v33 }
 0x269   : > { %v2068_v35 = vadd.f32 %v2067_v26, %v8615_v31  ;;  %v2069_v5 = vpop.f32.mrb[97].mxu1  ;;  %v2358_v38 = vpop.f32.mrb[97].mxu0  ;;  %v11364_v31 = vld [vmem:[#allocation23_spill] sm:$0xff] }
 0x26a   : > { %v2070_v46 = vpop.f32.mrb[98].mxu1  ;;  %v2359_v48 = vpop.f32.mrb[98].mxu0 }
 0x26b   : > { %v8838_v24 = vadd.f32 %v2356_v39, %v2068_v35  ;;  %v2071_v61 = vadd.f32 %v2070_v46, %v8619_v6  ;;  %v2072_v41 = vpop.f32.mrb[99].mxu1  ;;  %v2361_v34 = vpop.f32.mrb[99].mxu0  ;;  %3424 = vmatpush1.bf16.msra.mxu1 %v5726_v56  ;;  %4098 = vmatpush1.bf16.msra.mxu0 %v5727_v21  ;;  %v5730_v6 = vld [vmem:[#allocation5 + $0x138] sm:$0xff]   ;;  %v5732_v46 = vld [vmem:[#allocation5 + $0x140] sm:$0xff]  }
 0x26c   : > { %3425 = vmatprep.subr.bf16.mxu1 %v11355_v33  ;;  %4099 = vmatprep.subr.bf16.mxu0 %v11355_v33  ;;  %v11369_v41 = vld [vmem:[#allocation87_spill] sm:$0xff]  ;;  %v11370_v34 = vld [vmem:[#allocation30_spill] sm:$0xff] }
 0x26d   : > { %v8843_v58 = vadd.f32 %v2359_v48, %v2071_v61  ;;  %2892 = vmatmul.mubr.bf16.gmra.mrb[204].mxu1 %v11364_v31  ;;  %3181 = vmatmul.mubr.bf16.gmra.mrb[204].mxu0 %v11365_v14  ;;  %v5733_v48 = vld [vmem:[#allocation5 + $0x340] sm:$0xff]  }
 0x26e   : > { %2899 = vmatprep.mubr.bf16.mxu1 %v11366_v54  ;;  %3188 = vmatprep.mubr.bf16.mxu0 %v11367_v30  ;;  %v11390_v30 = vld [vmem:[#allocation56_spill] sm:$0xff] }
 0x26f   : > { %3426 = vmatpush1.bf16.msra.mxu1 %v5728_v7  ;;  %4100 = vmatpush1.bf16.msra.mxu0 %v5729_v19  ;;  %v11371_v7 = vld [vmem:[#allocation89_spill] sm:$0xff] }
 0x270   : > { %v2075_v3 = vpop.f32.mrb[100].mxu1  ;;  %v2364_v45 = vpop.f32.mrb[100].mxu0  ;;  %3427 = vmatprep.subr.bf16.mxu1 %v11355_v33  ;;  %4101 = vmatprep.subr.bf16.mxu0 %v11355_v33  ;;  %v5735_v19 = vld [vmem:[#allocation5 + $0x348] sm:$0xff]  }
 0x271   : > { %v2076_v1 = vadd.f32 %v2075_v3, %v8627_v36  ;;  %v2077_v25 = vpop.f32.mrb[101].mxu1  ;;  %v2366_v56 = vpop.f32.mrb[101].mxu0  ;;  %v11368_v36 = vld [vmem:[#allocation27_spill] sm:$0xff] }
 0x272   : > { %v2078_v21 = vpop.f32.mrb[102].mxu1  ;;  %v2367_v26 = vpop.f32.mrb[102].mxu0 }
 0x273   : > { %v8852_v39 = vadd.f32 %v2364_v45, %v2076_v1  ;;  %v2079_v35 = vadd.f32 %v2078_v21, %v8631_v17  ;;  %v2080_v5 = vpop.f32.mrb[103].mxu1  ;;  %v2369_v38 = vpop.f32.mrb[103].mxu0  ;;  %3428 = vmatpush1.bf16.msra.mxu1 %v5730_v6  ;;  %4102 = vmatpush1.bf16.msra.mxu0 %v5731_v10  ;;  %v5734_v17 = vld [vmem:[#allocation5 + $0x148] sm:$0xff]  }
 0x274   : > { %3429 = vmatprep.subr.bf16.mxu1 %v11355_v33  ;;  %4103 = vmatprep.subr.bf16.mxu0 %v11355_v33  ;;  %v5737_v5 = vld [vmem:[#allocation5 + $0x350] sm:$0xff]  }
 0x275   : > { %v8857_v61 = vadd.f32 %v2367_v26, %v2079_v35  ;;  %2900 = vmatmul.mubr.bf16.gmra.mrb[208].mxu1 %v11368_v36  ;;  %3189 = vmatmul.mubr.bf16.gmra.mrb[208].mxu0 %v11369_v41  ;;  %v5736_v35 = vld [vmem:[#allocation5 + $0x150] sm:$0xff]   ;;  %v5740_v41 = vld [vmem:[#allocation5 + $0x160] sm:$0xff]  }
 0x276   : > { %2907 = vmatprep.mubr.bf16.mxu1 %v11370_v34  ;;  %3196 = vmatprep.mubr.bf16.mxu0 %v11371_v7  ;;  %v11384_v7 = vld [vmem:[#allocation50_spill] sm:$0xff] }
 0x277   : > { %3430 = vmatpush1.bf16.msra.mxu1 %v5732_v46  ;;  %4104 = vmatpush1.bf16.msra.mxu0 %v5733_v48  ;;  %v11373_v46 = vld [vmem:[#allocation91_spill] sm:$0xff]  ;;  %v11374_v48 = vld [vmem:[#allocation34_spill] sm:$0xff] }
 0x278   : > { %v2083_v31 = vpop.f32.mrb[104].mxu1  ;;  %v2372_v14 = vpop.f32.mrb[104].mxu0  ;;  %3431 = vmatprep.subr.bf16.mxu1 %v11355_v33  ;;  %4105 = vmatprep.subr.bf16.mxu0 %v11355_v33 }
 0x279   : > { %v2084_v6 = vadd.f32 %v2083_v31, %v8639_v37  ;;  %v2085_v10 = vpop.f32.mrb[105].mxu1  ;;  %v2374_v3 = vpop.f32.mrb[105].mxu0  ;;  %v11372_v37 = vld [vmem:[#allocation32_spill] sm:$0xff]  ;;  %v11375_v31 = vld [vmem:[#allocation93_spill] sm:$0xff] }
 0x27a   : > { %v2086_v45 = vpop.f32.mrb[106].mxu1  ;;  %v2375_v1 = vpop.f32.mrb[106].mxu0 }
 0x27b   : > { %v8866_v25 = vadd.f32 %v2372_v14, %v2084_v6  ;;  %v2087_v56 = vadd.f32 %v2086_v45, %v8643_v43  ;;  %v2088_v21 = vpop.f32.mrb[107].mxu1  ;;  %v2377_v26 = vpop.f32.mrb[107].mxu0  ;;  %3432 = vmatpush1.bf16.msra.mxu1 %v5734_v17  ;;  %4106 = vmatpush1.bf16.msra.mxu0 %v5735_v19 }
 0x27c   : > { %3433 = vmatprep.subr.bf16.mxu1 %v11355_v33  ;;  %4107 = vmatprep.subr.bf16.mxu0 %v11355_v33 }
 0x27d   : > { %v8871_v38 = vadd.f32 %v2375_v1, %v2087_v56  ;;  %2908 = vmatmul.mubr.bf16.gmra.mrb[212].mxu1 %v11372_v37  ;;  %3197 = vmatmul.mubr.bf16.gmra.mrb[212].mxu0 %v11373_v46 }
 0x27e   : > { %2915 = vmatprep.mubr.bf16.mxu1 %v11374_v48  ;;  %3204 = vmatprep.mubr.bf16.mxu0 %v11375_v31  ;;  %v11378_v31 = vld [vmem:[#allocation40_spill] sm:$0xff] }
 0x27f   : > { %3434 = vmatpush1.bf16.msra.mxu1 %v5736_v35  ;;  %4108 = vmatpush1.bf16.msra.mxu0 %v5737_v5  ;;  %v11376_v35 = vld [vmem:[#allocation37_spill] sm:$0xff]  ;;  %v11377_v5 = vld [vmem:[#allocation95_spill] sm:$0xff] }
 0x280   : > { %v2091_v43 = vpop.f32.mrb[108].mxu1  ;;  %v2380_v17 = vpop.f32.mrb[108].mxu0  ;;  %3435 = vmatprep.subr.bf16.mxu1 %v11355_v33  ;;  %4109 = vmatprep.subr.bf16.mxu0 %v11355_v33 }
 0x281   : > { %v2092_v19 = vadd.f32 %v2091_v43, %v8651_v2  ;;  %v2093_v14 = vpop.f32.mrb[109].mxu1  ;;  %v2382_v6 = vpop.f32.mrb[109].mxu0  ;;  %v11379_v2 = vld [vmem:[#allocation97_spill] sm:$0xff] }
 0x282   : > { %v2094_v10 = vpop.f32.mrb[110].mxu1  ;;  %v2383_v3 = vpop.f32.mrb[110].mxu0 }
 0x283   : > { %v8880_v45 = vadd.f32 %v2380_v17, %v2092_v19  ;;  %v2095_v1 = vadd.f32 %v2094_v10, %v8655_v12  ;;  %v2096_v56 = vpop.f32.mrb[111].mxu1  ;;  %v2385_v21 = vpop.f32.mrb[111].mxu0  ;;  %3436 = vmatpush1.bf16.msra.mxu1 %v5738_v50  ;;  %v11382_v50 = vld [vmem:[#allocation42_spill] sm:$0xff] }
 0x284   : > { %3437 = vmatprep.subr.bf16.mxu1 %v11355_v33 }
 0x285   : > { %v8883_v26 = vadd.f32 %v2383_v3, %v2095_v1  ;;  %2916 = vmatmul.mubr.bf16.gmra.mrb[216].mxu1 %v11376_v35  ;;  %3205 = vmatmul.mubr.bf16.gmra.mrb[216].mxu0 %v11377_v5  ;;  %v5739_v5 = vld [vmem:[#allocation5 + $0x358] sm:$0xff]  }
 0x286   : > { %2923 = vmatprep.mubr.bf16.mxu1 %v11378_v31  ;;  %3212 = vmatprep.mubr.bf16.mxu0 %v11379_v2  ;;  %v11383_v2 = vld [vmem:[#allocation99_spill] sm:$0xff] }
 0x287   : > { %4110 = vmatpush1.bf16.msra.mxu0 %v5739_v5  ;;  %v11389_v5 = vld [vmem:[#allocation49_spill] sm:$0xff]  ;;  %3438 = vmatpush1.bf16.msra.mxu1 %v5740_v41 }
 0x288   : > { %v2099_v43 = vpop.f32.mrb[112].mxu1  ;;  %v2388_v14 = vpop.f32.mrb[112].mxu0  ;;  %4111 = vmatprep.subr.bf16.mxu0 %v11355_v33  ;;  %3439 = vmatprep.subr.bf16.mxu1 %v11355_v33  ;;  %v11394_v41 = vld [vmem:[#allocation61_spill] sm:$0xff] }
 0x289   : > { %v2100_v12 = vadd.f32 %v2099_v43, %v8663_v63  ;;  %v2101_v17 = vpop.f32.mrb[113].mxu1  ;;  %v2390_v19 = vpop.f32.mrb[113].mxu0  ;;  %v11385_v63 = vld [vmem:[#allocation39_spill] sm:$0xff] }
 0x28a   : > { %v2102_v6 = vpop.f32.mrb[114].mxu1  ;;  %v2391_v10 = vpop.f32.mrb[114].mxu0 }
 0x28b   : > { %v8891_v3 = vadd.f32 %v2388_v14, %v2100_v12  ;;  %v2103_v1 = vadd.f32 %v2102_v6, %v8667_v52  ;;  %v2104_v56 = vpop.f32.mrb[115].mxu1  ;;  %v2393_v21 = vpop.f32.mrb[115].mxu0 }
 0x28d   : > { %11380 = vst [vmem:[#allocation205_spill] sm:$0xff] %v8891_v3  ;;  %v8894_v46 = vadd.f32 %v2391_v10, %v2103_v1  ;;  %2924 = vmatmul.mubr.bf16.gmra.mrb[220].mxu1 %v11382_v50  ;;  %3213 = vmatmul.mubr.bf16.gmra.mrb[220].mxu0 %v11383_v2  ;;  %v11418_v3 = vld [vmem:[#allocation70_spill] sm:$0xff] }
 0x28e   : > { %2931 = vmatprep.mubr.bf16.mxu1 %v11384_v7  ;;  %3220 = vmatprep.mubr.bf16.mxu0 %v11385_v63  ;;  %v11388_v63 = vld [vmem:[#allocation53_spill] sm:$0xff] }
 0x28f   : > { %11381 = vst [vmem:[#allocation218_spill] sm:$0xff] %v8894_v46  ;;  %v11409_v46 = vld [vmem:[#allocation63_spill] sm:$0xff] }
 0x290   : > { %v2107_v43 = vpop.f32.mrb[116].mxu1  ;;  %v2396_v17 = vpop.f32.mrb[116].mxu0 }
 0x291   : > { %v2108_v52 = vadd.f32 %v2107_v43, %v8675_v16  ;;  %v2109_v14 = vpop.f32.mrb[117].mxu1  ;;  %v2398_v12 = vpop.f32.mrb[117].mxu0  ;;  %v11391_v16 = vld [vmem:[#allocation55_spill] sm:$0xff] }
 0x292   : > { %v2110_v19 = vpop.f32.mrb[118].mxu1  ;;  %v2399_v6 = vpop.f32.mrb[118].mxu0 }
 0x293   : > { %v8902_v10 = vadd.f32 %v2396_v17, %v2108_v52  ;;  %v2111_v1 = vadd.f32 %v2110_v19, %v8679_v40  ;;  %v2112_v56 = vpop.f32.mrb[119].mxu1  ;;  %v2401_v21 = vpop.f32.mrb[119].mxu0 }
 0x295   : > { %11386 = vst [vmem:[#allocation220_spill] sm:$0xff] %v8902_v10  ;;  %v8905_v2 = vadd.f32 %v2399_v6, %v2111_v1  ;;  %2932 = vmatmul.mubr.bf16.gmra.mrb[224].mxu1 %v11388_v63  ;;  %3221 = vmatmul.mubr.bf16.gmra.mrb[224].mxu0 %v11389_v5  ;;  %v5741_v5 = vld [vmem:[#allocation5 + $0x360] sm:$0xff]  }
 0x296   : > { %2939 = vmatprep.mubr.bf16.mxu1 %v11390_v30  ;;  %3228 = vmatprep.mubr.bf16.mxu0 %v11391_v16  ;;  %v11395_v16 = vld [vmem:[#allocation52_spill] sm:$0xff] }
 0x297   : > { %11387 = vst [vmem:[#allocation16_spill] sm:$0xff] %v8905_v2  ;;  %v11396_v10 = vld [vmem:[#allocation64_spill] sm:$0xff]  ;;  %4112 = vmatpush1.bf16.msra.mxu0 %v5741_v5  ;;  %v11401_v5 = vld [vmem:[#allocation58_spill] sm:$0xff] }
 0x298   : > { %v2115_v43 = vpop.f32.mrb[120].mxu1  ;;  %v2404_v14 = vpop.f32.mrb[120].mxu0  ;;  %4113 = vmatprep.subr.bf16.mxu0 %v11355_v33 }
 0x299   : > { %v2116_v40 = vadd.f32 %v2115_v43, %v8687_v0  ;;  %v2117_v17 = vpop.f32.mrb[121].mxu1  ;;  %v2406_v52 = vpop.f32.mrb[121].mxu0  ;;  %v11397_v0 = vld [vmem:[#allocation101_spill] sm:$0xff] }
 0x29a   : > { %v2118_v12 = vpop.f32.mrb[122].mxu1  ;;  %v2407_v19 = vpop.f32.mrb[122].mxu0 }
 0x29b   : > { %v8913_v6 = vadd.f32 %v2404_v14, %v2116_v40  ;;  %v2119_v1 = vadd.f32 %v2118_v12, %v8691_v44  ;;  %v2120_v56 = vpop.f32.mrb[123].mxu1  ;;  %v2409_v21 = vpop.f32.mrb[123].mxu0 }
 0x29d   : > { %11392 = vst [vmem:[#allocation235_spill] sm:$0xff] %v8913_v6  ;;  %v8916_v2 = vadd.f32 %v2407_v19, %v2119_v1  ;;  %2940 = vmatmul.mubr.bf16.gmra.mrb[228].mxu1 %v11394_v41  ;;  %3229 = vmatmul.mubr.bf16.gmra.mrb[228].mxu0 %v11395_v16  ;;  %v11402_v6 = vld [vmem:[#allocation71_spill] sm:$0xff] }
 0x29e   : > { %2947 = vmatprep.mubr.bf16.mxu1 %v11396_v10  ;;  %3236 = vmatprep.mubr.bf16.mxu0 %v11397_v0  ;;  %v11400_v0 = vld [vmem:[#allocation68_spill] sm:$0xff] }
 0x29f   : > { %11393 = vst [vmem:[#allocation237_spill] sm:$0xff] %v8916_v2  ;;  %v5742_v2 = vld [vmem:[#allocation5 + $0x168] sm:$0xff]  }
 0x2a0   : > { %v2123_v43 = vpop.f32.mrb[124].mxu1  ;;  %v2412_v17 = vpop.f32.mrb[124].mxu0  ;;  %3440 = vmatpush1.bf16.msra.mxu1 %v5742_v2 }
 0x2a1   : > { %v2124_v44 = vadd.f32 %v2123_v43, %v8699_v4  ;;  %v2125_v14 = vpop.f32.mrb[125].mxu1  ;;  %v2414_v40 = vpop.f32.mrb[125].mxu0  ;;  %v11403_v4 = vld [vmem:[#allocation104_spill] sm:$0xff]  ;;  %3441 = vmatprep.subr.bf16.mxu1 %v11355_v33 }
 0x2a2   : > { %v2126_v52 = vpop.f32.mrb[126].mxu1  ;;  %v2415_v12 = vpop.f32.mrb[126].mxu0 }
 0x2a3   : > { %v8924_v19 = vadd.f32 %v2412_v17, %v2124_v44  ;;  %v2127_v1 = vadd.f32 %v2126_v52, %v8703_v29  ;;  %v2128_v56 = vpop.f32.mrb[127].mxu1  ;;  %v2417_v21 = vpop.f32.mrb[127].mxu0  ;;  %v11404_v17 = vld [vmem:[#allocation188_spill] sm:$0xff] }
 0x2a4   : > { %v5743_v52 = vld [vmem:[#allocation5 + $0x368] sm:$0xff]   ;;  %v11406_v21 = vld [vmem:[#allocation190_spill] sm:$0xff] }
 0x2a5   : > { %11398 = vst [vmem:[#allocation14_spill] sm:$0xff] %v8924_v19  ;;  %v8927_v16 = vadd.f32 %v2415_v12, %v2127_v1  ;;  %2948 = vmatmul.mubr.bf16.gmra.mrb[232].mxu1 %v11400_v0  ;;  %3237 = vmatmul.mubr.bf16.gmra.mrb[232].mxu0 %v11401_v5 }
 0x2a6   : > { %2955 = vmatprep.mubr.bf16.mxu1 %v11402_v6  ;;  %3244 = vmatprep.mubr.bf16.mxu0 %v11403_v4  ;;  %v11408_v4 = vld [vmem:[#allocation74_spill] sm:$0xff] }
 0x2a7   : > { %11399 = vst [vmem:[#allocation29_spill] sm:$0xff] %v8927_v16  ;;  %4114 = vmatpush1.bf16.msra.mxu0 %v5743_v52 }
 0x2a8   : > { %v2131_v43 = vpop.f32.mrb[128].mxu1  ;;  %v2420_v14 = vpop.f32.mrb[128].mxu0  ;;  %4115 = vmatprep.subr.bf16.mxu0 %v11355_v33 }
 0x2a9   : > { %v2132_v29 = vadd.f32 %v2131_v43, %v11404_v17  ;;  %v2133_v44 = vpop.f32.mrb[129].mxu1  ;;  %v2422_v40 = vpop.f32.mrb[129].mxu0  ;;  %v11410_v43 = vld [vmem:[#allocation81_spill] sm:$0xff]  ;;  %v11411_v17 = vld [vmem:[#allocation67_spill] sm:$0xff] }
 0x2aa   : > { %v2134_v12 = vpop.f32.mrb[130].mxu1  ;;  %v2423_v1 = vpop.f32.mrb[130].mxu0 }
 0x2ab   : > { %v8935_v56 = vadd.f32 %v2420_v14, %v2132_v29  ;;  %v2135_v5 = vadd.f32 %v2134_v12, %v11406_v21  ;;  %v2136_v16 = vpop.f32.mrb[131].mxu1  ;;  %v2425_v19 = vpop.f32.mrb[131].mxu0  ;;  %v11412_v29 = vld [vmem:[#allocation196_spill] sm:$0xff] }
 0x2ad   : > { %11405 = vst [vmem:[#allocation18_spill] sm:$0xff] %v8935_v56  ;;  %v8939_v2 = vadd.f32 %v2423_v1, %v2135_v5  ;;  %2956 = vmatmul.mubr.bf16.gmra.mrb[236].mxu1 %v11408_v4  ;;  %3245 = vmatmul.mubr.bf16.gmra.mrb[236].mxu0 %v11409_v46  ;;  %v11414_v5 = vld [vmem:[#allocation198_spill] sm:$0xff]  ;;  %v11416_v46 = vld [vmem:[#allocation84_spill] sm:$0xff] }
 0x2ae   : > { %2963 = vmatprep.mubr.bf16.mxu1 %v11410_v43  ;;  %3252 = vmatprep.mubr.bf16.mxu0 %v11411_v17  ;;  %v11417_v43 = vld [vmem:[#allocation109_spill] sm:$0xff] }
 0x2af   : > { %11407 = vst [vmem:[#allocation45_spill] sm:$0xff] %v8939_v2  ;;  %v5744_v17 = vld [vmem:[#allocation5 + $0x170] sm:$0xff]  }
 0x2b0   : > { %v2139_v44 = vpop.f32.mrb[132].mxu1  ;;  %v2428_v14 = vpop.f32.mrb[132].mxu0  ;;  %3442 = vmatpush1.bf16.msra.mxu1 %v5744_v17 }
 0x2b1   : > { %v2140_v40 = vadd.f32 %v2139_v44, %v11412_v29  ;;  %v2141_v12 = vpop.f32.mrb[133].mxu1  ;;  %v2430_v16 = vpop.f32.mrb[133].mxu0  ;;  %v11419_v44 = vld [vmem:[#allocation115_spill] sm:$0xff]  ;;  %3443 = vmatprep.subr.bf16.mxu1 %v11355_v33 }
 0x2b2   : > { %v2142_v19 = vpop.f32.mrb[134].mxu1  ;;  %v2431_v52 = vpop.f32.mrb[134].mxu0  ;;  %v5745_v16 = vld [vmem:[#allocation5 + $0x370] sm:$0xff]  }
 0x2b3   : > { %v8946_v21 = vadd.f32 %v2428_v14, %v2140_v40  ;;  %v2143_v1 = vadd.f32 %v2142_v19, %v11414_v5  ;;  %v2144_v2 = vpop.f32.mrb[135].mxu1  ;;  %v2433_v56 = vpop.f32.mrb[135].mxu0  ;;  %v11420_v14 = vld [vmem:[#allocation204_spill] sm:$0xff]  ;;  %4116 = vmatpush1.bf16.msra.mxu0 %v5745_v16 }
 0x2b4   : > { %4117 = vmatprep.subr.bf16.mxu0 %v11355_v33 }
 0x2b5   : > { %11413 = vst [vmem:[#allocation20_spill] sm:$0xff] %v8946_v21  ;;  %v8949_v4 = vadd.f32 %v2431_v52, %v2143_v1  ;;  %2964 = vmatmul.mubr.bf16.gmra.mrb[240].mxu1 %v11416_v46  ;;  %3253 = vmatmul.mubr.bf16.gmra.mrb[240].mxu0 %v11417_v43  ;;  %v11422_v1 = vld [vmem:[#allocation206_spill] sm:$0xff] }
 0x2b6   : > { %2971 = vmatprep.mubr.bf16.mxu1 %v11418_v3  ;;  %3260 = vmatprep.mubr.bf16.mxu0 %v11419_v44  ;;  %v11424_v44 = vld [vmem:[#allocation111_spill] sm:$0xff]  ;;  %v11425_v3 = vld [vmem:[#allocation117_spill] sm:$0xff]  ;;  %v11434_v46 = vld [vmem:[#allocation78_spill] sm:$0xff] }
 0x2b7   : > { %11415 = vst [vmem:[#allocation59_spill] sm:$0xff] %v8949_v4 }
 0x2b8   : > { %v2147_v29 = vpop.f32.mrb[136].mxu1  ;;  %v2436_v12 = vpop.f32.mrb[136].mxu0 }
 0x2b9   : > { %v2148_v40 = vadd.f32 %v2147_v29, %v11420_v14  ;;  %v2149_v2 = vpop.f32.mrb[137].mxu1  ;;  %v2438_v56 = vpop.f32.mrb[137].mxu0  ;;  %v11426_v29 = vld [vmem:[#allocation113_spill] sm:$0xff]  ;;  %v11427_v14 = vld [vmem:[#allocation120_spill] sm:$0xff] }
 0x2ba   : > { %v2150_v19 = vpop.f32.mrb[138].mxu1  ;;  %v2439_v52 = vpop.f32.mrb[138].mxu0 }
 0x2bb   : > { %v8957_v5 = vadd.f32 %v2436_v12, %v2148_v40  ;;  %v2151_v43 = vadd.f32 %v2150_v19, %v11422_v1  ;;  %v2152_v4 = vpop.f32.mrb[139].mxu1  ;;  %v2441_v21 = vpop.f32.mrb[139].mxu0  ;;  %v11428_v40 = vld [vmem:[#allocation211_spill] sm:$0xff] }
 0x2bd   : > { %11421 = vst [vmem:[#allocation23_spill] sm:$0xff] %v8957_v5  ;;  %v8961_v17 = vadd.f32 %v2439_v52, %v2151_v43  ;;  %2972 = vmatmul.mubr.bf16.gmra.mrb[244].mxu1 %v11424_v44  ;;  %3261 = vmatmul.mubr.bf16.gmra.mrb[244].mxu0 %v11425_v3  ;;  %v11430_v43 = vld [vmem:[#allocation212_spill] sm:$0xff] }
 0x2be   : > { %2979 = vmatprep.mubr.bf16.mxu1 %v11426_v29  ;;  %3268 = vmatprep.mubr.bf16.mxu0 %v11427_v14  ;;  %v11432_v3 = vld [vmem:[#allocation76_spill] sm:$0xff]  ;;  %v11433_v29 = vld [vmem:[#allocation122_spill] sm:$0xff] }
 0x2bf   : > { %11423 = vst [vmem:[#allocation75_spill] sm:$0xff] %v8961_v17  ;;  %v5746_v14 = vld [vmem:[#allocation5 + $0x178] sm:$0xff]  }
 0x2c0   : > { %v2155_v2 = vpop.f32.mrb[140].mxu1  ;;  %v2444_v12 = vpop.f32.mrb[140].mxu0  ;;  %3444 = vmatpush1.bf16.msra.mxu1 %v5746_v14 }
 0x2c1   : > { %v2156_v56 = vadd.f32 %v2155_v2, %v11428_v40  ;;  %v2157_v19 = vpop.f32.mrb[141].mxu1  ;;  %v2446_v4 = vpop.f32.mrb[141].mxu0  ;;  %v11435_v2 = vld [vmem:[#allocation127_spill] sm:$0xff]  ;;  %4376 = vmatprep.subr.bf16.mxu1 %v11355_v33 }
 0x2c2   : > { %v2158_v21 = vpop.f32.mrb[142].mxu1  ;;  %v2447_v16 = vpop.f32.mrb[142].mxu0  ;;  %v5747_v4 = vld [vmem:[#allocation5 + $0x378] sm:$0xff]  }
 0x2c3   : > { %v8968_v1 = vadd.f32 %v2444_v12, %v2156_v56  ;;  %v2159_v52 = vadd.f32 %v2158_v21, %v11430_v43  ;;  %v2160_v17 = vpop.f32.mrb[143].mxu1  ;;  %v2449_v5 = vpop.f32.mrb[143].mxu0  ;;  %v11436_v12 = vld [vmem:[#allocation219_spill] sm:$0xff]  ;;  %4118 = vmatpush1.bf16.msra.mxu0 %v5747_v4 }
 0x2c4   : > { %4665 = vmatprep.subr.bf16.mxu0 %v11355_v33 }
 0x2c5   : > { %11429 = vst [vmem:[#allocation25_spill] sm:$0xff] %v8968_v1  ;;  %v8971_v44 = vadd.f32 %v2447_v16, %v2159_v52  ;;  %2980 = vmatmul.mubr.bf16.gmra.mrb[248].mxu1 %v11432_v3  ;;  %3269 = vmatmul.mubr.bf16.gmra.mrb[248].mxu0 %v11433_v29  ;;  %v11438_v52 = vld [vmem:[#allocation221_spill] sm:$0xff] }
 0x2c6   : > { %2987 = vmatprep.mubr.bf16.mxu1 %v11434_v46  ;;  %3276 = vmatprep.mubr.bf16.mxu0 %v11435_v2  ;;  %v11440_v2 = vld [vmem:[#allocation83_spill] sm:$0xff]  ;;  %v11441_v46 = vld [vmem:[#allocation129_spill] sm:$0xff] }
 0x2c7   : > { %11431 = vst [vmem:[#allocation27_spill] sm:$0xff] %v8971_v44  ;;  %v11451_v3 = vld [vmem:[#allocation13_spill] sm:$0xff] }
 0x2c8   : > { %v2163_v40 = vpop.f32.mrb[144].mxu1  ;;  %v2452_v19 = vpop.f32.mrb[144].mxu0 }
 0x2c9   : > { %v2164_v56 = vadd.f32 %v2163_v40, %v11436_v12  ;;  %v2165_v17 = vpop.f32.mrb[145].mxu1  ;;  %v2454_v5 = vpop.f32.mrb[145].mxu0  ;;  %v11442_v40 = vld [vmem:[#allocation125_spill] sm:$0xff]  ;;  %v11443_v12 = vld [vmem:[#allocation135_spill] sm:$0xff] }
 0x2ca   : > { %v2166_v21 = vpop.f32.mrb[146].mxu1  ;;  %v2455_v16 = vpop.f32.mrb[146].mxu0 }
 0x2cb   : > { %v8979_v43 = vadd.f32 %v2452_v19, %v2164_v56  ;;  %v2167_v29 = vadd.f32 %v2166_v21, %v11438_v52  ;;  %v2168_v44 = vpop.f32.mrb[147].mxu1  ;;  %v2457_v1 = vpop.f32.mrb[147].mxu0  ;;  %v11444_v56 = vld [vmem:[#allocation227_spill] sm:$0xff] }
 0x2cd   : > { %11437 = vst [vmem:[#allocation30_spill] sm:$0xff] %v8979_v43  ;;  %v8983_v14 = vadd.f32 %v2455_v16, %v2167_v29  ;;  %2988 = vmatmul.mubr.bf16.gmra.mrb[252].mxu1 %v11440_v2  ;;  %3277 = vmatmul.mubr.bf16.gmra.mrb[252].mxu0 %v11441_v46  ;;  %v11446_v29 = vld [vmem:[#allocation232_spill] sm:$0xff]  ;;  %v11448_v46 = vld [vmem:[#allocation131_spill] sm:$0xff] }
 0x2ce   : > { %2995 = vmatprep.mubr.bf16.mxu1 %v11442_v40  ;;  %3284 = vmatprep.mubr.bf16.mxu0 %v11443_v12  ;;  %v11449_v40 = vld [vmem:[#allocation137_spill] sm:$0xff] }
 0x2cf   : > { %11439 = vst [vmem:[#allocation32_spill] sm:$0xff] %v8983_v14  ;;  %v11450_v12 = vld [vmem:[#allocation133_spill] sm:$0xff] }
 0x2d0   : > { %v2171_v17 = vpop.f32.mrb[148].mxu1  ;;  %v2460_v19 = vpop.f32.mrb[148].mxu0 }
 0x2d1   : > { %v2172_v5 = vadd.f32 %v2171_v17, %v11444_v56  ;;  %v2173_v21 = vpop.f32.mrb[149].mxu1  ;;  %v2462_v44 = vpop.f32.mrb[149].mxu0 }
 0x2d2   : > { %v2174_v1 = vpop.f32.mrb[150].mxu1  ;;  %v2463_v4 = vpop.f32.mrb[150].mxu0  ;;  %v11452_v21 = vld [vmem:[#allocation236_spill] sm:$0xff] }
 0x2d3   : > { %v8990_v52 = vadd.f32 %v2460_v19, %v2172_v5  ;;  %v2175_v16 = vadd.f32 %v2174_v1, %v11446_v29  ;;  %v2176_v14 = vpop.f32.mrb[151].mxu1  ;;  %v2465_v43 = vpop.f32.mrb[151].mxu0 }
 0x2d4   : > { %v11454_v43 = vld [vmem:[#allocation238_spill] sm:$0xff] }
 0x2d5   : > { %11445 = vst [vmem:[#allocation34_spill] sm:$0xff] %v8990_v52  ;;  %v8993_v2 = vadd.f32 %v2463_v4, %v2175_v16  ;;  %2996 = vmatmul.mubr.bf16.gmra.mrb[0].mxu1 %v11448_v46  ;;  %3285 = vmatmul.mubr.bf16.gmra.mrb[0].mxu0 %v11449_v40  ;;  %v11456_v40 = vld [vmem:[#allocation139_spill] sm:$0xff] }
 0x2d6   : > { %3003 = vmatprep.mubr.bf16.mxu1 %v11450_v12  ;;  %3292 = vmatprep.mubr.bf16.mxu0 %v11451_v3  ;;  %v11457_v12 = vld [vmem:[#allocation17_spill] sm:$0xff]  ;;  %v11458_v3 = vld [vmem:[#allocation15_spill] sm:$0xff] }
 0x2d7   : > { %11447 = vst [vmem:[#allocation37_spill] sm:$0xff] %v8993_v2  ;;  %v11459_v46 = vld [vmem:[#allocation143_spill] sm:$0xff] }
 0x2d8   : > { %v2179_v17 = vpop.f32.mrb[152].mxu1  ;;  %v2468_v56 = vpop.f32.mrb[152].mxu0 }
 0x2d9   : > { %v2180_v44 = vadd.f32 %v2179_v17, %v11452_v21  ;;  %v2181_v19 = vpop.f32.mrb[153].mxu1  ;;  %v2470_v5 = vpop.f32.mrb[153].mxu0 }
 0x2da   : > { %v2182_v52 = vpop.f32.mrb[154].mxu1  ;;  %v2471_v1 = vpop.f32.mrb[154].mxu0 }
 0x2db   : > { %v9000_v14 = vadd.f32 %v2468_v56, %v2180_v44  ;;  %v2183_v4 = vadd.f32 %v2182_v52, %v11454_v43  ;;  %v2184_v29 = vpop.f32.mrb[155].mxu1  ;;  %v2473_v16 = vpop.f32.mrb[155].mxu0 }
 0x2dd   : > { %11453 = vst [vmem:[#allocation40_spill] sm:$0xff] %v9000_v14  ;;  %v9003_v2 = vadd.f32 %v2471_v1, %v2183_v4  ;;  %3004 = vmatmul.mubr.bf16.gmra.mrb[4].mxu1 %v11456_v40  ;;  %3293 = vmatmul.mubr.bf16.gmra.mrb[4].mxu0 %v11457_v12  ;;  %v11462_v12 = vld [vmem:[#allocation19_spill] sm:$0xff] }
 0x2de   : > { %3011 = vmatprep.mubr.bf16.mxu1 %v11458_v3  ;;  %3300 = vmatprep.mubr.bf16.mxu0 %v11459_v46  ;;  %v11464_v46 = vld [vmem:[#allocation21_spill] sm:$0xff]  ;;  %v11465_v14 = vld [vmem:[#allocation147_spill] sm:$0xff] }
 0x2df   : > { %11455 = vst [vmem:[#allocation42_spill] sm:$0xff] %v9003_v2  ;;  %v11463_v2 = vld [vmem:[#allocation145_spill] sm:$0xff] }
 0x2e0   : > { %v2187_v17 = vpop.f32.mrb[156].mxu1  ;;  %v2476_v21 = vpop.f32.mrb[156].mxu0 }
 0x2e1   : > { %v2188_v19 = vadd.f32 %v2187_v17, %v8601_v47  ;;  %v2189_v56 = vpop.f32.mrb[157].mxu1  ;;  %v2478_v44 = vpop.f32.mrb[157].mxu0 }
 0x2e2   : > { %v2190_v5 = vpop.f32.mrb[158].mxu1  ;;  %v2479_v52 = vpop.f32.mrb[158].mxu0 }
 0x2e3   : > { %v9010_v43 = vadd.f32 %v2476_v21, %v2188_v19  ;;  %v2191_v1 = vadd.f32 %v2190_v5, %v8609_v22  ;;  %v2192_v4 = vpop.f32.mrb[159].mxu1  ;;  %v2481_v29 = vpop.f32.mrb[159].mxu0 }
 0x2e5   : > { %11460 = vst [vmem:[#allocation50_spill] sm:$0xff] %v9010_v43  ;;  %v9013_v16 = vadd.f32 %v2479_v52, %v2191_v1  ;;  %3012 = vmatmul.mubr.bf16.gmra.mrb[8].mxu1 %v11462_v12  ;;  %3301 = vmatmul.mubr.bf16.gmra.mrb[8].mxu0 %v11463_v2  ;;  %v11468_v2 = vld [vmem:[#allocation24_spill] sm:$0xff]  ;;  %v11471_v43 = vld [vmem:[#allocation151_spill] sm:$0xff] }
 0x2e6   : > { %3019 = vmatprep.mubr.bf16.mxu1 %v11464_v46  ;;  %3308 = vmatprep.mubr.bf16.mxu0 %v11465_v14  ;;  %v11470_v14 = vld [vmem:[#allocation26_spill] sm:$0xff] }
 0x2e7   : > { %11461 = vst [vmem:[#allocation53_spill] sm:$0xff] %v9013_v16  ;;  %v11469_v16 = vld [vmem:[#allocation149_spill] sm:$0xff] }
 0x2e8   : > { %v2195_v47 = vpop.f32.mrb[160].mxu1  ;;  %v2484_v17 = vpop.f32.mrb[160].mxu0 }
 0x2e9   : > { %v2196_v56 = vadd.f32 %v2195_v47, %v8617_v62  ;;  %v2197_v21 = vpop.f32.mrb[161].mxu1  ;;  %v2486_v19 = vpop.f32.mrb[161].mxu0 }
 0x2ea   : > { %v2198_v44 = vpop.f32.mrb[162].mxu1  ;;  %v2487_v22 = vpop.f32.mrb[162].mxu0 }
 0x2eb   : > { %v9020_v5 = vadd.f32 %v2484_v17, %v2196_v56  ;;  %v2199_v52 = vadd.f32 %v2198_v44, %v8621_v11  ;;  %v2200_v1 = vpop.f32.mrb[163].mxu1  ;;  %v2489_v4 = vpop.f32.mrb[163].mxu0 }
 0x2ed   : > { %11466 = vst [vmem:[#allocation56_spill] sm:$0xff] %v9020_v5  ;;  %v9023_v29 = vadd.f32 %v2487_v22, %v2199_v52  ;;  %3020 = vmatmul.mubr.bf16.gmra.mrb[12].mxu1 %v11468_v2  ;;  %3309 = vmatmul.mubr.bf16.gmra.mrb[12].mxu0 %v11469_v16  ;;  %v11474_v16 = vld [vmem:[#allocation28_spill] sm:$0xff]  ;;  %v11488_v5 = vld [vmem:[#allocation161_spill] sm:$0xff] }
 0x2ee   : > { %3027 = vmatprep.mubr.bf16.mxu1 %v11470_v14  ;;  %3316 = vmatprep.mubr.bf16.mxu0 %v11471_v43  ;;  %v11475_v43 = vld [vmem:[#allocation31_spill] sm:$0xff] }
 0x2ef   : > { %11467 = vst [vmem:[#allocation61_spill] sm:$0xff] %v9023_v29  ;;  %v11482_v29 = vld [vmem:[#allocation159_spill] sm:$0xff] }
 0x2f0   : > { %v2203_v62 = vpop.f32.mrb[164].mxu1  ;;  %v2492_v47 = vpop.f32.mrb[164].mxu0 }
 0x2f1   : > { %v2204_v21 = vadd.f32 %v2203_v62, %v8629_v23  ;;  %v2205_v17 = vpop.f32.mrb[165].mxu1  ;;  %v2494_v56 = vpop.f32.mrb[165].mxu0 }
 0x2f2   : > { %v2206_v19 = vpop.f32.mrb[166].mxu1  ;;  %v2495_v11 = vpop.f32.mrb[166].mxu0 }
 0x2f3   : > { %v9030_v44 = vadd.f32 %v2492_v47, %v2204_v21  ;;  %v2207_v22 = vadd.f32 %v2206_v19, %v8633_v32  ;;  %v2208_v52 = vpop.f32.mrb[167].mxu1  ;;  %v2497_v1 = vpop.f32.mrb[167].mxu0 }
 0x2f5   : > { %11472 = vst [vmem:[#allocation64_spill] sm:$0xff] %v9030_v44  ;;  %v9033_v4 = vadd.f32 %v2495_v11, %v2207_v22  ;;  %3028 = vmatmul.mubr.bf16.gmra.mrb[16].mxu1 %v11474_v16  ;;  %3317 = vmatmul.mubr.bf16.gmra.mrb[16].mxu0 %v7969_v20  ;;  %v11477_v11 = vld [vmem:[#allocation242_spill] sm:$0xff]  ;;  %v11479_v20 = vld [vmem:[#allocation33_spill] sm:$0xff] }
 0x2f6   : > { %3035 = vmatprep.mubr.bf16.mxu1 %v11475_v43  ;;  %3324 = vmatprep.mubr.bf16.mxu0 %v8005_v51  ;;  %v11480_v44 = vld [vmem:[#allocation157_spill] sm:$0xff]  ;;  %v11481_v51 = vld [vmem:[#allocation35_spill] sm:$0xff] }
 0x2f7   : > { %11473 = vst [vmem:[#allocation68_spill] sm:$0xff] %v9033_v4 }
 0x2f8   : > { %v2211_v23 = vpop.f32.mrb[168].mxu1  ;;  %v2500_v62 = vpop.f32.mrb[168].mxu0 }
 0x2f9   : > { %v2212_v17 = vadd.f32 %v2211_v23, %v8641_v55  ;;  %v2213_v47 = vpop.f32.mrb[169].mxu1  ;;  %v2502_v21 = vpop.f32.mrb[169].mxu0 }
 0x2fa   : > { %v2214_v56 = vpop.f32.mrb[170].mxu1  ;;  %v2503_v32 = vpop.f32.mrb[170].mxu0  ;;  %v11483_v47 = vld [vmem:[#allocation243_spill] sm:$0xff] }
 0x2fb   : > { %v9040_v19 = vadd.f32 %v2500_v62, %v2212_v17  ;;  %v2215_v22 = vadd.f32 %v2214_v56, %v11477_v11  ;;  %v2216_v52 = vpop.f32.mrb[171].mxu1  ;;  %v2505_v1 = vpop.f32.mrb[171].mxu0 }
 0x2fd   : > { %11476 = vst [vmem:[#allocation71_spill] sm:$0xff] %v9040_v19  ;;  %v9043_v4 = vadd.f32 %v2503_v32, %v2215_v22  ;;  %3036 = vmatmul.mubr.bf16.gmra.mrb[20].mxu1 %v11479_v20  ;;  %3325 = vmatmul.mubr.bf16.gmra.mrb[20].mxu0 %v11480_v44  ;;  %v11485_v32 = vld [vmem:[#allocation244_spill] sm:$0xff]  ;;  %v11487_v44 = vld [vmem:[#allocation38_spill] sm:$0xff] }
 0x2fe   : > { %3043 = vmatprep.mubr.bf16.mxu1 %v11481_v51  ;;  %3332 = vmatprep.mubr.bf16.mxu0 %v11482_v29  ;;  %v11489_v29 = vld [vmem:[#allocation41_spill] sm:$0xff]  ;;  %v11490_v51 = vld [vmem:[#allocation163_spill] sm:$0xff] }
 0x2ff   : > { %11478 = vst [vmem:[#allocation188_spill] sm:$0xff] %v9043_v4 }
 0x300   : > { %v2219_v55 = vpop.f32.mrb[172].mxu1  ;;  %v2508_v23 = vpop.f32.mrb[172].mxu0 }
 0x301   : > { %v2220_v21 = vadd.f32 %v2219_v55, %v11483_v47  ;;  %v2221_v62 = vpop.f32.mrb[173].mxu1  ;;  %v2510_v17 = vpop.f32.mrb[173].mxu0 }
 0x302   : > { %v2222_v19 = vpop.f32.mrb[174].mxu1  ;;  %v2511_v56 = vpop.f32.mrb[174].mxu0  ;;  %v11491_v62 = vld [vmem:[#allocation245_spill] sm:$0xff] }
 0x303   : > { %v9050_v11 = vadd.f32 %v2508_v23, %v2220_v21  ;;  %v2223_v22 = vadd.f32 %v2222_v19, %v11485_v32  ;;  %v2224_v52 = vpop.f32.mrb[175].mxu1  ;;  %v2513_v1 = vpop.f32.mrb[175].mxu0 }
 0x305   : > { %11484 = vst [vmem:[#allocation190_spill] sm:$0xff] %v9050_v11  ;;  %v9053_v4 = vadd.f32 %v2511_v56, %v2223_v22  ;;  %3044 = vmatmul.mubr.bf16.gmra.mrb[24].mxu1 %v11487_v44  ;;  %3333 = vmatmul.mubr.bf16.gmra.mrb[24].mxu0 %v11488_v5  ;;  %v11493_v56 = vld [vmem:[#allocation246_spill] sm:$0xff]  ;;  %v11495_v5 = vld [vmem:[#allocation43_spill] sm:$0xff] }
 0x306   : > { %3051 = vmatprep.mubr.bf16.mxu1 %v11489_v29  ;;  %3340 = vmatprep.mubr.bf16.mxu0 %v11490_v51  ;;  %v11496_v29 = vld [vmem:[#allocation165_spill] sm:$0xff]  ;;  %v11497_v51 = vld [vmem:[#allocation51_spill] sm:$0xff] }
 0x307   : > { %11486 = vst [vmem:[#allocation196_spill] sm:$0xff] %v9053_v4  ;;  %v11498_v44 = vld [vmem:[#allocation167_spill] sm:$0xff] }
 0x308   : > { %v2227_v55 = vpop.f32.mrb[176].mxu1  ;;  %v2516_v47 = vpop.f32.mrb[176].mxu0 }
 0x309   : > { %v2228_v17 = vadd.f32 %v2227_v55, %v11491_v62  ;;  %v2229_v23 = vpop.f32.mrb[177].mxu1  ;;  %v2518_v21 = vpop.f32.mrb[177].mxu0 }
 0x30a   : > { %v2230_v11 = vpop.f32.mrb[178].mxu1  ;;  %v2519_v19 = vpop.f32.mrb[178].mxu0  ;;  %v11499_v23 = vld [vmem:[#allocation247_spill] sm:$0xff] }
 0x30b   : > { %v9060_v32 = vadd.f32 %v2516_v47, %v2228_v17  ;;  %v2231_v22 = vadd.f32 %v2230_v11, %v11493_v56  ;;  %v2232_v52 = vpop.f32.mrb[179].mxu1  ;;  %v2521_v1 = vpop.f32.mrb[179].mxu0 }
 0x30d   : > { %11492 = vst [vmem:[#allocation198_spill] sm:$0xff] %v9060_v32  ;;  %v9063_v4 = vadd.f32 %v2519_v19, %v2231_v22  ;;  %3052 = vmatmul.mubr.bf16.gmra.mrb[28].mxu1 %v11495_v5  ;;  %3341 = vmatmul.mubr.bf16.gmra.mrb[28].mxu0 %v11496_v29  ;;  %v11501_v19 = vld [vmem:[#allocation248_spill] sm:$0xff]  ;;  %v11503_v29 = vld [vmem:[#allocation54_spill] sm:$0xff]  ;;  %v11506_v5 = vld [vmem:[#allocation171_spill] sm:$0xff] }
 0x30e   : > { %3059 = vmatprep.mubr.bf16.mxu1 %v11497_v51  ;;  %3348 = vmatprep.mubr.bf16.mxu0 %v11498_v44  ;;  %v11504_v51 = vld [vmem:[#allocation169_spill] sm:$0xff]  ;;  %v11505_v44 = vld [vmem:[#allocation60_spill] sm:$0xff] }
 0x30f   : > { %11494 = vst [vmem:[#allocation204_spill] sm:$0xff] %v9063_v4 }
 0x310   : > { %v2235_v55 = vpop.f32.mrb[180].mxu1  ;;  %v2524_v62 = vpop.f32.mrb[180].mxu0 }
 0x311   : > { %v2236_v21 = vadd.f32 %v2235_v55, %v11499_v23  ;;  %v2237_v47 = vpop.f32.mrb[181].mxu1  ;;  %v2526_v17 = vpop.f32.mrb[181].mxu0 }
 0x312   : > { %v2238_v32 = vpop.f32.mrb[182].mxu1  ;;  %v2527_v11 = vpop.f32.mrb[182].mxu0  ;;  %v11507_v47 = vld [vmem:[#allocation249_spill] sm:$0xff] }
 0x313   : > { %v9070_v56 = vadd.f32 %v2524_v62, %v2236_v21  ;;  %v2239_v22 = vadd.f32 %v2238_v32, %v11501_v19  ;;  %v2240_v52 = vpop.f32.mrb[183].mxu1  ;;  %v2529_v1 = vpop.f32.mrb[183].mxu0 }
 0x315   : > { %11500 = vst [vmem:[#allocation206_spill] sm:$0xff] %v9070_v56  ;;  %v9073_v4 = vadd.f32 %v2527_v11, %v2239_v22  ;;  %3060 = vmatmul.mubr.bf16.gmra.mrb[32].mxu1 %v11503_v29  ;;  %3349 = vmatmul.mubr.bf16.gmra.mrb[32].mxu0 %v11504_v51  ;;  %v11509_v11 = vld [vmem:[#allocation250_spill] sm:$0xff]  ;;  %v11514_v29 = vld [vmem:[#allocation175_spill] sm:$0xff] }
 0x316   : > { %3067 = vmatprep.mubr.bf16.mxu1 %v11505_v44  ;;  %3356 = vmatprep.mubr.bf16.mxu0 %v11506_v5  ;;  %v11511_v51 = vld [vmem:[#allocation62_spill] sm:$0xff]  ;;  %v11512_v44 = vld [vmem:[#allocation173_spill] sm:$0xff] }
 0x317   : > { %11502 = vst [vmem:[#allocation211_spill] sm:$0xff] %v9073_v4  ;;  %v11513_v5 = vld [vmem:[#allocation65_spill] sm:$0xff] }
 0x318   : > { %v2243_v55 = vpop.f32.mrb[184].mxu1  ;;  %v2532_v23 = vpop.f32.mrb[184].mxu0 }
 0x319   : > { %v2244_v17 = vadd.f32 %v2243_v55, %v11507_v47  ;;  %v2245_v62 = vpop.f32.mrb[185].mxu1  ;;  %v2534_v21 = vpop.f32.mrb[185].mxu0 }
 0x31a   : > { %v2246_v56 = vpop.f32.mrb[186].mxu1  ;;  %v2535_v32 = vpop.f32.mrb[186].mxu0  ;;  %v11515_v62 = vld [vmem:[#allocation251_spill] sm:$0xff] }
 0x31b   : > { %v9080_v19 = vadd.f32 %v2532_v23, %v2244_v17  ;;  %v2247_v22 = vadd.f32 %v2246_v56, %v11509_v11  ;;  %v2248_v52 = vpop.f32.mrb[187].mxu1  ;;  %v2537_v1 = vpop.f32.mrb[187].mxu0 }
 0x31d   : > { %11508 = vst [vmem:[#allocation212_spill] sm:$0xff] %v9080_v19  ;;  %v9083_v4 = vadd.f32 %v2535_v32, %v2247_v22  ;;  %3068 = vmatmul.mubr.bf16.gmra.mrb[36].mxu1 %v11511_v51  ;;  %3357 = vmatmul.mubr.bf16.gmra.mrb[36].mxu0 %v11512_v44  ;;  %v11517_v32 = vld [vmem:[#allocation252_spill] sm:$0xff]  ;;  %v11519_v44 = vld [vmem:[#allocation69_spill] sm:$0xff]  ;;  %v11522_v51 = vld [vmem:[#allocation179_spill] sm:$0xff] }
 0x31e   : > { %3075 = vmatprep.mubr.bf16.mxu1 %v11513_v5  ;;  %3364 = vmatprep.mubr.bf16.mxu0 %v11514_v29  ;;  %v11520_v5 = vld [vmem:[#allocation177_spill] sm:$0xff]  ;;  %v11521_v29 = vld [vmem:[#allocation72_spill] sm:$0xff] }
 0x31f   : > { %11510 = vst [vmem:[#allocation219_spill] sm:$0xff] %v9083_v4 }
 0x320   : > { %v2251_v55 = vpop.f32.mrb[188].mxu1  ;;  %v2540_v47 = vpop.f32.mrb[188].mxu0 }
 0x321   : > { %v2252_v21 = vadd.f32 %v2251_v55, %v11515_v62  ;;  %v2253_v23 = vpop.f32.mrb[189].mxu1  ;;  %v2542_v17 = vpop.f32.mrb[189].mxu0 }
 0x322   : > { %v2254_v19 = vpop.f32.mrb[190].mxu1  ;;  %v2543_v56 = vpop.f32.mrb[190].mxu0 }
 0x323   : > { %v9090_v11 = vadd.f32 %v2540_v47, %v2252_v21  ;;  %v2255_v22 = vadd.f32 %v2254_v19, %v11517_v32  ;;  %v2256_v52 = vpop.f32.mrb[191].mxu1  ;;  %v2545_v1 = vpop.f32.mrb[191].mxu0 }
 0x324   : > { %v11524_v1 = vld [vmem:[#allocation79_spill] sm:$0xff] }
 0x325   : > { %11516 = vst [vmem:[#allocation221_spill] sm:$0xff] %v9090_v11  ;;  %v9093_v4 = vadd.f32 %v2543_v56, %v2255_v22  ;;  %3076 = vmatmul.mubr.bf16.gmra.mrb[40].mxu1 %v11519_v44  ;;  %3365 = vmatmul.mubr.bf16.gmra.mrb[40].mxu0 %v11520_v5  ;;  %v11525_v5 = vld [vmem:[#allocation181_spill] sm:$0xff]  ;;  %v11528_v11 = vld [vmem:[#allocation183_spill] sm:$0xff] }
 0x326   : > { %3083 = vmatprep.mubr.bf16.mxu1 %v11521_v29  ;;  %3372 = vmatprep.mubr.bf16.mxu0 %v11522_v51  ;;  %v11527_v51 = vld [vmem:[#allocation82_spill] sm:$0xff] }
 0x327   : > { %11518 = vst [vmem:[#allocation227_spill] sm:$0xff] %v9093_v4 }
 0x328   : > { %v2869_v55 = vpop.f32.mrb[192].mxu1  ;;  %v3158_v62 = vpop.f32.mrb[192].mxu0 }
 0x329   : > { %v2870_v23 = vadd.f32 %v2869_v55, %v8712_v57  ;;  %v2871_v47 = vpop.f32.mrb[193].mxu1  ;;  %v3160_v21 = vpop.f32.mrb[193].mxu0 }
 0x32a   : > { %v2872_v17 = vpop.f32.mrb[194].mxu1  ;;  %v3161_v19 = vpop.f32.mrb[194].mxu0 }
 0x32b   : > { %v2873_v32 = vadd.f32 %v2872_v17, %v8715_v13  ;;  %v2874_v56 = vpop.f32.mrb[195].mxu1  ;;  %v3163_v22 = vpop.f32.mrb[195].mxu0  ;;  %v9101_v52 = vadd.f32 %v3158_v62, %v2870_v23 }
 0x32d   : > { %11523 = vst [vmem:[#allocation232_spill] sm:$0xff] %v9101_v52  ;;  %3084 = vmatmul.mubr.bf16.gmra.mrb[44].mxu1 %v11524_v1  ;;  %3373 = vmatmul.mubr.bf16.gmra.mrb[44].mxu0 %v11525_v5  ;;  %v9105_v4 = vadd.f32 %v3161_v19, %v2873_v32  ;;  %v11530_v19 = vld [vmem:[#allocation73_spill] sm:$0xff]  ;;  %v11547_v1 = vld [vmem:[#allocation119_spill] sm:$0xff] }
 0x32e   : > { %3091 = vmatprep.mubr.bf16.mxu1 %v11527_v51  ;;  %3380 = vmatprep.mubr.bf16.mxu0 %v11528_v11  ;;  %v11531_v32 = vld [vmem:[#allocation185_spill] sm:$0xff]  ;;  %v11533_v11 = vld [vmem:[#allocation108_spill] sm:$0xff] }
 0x32f   : > { %11526 = vst [vmem:[#allocation236_spill] sm:$0xff] %v9105_v4  ;;  %v11534_v4 = vld [vmem:[#allocation191_spill] sm:$0xff] }
 0x330   : > { %v2877_v57 = vpop.f32.mrb[196].mxu1  ;;  %v3166_v55 = vpop.f32.mrb[196].mxu0 }
 0x331   : > { %v2878_v47 = vadd.f32 %v2877_v57, %v8722_v8  ;;  %v2879_v21 = vpop.f32.mrb[197].mxu1  ;;  %v3168_v13 = vpop.f32.mrb[197].mxu0 }
 0x332   : > { %v2880_v17 = vpop.f32.mrb[198].mxu1  ;;  %v3169_v56 = vpop.f32.mrb[198].mxu0  ;;  %v11535_v21 = vld [vmem:[#allocation187_spill] sm:$0xff] }
 0x333   : > { %v2881_v62 = vadd.f32 %v2880_v17, %v8725_v42  ;;  %v2882_v23 = vpop.f32.mrb[199].mxu1  ;;  %v3171_v22 = vpop.f32.mrb[199].mxu0  ;;  %v9111_v52 = vadd.f32 %v3166_v55, %v2878_v47  ;;  %v11536_v47 = vld [vmem:[#allocation189_spill] sm:$0xff] }
 0x335   : > { %11529 = vst [vmem:[#allocation238_spill] sm:$0xff] %v9111_v52  ;;  %3092 = vmatmul.mubr.bf16.gmra.mrb[48].mxu1 %v11530_v19  ;;  %3381 = vmatmul.mubr.bf16.gmra.mrb[48].mxu0 %v11531_v32  ;;  %v9115_v5 = vadd.f32 %v3169_v56, %v2881_v62  ;;  %v11538_v62 = vld [vmem:[#allocation112_spill] sm:$0xff]  ;;  %v11539_v32 = vld [vmem:[#allocation193_spill] sm:$0xff] }
 0x336   : > { %3099 = vmatprep.mubr.bf16.mxu1 %v11533_v11  ;;  %3388 = vmatprep.mubr.bf16.mxu0 %v11534_v4  ;;  %v5843_v11 = vld [vmem:[%s6246_s5 + $0x28] sm:$0xff] }
 0x337   : > { %11532 = vst [vmem:[#allocation139_spill] sm:$0xff] %v9115_v5  ;;  %v11541_v5 = vld [vmem:[#allocation114_spill] sm:$0xff] }
 0x338   : > { %v2885_v8 = vpop.f32.mrb[200].mxu1  ;;  %v3174_v57 = vpop.f32.mrb[200].mxu0 }
 0x339   : > { %v2886_v13 = vadd.f32 %v2885_v8, %v11535_v21  ;;  %v2887_v51 = vpop.f32.mrb[201].mxu1  ;;  %v3176_v42 = vpop.f32.mrb[201].mxu0 }
 0x33a   : > { %v2888_v17 = vpop.f32.mrb[202].mxu1  ;;  %v3177_v55 = vpop.f32.mrb[202].mxu0  ;;  %v11542_v51 = vld [vmem:[#allocation199_spill] sm:$0xff]  ;;  %v11543_v42 = vld [vmem:[#allocation197_spill] sm:$0xff] }
 0x33b   : > { %v2889_v23 = vadd.f32 %v2888_v17, %v11536_v47  ;;  %v2890_v22 = vpop.f32.mrb[203].mxu1  ;;  %v3179_v52 = vpop.f32.mrb[203].mxu0  ;;  %v9121_v56 = vadd.f32 %v3174_v57, %v2886_v13 }
 0x33c   : > { %v9131_v22 = vld [vmem:[%s6246_s5 + $0x8] sm:$0xff] }
 0x33d   : > { %11537 = vst [vmem:[#allocation15_spill] sm:$0xff] %v9121_v56  ;;  %3100 = vmatmul.mubr.bf16.gmra.mrb[52].mxu1 %v11538_v62  ;;  %3389 = vmatmul.mubr.bf16.gmra.mrb[52].mxu0 %v11539_v32  ;;  %v9125_v4 = vadd.f32 %v3177_v55, %v2889_v23  ;;  %11544 = vst [vmem:[#allocation21_spill] sm:$0xff] %v9131_v22  ;;  %v10754_v57 = vrot.slane %v9131_v22, 2  ;;  %v5842_v32 = vld [vmem:[%s6246_s5 + $0x18] sm:$0xff] }
 0x33e   : > { %3107 = vmatprep.mubr.bf16.mxu1 %v11541_v5  ;;  %3396 = vmatprep.mubr.bf16.mxu0 %v11542_v51  ;;  %v697_v55 = vrot.slane %v5842_v32, 2  ;;  %v11545_v23 = vld [vmem:[#allocation203_spill] sm:$0xff]  ;;  %v699_v51 = vrot.slane %v5843_v11, 2 }
 0x33f   : > { %11540 = vst [vmem:[#allocation19_spill] sm:$0xff] %v9125_v4 }
 0x340   : > { %v2893_v8 = vpop.f32.mrb[204].mxu1  ;;  %v3182_v21 = vpop.f32.mrb[204].mxu0  ;;  %v978_v32 = vsel %vm838_vm1, %v697_v55, %v699_v51 }
 0x341   : > { %v2894_v17 = vadd.f32 %v2893_v8, %v11543_v42  ;;  %v2895_v47 = vpop.f32.mrb[205].mxu1  ;;  %v3184_v52 = vpop.f32.mrb[205].mxu0  ;;  %v11548_v8 = vld [vmem:[#allocation201_spill] sm:$0xff] }
 0x342   : > { %v2896_v13 = vpop.f32.mrb[206].mxu1  ;;  %v3185_v56 = vpop.f32.mrb[206].mxu0  ;;  %v11550_v47 = vld [vmem:[#allocation80_spill] sm:$0xff]  ;;  %v11551_v52 = vld [vmem:[#allocation207_spill] sm:$0xff] }
 0x343   : > { %v2897_v4 = vadd.f32 %v2896_v13, %v11545_v23  ;;  %v2898_v5 = vpop.f32.mrb[207].mxu1  ;;  %v3187_v62 = vpop.f32.mrb[207].mxu0  ;;  %v9137_v19 = vadd.f32 %v3182_v21, %v2894_v17 }
 0x344   : > { %v980_v5 = vsel %vm838_vm1, %v10754_v57, %v697_v55  ;;  %v11553_v55 = vld [vmem:[#allocation209_spill] sm:$0xff] }
 0x345   : > { %11546 = vst [vmem:[#allocation24_spill] sm:$0xff] %v9137_v19  ;;  %3108 = vmatmul.mubr.bf16.gmra.mrb[56].mxu1 %v11547_v1  ;;  %3397 = vmatmul.mubr.bf16.gmra.mrb[56].mxu0 %v11548_v8  ;;  %v9141_v42 = vadd.f32 %v3185_v56, %v2897_v4  ;;  %v1128_v23 = vpack.c.bf16 %v978_v32, %v980_v5  ;;  %v11552_v1 = vld [vmem:[#allocation124_spill] sm:$0xff] }
 0x346   : > { %3115 = vmatprep.mubr.bf16.mxu1 %v11550_v47  ;;  %3404 = vmatprep.mubr.bf16.mxu0 %v11551_v52  ;;  %v5844_v47 = vld [vmem:[%s6246_s5 + $0x38] sm:$0xff]  ;;  %v11555_v32 = vld [vmem:[#allocation12_spill] sm:$0xff] }
 0x347   : > { %11549 = vst [vmem:[#allocation26_spill] sm:$0xff] %v9141_v42  ;;  %v701_v22 = vrot.slane %v5844_v47, 2  ;;  %v11556_v5 = vrot.slane %v11555_v32, 2 }
 0x348   : > { %v2901_v11 = vpop.f32.mrb[208].mxu1  ;;  %v3190_v62 = vpop.f32.mrb[208].mxu0 }
 0x349   : > { %v2902_v21 = vadd.f32 %v2901_v11, %v8772_v18  ;;  %v2903_v17 = vpop.f32.mrb[209].mxu1  ;;  %v3192_v4 = vpop.f32.mrb[209].mxu0 }
 0x34a   : > { %v2904_v56 = vpop.f32.mrb[210].mxu1  ;;  %v3193_v13 = vpop.f32.mrb[210].mxu0  ;;  %v5748_v17 = vld [vmem:[#allocation5 + $0x380] sm:$0xff]  }
 0x34b   : > { %v2905_v8 = vadd.f32 %v2904_v56, %v8775_v27  ;;  %v2906_v52 = vpop.f32.mrb[211].mxu1  ;;  %v3195_v42 = vpop.f32.mrb[211].mxu0  ;;  %v9153_v19 = vadd.f32 %v3190_v62, %v2902_v21  ;;  %v974_v27 = vsel %vm838_vm1, %v701_v22, %v11556_v5  ;;  %v5749_v4 = vld [vmem:[#allocation5 + $0x400] sm:$0xff]   ;;  %v11558_v5 = vld [vmem:[#allocation234_spill] sm:$0xff] }
 0x34c   : > { %v976_v42 = vsel %vm838_vm1, %v699_v51, %v701_v22  ;;  %v5750_v51 = vld [vmem:[#allocation5 + $0x388] sm:$0xff]  }
 0x34d   : > { %3116 = vmatmul.mubr.bf16.gmra.mrb[60].mxu1 %v11552_v1  ;;  %3405 = vmatmul.mubr.bf16.gmra.mrb[60].mxu0 %v11553_v55  ;;  %v9158_v57 = vadd.f32 %v3193_v13, %v2905_v8  ;;  %v11557_v55 = vld [vmem:[#allocation241_spill] sm:$0xff] }
 0x34e   : > { %3445 = vmatprep.mubr.bf16.mxu1 %v1128_v23  ;;  %4119 = vmatprep.mubr.bf16.mxu0 %v11366_v54  ;;  %v1130_v23 = vpack.c.bf16 %v974_v27, %v976_v42  ;;  %v5751_v22 = vld [vmem:[#allocation5 + $0x408] sm:$0xff]  }
 0x34f   : > { %11554 = vst [vmem:[#allocation28_spill] sm:$0xff] %v9158_v57  ;;  %v11559_v57 = vpack.c.bf16 %v11557_v55, %v11558_v5 }
 0x350   : > { %v2909_v18 = vpop.f32.mrb[212].mxu1  ;;  %v3198_v11 = vpop.f32.mrb[212].mxu0 }
 0x351   : > { %v2910_v47 = vadd.f32 %v2909_v18, %v8795_v15  ;;  %v2911_v52 = vpop.f32.mrb[213].mxu1  ;;  %v3200_v62 = vpop.f32.mrb[213].mxu0 }
 0x352   : > { %v2912_v21 = vpop.f32.mrb[214].mxu1  ;;  %v3201_v8 = vpop.f32.mrb[214].mxu0  ;;  %v5753_v62 = vld [vmem:[#allocation5 + $0x410] sm:$0xff]  }
 0x353   : > { %v2913_v54 = vadd.f32 %v2912_v21, %v8799_v9  ;;  %v2914_v56 = vpop.f32.mrb[215].mxu1  ;;  %v3203_v13 = vpop.f32.mrb[215].mxu0  ;;  %v9169_v32 = vadd.f32 %v3198_v11, %v2910_v47 }
 0x354   : > { %v5755_v56 = vld [vmem:[#allocation5 + $0x418] sm:$0xff]  }
 0x355   : > { %3446 = vmatmul.mubr.bf16.vlgmr.msra.gmra.mrb[64].mxu1 %v11559_v57  ;;  %4120 = vmatmul.mubr.bf16.vlgmr.msra.gmra.mrb[64].mxu0 %v11368_v36  ;;  %v9175_v15 = vadd.f32 %v3201_v8, %v2913_v54  ;;  %v11560_v8 = vld [vmem:[#allocation239_spill] sm:$0xff]  ;;  %v11563_v54 = vld [vmem:[#allocation36_spill] sm:$0xff] }
 0x356   : > { %4377 = vmatpush1.bf16.msra.mxu1 %v5748_v17  ;;  %4666 = vmatpush1.bf16.msra.mxu0 %v5749_v4 }
 0x357   : > { %3453 = vmatprep.mubr.bf16.mxu1 %v1130_v23  ;;  %4127 = vmatprep.mubr.bf16.mxu0 %v11370_v34  ;;  %v5752_v34 = vld [vmem:[#allocation5 + $0x390] sm:$0xff]  }
 0x358   : > { %v2917_v9 = vpop.f32.mrb[216].mxu1  ;;  %v3206_v18 = vpop.f32.mrb[216].mxu0  ;;  %4378 = vmatprep.subr.bf16.mxu1 %v11355_v33  ;;  %4667 = vmatprep.subr.bf16.mxu0 %v11355_v33 }
 0x359   : > { %v2918_v55 = vadd.f32 %v2917_v9, %v8812_v60  ;;  %v2919_v57 = vpop.f32.mrb[217].mxu1  ;;  %v3208_v11 = vpop.f32.mrb[217].mxu0  ;;  %v11561_v60 = vld [vmem:[#allocation240_spill] sm:$0xff] }
 0x35a   : > { %v2920_v36 = vpop.f32.mrb[218].mxu1  ;;  %v3209_v27 = vpop.f32.mrb[218].mxu0  ;;  %4379 = vmatpush1.bf16.msra.mxu1 %v5750_v51  ;;  %4668 = vmatpush1.bf16.msra.mxu0 %v5751_v22  ;;  %v11562_v17 = vpack.c.bf16 %v11560_v8, %v11561_v60  ;;  %v5756_v57 = vld [vmem:[#allocation5 + $0x3a0] sm:$0xff]  }
 0x35b   : > { %v2921_v42 = vadd.f32 %v2920_v36, %v8817_v49  ;;  %v2922_v47 = vpop.f32.mrb[219].mxu1  ;;  %v3211_v52 = vpop.f32.mrb[219].mxu0  ;;  %4380 = vmatprep.subr.bf16.mxu1 %v11355_v33  ;;  %4669 = vmatprep.subr.bf16.mxu0 %v11355_v33  ;;  %v9184_v21 = vadd.f32 %v3206_v18, %v2918_v55  ;;  %v5754_v49 = vld [vmem:[#allocation5 + $0x398] sm:$0xff]   ;;  %v5757_v11 = vld [vmem:[#allocation5 + $0x420] sm:$0xff]  }
 0x35c   : > { %v5759_v47 = vld [vmem:[#allocation5 + $0x428] sm:$0xff]  }
 0x35d   : > { %3454 = vmatmul.mubr.bf16.gmra.mrb[68].mxu1 %v11562_v17  ;;  %4128 = vmatmul.mubr.bf16.gmra.mrb[68].mxu0 %v11372_v37  ;;  %v9190_v4 = vadd.f32 %v3209_v27, %v2921_v42  ;;  %v11564_v27 = vld [vmem:[#allocation47_spill] sm:$0xff]  ;;  %v11565_v42 = vld [vmem:[#allocation66_spill] sm:$0xff] }
 0x35e   : > { %3461 = vmatprep.mubr.bf16.mxu1 %v11563_v54  ;;  %4135 = vmatprep.mubr.bf16.mxu0 %v11374_v48 }
 0x35f   : > { %4381 = vmatpush1.bf16.msra.mxu1 %v5752_v34  ;;  %4670 = vmatpush1.bf16.msra.mxu0 %v5753_v62 }
 0x360   : > { %v2925_v13 = vpop.f32.mrb[220].mxu1  ;;  %v3214_v23 = vpop.f32.mrb[220].mxu0  ;;  %4382 = vmatprep.subr.bf16.mxu1 %v11355_v33  ;;  %4671 = vmatprep.subr.bf16.mxu0 %v11355_v33 }
 0x361   : > { %v2926_v5 = vadd.f32 %v2925_v13, %v8824_v28  ;;  %v2927_v51 = vpop.f32.mrb[221].mxu1  ;;  %v3216_v37 = vpop.f32.mrb[221].mxu0  ;;  %v5761_v13 = vld [vmem:[#allocation5 + $0x430] sm:$0xff]  }
 0x362   : > { %v2928_v22 = vpop.f32.mrb[222].mxu1  ;;  %v3217_v9 = vpop.f32.mrb[222].mxu0  ;;  %v11567_v51 = vld [vmem:[#allocation86_spill] sm:$0xff] }
 0x363   : > { %v2929_v18 = vadd.f32 %v2928_v22, %v8829_v59  ;;  %v2930_v55 = vpop.f32.mrb[223].mxu1  ;;  %v3219_v48 = vpop.f32.mrb[223].mxu0  ;;  %4383 = vmatpush1.bf16.msra.mxu1 %v5754_v49  ;;  %4672 = vmatpush1.bf16.msra.mxu0 %v5755_v56  ;;  %v9198_v36 = vadd.f32 %v3214_v23, %v2926_v5  ;;  %v5758_v59 = vld [vmem:[#allocation5 + $0x3a8] sm:$0xff]   ;;  %v5760_v56 = vld [vmem:[#allocation5 + $0x3b0] sm:$0xff]   ;;  %v5763_v37 = vld [vmem:[#allocation5 + $0x438] sm:$0xff]  }
 0x364   : > { %4384 = vmatprep.subr.bf16.mxu1 %v11355_v33  ;;  %4673 = vmatprep.subr.bf16.mxu0 %v11355_v33  ;;  %v11566_v5 = vld [vmem:[#allocation77_spill] sm:$0xff] }
 0x365   : > { %3462 = vmatmul.mubr.bf16.gmra.mrb[72].mxu1 %v11564_v27  ;;  %4136 = vmatmul.mubr.bf16.gmra.mrb[72].mxu0 %v11376_v35  ;;  %v9204_v28 = vadd.f32 %v3217_v9, %v2929_v18 }
 0x366   : > { %3469 = vmatprep.mubr.bf16.mxu1 %v11565_v42  ;;  %4143 = vmatprep.mubr.bf16.mxu0 %v11378_v31  ;;  %v5764_v42 = vld [vmem:[#allocation5 + $0x3c0] sm:$0xff]  }
 0x367   : > { %4385 = vmatpush1.bf16.msra.mxu1 %v5756_v57  ;;  %4674 = vmatpush1.bf16.msra.mxu0 %v5757_v11 }
 0x368   : > { %v2933_v52 = vpop.f32.mrb[224].mxu1  ;;  %v3222_v34 = vpop.f32.mrb[224].mxu0  ;;  %4386 = vmatprep.subr.bf16.mxu1 %v11355_v33  ;;  %4675 = vmatprep.subr.bf16.mxu0 %v11355_v33 }
 0x369   : > { %v2934_v62 = vadd.f32 %v2933_v52, %v8838_v24  ;;  %v2935_v8 = vpop.f32.mrb[225].mxu1  ;;  %v3224_v35 = vpop.f32.mrb[225].mxu0  ;;  %v11568_v52 = vld [vmem:[#allocation88_spill] sm:$0xff] }
 0x36a   : > { %v2936_v60 = vpop.f32.mrb[226].mxu1  ;;  %v3225_v17 = vpop.f32.mrb[226].mxu0 }
 0x36b   : > { %v2937_v54 = vadd.f32 %v2936_v60, %v8843_v58  ;;  %v2938_v49 = vpop.f32.mrb[227].mxu1  ;;  %v3227_v31 = vpop.f32.mrb[227].mxu0  ;;  %4387 = vmatpush1.bf16.msra.mxu1 %v5758_v59  ;;  %4676 = vmatpush1.bf16.msra.mxu0 %v5759_v47  ;;  %v9212_v23 = vadd.f32 %v3222_v34, %v2934_v62  ;;  %v5762_v58 = vld [vmem:[#allocation5 + $0x3b8] sm:$0xff]   ;;  %v5765_v59 = vld [vmem:[#allocation5 + $0x440] sm:$0xff]   ;;  %v5767_v62 = vld [vmem:[#allocation5 + $0x448] sm:$0xff]  }
 0x36c   : > { %4388 = vmatprep.subr.bf16.mxu1 %v11355_v33  ;;  %4677 = vmatprep.subr.bf16.mxu0 %v11355_v33  ;;  %v11569_v34 = vld [vmem:[#allocation90_spill] sm:$0xff] }
 0x36d   : > { %3470 = vmatmul.mubr.bf16.gmra.mrb[76].mxu1 %v11566_v5  ;;  %4144 = vmatmul.mubr.bf16.gmra.mrb[76].mxu0 %v11382_v50  ;;  %v9218_v24 = vadd.f32 %v3225_v17, %v2937_v54  ;;  %v5769_v5 = vld [vmem:[#allocation5 + $0x450] sm:$0xff]  }
 0x36e   : > { %3477 = vmatprep.mubr.bf16.mxu1 %v11567_v51  ;;  %4151 = vmatprep.mubr.bf16.mxu0 %v11384_v7 }
 0x36f   : > { %4389 = vmatpush1.bf16.msra.mxu1 %v5760_v56  ;;  %4678 = vmatpush1.bf16.msra.mxu0 %v5761_v13  ;;  %v5768_v13 = vld [vmem:[#allocation5 + $0x3d0] sm:$0xff]  }
 0x370   : > { %v2941_v22 = vpop.f32.mrb[228].mxu1  ;;  %v3230_v9 = vpop.f32.mrb[228].mxu0  ;;  %4390 = vmatprep.subr.bf16.mxu1 %v11355_v33  ;;  %4679 = vmatprep.subr.bf16.mxu0 %v11355_v33 }
 0x371   : > { %v2942_v18 = vadd.f32 %v2941_v22, %v8852_v39  ;;  %v2943_v55 = vpop.f32.mrb[229].mxu1  ;;  %v3232_v50 = vpop.f32.mrb[229].mxu0  ;;  %v11571_v22 = vld [vmem:[#allocation94_spill] sm:$0xff] }
 0x372   : > { %v2944_v48 = vpop.f32.mrb[230].mxu1  ;;  %v3233_v57 = vpop.f32.mrb[230].mxu0 }
 0x373   : > { %v2945_v11 = vadd.f32 %v2944_v48, %v8857_v61  ;;  %v2946_v27 = vpop.f32.mrb[231].mxu1  ;;  %v3235_v7 = vpop.f32.mrb[231].mxu0  ;;  %4391 = vmatpush1.bf16.msra.mxu1 %v5762_v58  ;;  %4680 = vmatpush1.bf16.msra.mxu0 %v5763_v37  ;;  %v9226_v47 = vadd.f32 %v3230_v9, %v2942_v18  ;;  %v5766_v61 = vld [vmem:[#allocation5 + $0x3c8] sm:$0xff]  }
 0x374   : > { %4392 = vmatprep.subr.bf16.mxu1 %v11355_v33  ;;  %4681 = vmatprep.subr.bf16.mxu0 %v11355_v33  ;;  %v11570_v37 = vld [vmem:[#allocation92_spill] sm:$0xff] }
 0x375   : > { %3478 = vmatmul.mubr.bf16.gmra.mrb[80].mxu1 %v11568_v52  ;;  %4152 = vmatmul.mubr.bf16.gmra.mrb[80].mxu0 %v11388_v63  ;;  %v9232_v39 = vadd.f32 %v3233_v57, %v2945_v11 }
 0x376   : > { %3485 = vmatprep.mubr.bf16.mxu1 %v11569_v34  ;;  %4159 = vmatprep.mubr.bf16.mxu0 %v11390_v30 }
 0x377   : > { %4393 = vmatpush1.bf16.msra.mxu1 %v5764_v42  ;;  %4682 = vmatpush1.bf16.msra.mxu0 %v5765_v59  ;;  %v5770_v42 = vld [vmem:[#allocation5 + $0x3d8] sm:$0xff]  }
 0x378   : > { %v2949_v8 = vpop.f32.mrb[232].mxu1  ;;  %v3238_v35 = vpop.f32.mrb[232].mxu0  ;;  %4394 = vmatprep.subr.bf16.mxu1 %v11355_v33  ;;  %4683 = vmatprep.subr.bf16.mxu0 %v11355_v33 }
 0x379   : > { %v2950_v60 = vadd.f32 %v2949_v8, %v8866_v25  ;;  %v2951_v17 = vpop.f32.mrb[233].mxu1  ;;  %v3240_v63 = vpop.f32.mrb[233].mxu0 }
 0x37a   : > { %v2952_v54 = vpop.f32.mrb[234].mxu1  ;;  %v3241_v49 = vpop.f32.mrb[234].mxu0  ;;  %v5771_v17 = vld [vmem:[#allocation5 + $0x458] sm:$0xff]  }
 0x37b   : > { %v2953_v31 = vadd.f32 %v2952_v54, %v8871_v38  ;;  %v2954_v56 = vpop.f32.mrb[235].mxu1  ;;  %v3243_v30 = vpop.f32.mrb[235].mxu0  ;;  %4395 = vmatpush1.bf16.msra.mxu1 %v5766_v61  ;;  %4684 = vmatpush1.bf16.msra.mxu0 %v5767_v62  ;;  %v9240_v58 = vadd.f32 %v3238_v35, %v2950_v60  ;;  %v11573_v61 = vld [vmem:[#allocation98_spill] sm:$0xff] }
 0x37c   : > { %4396 = vmatprep.subr.bf16.mxu1 %v11355_v33  ;;  %4685 = vmatprep.subr.bf16.mxu0 %v11355_v33 }
 0x37d   : > { %3486 = vmatmul.mubr.bf16.gmra.mrb[84].mxu1 %v11570_v37  ;;  %4160 = vmatmul.mubr.bf16.gmra.mrb[84].mxu0 %v11394_v41  ;;  %v9246_v25 = vadd.f32 %v3241_v49, %v2953_v31 }
 0x37e   : > { %3493 = vmatprep.mubr.bf16.mxu1 %v11571_v22  ;;  %4167 = vmatprep.mubr.bf16.mxu0 %v11396_v10  ;;  %v11572_v10 = vld [vmem:[#allocation96_spill] sm:$0xff] }
 0x37f   : > { %4397 = vmatpush1.bf16.msra.mxu1 %v5768_v13  ;;  %4686 = vmatpush1.bf16.msra.mxu0 %v5769_v5  ;;  %v11577_v13 = vld [vmem:[#allocation74_spill] sm:$0xff] }
 0x380   : > { %v2957_v38 = vpop.f32.mrb[236].mxu1  ;;  %v3246_v9 = vpop.f32.mrb[236].mxu0  ;;  %4398 = vmatprep.subr.bf16.mxu1 %v11355_v33  ;;  %4687 = vmatprep.subr.bf16.mxu0 %v11355_v33 }
 0x381   : > { %v2958_v18 = vadd.f32 %v2957_v38, %v8880_v45  ;;  %v2959_v55 = vpop.f32.mrb[237].mxu1  ;;  %v3248_v50 = vpop.f32.mrb[237].mxu0  ;;  %v11578_v38 = vld [vmem:[#allocation100_spill] sm:$0xff] }
 0x382   : > { %v2960_v48 = vpop.f32.mrb[238].mxu1  ;;  %v3249_v41 = vpop.f32.mrb[238].mxu0  ;;  %v11580_v50 = vld [vmem:[#allocation220_spill] sm:$0xff] }
 0x383   : > { %v2961_v57 = vadd.f32 %v2960_v48, %v8883_v26  ;;  %v2962_v11 = vpop.f32.mrb[239].mxu1  ;;  %v3251_v27 = vpop.f32.mrb[239].mxu0  ;;  %v9254_v7 = vadd.f32 %v3246_v9, %v2958_v18  ;;  %4399 = vmatpush1.bf16.msra.mxu1 %v5770_v42  ;;  %v11574_v26 = vld [vmem:[#allocation205_spill] sm:$0xff]  ;;  %4688 = vmatpush1.bf16.msra.mxu0 %v5771_v17  ;;  %v11581_v42 = vld [vmem:[#allocation16_spill] sm:$0xff] }
 0x384   : > { %4400 = vmatprep.subr.bf16.mxu1 %v11355_v33  ;;  %4689 = vmatprep.subr.bf16.mxu0 %v11355_v33  ;;  %v11579_v9 = vld [vmem:[#allocation81_spill] sm:$0xff]  ;;  %v5772_v17 = vld [vmem:[#allocation5 + $0x3e0] sm:$0xff]  }
 0x385   : > { %3494 = vmatmul.mubr.bf16.gmra.mrb[88].mxu1 %v11572_v10  ;;  %4168 = vmatmul.mubr.bf16.gmra.mrb[88].mxu0 %v11400_v0  ;;  %v9258_v59 = vadd.f32 %v3249_v41, %v2961_v57  ;;  %v11575_v0 = vld [vmem:[#allocation218_spill] sm:$0xff] }
 0x386   : > { %3501 = vmatprep.mubr.bf16.mxu1 %v11573_v61  ;;  %4175 = vmatprep.mubr.bf16.mxu0 %v11402_v6  ;;  %v11576_v6 = vld [vmem:[#allocation46_spill] sm:$0xff] }
 0x387   : > { %4401 = vmatpush1.bf16.msra.mxu1 %v5772_v17  ;;  %v11595_v17 = vld [vmem:[#allocation113_spill] sm:$0xff] }
 0x388   : > { %v2965_v45 = vpop.f32.mrb[240].mxu1  ;;  %v3254_v62 = vpop.f32.mrb[240].mxu0  ;;  %4402 = vmatprep.subr.bf16.mxu1 %v11355_v33 }
 0x389   : > { %v2966_v8 = vadd.f32 %v2965_v45, %v11574_v26  ;;  %v2967_v35 = vpop.f32.mrb[241].mxu1  ;;  %v3256_v60 = vpop.f32.mrb[241].mxu0 }
 0x38a   : > { %v2968_v63 = vpop.f32.mrb[242].mxu1  ;;  %v3257_v54 = vpop.f32.mrb[242].mxu0  ;;  %v11583_v35 = vld [vmem:[#allocation44_spill] sm:$0xff] }
 0x38b   : > { %v2969_v49 = vadd.f32 %v2968_v63, %v11575_v0  ;;  %v2970_v31 = vpop.f32.mrb[243].mxu1  ;;  %v3259_v56 = vpop.f32.mrb[243].mxu0  ;;  %v9265_v30 = vadd.f32 %v3254_v62, %v2966_v8  ;;  %v11584_v60 = vld [vmem:[#allocation84_spill] sm:$0xff]  ;;  %v11587_v0 = vld [vmem:[#allocation70_spill] sm:$0xff] }
 0x38c   : > { %v11588_v56 = vld [vmem:[#allocation235_spill] sm:$0xff] }
 0x38d   : > { %3502 = vmatmul.mubr.bf16.gmra.mrb[92].mxu1 %v11576_v6  ;;  %4176 = vmatmul.mubr.bf16.gmra.mrb[92].mxu0 %v11577_v13  ;;  %v9270_v5 = vadd.f32 %v3257_v54, %v2969_v49  ;;  %v11586_v54 = vld [vmem:[#allocation48_spill] sm:$0xff] }
 0x38e   : > { %3509 = vmatprep.mubr.bf16.mxu1 %v11578_v38  ;;  %4183 = vmatprep.mubr.bf16.mxu0 %v11579_v9 }
 0x390   : > { %v2973_v18 = vpop.f32.mrb[244].mxu1  ;;  %v3262_v55 = vpop.f32.mrb[244].mxu0 }
 0x391   : > { %v2974_v48 = vadd.f32 %v2973_v18, %v11580_v50  ;;  %v2975_v41 = vpop.f32.mrb[245].mxu1  ;;  %v3264_v57 = vpop.f32.mrb[245].mxu0 }
 0x392   : > { %v2976_v11 = vpop.f32.mrb[246].mxu1  ;;  %v3265_v27 = vpop.f32.mrb[246].mxu0  ;;  %v11589_v41 = vld [vmem:[#allocation237_spill] sm:$0xff] }
 0x393   : > { %v2977_v45 = vadd.f32 %v2976_v11, %v11581_v42  ;;  %v2978_v62 = vpop.f32.mrb[247].mxu1  ;;  %v3267_v26 = vpop.f32.mrb[247].mxu0  ;;  %v9276_v8 = vadd.f32 %v3262_v55, %v2974_v48  ;;  %v5773_v55 = vld [vmem:[#allocation5 + $0x460] sm:$0xff]  }
 0x394   : > { %4690 = vmatpush1.bf16.msra.mxu0 %v5773_v55  ;;  %v11592_v62 = vld [vmem:[#allocation111_spill] sm:$0xff] }
 0x395   : > { %11582 = vst [vmem:[#allocation31_spill] sm:$0xff] %v9276_v8  ;;  %3510 = vmatmul.mubr.bf16.gmra.mrb[96].mxu1 %v11583_v35  ;;  %4184 = vmatmul.mubr.bf16.gmra.mrb[96].mxu0 %v11584_v60  ;;  %v9280_v63 = vadd.f32 %v3265_v27, %v2977_v45  ;;  %v11591_v45 = vld [vmem:[#allocation57_spill] sm:$0xff]  ;;  %v11594_v60 = vld [vmem:[#allocation102_spill] sm:$0xff] }
 0x396   : > { %3517 = vmatprep.mubr.bf16.mxu1 %v11586_v54  ;;  %4191 = vmatprep.mubr.bf16.mxu0 %v11587_v0 }
 0x397   : > { %11585 = vst [vmem:[#allocation242_spill] sm:$0xff] %v9280_v63  ;;  %4691 = vmatprep.subr.bf16.mxu0 %v11355_v33 }
 0x398   : > { %v2981_v49 = vpop.f32.mrb[248].mxu1  ;;  %v3270_v31 = vpop.f32.mrb[248].mxu0 }
 0x399   : > { %v2982_v13 = vadd.f32 %v2981_v49, %v11588_v56  ;;  %v2983_v9 = vpop.f32.mrb[249].mxu1  ;;  %v3272_v18 = vpop.f32.mrb[249].mxu0  ;;  %v11596_v56 = vld [vmem:[#allocation14_spill] sm:$0xff] }
 0x39a   : > { %v2984_v50 = vpop.f32.mrb[250].mxu1  ;;  %v3273_v48 = vpop.f32.mrb[250].mxu0 }
 0x39b   : > { %v2985_v57 = vadd.f32 %v2984_v50, %v11589_v41  ;;  %v2986_v11 = vpop.f32.mrb[251].mxu1  ;;  %v3275_v27 = vpop.f32.mrb[251].mxu0  ;;  %v9287_v42 = vadd.f32 %v3270_v31, %v2982_v13  ;;  %v11597_v50 = vld [vmem:[#allocation29_spill] sm:$0xff] }
 0x39d   : > { %11590 = vst [vmem:[#allocation33_spill] sm:$0xff] %v9287_v42  ;;  %3518 = vmatmul.mubr.bf16.gmra.mrb[100].mxu1 %v11591_v45  ;;  %4192 = vmatmul.mubr.bf16.gmra.mrb[100].mxu0 %v11592_v62  ;;  %v9292_v26 = vadd.f32 %v3273_v48, %v2985_v57  ;;  %v11599_v48 = vld [vmem:[#allocation103_spill] sm:$0xff]  ;;  %v11600_v57 = vld [vmem:[#allocation76_spill] sm:$0xff] }
 0x39e   : > { %3525 = vmatprep.mubr.bf16.mxu1 %v11594_v60  ;;  %4199 = vmatprep.mubr.bf16.mxu0 %v11595_v17  ;;  %v5774_v62 = vld [vmem:[#allocation5 + $0x3e8] sm:$0xff]  }
 0x39f   : > { %11593 = vst [vmem:[#allocation243_spill] sm:$0xff] %v9292_v26  ;;  %v11602_v26 = vld [vmem:[#allocation105_spill] sm:$0xff]  ;;  %4403 = vmatpush1.bf16.msra.mxu1 %v5774_v62  ;;  %v11607_v62 = vld [vmem:[#allocation106_spill] sm:$0xff] }
 0x3a0   : > { %v2989_v0 = vpop.f32.mrb[252].mxu1  ;;  %v3278_v49 = vpop.f32.mrb[252].mxu0  ;;  %4404 = vmatprep.subr.bf16.mxu1 %v11355_v33 }
 0x3a1   : > { %v2990_v9 = vadd.f32 %v2989_v0, %v11596_v56  ;;  %v2991_v18 = vpop.f32.mrb[253].mxu1  ;;  %v3280_v55 = vpop.f32.mrb[253].mxu0  ;;  %v11603_v0 = vld [vmem:[#allocation78_spill] sm:$0xff] }
 0x3a2   : > { %v2992_v31 = vpop.f32.mrb[254].mxu1  ;;  %v3281_v13 = vpop.f32.mrb[254].mxu0  ;;  %v11604_v55 = vld [vmem:[#allocation18_spill] sm:$0xff] }
 0x3a3   : > { %v2993_v41 = vadd.f32 %v2992_v31, %v11597_v50  ;;  %v2994_v11 = vpop.f32.mrb[255].mxu1  ;;  %v3283_v27 = vpop.f32.mrb[255].mxu0  ;;  %v9298_v53 = vadd.f32 %v3278_v49, %v2990_v9  ;;  %v5775_v50 = vld [vmem:[#allocation5 + $0x468] sm:$0xff]  }
 0x3a4   : > { %4692 = vmatpush1.bf16.msra.mxu0 %v5775_v50 }
 0x3a5   : > { %11598 = vst [vmem:[#allocation244_spill] sm:$0xff] %v9298_v53  ;;  %3526 = vmatmul.mubr.bf16.gmra.mrb[104].mxu1 %v11599_v48  ;;  %4200 = vmatmul.mubr.bf16.gmra.mrb[104].mxu0 %v11600_v57  ;;  %v9302_v17 = vadd.f32 %v3281_v13, %v2993_v41  ;;  %v11605_v57 = vld [vmem:[#allocation45_spill] sm:$0xff] }
 0x3a6   : > { %3533 = vmatprep.mubr.bf16.mxu1 %v11602_v26  ;;  %4207 = vmatprep.mubr.bf16.mxu0 %v11603_v0  ;;  %v11608_v0 = vld [vmem:[#allocation83_spill] sm:$0xff] }
 0x3a7   : > { %11601 = vst [vmem:[#allocation245_spill] sm:$0xff] %v9302_v17  ;;  %4693 = vmatprep.subr.bf16.mxu0 %v11355_v33 }
 0x3a8   : > { %v2997_v56 = vpop.f32.mrb[0].mxu1  ;;  %v3286_v18 = vpop.f32.mrb[0].mxu0 }
 0x3a9   : > { %v2998_v31 = vadd.f32 %v2997_v56, %v11604_v55  ;;  %v2999_v49 = vpop.f32.mrb[1].mxu1  ;;  %v3288_v9 = vpop.f32.mrb[1].mxu0  ;;  %v11610_v56 = vld [vmem:[#allocation107_spill] sm:$0xff]  ;;  %v11611_v55 = vld [vmem:[#allocation125_spill] sm:$0xff] }
 0x3aa   : > { %v3000_v11 = vpop.f32.mrb[2].mxu1  ;;  %v3289_v27 = vpop.f32.mrb[2].mxu0 }
 0x3ab   : > { %v3001_v53 = vadd.f32 %v3000_v11, %v11605_v57  ;;  %v3002_v13 = vpop.f32.mrb[3].mxu1  ;;  %v3291_v41 = vpop.f32.mrb[3].mxu0  ;;  %v9309_v17 = vadd.f32 %v3286_v18, %v2998_v31  ;;  %v11612_v11 = vld [vmem:[#allocation20_spill] sm:$0xff] }
 0x3ac   : > { %v11613_v41 = vld [vmem:[#allocation59_spill] sm:$0xff] }
 0x3ad   : > { %11606 = vst [vmem:[#allocation246_spill] sm:$0xff] %v9309_v17  ;;  %3534 = vmatmul.mubr.bf16.gmra.mrb[108].mxu1 %v11607_v62  ;;  %4208 = vmatmul.mubr.bf16.gmra.mrb[108].mxu0 %v11608_v0  ;;  %v9314_v42 = vadd.f32 %v3289_v27, %v3001_v53  ;;  %v11615_v53 = vld [vmem:[#allocation110_spill] sm:$0xff]  ;;  %v11616_v27 = vld [vmem:[#allocation131_spill] sm:$0xff] }
 0x3ae   : > { %3541 = vmatprep.mubr.bf16.mxu1 %v11610_v56  ;;  %4215 = vmatprep.mubr.bf16.mxu0 %v11611_v55  ;;  %v5776_v0 = vld [vmem:[#allocation5 + $0x3f0] sm:$0xff]  }
 0x3af   : > { %11609 = vst [vmem:[#allocation247_spill] sm:$0xff] %v9314_v42  ;;  %v11618_v42 = vld [vmem:[#allocation116_spill] sm:$0xff]  ;;  %4405 = vmatpush1.bf16.msra.mxu1 %v5776_v0  ;;  %v11623_v0 = vld [vmem:[#allocation118_spill] sm:$0xff] }
 0x3b0   : > { %v3005_v49 = vpop.f32.mrb[4].mxu1  ;;  %v3294_v9 = vpop.f32.mrb[4].mxu0  ;;  %4406 = vmatprep.subr.bf16.mxu1 %v11355_v33 }
 0x3b1   : > { %v3006_v57 = vadd.f32 %v3005_v49, %v11612_v11  ;;  %v3007_v13 = vpop.f32.mrb[5].mxu1  ;;  %v3296_v50 = vpop.f32.mrb[5].mxu0  ;;  %v11619_v49 = vld [vmem:[#allocation133_spill] sm:$0xff] }
 0x3b2   : > { %v3008_v18 = vpop.f32.mrb[6].mxu1  ;;  %v3297_v31 = vpop.f32.mrb[6].mxu0  ;;  %v5777_v50 = vld [vmem:[#allocation5 + $0x470] sm:$0xff]  }
 0x3b3   : > { %v3009_v17 = vadd.f32 %v3008_v18, %v11613_v41  ;;  %v3010_v63 = vpop.f32.mrb[7].mxu1  ;;  %v3299_v8 = vpop.f32.mrb[7].mxu0  ;;  %v9320_v62 = vadd.f32 %v3294_v9, %v3006_v57  ;;  %4694 = vmatpush1.bf16.msra.mxu0 %v5777_v50 }
 0x3b4   : > { %v11620_v63 = vld [vmem:[#allocation23_spill] sm:$0xff]  ;;  %4695 = vmatprep.subr.bf16.mxu0 %v11355_v33 }
 0x3b5   : > { %11614 = vst [vmem:[#allocation248_spill] sm:$0xff] %v9320_v62  ;;  %3542 = vmatmul.mubr.bf16.gmra.mrb[112].mxu1 %v11615_v53  ;;  %4216 = vmatmul.mubr.bf16.gmra.mrb[112].mxu0 %v11616_v27  ;;  %v9324_v55 = vadd.f32 %v3297_v31, %v3009_v17  ;;  %v11621_v27 = vld [vmem:[#allocation75_spill] sm:$0xff] }
 0x3b6   : > { %3549 = vmatprep.mubr.bf16.mxu1 %v11618_v42  ;;  %4223 = vmatprep.mubr.bf16.mxu0 %v11619_v49 }
 0x3b7   : > { %11617 = vst [vmem:[#allocation249_spill] sm:$0xff] %v9324_v55 }
 0x3b8   : > { %v3013_v11 = vpop.f32.mrb[8].mxu1  ;;  %v3302_v13 = vpop.f32.mrb[8].mxu0 }
 0x3b9   : > { %v3014_v8 = vadd.f32 %v3013_v11, %v11620_v63  ;;  %v3015_v9 = vpop.f32.mrb[9].mxu1  ;;  %v3304_v57 = vpop.f32.mrb[9].mxu0  ;;  %v11625_v11 = vld [vmem:[#allocation121_spill] sm:$0xff] }
 0x3ba   : > { %v3016_v18 = vpop.f32.mrb[10].mxu1  ;;  %v3305_v41 = vpop.f32.mrb[10].mxu0  ;;  %v11626_v57 = vld [vmem:[#allocation25_spill] sm:$0xff] }
 0x3bb   : > { %v3017_v62 = vadd.f32 %v3016_v18, %v11621_v27  ;;  %v3018_v17 = vpop.f32.mrb[11].mxu1  ;;  %v3307_v31 = vpop.f32.mrb[11].mxu0  ;;  %v9331_v55 = vadd.f32 %v3302_v13, %v3014_v8 }
 0x3bc   : > { %v11627_v17 = vld [vmem:[#allocation27_spill] sm:$0xff] }
 0x3bd   : > { %11622 = vst [vmem:[#allocation250_spill] sm:$0xff] %v9331_v55  ;;  %3550 = vmatmul.mubr.bf16.gmra.mrb[116].mxu1 %v11623_v0  ;;  %4224 = vmatmul.mubr.bf16.gmra.mrb[116].mxu0 %v11456_v40  ;;  %v9336_v49 = vadd.f32 %v3305_v41, %v3017_v62  ;;  %v11629_v40 = vld [vmem:[#allocation123_spill] sm:$0xff]  ;;  %v11631_v41 = vld [vmem:[#allocation128_spill] sm:$0xff] }
 0x3be   : > { %3557 = vmatprep.mubr.bf16.mxu1 %v11625_v11  ;;  %4231 = vmatprep.mubr.bf16.mxu0 %v11458_v3  ;;  %v5778_v62 = vld [vmem:[#allocation5 + $0x3f8] sm:$0xff]  }
 0x3bf   : > { %11624 = vst [vmem:[#allocation251_spill] sm:$0xff] %v9336_v49  ;;  %4407 = vmatpush1.bf16.msra.mxu1 %v5778_v62  ;;  %v11637_v62 = vld [vmem:[#allocation136_spill] sm:$0xff] }
 0x3c0   : > { %v3021_v63 = vpop.f32.mrb[12].mxu1  ;;  %v3310_v9 = vpop.f32.mrb[12].mxu0 }
 0x3c1   : > { %v3022_v18 = vadd.f32 %v3021_v63, %v11626_v57  ;;  %v3023_v27 = vpop.f32.mrb[13].mxu1  ;;  %v3312_v50 = vpop.f32.mrb[13].mxu0 }
 0x3c2   : > { %v3024_v13 = vpop.f32.mrb[14].mxu1  ;;  %v3313_v8 = vpop.f32.mrb[14].mxu0  ;;  %v11632_v27 = vld [vmem:[#allocation30_spill] sm:$0xff] }
 0x3c3   : > { %v3025_v33 = vadd.f32 %v3024_v13, %v11627_v17  ;;  %v3026_v31 = vpop.f32.mrb[15].mxu1  ;;  %v3315_v55 = vpop.f32.mrb[15].mxu0  ;;  %v9342_v0 = vadd.f32 %v3310_v9, %v3022_v18  ;;  %v5779_v9 = vld [vmem:[#allocation5 + $0x478] sm:$0xff]  }
 0x3c4   : > { %v11633_v31 = vld [vmem:[#allocation32_spill] sm:$0xff]  ;;  %4696 = vmatpush1.bf16.msra.mxu0 %v5779_v9 }
 0x3c5   : > { %11628 = vst [vmem:[#allocation252_spill] sm:$0xff] %v9342_v0  ;;  %3558 = vmatmul.mubr.bf16.gmra.mrb[120].mxu1 %v11629_v40  ;;  %4232 = vmatmul.mubr.bf16.gmra.mrb[120].mxu0 %v11462_v12  ;;  %v9346_v3 = vadd.f32 %v3313_v8, %v3025_v33  ;;  %v11635_v33 = vld [vmem:[#allocation130_spill] sm:$0xff] }
 0x3c6   : > { %3565 = vmatprep.mubr.bf16.mxu1 %v11631_v41  ;;  %4239 = vmatprep.mubr.bf16.mxu0 %v11464_v46 }
 0x3c7   : > { %11630 = vst [vmem:[#allocation69_spill] sm:$0xff] %v9346_v3 }
 0x3c8   : > { %v3029_v63 = vpop.f32.mrb[16].mxu1  ;;  %v3318_v57 = vpop.f32.mrb[16].mxu0 }
 0x3c9   : > { %v3030_v50 = vadd.f32 %v3029_v63, %v11632_v27  ;;  %v3031_v13 = vpop.f32.mrb[17].mxu1  ;;  %v3320_v55 = vpop.f32.mrb[17].mxu0 }
 0x3ca   : > { %v3032_v18 = vpop.f32.mrb[18].mxu1  ;;  %v3321_v17 = vpop.f32.mrb[18].mxu0  ;;  %v11638_v13 = vld [vmem:[#allocation34_spill] sm:$0xff] }
 0x3cb   : > { %v3033_v0 = vadd.f32 %v3032_v18, %v11633_v31  ;;  %v3034_v12 = vpop.f32.mrb[19].mxu1  ;;  %v3323_v49 = vpop.f32.mrb[19].mxu0  ;;  %v9352_v8 = vadd.f32 %v3318_v57, %v3030_v50  ;;  %v11639_v57 = vld [vmem:[#allocation37_spill] sm:$0xff] }
 0x3cd   : > { %11634 = vst [vmem:[#allocation72_spill] sm:$0xff] %v9352_v8  ;;  %3566 = vmatmul.mubr.bf16.gmra.mrb[124].mxu1 %v11635_v33  ;;  %4240 = vmatmul.mubr.bf16.gmra.mrb[124].mxu0 %v11468_v2  ;;  %v9356_v46 = vadd.f32 %v3321_v17, %v3033_v0  ;;  %v11641_v2 = vld [vmem:[#allocation138_spill] sm:$0xff] }
 0x3ce   : > { %3573 = vmatprep.mubr.bf16.mxu1 %v11637_v62  ;;  %4247 = vmatprep.mubr.bf16.mxu0 %v11470_v14  ;;  %v11643_v14 = vld [vmem:[#allocation141_spill] sm:$0xff] }
 0x3cf   : > { %11636 = vst [vmem:[#allocation187_spill] sm:$0xff] %v9356_v46 }
 0x3d0   : > { %v3037_v63 = vpop.f32.mrb[20].mxu1  ;;  %v3326_v27 = vpop.f32.mrb[20].mxu0 }
 0x3d1   : > { %v3038_v55 = vadd.f32 %v3037_v63, %v11638_v13  ;;  %v3039_v18 = vpop.f32.mrb[21].mxu1  ;;  %v3328_v31 = vpop.f32.mrb[21].mxu0  ;;  %v11644_v13 = vld [vmem:[#allocation40_spill] sm:$0xff] }
 0x3d2   : > { %v3040_v49 = vpop.f32.mrb[22].mxu1  ;;  %v3329_v9 = vpop.f32.mrb[22].mxu0 }
 0x3d3   : > { %v3041_v50 = vadd.f32 %v3040_v49, %v11639_v57  ;;  %v3042_v12 = vpop.f32.mrb[23].mxu1  ;;  %v3331_v8 = vpop.f32.mrb[23].mxu0  ;;  %v9362_v3 = vadd.f32 %v3326_v27, %v3038_v55  ;;  %v11645_v27 = vld [vmem:[#allocation42_spill] sm:$0xff] }
 0x3d5   : > { %11640 = vst [vmem:[#allocation189_spill] sm:$0xff] %v9362_v3  ;;  %3574 = vmatmul.mubr.bf16.gmra.mrb[128].mxu1 %v11641_v2  ;;  %4248 = vmatmul.mubr.bf16.gmra.mrb[128].mxu0 %v11474_v16  ;;  %v9366_v0 = vadd.f32 %v3329_v9, %v3041_v50  ;;  %v11647_v16 = vld [vmem:[#allocation142_spill] sm:$0xff]  ;;  %v11650_v50 = vld [vmem:[#allocation35_spill] sm:$0xff] }
 0x3d6   : > { %3581 = vmatprep.mubr.bf16.mxu1 %v11643_v14  ;;  %4255 = vmatprep.mubr.bf16.mxu0 %v11475_v43  ;;  %v11649_v43 = vld [vmem:[#allocation144_spill] sm:$0xff] }
 0x3d7   : > { %11642 = vst [vmem:[#allocation197_spill] sm:$0xff] %v9366_v0 }
 0x3d8   : > { %v3045_v17 = vpop.f32.mrb[24].mxu1  ;;  %v3334_v63 = vpop.f32.mrb[24].mxu0 }
 0x3d9   : > { %v3046_v18 = vadd.f32 %v3045_v17, %v11644_v13  ;;  %v3047_v31 = vpop.f32.mrb[25].mxu1  ;;  %v3336_v49 = vpop.f32.mrb[25].mxu0 }
 0x3da   : > { %v3048_v57 = vpop.f32.mrb[26].mxu1  ;;  %v3337_v8 = vpop.f32.mrb[26].mxu0  ;;  %v11651_v31 = vld [vmem:[#allocation50_spill] sm:$0xff] }
 0x3db   : > { %v3049_v55 = vadd.f32 %v3048_v57, %v11645_v27  ;;  %v3050_v12 = vpop.f32.mrb[27].mxu1  ;;  %v3339_v3 = vpop.f32.mrb[27].mxu0  ;;  %v9372_v46 = vadd.f32 %v3334_v63, %v3046_v18  ;;  %v11652_v63 = vld [vmem:[#allocation53_spill] sm:$0xff] }
 0x3dd   : > { %11646 = vst [vmem:[#allocation203_spill] sm:$0xff] %v9372_v46  ;;  %3582 = vmatmul.mubr.bf16.gmra.mrb[132].mxu1 %v11647_v16  ;;  %4256 = vmatmul.mubr.bf16.gmra.mrb[132].mxu0 %v11479_v20  ;;  %v9376_v9 = vadd.f32 %v3337_v8, %v3049_v55  ;;  %v11654_v20 = vld [vmem:[#allocation146_spill] sm:$0xff] }
 0x3de   : > { %3589 = vmatprep.mubr.bf16.mxu1 %v11649_v43  ;;  %4263 = vmatprep.mubr.bf16.mxu0 %v11650_v50  ;;  %v11655_v8 = vld [vmem:[#allocation38_spill] sm:$0xff]  ;;  %v11657_v50 = vld [vmem:[#allocation148_spill] sm:$0xff] }
 0x3df   : > { %11648 = vst [vmem:[#allocation124_spill] sm:$0xff] %v9376_v9  ;;  %v11658_v9 = vld [vmem:[#allocation41_spill] sm:$0xff] }
 0x3e0   : > { %v3053_v17 = vpop.f32.mrb[28].mxu1  ;;  %v3342_v13 = vpop.f32.mrb[28].mxu0 }
 0x3e1   : > { %v3054_v49 = vadd.f32 %v3053_v17, %v11651_v31  ;;  %v3055_v0 = vpop.f32.mrb[29].mxu1  ;;  %v3344_v57 = vpop.f32.mrb[29].mxu0  ;;  %v11659_v31 = vld [vmem:[#allocation56_spill] sm:$0xff] }
 0x3e2   : > { %v3056_v27 = vpop.f32.mrb[30].mxu1  ;;  %v3345_v3 = vpop.f32.mrb[30].mxu0 }
 0x3e3   : > { %v3057_v18 = vadd.f32 %v3056_v27, %v11652_v63  ;;  %v3058_v12 = vpop.f32.mrb[31].mxu1  ;;  %v3347_v46 = vpop.f32.mrb[31].mxu0  ;;  %v9382_v16 = vadd.f32 %v3342_v13, %v3054_v49  ;;  %v11660_v13 = vld [vmem:[#allocation61_spill] sm:$0xff] }
 0x3e5   : > { %11653 = vst [vmem:[#allocation12_spill] sm:$0xff] %v9382_v16  ;;  %3590 = vmatmul.mubr.bf16.gmra.mrb[136].mxu1 %v11654_v20  ;;  %4264 = vmatmul.mubr.bf16.gmra.mrb[136].mxu0 %v11655_v8  ;;  %v9386_v55 = vadd.f32 %v3345_v3, %v3057_v18  ;;  %v11662_v3 = vld [vmem:[#allocation150_spill] sm:$0xff]  ;;  %v11663_v18 = vld [vmem:[#allocation43_spill] sm:$0xff] }
 0x3e6   : > { %3597 = vmatprep.mubr.bf16.mxu1 %v11657_v50  ;;  %4271 = vmatprep.mubr.bf16.mxu0 %v11658_v9  ;;  %v11665_v9 = vld [vmem:[#allocation152_spill] sm:$0xff] }
 0x3e7   : > { %11656 = vst [vmem:[#allocation241_spill] sm:$0xff] %v9386_v55  ;;  %v11666_v55 = vld [vmem:[#allocation51_spill] sm:$0xff] }
 0x3e8   : > { %v3061_v0 = vpop.f32.mrb[32].mxu1  ;;  %v3350_v17 = vpop.f32.mrb[32].mxu0 }
 0x3e9   : > { %v3062_v57 = vadd.f32 %v3061_v0, %v11659_v31  ;;  %v3063_v43 = vpop.f32.mrb[33].mxu1  ;;  %v3352_v27 = vpop.f32.mrb[33].mxu0  ;;  %v11667_v31 = vld [vmem:[#allocation64_spill] sm:$0xff] }
 0x3ea   : > { %v3064_v63 = vpop.f32.mrb[34].mxu1  ;;  %v3353_v46 = vpop.f32.mrb[34].mxu0 }
 0x3eb   : > { %v3065_v49 = vadd.f32 %v3064_v63, %v11660_v13  ;;  %v3066_v12 = vpop.f32.mrb[35].mxu1  ;;  %v3355_v16 = vpop.f32.mrb[35].mxu0  ;;  %v9392_v20 = vadd.f32 %v3350_v17, %v3062_v57  ;;  %v11668_v17 = vld [vmem:[#allocation68_spill] sm:$0xff] }
 0x3ed   : > { %11661 = vst [vmem:[#allocation234_spill] sm:$0xff] %v9392_v20  ;;  %3598 = vmatmul.mubr.bf16.gmra.mrb[140].mxu1 %v11662_v3  ;;  %4272 = vmatmul.mubr.bf16.gmra.mrb[140].mxu0 %v11663_v18  ;;  %v9396_v8 = vadd.f32 %v3353_v46, %v3065_v49  ;;  %v11670_v46 = vld [vmem:[#allocation154_spill] sm:$0xff] }
 0x3ee   : > { %3605 = vmatprep.mubr.bf16.mxu1 %v11665_v9  ;;  %4279 = vmatprep.mubr.bf16.mxu0 %v11666_v55  ;;  %v11671_v49 = vld [vmem:[#allocation54_spill] sm:$0xff]  ;;  %v11673_v55 = vld [vmem:[#allocation156_spill] sm:$0xff] }
 0x3ef   : > { %11664 = vst [vmem:[#allocation239_spill] sm:$0xff] %v9396_v8  ;;  %v11674_v8 = vld [vmem:[#allocation60_spill] sm:$0xff] }
 0x3f0   : > { %v3069_v43 = vpop.f32.mrb[36].mxu1  ;;  %v3358_v0 = vpop.f32.mrb[36].mxu0 }
 0x3f1   : > { %v3070_v27 = vadd.f32 %v3069_v43, %v11667_v31  ;;  %v3071_v50 = vpop.f32.mrb[37].mxu1  ;;  %v3360_v63 = vpop.f32.mrb[37].mxu0  ;;  %v11675_v31 = vld [vmem:[#allocation71_spill] sm:$0xff] }
 0x3f2   : > { %v3072_v13 = vpop.f32.mrb[38].mxu1  ;;  %v3361_v16 = vpop.f32.mrb[38].mxu0 }
 0x3f3   : > { %v3073_v57 = vadd.f32 %v3072_v13, %v11668_v17  ;;  %v3074_v12 = vpop.f32.mrb[39].mxu1  ;;  %v3363_v20 = vpop.f32.mrb[39].mxu0  ;;  %v9402_v3 = vadd.f32 %v3358_v0, %v3070_v27  ;;  %v11676_v0 = vld [vmem:[#allocation188_spill] sm:$0xff] }
 0x3f5   : > { %11669 = vst [vmem:[#allocation240_spill] sm:$0xff] %v9402_v3  ;;  %3606 = vmatmul.mubr.bf16.gmra.mrb[144].mxu1 %v11670_v46  ;;  %4280 = vmatmul.mubr.bf16.gmra.mrb[144].mxu0 %v11671_v49  ;;  %v9406_v18 = vadd.f32 %v3361_v16, %v3073_v57  ;;  %v11678_v16 = vld [vmem:[#allocation158_spill] sm:$0xff] }
 0x3f6   : > { %3613 = vmatprep.mubr.bf16.mxu1 %v11673_v55  ;;  %4287 = vmatprep.mubr.bf16.mxu0 %v11674_v8  ;;  %v11679_v57 = vld [vmem:[#allocation62_spill] sm:$0xff]  ;;  %v11681_v8 = vld [vmem:[#allocation160_spill] sm:$0xff] }
 0x3f7   : > { %11672 = vst [vmem:[#allocation36_spill] sm:$0xff] %v9406_v18  ;;  %v11682_v18 = vld [vmem:[#allocation65_spill] sm:$0xff] }
 0x3f8   : > { %v3077_v50 = vpop.f32.mrb[40].mxu1  ;;  %v3366_v43 = vpop.f32.mrb[40].mxu0 }
 0x3f9   : > { %v3078_v63 = vadd.f32 %v3077_v50, %v11675_v31  ;;  %v3079_v9 = vpop.f32.mrb[41].mxu1  ;;  %v3368_v13 = vpop.f32.mrb[41].mxu0  ;;  %v11683_v31 = vld [vmem:[#allocation190_spill] sm:$0xff] }
 0x3fa   : > { %v3080_v17 = vpop.f32.mrb[42].mxu1  ;;  %v3369_v20 = vpop.f32.mrb[42].mxu0 }
 0x3fb   : > { %v3081_v27 = vadd.f32 %v3080_v17, %v11676_v0  ;;  %v3082_v12 = vpop.f32.mrb[43].mxu1  ;;  %v3371_v3 = vpop.f32.mrb[43].mxu0  ;;  %v9412_v46 = vadd.f32 %v3366_v43, %v3078_v63  ;;  %v11684_v43 = vld [vmem:[#allocation196_spill] sm:$0xff] }
 0x3fd   : > { %11677 = vst [vmem:[#allocation47_spill] sm:$0xff] %v9412_v46  ;;  %3614 = vmatmul.mubr.bf16.gmra.mrb[148].mxu1 %v11678_v16  ;;  %4288 = vmatmul.mubr.bf16.gmra.mrb[148].mxu0 %v11679_v57  ;;  %v9416_v49 = vadd.f32 %v3369_v20, %v3081_v27  ;;  %v11686_v20 = vld [vmem:[#allocation162_spill] sm:$0xff] }
 0x3fe   : > { %3621 = vmatprep.mubr.bf16.mxu1 %v11681_v8  ;;  %4295 = vmatprep.mubr.bf16.mxu0 %v11682_v18  ;;  %v11688_v18 = vld [vmem:[#allocation164_spill] sm:$0xff] }
 0x3ff   : > { %11680 = vst [vmem:[#allocation66_spill] sm:$0xff] %v9416_v49 }
 0x400   : > { %v3085_v9 = vpop.f32.mrb[44].mxu1  ;;  %v3374_v50 = vpop.f32.mrb[44].mxu0 }
 0x401   : > { %v3086_v13 = vadd.f32 %v3085_v9, %v11683_v31  ;;  %v3087_v55 = vpop.f32.mrb[45].mxu1  ;;  %v3376_v17 = vpop.f32.mrb[45].mxu0  ;;  %v11689_v9 = vld [vmem:[#allocation198_spill] sm:$0xff] }
 0x402   : > { %v3088_v0 = vpop.f32.mrb[46].mxu1  ;;  %v3377_v3 = vpop.f32.mrb[46].mxu0 }
 0x403   : > { %v3089_v63 = vadd.f32 %v3088_v0, %v11684_v43  ;;  %v3090_v12 = vpop.f32.mrb[47].mxu1  ;;  %v3379_v46 = vpop.f32.mrb[47].mxu0  ;;  %v9422_v16 = vadd.f32 %v3374_v50, %v3086_v13  ;;  %v11690_v50 = vld [vmem:[#allocation204_spill] sm:$0xff] }
 0x405   : > { %11685 = vst [vmem:[#allocation77_spill] sm:$0xff] %v9422_v16  ;;  %3622 = vmatmul.mubr.bf16.gmra.mrb[152].mxu1 %v11686_v20  ;;  %4296 = vmatmul.mubr.bf16.gmra.mrb[152].mxu0 %v11519_v44  ;;  %v9426_v27 = vadd.f32 %v3377_v3, %v3089_v63  ;;  %v11692_v44 = vld [vmem:[#allocation166_spill] sm:$0xff]  ;;  %v11693_v3 = vld [vmem:[#allocation79_spill] sm:$0xff] }
 0x406   : > { %3629 = vmatprep.mubr.bf16.mxu1 %v11688_v18  ;;  %4303 = vmatprep.mubr.bf16.mxu0 %v11521_v29  ;;  %v11695_v29 = vld [vmem:[#allocation168_spill] sm:$0xff] }
 0x407   : > { %11687 = vst [vmem:[#allocation86_spill] sm:$0xff] %v9426_v27  ;;  %v11696_v27 = vld [vmem:[#allocation82_spill] sm:$0xff] }
 0x408   : > { %v3093_v55 = vpop.f32.mrb[48].mxu1  ;;  %v3382_v57 = vpop.f32.mrb[48].mxu0 }
 0x409   : > { %v3094_v31 = vadd.f32 %v3093_v55, %v11689_v9  ;;  %v3095_v17 = vpop.f32.mrb[49].mxu1  ;;  %v3384_v0 = vpop.f32.mrb[49].mxu0 }
 0x40a   : > { %v3096_v43 = vpop.f32.mrb[50].mxu1  ;;  %v3385_v46 = vpop.f32.mrb[50].mxu0  ;;  %v11697_v17 = vld [vmem:[#allocation206_spill] sm:$0xff] }
 0x40b   : > { %v3097_v13 = vadd.f32 %v3096_v43, %v11690_v50  ;;  %v3098_v12 = vpop.f32.mrb[51].mxu1  ;;  %v3387_v16 = vpop.f32.mrb[51].mxu0  ;;  %v9432_v49 = vadd.f32 %v3382_v57, %v3094_v31  ;;  %v11698_v57 = vld [vmem:[#allocation211_spill] sm:$0xff] }
 0x40d   : > { %11691 = vst [vmem:[#allocation88_spill] sm:$0xff] %v9432_v49  ;;  %3630 = vmatmul.mubr.bf16.gmra.mrb[156].mxu1 %v11692_v44  ;;  %4304 = vmatmul.mubr.bf16.gmra.mrb[156].mxu0 %v11693_v3  ;;  %v9436_v63 = vadd.f32 %v3385_v46, %v3097_v13  ;;  %v11700_v46 = vld [vmem:[#allocation170_spill] sm:$0xff]  ;;  %v11701_v13 = vld [vmem:[#allocation73_spill] sm:$0xff] }
 0x40e   : > { %3637 = vmatprep.mubr.bf16.mxu1 %v11695_v29  ;;  %4311 = vmatprep.mubr.bf16.mxu0 %v11696_v27  ;;  %v11703_v27 = vld [vmem:[#allocation172_spill] sm:$0xff] }
 0x40f   : > { %11694 = vst [vmem:[#allocation90_spill] sm:$0xff] %v9436_v63  ;;  %v11704_v63 = vld [vmem:[#allocation108_spill] sm:$0xff] }
 0x410   : > { %v3101_v55 = vpop.f32.mrb[52].mxu1  ;;  %v3390_v9 = vpop.f32.mrb[52].mxu0 }
 0x411   : > { %v3102_v0 = vadd.f32 %v3101_v55, %v11697_v17  ;;  %v3103_v18 = vpop.f32.mrb[53].mxu1  ;;  %v3392_v43 = vpop.f32.mrb[53].mxu0  ;;  %v11705_v17 = vld [vmem:[#allocation212_spill] sm:$0xff] }
 0x412   : > { %v3104_v50 = vpop.f32.mrb[54].mxu1  ;;  %v3393_v16 = vpop.f32.mrb[54].mxu0 }
 0x413   : > { %v3105_v31 = vadd.f32 %v3104_v50, %v11698_v57  ;;  %v3106_v12 = vpop.f32.mrb[55].mxu1  ;;  %v3395_v49 = vpop.f32.mrb[55].mxu0  ;;  %v9442_v44 = vadd.f32 %v3390_v9, %v3102_v0  ;;  %v11706_v9 = vld [vmem:[#allocation219_spill] sm:$0xff] }
 0x415   : > { %11699 = vst [vmem:[#allocation92_spill] sm:$0xff] %v9442_v44  ;;  %3638 = vmatmul.mubr.bf16.gmra.mrb[160].mxu1 %v11700_v46  ;;  %4312 = vmatmul.mubr.bf16.gmra.mrb[160].mxu0 %v11701_v13  ;;  %v9446_v3 = vadd.f32 %v3393_v16, %v3105_v31  ;;  %v11708_v16 = vld [vmem:[#allocation174_spill] sm:$0xff]  ;;  %v11709_v31 = vld [vmem:[#allocation112_spill] sm:$0xff] }
 0x416   : > { %3645 = vmatprep.mubr.bf16.mxu1 %v11703_v27  ;;  %4319 = vmatprep.mubr.bf16.mxu0 %v11704_v63  ;;  %v11711_v63 = vld [vmem:[#allocation176_spill] sm:$0xff] }
 0x417   : > { %11702 = vst [vmem:[#allocation94_spill] sm:$0xff] %v9446_v3  ;;  %v11712_v3 = vld [vmem:[#allocation114_spill] sm:$0xff] }
 0x418   : > { %v3109_v18 = vpop.f32.mrb[56].mxu1  ;;  %v3398_v55 = vpop.f32.mrb[56].mxu0 }
 0x419   : > { %v3110_v43 = vadd.f32 %v3109_v18, %v11705_v17  ;;  %v3111_v29 = vpop.f32.mrb[57].mxu1  ;;  %v3400_v50 = vpop.f32.mrb[57].mxu0  ;;  %v11713_v17 = vld [vmem:[#allocation221_spill] sm:$0xff] }
 0x41a   : > { %v3112_v57 = vpop.f32.mrb[58].mxu1  ;;  %v3401_v49 = vpop.f32.mrb[58].mxu0 }
 0x41b   : > { %v3113_v0 = vadd.f32 %v3112_v57, %v11706_v9  ;;  %v3114_v12 = vpop.f32.mrb[59].mxu1  ;;  %v3403_v44 = vpop.f32.mrb[59].mxu0  ;;  %v9452_v46 = vadd.f32 %v3398_v55, %v3110_v43  ;;  %v11714_v55 = vld [vmem:[#allocation227_spill] sm:$0xff] }
 0x41d   : > { %11707 = vst [vmem:[#allocation96_spill] sm:$0xff] %v9452_v46  ;;  %3646 = vmatmul.mubr.bf16.gmra.mrb[164].mxu1 %v11708_v16  ;;  %4320 = vmatmul.mubr.bf16.gmra.mrb[164].mxu0 %v11709_v31  ;;  %v9456_v13 = vadd.f32 %v3401_v49, %v3113_v0  ;;  %v11716_v49 = vld [vmem:[#allocation178_spill] sm:$0xff]  ;;  %v11717_v0 = vld [vmem:[#allocation119_spill] sm:$0xff] }
 0x41e   : > { %3653 = vmatprep.mubr.bf16.mxu1 %v11711_v63  ;;  %4327 = vmatprep.mubr.bf16.mxu0 %v11712_v3  ;;  %v11719_v3 = vld [vmem:[#allocation180_spill] sm:$0xff] }
 0x41f   : > { %11710 = vst [vmem:[#allocation98_spill] sm:$0xff] %v9456_v13  ;;  %v11720_v13 = vld [vmem:[#allocation80_spill] sm:$0xff] }
 0x420   : > { %v3117_v29 = vpop.f32.mrb[60].mxu1  ;;  %v3406_v18 = vpop.f32.mrb[60].mxu0 }
 0x421   : > { %v3118_v50 = vadd.f32 %v3117_v29, %v11713_v17  ;;  %v3119_v27 = vpop.f32.mrb[61].mxu1  ;;  %v3408_v57 = vpop.f32.mrb[61].mxu0  ;;  %v11722_v17 = vld [vmem:[#allocation232_spill] sm:$0xff] }
 0x422   : > { %v3120_v9 = vpop.f32.mrb[62].mxu1  ;;  %v3409_v44 = vpop.f32.mrb[62].mxu0 }
 0x423   : > { %v3121_v43 = vadd.f32 %v3120_v9, %v11714_v55  ;;  %v3122_v12 = vpop.f32.mrb[63].mxu1  ;;  %v3411_v46 = vpop.f32.mrb[63].mxu0  ;;  %v9462_v16 = vadd.f32 %v3406_v18, %v3118_v50  ;;  %v11725_v55 = vld [vmem:[#allocation236_spill] sm:$0xff] }
 0x425   : > { %11715 = vst [vmem:[#allocation205_spill] sm:$0xff] %v9462_v16  ;;  %3654 = vmatmul.mubr.bf16.gmra.mrb[168].mxu1 %v11716_v49  ;;  %4328 = vmatmul.mubr.bf16.gmra.mrb[168].mxu0 %v11717_v0  ;;  %v9466_v31 = vadd.f32 %v3409_v44, %v3121_v43  ;;  %v11727_v0 = vld [vmem:[#allocation182_spill] sm:$0xff]  ;;  %v11738_v16 = vld [vmem:[#allocation192_spill] sm:$0xff] }
 0x426   : > { %3661 = vmatprep.mubr.bf16.mxu1 %v11719_v3  ;;  %4335 = vmatprep.mubr.bf16.mxu0 %v11720_v13  ;;  %v11728_v13 = vld [vmem:[#allocation184_spill] sm:$0xff]  ;;  %v11755_v49 = vld [vmem:[#allocation202_spill] sm:$0xff] }
 0x427   : > { %11718 = vst [vmem:[#allocation218_spill] sm:$0xff] %v9466_v31  ;;  %v11736_v31 = vld [vmem:[#allocation186_spill] sm:$0xff] }
 0x428   : > { %v3447_v27 = vpop.f32.mrb[64].mxu1  ;;  %v9470_v29 = vpop.f32.mrb[64].mxu0 }
 0x429   : > { %11721 = vst [vmem:[#allocation46_spill] sm:$0xff] %v9470_v29  ;;  %v9473_v57 = vadd.f32 %v3447_v27, %v11722_v17  ;;  %v3449_v9 = vpop.f32.mrb[65].mxu1  ;;  %v4123_v46 = vpop.f32.mrb[65].mxu0  ;;  %v11729_v29 = vld [vmem:[#allocation126_spill] sm:$0xff] }
 0x42a   : > { %v3450_v18 = vpop.f32.mrb[66].mxu1  ;;  %v9475_v50 = vpop.f32.mrb[66].mxu0  ;;  %v11731_v9 = vld [vmem:[#allocation238_spill] sm:$0xff] }
 0x42b   : > { %11723 = vst [vmem:[#allocation74_spill] sm:$0xff] %v9473_v57  ;;  %11724 = vst [vmem:[#allocation100_spill] sm:$0xff] %v9475_v50  ;;  %v9478_v12 = vadd.f32 %v3450_v18, %v11725_v55  ;;  %v3452_v44 = vpop.f32.mrb[67].mxu1  ;;  %v4126_v43 = vpop.f32.mrb[67].mxu0 }
 0x42c   : > { %v11734_v43 = vld [vmem:[#allocation139_spill] sm:$0xff] }
 0x42d   : > { %11726 = vst [vmem:[#allocation81_spill] sm:$0xff] %v9478_v12  ;;  %3662 = vmatmul.mubr.bf16.gmra.mrb[172].mxu1 %v11727_v0  ;;  %4336 = vmatmul.mubr.bf16.gmra.mrb[172].mxu0 %v11552_v1 }
 0x42e   : > { %3669 = vmatprep.mubr.bf16.mxu1 %v11728_v13  ;;  %4343 = vmatprep.mubr.bf16.mxu0 %v11729_v29  ;;  %v11737_v29 = vld [vmem:[#allocation132_spill] sm:$0xff] }
 0x42f   : > { %v11747_v13 = vld [vmem:[#allocation140_spill] sm:$0xff] }
 0x430   : > { %v3455_v27 = vpop.f32.mrb[68].mxu1  ;;  %v9484_v17 = vpop.f32.mrb[68].mxu0 }
 0x431   : > { %11730 = vst [vmem:[#allocation220_spill] sm:$0xff] %v9484_v17  ;;  %v9487_v46 = vadd.f32 %v3455_v27, %v11731_v9  ;;  %v3457_v57 = vpop.f32.mrb[69].mxu1  ;;  %v4131_v18 = vpop.f32.mrb[69].mxu0  ;;  %v11739_v17 = vld [vmem:[#allocation134_spill] sm:$0xff] }
 0x432   : > { %v3458_v55 = vpop.f32.mrb[70].mxu1  ;;  %v9489_v44 = vpop.f32.mrb[70].mxu0  ;;  %v9499_v27 = vld [vmem:[%s6246_s5 + $0x458] sm:$0xff] }
 0x433   : > { %11732 = vst [vmem:[#allocation16_spill] sm:$0xff] %v9487_v46  ;;  %11733 = vst [vmem:[#allocation44_spill] sm:$0xff] %v9489_v44  ;;  %v9492_v12 = vadd.f32 %v3458_v55, %v11734_v43  ;;  %v3460_v1 = vpop.f32.mrb[71].mxu1  ;;  %v4134_v50 = vpop.f32.mrb[71].mxu0  ;;  %v11741_v18 = vld [vmem:[#allocation15_spill] sm:$0xff] }
 0x434   : > { %v11744_v46 = vld [vmem:[#allocation19_spill] sm:$0xff] }
 0x435   : > { %11735 = vst [vmem:[#allocation84_spill] sm:$0xff] %v9492_v12  ;;  %3670 = vmatmul.mubr.bf16.gmra.mrb[176].mxu1 %v11736_v31  ;;  %4344 = vmatmul.mubr.bf16.gmra.mrb[176].mxu0 %v11737_v29  ;;  %v5845_v12 = vld [vmem:[%s6246_s5 + $0x448] sm:$0xff] }
 0x436   : > { %3677 = vmatprep.mubr.bf16.mxu1 %v11738_v16  ;;  %4351 = vmatprep.mubr.bf16.mxu0 %v11739_v17  ;;  %v1052_v17 = vpack.c.bf16 %v9499_v27, %v5845_v12  ;;  %v5846_v12 = vld [vmem:[%s6246_s5 + $0x440] sm:$0xff] }
 0x438   : > { %v3463_v57 = vpop.f32.mrb[72].mxu1  ;;  %v9501_v9 = vpop.f32.mrb[72].mxu0 }
 0x439   : > { %11740 = vst [vmem:[#allocation48_spill] sm:$0xff] %v9501_v9  ;;  %v9504_v55 = vadd.f32 %v3463_v57, %v11741_v18  ;;  %v3465_v43 = vpop.f32.mrb[73].mxu1  ;;  %v4139_v50 = vpop.f32.mrb[73].mxu0  ;;  %v11746_v9 = vld [vmem:[#allocation194_spill] sm:$0xff]  ;;  %v11748_v57 = vld [vmem:[#allocation200_spill] sm:$0xff] }
 0x43a   : > { %v3466_v1 = vpop.f32.mrb[74].mxu1  ;;  %v9506_v29 = vpop.f32.mrb[74].mxu0  ;;  %v9517_v18 = vld [vmem:[%s6246_s5 + $0x468] sm:$0xff]  ;;  %v9520_v43 = vld [vmem:[%s6246_s5 + $0x478] sm:$0xff] }
 0x43b   : > { %11742 = vst [vmem:[#allocation70_spill] sm:$0xff] %v9504_v55  ;;  %11743 = vst [vmem:[#allocation235_spill] sm:$0xff] %v9506_v29  ;;  %v9511_v44 = vadd.f32 %v3466_v1, %v11744_v46  ;;  %v3468_v16 = vpop.f32.mrb[75].mxu1  ;;  %v4142_v31 = vpop.f32.mrb[75].mxu0  ;;  %v5847_v46 = vld [vmem:[%s6246_s5 + $0x450] sm:$0xff] }
 0x43c   : > { %v1051_v1 = vpack.c.bf16 %v5847_v46, %v5846_v12  ;;  %v11750_v16 = vld [vmem:[#allocation24_spill] sm:$0xff]  ;;  %v9538_v12 = vld [vmem:[%s6246_s5 + $0x470] sm:$0xff] }
 0x43d   : > { %11745 = vst [vmem:[#allocation237_spill] sm:$0xff] %v9511_v44  ;;  %3678 = vmatmul.mubr.bf16.gmra.mrb[180].mxu1 %v11746_v9  ;;  %4352 = vmatmul.mubr.bf16.gmra.mrb[180].mxu0 %v11747_v13  ;;  %v11753_v9 = vld [vmem:[#allocation26_spill] sm:$0xff] }
 0x43e   : > { %3685 = vmatprep.mubr.bf16.mxu1 %v11748_v57  ;;  %4359 = vmatprep.mubr.bf16.mxu0 %v1052_v17  ;;  %v1054_v17 = vpack.c.bf16 %v9520_v43, %v9517_v18 }
 0x440   : > { %v3471_v50 = vpop.f32.mrb[76].mxu1  ;;  %v9522_v55 = vpop.f32.mrb[76].mxu0 }
 0x441   : > { %11749 = vst [vmem:[#allocation57_spill] sm:$0xff] %v9522_v55  ;;  %v9527_v31 = vadd.f32 %v3471_v50, %v11750_v16  ;;  %v3473_v44 = vpop.f32.mrb[77].mxu1  ;;  %v4147_v29 = vpop.f32.mrb[77].mxu0  ;;  %v11756_v50 = vld [vmem:[#allocation208_spill] sm:$0xff] }
 0x442   : > { %v3474_v13 = vpop.f32.mrb[78].mxu1  ;;  %v9529_v57 = vpop.f32.mrb[78].mxu0 }
 0x443   : > { %11751 = vst [vmem:[#allocation111_spill] sm:$0xff] %v9527_v31  ;;  %11752 = vst [vmem:[#allocation102_spill] sm:$0xff] %v9529_v57  ;;  %v9534_v0 = vadd.f32 %v3474_v13, %v11753_v9  ;;  %v3476_v3 = vpop.f32.mrb[79].mxu1  ;;  %v4150_v55 = vpop.f32.mrb[79].mxu0  ;;  %v5848_v9 = vld [vmem:[%s6246_s5 + $0x460] sm:$0xff] }
 0x444   : > { %v1053_v3 = vpack.c.bf16 %v9538_v12, %v5848_v9 }
 0x445   : > { %11754 = vst [vmem:[#allocation113_spill] sm:$0xff] %v9534_v0  ;;  %3686 = vmatmul.mubr.bf16.gmra.mrb[184].mxu1 %v11755_v49  ;;  %4360 = vmatmul.mubr.bf16.gmra.mrb[184].mxu0 %v1051_v1  ;;  %v11759_v1 = vld [vmem:[#allocation28_spill] sm:$0xff] }
 0x446   : > { %3693 = vmatprep.mubr.bf16.mxu1 %v11756_v50  ;;  %4367 = vmatprep.mubr.bf16.mxu0 %v1054_v17  ;;  %v11760_v17 = vld [vmem:[#allocation210_spill] sm:$0xff] }
 0x448   : > { %v3479_v44 = vpop.f32.mrb[80].mxu1  ;;  %v9541_v29 = vpop.f32.mrb[80].mxu0 }
 0x449   : > { %11757 = vst [vmem:[#allocation14_spill] sm:$0xff] %v9541_v29  ;;  %v9544_v46 = vadd.f32 %v3479_v44, %v9153_v19  ;;  %v3481_v16 = vpop.f32.mrb[81].mxu1  ;;  %v4155_v31 = vpop.f32.mrb[81].mxu0  ;;  %v11761_v29 = vld [vmem:[#allocation85_spill] sm:$0xff] }
 0x44a   : > { %v3482_v55 = vpop.f32.mrb[82].mxu1  ;;  %v9548_v13 = vpop.f32.mrb[82].mxu0 }
 0x44b   : > { %11758 = vst [vmem:[#allocation29_spill] sm:$0xff] %v9544_v46  ;;  %v9551_v0 = vadd.f32 %v3482_v55, %v11759_v1  ;;  %v3484_v57 = vpop.f32.mrb[83].mxu1  ;;  %v4158_v50 = vpop.f32.mrb[83].mxu0  ;;  %v11762_v1 = vld [vmem:[#allocation87_spill] sm:$0xff] }
 0x44d   : > { %3694 = vmatmul.mubr.bf16.gmra.mrb[188].mxu1 %v11760_v17  ;;  %4368 = vmatmul.mubr.bf16.gmra.mrb[188].mxu0 %v1053_v3 }
 0x44e   : > { %4408 = vmatprep.mubr.bf16.mxu1 %v11761_v29  ;;  %4697 = vmatprep.mubr.bf16.mxu0 %v11567_v51  ;;  %v11763_v51 = vld [vmem:[#allocation89_spill] sm:$0xff] }
 0x450   : > { %v3487_v19 = vpop.f32.mrb[84].mxu1  ;;  %v9556_v31 = vpop.f32.mrb[84].mxu0 }
 0x451   : > { %v9559_v44 = vadd.f32 %v3487_v19, %v9169_v32  ;;  %v3489_v16 = vpop.f32.mrb[85].mxu1  ;;  %v4163_v9 = vpop.f32.mrb[85].mxu0 }
 0x452   : > { %v3490_v46 = vpop.f32.mrb[86].mxu1  ;;  %v9561_v55 = vpop.f32.mrb[86].mxu0 }
 0x453   : > { %v9564_v57 = vadd.f32 %v3490_v46, %v9175_v15  ;;  %v3492_v50 = vpop.f32.mrb[87].mxu1  ;;  %v4166_v3 = vpop.f32.mrb[87].mxu0 }
 0x455   : > { %4409 = vmatmul.mubr.bf16.vlgmr.msra.gmra.mrb[192].mxu1 %v11762_v1  ;;  %4698 = vmatmul.mubr.bf16.vlgmr.msra.gmra.mrb[192].mxu0 %v11568_v52  ;;  %v11764_v1 = vld [vmem:[#allocation91_spill] sm:$0xff] }
 0x456   : > { %4416 = vmatprep.mubr.bf16.mxu1 %v11763_v51  ;;  %4705 = vmatprep.mubr.bf16.mxu0 %v11569_v34  ;;  %v11765_v34 = vld [vmem:[#allocation93_spill] sm:$0xff] }
 0x458   : > { %v3495_v32 = vpop.f32.mrb[88].mxu1  ;;  %v9570_v29 = vpop.f32.mrb[88].mxu0 }
 0x459   : > { %v9573_v19 = vadd.f32 %v3495_v32, %v9184_v21  ;;  %v3497_v16 = vpop.f32.mrb[89].mxu1  ;;  %v4171_v9 = vpop.f32.mrb[89].mxu0 }
 0x45a   : > { %v3498_v15 = vpop.f32.mrb[90].mxu1  ;;  %v9575_v46 = vpop.f32.mrb[90].mxu0 }
 0x45b   : > { %v9578_v50 = vadd.f32 %v3498_v15, %v9190_v4  ;;  %v3500_v3 = vpop.f32.mrb[91].mxu1  ;;  %v4174_v52 = vpop.f32.mrb[91].mxu0 }
 0x45d   : > { %4417 = vmatmul.mubr.bf16.gmra.mrb[196].mxu1 %v11764_v1  ;;  %4706 = vmatmul.mubr.bf16.gmra.mrb[196].mxu0 %v11570_v37  ;;  %v11766_v1 = vld [vmem:[#allocation95_spill] sm:$0xff] }
 0x45e   : > { %4424 = vmatprep.mubr.bf16.mxu1 %v11765_v34  ;;  %4713 = vmatprep.mubr.bf16.mxu0 %v11571_v22  ;;  %v11767_v22 = vld [vmem:[#allocation97_spill] sm:$0xff] }
 0x460   : > { %v3503_v21 = vpop.f32.mrb[92].mxu1  ;;  %v9584_v51 = vpop.f32.mrb[92].mxu0 }
 0x461   : > { %v9587_v32 = vadd.f32 %v3503_v21, %v9198_v36  ;;  %v3505_v16 = vpop.f32.mrb[93].mxu1  ;;  %v4179_v9 = vpop.f32.mrb[93].mxu0 }
 0x462   : > { %v3506_v4 = vpop.f32.mrb[94].mxu1  ;;  %v9589_v15 = vpop.f32.mrb[94].mxu0 }
 0x463   : > { %v9592_v3 = vadd.f32 %v3506_v4, %v9204_v28  ;;  %v3508_v52 = vpop.f32.mrb[95].mxu1  ;;  %v4182_v37 = vpop.f32.mrb[95].mxu0 }
 0x465   : > { %4425 = vmatmul.mubr.bf16.gmra.mrb[200].mxu1 %v11766_v1  ;;  %4714 = vmatmul.mubr.bf16.gmra.mrb[200].mxu0 %v11572_v10  ;;  %v11768_v1 = vld [vmem:[#allocation99_spill] sm:$0xff] }
 0x466   : > { %4432 = vmatprep.mubr.bf16.mxu1 %v11767_v22  ;;  %4721 = vmatprep.mubr.bf16.mxu0 %v11573_v61  ;;  %v11769_v61 = vld [vmem:[#allocation39_spill] sm:$0xff] }
 0x468   : > { %v3511_v36 = vpop.f32.mrb[96].mxu1  ;;  %v9598_v34 = vpop.f32.mrb[96].mxu0 }
 0x469   : > { %v9601_v21 = vadd.f32 %v3511_v36, %v9212_v23  ;;  %v3513_v16 = vpop.f32.mrb[97].mxu1  ;;  %v4187_v9 = vpop.f32.mrb[97].mxu0 }
 0x46a   : > { %v3514_v28 = vpop.f32.mrb[98].mxu1  ;;  %v9603_v4 = vpop.f32.mrb[98].mxu0 }
 0x46b   : > { %v9606_v52 = vadd.f32 %v3514_v28, %v9218_v24  ;;  %v3516_v37 = vpop.f32.mrb[99].mxu1  ;;  %v4190_v10 = vpop.f32.mrb[99].mxu0 }
 0x46d   : > { %4433 = vmatmul.mubr.bf16.gmra.mrb[204].mxu1 %v11768_v1  ;;  %4722 = vmatmul.mubr.bf16.gmra.mrb[204].mxu0 %v11576_v6  ;;  %v11770_v1 = vld [vmem:[#allocation49_spill] sm:$0xff] }
 0x46e   : > { %4440 = vmatprep.mubr.bf16.mxu1 %v11769_v61  ;;  %4729 = vmatprep.mubr.bf16.mxu0 %v11578_v38  ;;  %v11771_v38 = vld [vmem:[#allocation55_spill] sm:$0xff] }
 0x470   : > { %v3519_v23 = vpop.f32.mrb[100].mxu1  ;;  %v9612_v22 = vpop.f32.mrb[100].mxu0 }
 0x471   : > { %v9615_v36 = vadd.f32 %v3519_v23, %v9226_v47  ;;  %v3521_v16 = vpop.f32.mrb[101].mxu1  ;;  %v4195_v9 = vpop.f32.mrb[101].mxu0 }
 0x472   : > { %v3522_v24 = vpop.f32.mrb[102].mxu1  ;;  %v9617_v28 = vpop.f32.mrb[102].mxu0 }
 0x473   : > { %v9620_v37 = vadd.f32 %v3522_v24, %v9232_v39  ;;  %v3524_v10 = vpop.f32.mrb[103].mxu1  ;;  %v4198_v6 = vpop.f32.mrb[103].mxu0 }
 0x475   : > { %4441 = vmatmul.mubr.bf16.gmra.mrb[208].mxu1 %v11770_v1  ;;  %4730 = vmatmul.mubr.bf16.gmra.mrb[208].mxu0 %v11583_v35  ;;  %v11772_v1 = vld [vmem:[#allocation52_spill] sm:$0xff] }
 0x476   : > { %4448 = vmatprep.mubr.bf16.mxu1 %v11771_v38  ;;  %4737 = vmatprep.mubr.bf16.mxu0 %v11586_v54  ;;  %v11773_v54 = vld [vmem:[#allocation101_spill] sm:$0xff] }
 0x478   : > { %v3527_v47 = vpop.f32.mrb[104].mxu1  ;;  %v9626_v61 = vpop.f32.mrb[104].mxu0 }
 0x479   : > { %v9629_v23 = vadd.f32 %v3527_v47, %v9240_v58  ;;  %v3529_v16 = vpop.f32.mrb[105].mxu1  ;;  %v4203_v9 = vpop.f32.mrb[105].mxu0 }
 0x47a   : > { %v3530_v39 = vpop.f32.mrb[106].mxu1  ;;  %v9631_v24 = vpop.f32.mrb[106].mxu0 }
 0x47b   : > { %v9634_v10 = vadd.f32 %v3530_v39, %v9246_v25  ;;  %v3532_v6 = vpop.f32.mrb[107].mxu1  ;;  %v4206_v35 = vpop.f32.mrb[107].mxu0 }
 0x47d   : > { %4449 = vmatmul.mubr.bf16.gmra.mrb[212].mxu1 %v11772_v1  ;;  %4738 = vmatmul.mubr.bf16.gmra.mrb[212].mxu0 %v11591_v45  ;;  %v11774_v1 = vld [vmem:[#allocation58_spill] sm:$0xff] }
 0x47e   : > { %4456 = vmatprep.mubr.bf16.mxu1 %v11773_v54  ;;  %4745 = vmatprep.mubr.bf16.mxu0 %v11594_v60  ;;  %v11775_v60 = vld [vmem:[#allocation104_spill] sm:$0xff] }
 0x480   : > { %v3535_v58 = vpop.f32.mrb[108].mxu1  ;;  %v9640_v38 = vpop.f32.mrb[108].mxu0 }
 0x481   : > { %v9643_v47 = vadd.f32 %v3535_v58, %v9254_v7  ;;  %v3537_v16 = vpop.f32.mrb[109].mxu1  ;;  %v4211_v9 = vpop.f32.mrb[109].mxu0 }
 0x482   : > { %v3538_v25 = vpop.f32.mrb[110].mxu1  ;;  %v9645_v39 = vpop.f32.mrb[110].mxu0 }
 0x483   : > { %v9648_v6 = vadd.f32 %v3538_v25, %v9258_v59  ;;  %v3540_v35 = vpop.f32.mrb[111].mxu1  ;;  %v4214_v45 = vpop.f32.mrb[111].mxu0 }
 0x485   : > { %4457 = vmatmul.mubr.bf16.gmra.mrb[216].mxu1 %v11774_v1  ;;  %4746 = vmatmul.mubr.bf16.gmra.mrb[216].mxu0 %v11599_v48  ;;  %v11779_v1 = vld [vmem:[#allocation63_spill] sm:$0xff] }
 0x486   : > { %4464 = vmatprep.mubr.bf16.mxu1 %v11775_v60  ;;  %4753 = vmatprep.mubr.bf16.mxu0 %v11602_v26  ;;  %v11780_v60 = vld [vmem:[#allocation106_spill] sm:$0xff]  ;;  %v11781_v26 = vld [vmem:[#allocation67_spill] sm:$0xff] }
 0x488   : > { %v3543_v7 = vpop.f32.mrb[112].mxu1  ;;  %v9654_v54 = vpop.f32.mrb[112].mxu0 }
 0x489   : > { %v9657_v58 = vadd.f32 %v3543_v7, %v9265_v30  ;;  %v3545_v16 = vpop.f32.mrb[113].mxu1  ;;  %v4219_v9 = vpop.f32.mrb[113].mxu0 }
 0x48a   : > { %v3546_v59 = vpop.f32.mrb[114].mxu1  ;;  %v9659_v25 = vpop.f32.mrb[114].mxu0  ;;  %v11782_v16 = vld [vmem:[#allocation31_spill] sm:$0xff] }
 0x48b   : > { %11776 = vst [vmem:[#allocation103_spill] sm:$0xff] %v9657_v58  ;;  %11777 = vst [vmem:[#allocation76_spill] sm:$0xff] %v9659_v25  ;;  %v9662_v35 = vadd.f32 %v3546_v59, %v9270_v5  ;;  %v3548_v45 = vpop.f32.mrb[115].mxu1  ;;  %v4222_v48 = vpop.f32.mrb[115].mxu0 }
 0x48c   : > { %v11785_v45 = vld [vmem:[#allocation242_spill] sm:$0xff] }
 0x48d   : > { %11778 = vst [vmem:[#allocation105_spill] sm:$0xff] %v9662_v35  ;;  %4465 = vmatmul.mubr.bf16.gmra.mrb[220].mxu1 %v11779_v1  ;;  %4754 = vmatmul.mubr.bf16.gmra.mrb[220].mxu0 %v11780_v60  ;;  %v11787_v35 = vld [vmem:[#allocation109_spill] sm:$0xff] }
 0x48e   : > { %4472 = vmatprep.mubr.bf16.mxu1 %v11781_v26  ;;  %4761 = vmatprep.mubr.bf16.mxu0 %v11610_v56  ;;  %v11788_v56 = vld [vmem:[#allocation115_spill] sm:$0xff] }
 0x490   : > { %v3551_v30 = vpop.f32.mrb[116].mxu1  ;;  %v9668_v7 = vpop.f32.mrb[116].mxu0 }
 0x491   : > { %v9671_v9 = vadd.f32 %v3551_v30, %v11782_v16  ;;  %v3553_v58 = vpop.f32.mrb[117].mxu1  ;;  %v4227_v25 = vpop.f32.mrb[117].mxu0 }
 0x492   : > { %v3554_v5 = vpop.f32.mrb[118].mxu1  ;;  %v9673_v59 = vpop.f32.mrb[118].mxu0  ;;  %v11790_v58 = vld [vmem:[#allocation33_spill] sm:$0xff] }
 0x493   : > { %11783 = vst [vmem:[#allocation78_spill] sm:$0xff] %v9671_v9  ;;  %11784 = vst [vmem:[#allocation18_spill] sm:$0xff] %v9673_v59  ;;  %v9676_v48 = vadd.f32 %v3554_v5, %v11785_v45  ;;  %v3556_v1 = vpop.f32.mrb[119].mxu1  ;;  %v4230_v60 = vpop.f32.mrb[119].mxu0 }
 0x494   : > { %v11793_v1 = vld [vmem:[#allocation243_spill] sm:$0xff] }
 0x495   : > { %11786 = vst [vmem:[#allocation45_spill] sm:$0xff] %v9676_v48  ;;  %4473 = vmatmul.mubr.bf16.gmra.mrb[224].mxu1 %v11787_v35  ;;  %4762 = vmatmul.mubr.bf16.gmra.mrb[224].mxu0 %v11615_v53  ;;  %v11795_v48 = vld [vmem:[#allocation117_spill] sm:$0xff] }
 0x496   : > { %4480 = vmatprep.mubr.bf16.mxu1 %v11788_v56  ;;  %4769 = vmatprep.mubr.bf16.mxu0 %v11618_v42  ;;  %v11796_v56 = vld [vmem:[#allocation118_spill] sm:$0xff]  ;;  %v11797_v42 = vld [vmem:[#allocation120_spill] sm:$0xff] }
 0x498   : > { %v3559_v26 = vpop.f32.mrb[120].mxu1  ;;  %v9682_v30 = vpop.f32.mrb[120].mxu0 }
 0x499   : > { %11789 = vst [vmem:[#allocation83_spill] sm:$0xff] %v9682_v30  ;;  %v9685_v25 = vadd.f32 %v3559_v26, %v11790_v58  ;;  %v3561_v16 = vpop.f32.mrb[121].mxu1  ;;  %v4235_v9 = vpop.f32.mrb[121].mxu0 }
 0x49a   : > { %v3562_v5 = vpop.f32.mrb[122].mxu1  ;;  %v9687_v45 = vpop.f32.mrb[122].mxu0  ;;  %v11799_v9 = vld [vmem:[#allocation244_spill] sm:$0xff] }
 0x49b   : > { %11791 = vst [vmem:[#allocation107_spill] sm:$0xff] %v9685_v25  ;;  %11792 = vst [vmem:[#allocation125_spill] sm:$0xff] %v9687_v45  ;;  %v9690_v60 = vadd.f32 %v3562_v5, %v11793_v1  ;;  %v3564_v35 = vpop.f32.mrb[123].mxu1  ;;  %v4238_v53 = vpop.f32.mrb[123].mxu0 }
 0x49c   : > { %v11802_v35 = vld [vmem:[#allocation245_spill] sm:$0xff] }
 0x49d   : > { %11794 = vst [vmem:[#allocation20_spill] sm:$0xff] %v9690_v60  ;;  %4481 = vmatmul.mubr.bf16.gmra.mrb[228].mxu1 %v11795_v48  ;;  %4770 = vmatmul.mubr.bf16.gmra.mrb[228].mxu0 %v11796_v56  ;;  %v11804_v60 = vld [vmem:[#allocation122_spill] sm:$0xff] }
 0x49e   : > { %4488 = vmatprep.mubr.bf16.mxu1 %v11797_v42  ;;  %4777 = vmatprep.mubr.bf16.mxu0 %v11625_v11  ;;  %v11805_v11 = vld [vmem:[#allocation127_spill] sm:$0xff] }
 0x4a0   : > { %v3567_v26 = vpop.f32.mrb[124].mxu1  ;;  %v9696_v58 = vpop.f32.mrb[124].mxu0 }
 0x4a1   : > { %11798 = vst [vmem:[#allocation59_spill] sm:$0xff] %v9696_v58  ;;  %v9699_v16 = vadd.f32 %v3567_v26, %v11799_v9  ;;  %v3569_v25 = vpop.f32.mrb[125].mxu1  ;;  %v4243_v45 = vpop.f32.mrb[125].mxu0  ;;  %v11866_v58 = vld [vmem:[#allocation153_spill] sm:$0xff] }
 0x4a2   : > { %v3570_v5 = vpop.f32.mrb[126].mxu1  ;;  %v9701_v1 = vpop.f32.mrb[126].mxu0  ;;  %v11807_v25 = vld [vmem:[#allocation246_spill] sm:$0xff] }
 0x4a3   : > { %11800 = vst [vmem:[#allocation110_spill] sm:$0xff] %v9699_v16  ;;  %11801 = vst [vmem:[#allocation131_spill] sm:$0xff] %v9701_v1  ;;  %v9704_v53 = vadd.f32 %v3570_v5, %v11802_v35  ;;  %v3572_v48 = vpop.f32.mrb[127].mxu1  ;;  %v4246_v56 = vpop.f32.mrb[127].mxu0 }
 0x4a4   : > { %v11810_v48 = vld [vmem:[#allocation247_spill] sm:$0xff] }
 0x4a5   : > { %11803 = vst [vmem:[#allocation116_spill] sm:$0xff] %v9704_v53  ;;  %4489 = vmatmul.mubr.bf16.gmra.mrb[232].mxu1 %v11804_v60  ;;  %4778 = vmatmul.mubr.bf16.gmra.mrb[232].mxu0 %v11629_v40  ;;  %v11812_v53 = vld [vmem:[#allocation129_spill] sm:$0xff] }
 0x4a6   : > { %4496 = vmatprep.mubr.bf16.mxu1 %v11805_v11  ;;  %4785 = vmatprep.mubr.bf16.mxu0 %v11631_v41  ;;  %v11813_v41 = vld [vmem:[#allocation135_spill] sm:$0xff] }
 0x4a8   : > { %v3575_v42 = vpop.f32.mrb[128].mxu1  ;;  %v9710_v26 = vpop.f32.mrb[128].mxu0 }
 0x4a9   : > { %11806 = vst [vmem:[#allocation133_spill] sm:$0xff] %v9710_v26  ;;  %v9713_v45 = vadd.f32 %v3575_v42, %v11807_v25  ;;  %v3577_v9 = vpop.f32.mrb[129].mxu1  ;;  %v4251_v16 = vpop.f32.mrb[129].mxu0 }
 0x4aa   : > { %v3578_v5 = vpop.f32.mrb[130].mxu1  ;;  %v9715_v35 = vpop.f32.mrb[130].mxu0  ;;  %v11815_v16 = vld [vmem:[#allocation248_spill] sm:$0xff] }
 0x4ab   : > { %11808 = vst [vmem:[#allocation23_spill] sm:$0xff] %v9713_v45  ;;  %11809 = vst [vmem:[#allocation75_spill] sm:$0xff] %v9715_v35  ;;  %v9718_v56 = vadd.f32 %v3578_v5, %v11810_v48  ;;  %v3580_v60 = vpop.f32.mrb[131].mxu1  ;;  %v4254_v40 = vpop.f32.mrb[131].mxu0 }
 0x4ac   : > { %v11818_v60 = vld [vmem:[#allocation249_spill] sm:$0xff] }
 0x4ad   : > { %11811 = vst [vmem:[#allocation121_spill] sm:$0xff] %v9718_v56  ;;  %4497 = vmatmul.mubr.bf16.gmra.mrb[236].mxu1 %v11812_v53  ;;  %4786 = vmatmul.mubr.bf16.gmra.mrb[236].mxu0 %v11635_v33  ;;  %v11820_v56 = vld [vmem:[#allocation137_spill] sm:$0xff] }
 0x4ae   : > { %4504 = vmatprep.mubr.bf16.mxu1 %v11813_v41  ;;  %4793 = vmatprep.mubr.bf16.mxu0 %v11637_v62  ;;  %v11821_v62 = vld [vmem:[#allocation13_spill] sm:$0xff] }
 0x4b0   : > { %v3583_v11 = vpop.f32.mrb[132].mxu1  ;;  %v9724_v42 = vpop.f32.mrb[132].mxu0 }
 0x4b1   : > { %11814 = vst [vmem:[#allocation25_spill] sm:$0xff] %v9724_v42  ;;  %v9727_v25 = vadd.f32 %v3583_v11, %v11815_v16  ;;  %v3585_v9 = vpop.f32.mrb[133].mxu1  ;;  %v4259_v45 = vpop.f32.mrb[133].mxu0  ;;  %v11843_v42 = vld [vmem:[#allocation146_spill] sm:$0xff] }
 0x4b2   : > { %v3586_v5 = vpop.f32.mrb[134].mxu1  ;;  %v9729_v48 = vpop.f32.mrb[134].mxu0  ;;  %v11823_v45 = vld [vmem:[#allocation250_spill] sm:$0xff] }
 0x4b3   : > { %11816 = vst [vmem:[#allocation27_spill] sm:$0xff] %v9727_v25  ;;  %11817 = vst [vmem:[#allocation123_spill] sm:$0xff] %v9729_v48  ;;  %v9732_v40 = vadd.f32 %v3586_v5, %v11818_v60  ;;  %v3588_v53 = vpop.f32.mrb[135].mxu1  ;;  %v4262_v33 = vpop.f32.mrb[135].mxu0 }
 0x4b4   : > { %v11826_v53 = vld [vmem:[#allocation251_spill] sm:$0xff] }
 0x4b5   : > { %11819 = vst [vmem:[#allocation128_spill] sm:$0xff] %v9732_v40  ;;  %4505 = vmatmul.mubr.bf16.gmra.mrb[240].mxu1 %v11820_v56  ;;  %4794 = vmatmul.mubr.bf16.gmra.mrb[240].mxu0 %v11641_v2  ;;  %v11828_v40 = vld [vmem:[#allocation17_spill] sm:$0xff] }
 0x4b6   : > { %4512 = vmatprep.mubr.bf16.mxu1 %v11821_v62  ;;  %4801 = vmatprep.mubr.bf16.mxu0 %v11643_v14  ;;  %v11829_v62 = vld [vmem:[#allocation142_spill] sm:$0xff]  ;;  %v542_v14 = vrot.slane %v9499_v27, 1 }
 0x4b8   : > { %v3591_v41 = vpop.f32.mrb[136].mxu1  ;;  %v9738_v11 = vpop.f32.mrb[136].mxu0 }
 0x4b9   : > { %11822 = vst [vmem:[#allocation30_spill] sm:$0xff] %v9738_v11  ;;  %v9741_v16 = vadd.f32 %v3591_v41, %v11823_v45  ;;  %v3593_v9 = vpop.f32.mrb[137].mxu1  ;;  %v4267_v25 = vpop.f32.mrb[137].mxu0  ;;  %v833_v11 = vrot.slane %v9499_v27, 2  ;;  %v544_v41 = vrot.slane %v9517_v18, 1  ;;  %v11830_v45 = vld [vmem:[#allocation143_spill] sm:$0xff] }
 0x4ba   : > { %v3594_v5 = vpop.f32.mrb[138].mxu1  ;;  %v9743_v60 = vpop.f32.mrb[138].mxu0  ;;  %v835_v25 = vrot.slane %v9517_v18, 2  ;;  %v11831_v9 = vld [vmem:[#allocation144_spill] sm:$0xff]  ;;  %v11837_v18 = vld [vmem:[#allocation217_spill] sm:$0xff] }
 0x4bb   : > { %11824 = vst [vmem:[#allocation32_spill] sm:$0xff] %v9741_v16  ;;  %11825 = vst [vmem:[#allocation130_spill] sm:$0xff] %v9743_v60  ;;  %v9746_v33 = vadd.f32 %v3594_v5, %v11826_v53  ;;  %v3596_v56 = vpop.f32.mrb[139].mxu1  ;;  %v4270_v2 = vpop.f32.mrb[139].mxu0  ;;  %v9765_v60 = vsel %vm549_vm0, %v542_v14, %v544_v41  ;;  %v11838_v48 = vrot.slane %v11837_v18, 1 }
 0x4bc   : > { %v11833_v56 = vld [vmem:[#allocation252_spill] sm:$0xff] }
 0x4bd   : > { %11827 = vst [vmem:[#allocation136_spill] sm:$0xff] %v9746_v33  ;;  %4513 = vmatmul.mubr.bf16.gmra.mrb[244].mxu1 %v11828_v40  ;;  %4802 = vmatmul.mubr.bf16.gmra.mrb[244].mxu0 %v11829_v62 }
 0x4be   : > { %4520 = vmatprep.mubr.bf16.mxu1 %v11830_v45  ;;  %4809 = vmatprep.mubr.bf16.mxu0 %v11831_v9  ;;  %v9771_v45 = vsel %vm549_vm0, %v11838_v48, %v542_v14  ;;  %v9775_v9 = vsel %vm838_vm1, %v833_v11, %v835_v25  ;;  %v11842_v14 = vld [vmem:[#allocation145_spill] sm:$0xff] }
 0x4c0   : > { %v3599_v5 = vpop.f32.mrb[140].mxu1  ;;  %v9756_v53 = vpop.f32.mrb[140].mxu0 }
 0x4c1   : > { %11832 = vst [vmem:[#allocation34_spill] sm:$0xff] %v9756_v53  ;;  %v9759_v2 = vadd.f32 %v3599_v5, %v11833_v56  ;;  %v3601_v40 = vpop.f32.mrb[141].mxu1  ;;  %v4275_v62 = vpop.f32.mrb[141].mxu0  ;;  %v11839_v5 = vrot.slane %v11837_v18, 2  ;;  %v546_v18 = vrot.slane %v9520_v43, 1 }
 0x4c2   : > { %v3602_v33 = vpop.f32.mrb[142].mxu1  ;;  %v9761_v16 = vpop.f32.mrb[142].mxu0  ;;  %v11840_v40 = vld [vmem:[#allocation69_spill] sm:$0xff] }
 0x4c3   : > { %11834 = vst [vmem:[#allocation37_spill] sm:$0xff] %v9759_v2  ;;  %11835 = vst [vmem:[#allocation138_spill] sm:$0xff] %v9761_v16  ;;  %v9781_v56 = vsel %vm838_vm1, %v11839_v5, %v833_v11  ;;  %v9784_v62 = vadd.f32 %v3602_v33, %v11840_v40  ;;  %v3604_v2 = vpop.f32.mrb[143].mxu1  ;;  %v4278_v16 = vpop.f32.mrb[143].mxu0  ;;  %v837_v11 = vrot.slane %v9520_v43, 2  ;;  %v11844_v5 = vld [vmem:[#allocation147_spill] sm:$0xff] }
 0x4c4   : > { %v11845_v33 = vld [vmem:[#allocation148_spill] sm:$0xff]  ;;  %v11850_v43 = vld [vmem:[#allocation195_spill] sm:$0xff] }
 0x4c5   : > { %11841 = vst [vmem:[#allocation141_spill] sm:$0xff] %v9784_v62  ;;  %4521 = vmatmul.mubr.bf16.gmra.mrb[248].mxu1 %v11842_v14  ;;  %4810 = vmatmul.mubr.bf16.gmra.mrb[248].mxu0 %v11843_v42  ;;  %v11847_v40 = vld [vmem:[#allocation72_spill] sm:$0xff]  ;;  %v9805_v42 = vsel %vm549_vm0, %v544_v41, %v546_v18  ;;  %v11851_v26 = vrot.slane %v11850_v43, 1 }
 0x4c6   : > { %4528 = vmatprep.mubr.bf16.mxu1 %v11844_v5  ;;  %4817 = vmatprep.mubr.bf16.mxu0 %v11845_v33  ;;  %v9815_v33 = vsel %vm838_vm1, %v835_v25, %v837_v11  ;;  %v11857_v25 = vld [vmem:[#allocation150_spill] sm:$0xff] }
 0x4c7   : > { %v9811_v5 = vsel %vm549_vm0, %v546_v18, %v11851_v26  ;;  %v11856_v18 = vld [vmem:[#allocation149_spill] sm:$0xff] }
 0x4c8   : > { %v3607_v2 = vpop.f32.mrb[144].mxu1  ;;  %v9796_v16 = vpop.f32.mrb[144].mxu0  ;;  %v11864_v26 = vld [vmem:[#allocation197_spill] sm:$0xff] }
 0x4c9   : > { %11846 = vst [vmem:[#allocation40_spill] sm:$0xff] %v9796_v16  ;;  %v9799_v53 = vadd.f32 %v3607_v2, %v11847_v40  ;;  %v3609_v62 = vpop.f32.mrb[145].mxu1  ;;  %v4283_v48 = vpop.f32.mrb[145].mxu0  ;;  %v11852_v2 = vld [vmem:[#allocation21_spill] sm:$0xff]  ;;  %v11854_v40 = vld [vmem:[#allocation187_spill] sm:$0xff]  ;;  %v11859_v16 = vld [vmem:[#allocation152_spill] sm:$0xff] }
 0x4ca   : > { %v3610_v35 = vpop.f32.mrb[146].mxu1  ;;  %v9801_v14 = vpop.f32.mrb[146].mxu0  ;;  %v11853_v62 = vrot.slane %v11852_v2, 2  ;;  %v11858_v2 = vld [vmem:[#allocation151_spill] sm:$0xff] }
 0x4cb   : > { %11848 = vst [vmem:[#allocation42_spill] sm:$0xff] %v9799_v53  ;;  %11849 = vst [vmem:[#allocation35_spill] sm:$0xff] %v9801_v14  ;;  %v9824_v53 = vadd.f32 %v3610_v35, %v11854_v40  ;;  %v3612_v41 = vpop.f32.mrb[147].mxu1  ;;  %v4286_v14 = vpop.f32.mrb[147].mxu0  ;;  %v11861_v35 = vld [vmem:[#allocation189_spill] sm:$0xff] }
 0x4cc   : > { %v9821_v48 = vsel %vm838_vm1, %v837_v11, %v11853_v62 }
 0x4cd   : > { %11855 = vst [vmem:[#allocation50_spill] sm:$0xff] %v9824_v53  ;;  %4529 = vmatmul.mubr.bf16.gmra.mrb[252].mxu1 %v11856_v18  ;;  %4818 = vmatmul.mubr.bf16.gmra.mrb[252].mxu0 %v11857_v25 }
 0x4ce   : > { %4536 = vmatprep.mubr.bf16.mxu1 %v11858_v2  ;;  %4825 = vmatprep.mubr.bf16.mxu0 %v11859_v16  ;;  %v11867_v2 = vld [vmem:[#allocation154_spill] sm:$0xff]  ;;  %v11868_v16 = vld [vmem:[#allocation155_spill] sm:$0xff] }
 0x4d0   : > { %v3615_v11 = vpop.f32.mrb[148].mxu1  ;;  %v9834_v62 = vpop.f32.mrb[148].mxu0 }
 0x4d1   : > { %11860 = vst [vmem:[#allocation53_spill] sm:$0xff] %v9834_v62  ;;  %v9837_v40 = vadd.f32 %v3615_v11, %v11861_v35  ;;  %v3617_v14 = vpop.f32.mrb[149].mxu1  ;;  %v4291_v41 = vpop.f32.mrb[149].mxu0  ;;  %v11869_v62 = vld [vmem:[#allocation156_spill] sm:$0xff] }
 0x4d2   : > { %v3618_v43 = vpop.f32.mrb[150].mxu1  ;;  %v9839_v53 = vpop.f32.mrb[150].mxu0  ;;  %v11871_v14 = vld [vmem:[#allocation203_spill] sm:$0xff] }
 0x4d3   : > { %11862 = vst [vmem:[#allocation38_spill] sm:$0xff] %v9837_v40  ;;  %11863 = vst [vmem:[#allocation41_spill] sm:$0xff] %v9839_v53  ;;  %v9842_v1 = vadd.f32 %v3618_v43, %v11864_v26  ;;  %v3620_v18 = vpop.f32.mrb[151].mxu1  ;;  %v4294_v25 = vpop.f32.mrb[151].mxu0 }
 0x4d4   : > { %v11874_v18 = vld [vmem:[#allocation124_spill] sm:$0xff] }
 0x4d5   : > { %11865 = vst [vmem:[#allocation56_spill] sm:$0xff] %v9842_v1  ;;  %4537 = vmatmul.mubr.bf16.gmra.mrb[0].mxu1 %v11866_v58  ;;  %4826 = vmatmul.mubr.bf16.gmra.mrb[0].mxu0 %v11867_v2  ;;  %v11876_v1 = vld [vmem:[#allocation157_spill] sm:$0xff] }
 0x4d6   : > { %4544 = vmatprep.mubr.bf16.mxu1 %v11868_v16  ;;  %4833 = vmatprep.mubr.bf16.mxu0 %v11869_v62  ;;  %v11877_v16 = vld [vmem:[#allocation158_spill] sm:$0xff]  ;;  %v11878_v62 = vld [vmem:[#allocation159_spill] sm:$0xff] }
 0x4d8   : > { %v3623_v11 = vpop.f32.mrb[152].mxu1  ;;  %v9848_v35 = vpop.f32.mrb[152].mxu0 }
 0x4d9   : > { %11870 = vst [vmem:[#allocation61_spill] sm:$0xff] %v9848_v35  ;;  %v9851_v41 = vadd.f32 %v3623_v11, %v11871_v14  ;;  %v3625_v40 = vpop.f32.mrb[153].mxu1  ;;  %v4299_v53 = vpop.f32.mrb[153].mxu0 }
 0x4da   : > { %v3626_v43 = vpop.f32.mrb[154].mxu1  ;;  %v9853_v26 = vpop.f32.mrb[154].mxu0  ;;  %v11880_v53 = vld [vmem:[#allocation12_spill] sm:$0xff] }
 0x4db   : > { %11872 = vst [vmem:[#allocation43_spill] sm:$0xff] %v9851_v41  ;;  %11873 = vst [vmem:[#allocation51_spill] sm:$0xff] %v9853_v26  ;;  %v9856_v25 = vadd.f32 %v3626_v43, %v11874_v18  ;;  %v3628_v58 = vpop.f32.mrb[155].mxu1  ;;  %v4302_v2 = vpop.f32.mrb[155].mxu0 }
 0x4dc   : > { %v11883_v58 = vld [vmem:[#allocation241_spill] sm:$0xff] }
 0x4dd   : > { %11875 = vst [vmem:[#allocation64_spill] sm:$0xff] %v9856_v25  ;;  %4545 = vmatmul.mubr.bf16.gmra.mrb[4].mxu1 %v11876_v1  ;;  %4834 = vmatmul.mubr.bf16.gmra.mrb[4].mxu0 %v11877_v16  ;;  %v11885_v25 = vld [vmem:[#allocation161_spill] sm:$0xff] }
 0x4de   : > { %4552 = vmatprep.mubr.bf16.mxu1 %v11878_v62  ;;  %4841 = vmatprep.mubr.bf16.mxu0 %v11681_v8  ;;  %v11886_v8 = vld [vmem:[#allocation163_spill] sm:$0xff]  ;;  %v11887_v62 = vld [vmem:[#allocation164_spill] sm:$0xff] }
 0x4e0   : > { %v3631_v11 = vpop.f32.mrb[156].mxu1  ;;  %v9862_v14 = vpop.f32.mrb[156].mxu0 }
 0x4e1   : > { %11879 = vst [vmem:[#allocation68_spill] sm:$0xff] %v9862_v14  ;;  %v9865_v40 = vadd.f32 %v3631_v11, %v11880_v53  ;;  %v3633_v41 = vpop.f32.mrb[157].mxu1  ;;  %v4307_v26 = vpop.f32.mrb[157].mxu0 }
 0x4e2   : > { %v3634_v43 = vpop.f32.mrb[158].mxu1  ;;  %v9867_v18 = vpop.f32.mrb[158].mxu0  ;;  %v11889_v41 = vld [vmem:[#allocation234_spill] sm:$0xff] }
 0x4e3   : > { %11881 = vst [vmem:[#allocation54_spill] sm:$0xff] %v9865_v40  ;;  %11882 = vst [vmem:[#allocation60_spill] sm:$0xff] %v9867_v18  ;;  %v9870_v2 = vadd.f32 %v3634_v43, %v11883_v58  ;;  %v3636_v1 = vpop.f32.mrb[159].mxu1  ;;  %v4310_v16 = vpop.f32.mrb[159].mxu0 }
 0x4e4   : > { %v11892_v1 = vld [vmem:[#allocation239_spill] sm:$0xff] }
 0x4e5   : > { %11884 = vst [vmem:[#allocation71_spill] sm:$0xff] %v9870_v2  ;;  %4553 = vmatmul.mubr.bf16.gmra.mrb[8].mxu1 %v11885_v25  ;;  %4842 = vmatmul.mubr.bf16.gmra.mrb[8].mxu0 %v11686_v20  ;;  %v11894_v2 = vld [vmem:[#allocation165_spill] sm:$0xff] }
 0x4e6   : > { %4560 = vmatprep.mubr.bf16.mxu1 %v11886_v8  ;;  %4849 = vmatprep.mubr.bf16.mxu0 %v11887_v62  ;;  %v11895_v8 = vld [vmem:[#allocation166_spill] sm:$0xff]  ;;  %v11896_v62 = vld [vmem:[#allocation167_spill] sm:$0xff] }
 0x4e8   : > { %v3639_v11 = vpop.f32.mrb[160].mxu1  ;;  %v9876_v53 = vpop.f32.mrb[160].mxu0 }
 0x4e9   : > { %11888 = vst [vmem:[#allocation188_spill] sm:$0xff] %v9876_v53  ;;  %v9879_v26 = vadd.f32 %v3639_v11, %v11889_v41  ;;  %v3641_v40 = vpop.f32.mrb[161].mxu1  ;;  %v4315_v18 = vpop.f32.mrb[161].mxu0  ;;  %v11897_v53 = vld [vmem:[#allocation168_spill] sm:$0xff] }
 0x4ea   : > { %v3642_v43 = vpop.f32.mrb[162].mxu1  ;;  %v9881_v58 = vpop.f32.mrb[162].mxu0  ;;  %v11899_v40 = vld [vmem:[#allocation240_spill] sm:$0xff] }
 0x4eb   : > { %11890 = vst [vmem:[#allocation62_spill] sm:$0xff] %v9879_v26  ;;  %11891 = vst [vmem:[#allocation160_spill] sm:$0xff] %v9881_v58  ;;  %v9884_v16 = vadd.f32 %v3642_v43, %v11892_v1  ;;  %v3644_v25 = vpop.f32.mrb[163].mxu1  ;;  %v4318_v20 = vpop.f32.mrb[163].mxu0 }
 0x4ec   : > { %v11902_v25 = vld [vmem:[#allocation36_spill] sm:$0xff] }
 0x4ed   : > { %11893 = vst [vmem:[#allocation65_spill] sm:$0xff] %v9884_v16  ;;  %4561 = vmatmul.mubr.bf16.gmra.mrb[12].mxu1 %v11894_v2  ;;  %4850 = vmatmul.mubr.bf16.gmra.mrb[12].mxu0 %v11895_v8  ;;  %v11904_v16 = vld [vmem:[#allocation169_spill] sm:$0xff] }
 0x4ee   : > { %4568 = vmatprep.mubr.bf16.mxu1 %v11896_v62  ;;  %4857 = vmatprep.mubr.bf16.mxu0 %v11897_v53  ;;  %v11905_v62 = vld [vmem:[#allocation170_spill] sm:$0xff]  ;;  %v11906_v53 = vld [vmem:[#allocation171_spill] sm:$0xff] }
 0x4f0   : > { %v3647_v11 = vpop.f32.mrb[164].mxu1  ;;  %v9890_v41 = vpop.f32.mrb[164].mxu0 }
 0x4f1   : > { %11898 = vst [vmem:[#allocation190_spill] sm:$0xff] %v9890_v41  ;;  %v9893_v18 = vadd.f32 %v3647_v11, %v11899_v40  ;;  %v3649_v26 = vpop.f32.mrb[165].mxu1  ;;  %v4323_v58 = vpop.f32.mrb[165].mxu0  ;;  %v11907_v41 = vld [vmem:[#allocation172_spill] sm:$0xff] }
 0x4f2   : > { %v3650_v43 = vpop.f32.mrb[166].mxu1  ;;  %v9895_v1 = vpop.f32.mrb[166].mxu0  ;;  %v11909_v26 = vld [vmem:[#allocation47_spill] sm:$0xff] }
 0x4f3   : > { %11900 = vst [vmem:[#allocation196_spill] sm:$0xff] %v9893_v18  ;;  %11901 = vst [vmem:[#allocation162_spill] sm:$0xff] %v9895_v1  ;;  %v9898_v20 = vadd.f32 %v3650_v43, %v11902_v25  ;;  %v3652_v2 = vpop.f32.mrb[167].mxu1  ;;  %v4326_v8 = vpop.f32.mrb[167].mxu0 }
 0x4f4   : > { %v11912_v2 = vld [vmem:[#allocation66_spill] sm:$0xff] }
 0x4f5   : > { %11903 = vst [vmem:[#allocation198_spill] sm:$0xff] %v9898_v20  ;;  %4569 = vmatmul.mubr.bf16.gmra.mrb[16].mxu1 %v11904_v16  ;;  %4858 = vmatmul.mubr.bf16.gmra.mrb[16].mxu0 %v11905_v62  ;;  %v11914_v20 = vld [vmem:[#allocation173_spill] sm:$0xff] }
 0x4f6   : > { %4576 = vmatprep.mubr.bf16.mxu1 %v11906_v53  ;;  %4865 = vmatprep.mubr.bf16.mxu0 %v11907_v41  ;;  %v11915_v53 = vld [vmem:[#allocation174_spill] sm:$0xff]  ;;  %v11916_v41 = vld [vmem:[#allocation175_spill] sm:$0xff] }
 0x4f8   : > { %v3655_v11 = vpop.f32.mrb[168].mxu1  ;;  %v9904_v40 = vpop.f32.mrb[168].mxu0 }
 0x4f9   : > { %11908 = vst [vmem:[#allocation204_spill] sm:$0xff] %v9904_v40  ;;  %v9907_v58 = vadd.f32 %v3655_v11, %v11909_v26  ;;  %v3657_v18 = vpop.f32.mrb[169].mxu1  ;;  %v4331_v1 = vpop.f32.mrb[169].mxu0  ;;  %v9990_v40 = vld [vmem:[#allocation7] ss:$0 sm:$0xff] }
 0x4fa   : > { %v3658_v43 = vpop.f32.mrb[170].mxu1  ;;  %v9909_v25 = vpop.f32.mrb[170].mxu0  ;;  %v11918_v18 = vld [vmem:[#allocation77_spill] sm:$0xff] }
 0x4fb   : > { %11910 = vst [vmem:[#allocation79_spill] sm:$0xff] %v9907_v58  ;;  %11911 = vst [vmem:[#allocation82_spill] sm:$0xff] %v9909_v25  ;;  %v9912_v8 = vadd.f32 %v3658_v43, %v11912_v2  ;;  %v3660_v16 = vpop.f32.mrb[171].mxu1  ;;  %v4334_v62 = vpop.f32.mrb[171].mxu0 }
 0x4fc   : > { %v11921_v16 = vld [vmem:[#allocation86_spill] sm:$0xff] }
 0x4fd   : > { %11913 = vst [vmem:[#allocation206_spill] sm:$0xff] %v9912_v8  ;;  %4577 = vmatmul.mubr.bf16.gmra.mrb[20].mxu1 %v11914_v20  ;;  %4866 = vmatmul.mubr.bf16.gmra.mrb[20].mxu0 %v11915_v53  ;;  %v11923_v8 = vld [vmem:[#allocation177_spill] sm:$0xff] }
 0x4fe   : > { %4584 = vmatprep.mubr.bf16.mxu1 %v11916_v41  ;;  %4873 = vmatprep.mubr.bf16.mxu0 %v11711_v63  ;;  %v11924_v41 = vld [vmem:[#allocation178_spill] sm:$0xff]  ;;  %v11925_v63 = vld [vmem:[#allocation179_spill] sm:$0xff] }
 0x500   : > { %v3663_v11 = vpop.f32.mrb[172].mxu1  ;;  %v9918_v26 = vpop.f32.mrb[172].mxu0 }
 0x501   : > { %11917 = vst [vmem:[#allocation211_spill] sm:$0xff] %v9918_v26  ;;  %v9921_v1 = vadd.f32 %v3663_v11, %v11918_v18  ;;  %v3665_v58 = vpop.f32.mrb[173].mxu1  ;;  %v4339_v25 = vpop.f32.mrb[173].mxu0  ;;  %v11926_v26 = vld [vmem:[#allocation180_spill] sm:$0xff] }
 0x502   : > { %v3666_v43 = vpop.f32.mrb[174].mxu1  ;;  %v9923_v2 = vpop.f32.mrb[174].mxu0  ;;  %v11928_v58 = vld [vmem:[#allocation88_spill] sm:$0xff] }
 0x503   : > { %11919 = vst [vmem:[#allocation73_spill] sm:$0xff] %v9921_v1  ;;  %11920 = vst [vmem:[#allocation108_spill] sm:$0xff] %v9923_v2  ;;  %v9926_v62 = vadd.f32 %v3666_v43, %v11921_v16  ;;  %v3668_v20 = vpop.f32.mrb[175].mxu1  ;;  %v4342_v53 = vpop.f32.mrb[175].mxu0 }
 0x504   : > { %v11931_v20 = vld [vmem:[#allocation90_spill] sm:$0xff] }
 0x505   : > { %11922 = vst [vmem:[#allocation212_spill] sm:$0xff] %v9926_v62  ;;  %4585 = vmatmul.mubr.bf16.gmra.mrb[24].mxu1 %v11923_v8  ;;  %4874 = vmatmul.mubr.bf16.gmra.mrb[24].mxu0 %v11924_v41  ;;  %v11933_v62 = vld [vmem:[#allocation181_spill] sm:$0xff] }
 0x506   : > { %4592 = vmatprep.mubr.bf16.mxu1 %v11925_v63  ;;  %4881 = vmatprep.mubr.bf16.mxu0 %v11926_v26  ;;  %v11934_v63 = vld [vmem:[#allocation182_spill] sm:$0xff]  ;;  %v11935_v26 = vld [vmem:[#allocation183_spill] sm:$0xff] }
 0x508   : > { %v3671_v11 = vpop.f32.mrb[176].mxu1  ;;  %v9932_v18 = vpop.f32.mrb[176].mxu0 }
 0x509   : > { %11927 = vst [vmem:[#allocation219_spill] sm:$0xff] %v9932_v18  ;;  %v9935_v25 = vadd.f32 %v3671_v11, %v11928_v58  ;;  %v3673_v1 = vpop.f32.mrb[177].mxu1  ;;  %v4347_v2 = vpop.f32.mrb[177].mxu0  ;;  %v11936_v18 = vld [vmem:[#allocation184_spill] sm:$0xff] }
 0x50a   : > { %v3674_v43 = vpop.f32.mrb[178].mxu1  ;;  %v9937_v16 = vpop.f32.mrb[178].mxu0  ;;  %v11938_v1 = vld [vmem:[#allocation92_spill] sm:$0xff] }
 0x50b   : > { %11929 = vst [vmem:[#allocation112_spill] sm:$0xff] %v9935_v25  ;;  %11930 = vst [vmem:[#allocation176_spill] sm:$0xff] %v9937_v16  ;;  %v9940_v53 = vadd.f32 %v3674_v43, %v11931_v20  ;;  %v3676_v8 = vpop.f32.mrb[179].mxu1  ;;  %v4350_v41 = vpop.f32.mrb[179].mxu0 }
 0x50c   : > { %v11941_v8 = vld [vmem:[#allocation94_spill] sm:$0xff] }
 0x50d   : > { %11932 = vst [vmem:[#allocation114_spill] sm:$0xff] %v9940_v53  ;;  %4593 = vmatmul.mubr.bf16.gmra.mrb[28].mxu1 %v11933_v62  ;;  %4882 = vmatmul.mubr.bf16.gmra.mrb[28].mxu0 %v11934_v63  ;;  %v11943_v53 = vld [vmem:[#allocation185_spill] sm:$0xff] }
 0x50e   : > { %4600 = vmatprep.mubr.bf16.mxu1 %v11935_v26  ;;  %4889 = vmatprep.mubr.bf16.mxu0 %v11936_v18  ;;  %v11944_v26 = vld [vmem:[#allocation186_spill] sm:$0xff]  ;;  %v11945_v18 = vld [vmem:[#allocation191_spill] sm:$0xff] }
 0x510   : > { %v3679_v11 = vpop.f32.mrb[180].mxu1  ;;  %v9946_v58 = vpop.f32.mrb[180].mxu0 }
 0x511   : > { %11937 = vst [vmem:[#allocation221_spill] sm:$0xff] %v9946_v58  ;;  %v9949_v2 = vadd.f32 %v3679_v11, %v11938_v1  ;;  %v3681_v25 = vpop.f32.mrb[181].mxu1  ;;  %v4355_v16 = vpop.f32.mrb[181].mxu0  ;;  %v11946_v58 = vld [vmem:[#allocation192_spill] sm:$0xff] }
 0x512   : > { %v3682_v43 = vpop.f32.mrb[182].mxu1  ;;  %v9951_v20 = vpop.f32.mrb[182].mxu0  ;;  %v11948_v25 = vld [vmem:[#allocation96_spill] sm:$0xff] }
 0x513   : > { %11939 = vst [vmem:[#allocation227_spill] sm:$0xff] %v9949_v2  ;;  %11940 = vst [vmem:[#allocation119_spill] sm:$0xff] %v9951_v20  ;;  %v9954_v41 = vadd.f32 %v3682_v43, %v11941_v8  ;;  %v3684_v62 = vpop.f32.mrb[183].mxu1  ;;  %v4358_v63 = vpop.f32.mrb[183].mxu0 }
 0x514   : > { %v11951_v62 = vld [vmem:[#allocation98_spill] sm:$0xff] }
 0x515   : > { %11942 = vst [vmem:[#allocation80_spill] sm:$0xff] %v9954_v41  ;;  %4601 = vmatmul.mubr.bf16.gmra.mrb[32].mxu1 %v11943_v53  ;;  %4890 = vmatmul.mubr.bf16.gmra.mrb[32].mxu0 %v11944_v26  ;;  %v11953_v41 = vld [vmem:[#allocation193_spill] sm:$0xff] }
 0x516   : > { %4608 = vmatprep.mubr.bf16.mxu1 %v11945_v18  ;;  %4897 = vmatprep.mubr.bf16.mxu0 %v11946_v58  ;;  %v11954_v18 = vld [vmem:[#allocation194_spill] sm:$0xff]  ;;  %v11955_v58 = vld [vmem:[#allocation199_spill] sm:$0xff] }
 0x518   : > { %v3687_v11 = vpop.f32.mrb[184].mxu1  ;;  %v9960_v1 = vpop.f32.mrb[184].mxu0 }
 0x519   : > { %11947 = vst [vmem:[#allocation232_spill] sm:$0xff] %v9960_v1  ;;  %v9963_v16 = vadd.f32 %v3687_v11, %v11948_v25  ;;  %v3689_v2 = vpop.f32.mrb[185].mxu1  ;;  %v4363_v20 = vpop.f32.mrb[185].mxu0  ;;  %v11956_v1 = vld [vmem:[#allocation200_spill] sm:$0xff] }
 0x51a   : > { %v3690_v43 = vpop.f32.mrb[186].mxu1  ;;  %v9965_v8 = vpop.f32.mrb[186].mxu0  ;;  %v11958_v2 = vld [vmem:[#allocation205_spill] sm:$0xff] }
 0x51b   : > { %11949 = vst [vmem:[#allocation236_spill] sm:$0xff] %v9963_v16  ;;  %11950 = vst [vmem:[#allocation126_spill] sm:$0xff] %v9965_v8  ;;  %v9968_v63 = vadd.f32 %v3690_v43, %v11951_v62  ;;  %v3692_v53 = vpop.f32.mrb[187].mxu1  ;;  %v4366_v26 = vpop.f32.mrb[187].mxu0 }
 0x51c   : > { %v11961_v53 = vld [vmem:[#allocation218_spill] sm:$0xff] }
 0x51d   : > { %11952 = vst [vmem:[#allocation238_spill] sm:$0xff] %v9968_v63  ;;  %4609 = vmatmul.mubr.bf16.gmra.mrb[36].mxu1 %v11953_v41  ;;  %4898 = vmatmul.mubr.bf16.gmra.mrb[36].mxu0 %v11954_v18  ;;  %v11963_v63 = vld [vmem:[#allocation201_spill] sm:$0xff] }
 0x51e   : > { %4616 = vmatprep.mubr.bf16.mxu1 %v11955_v58  ;;  %4905 = vmatprep.mubr.bf16.mxu0 %v11956_v1  ;;  %v11964_v1 = vld [vmem:[#allocation207_spill] sm:$0xff]  ;;  %v11965_v58 = vld [vmem:[#allocation208_spill] sm:$0xff] }
 0x520   : > { %v3695_v11 = vpop.f32.mrb[188].mxu1  ;;  %v9974_v25 = vpop.f32.mrb[188].mxu0 }
 0x521   : > { %11957 = vst [vmem:[#allocation139_spill] sm:$0xff] %v9974_v25  ;;  %v9977_v20 = vadd.f32 %v3695_v11, %v11958_v2  ;;  %v3697_v16 = vpop.f32.mrb[189].mxu1  ;;  %v4371_v8 = vpop.f32.mrb[189].mxu0 }
 0x522   : > { %v3698_v43 = vpop.f32.mrb[190].mxu1  ;;  %v9979_v62 = vpop.f32.mrb[190].mxu0  ;;  %v11966_v8 = vld [vmem:[#allocation46_spill] sm:$0xff] }
 0x523   : > { %11959 = vst [vmem:[#allocation132_spill] sm:$0xff] %v9977_v20  ;;  %11960 = vst [vmem:[#allocation134_spill] sm:$0xff] %v9979_v62  ;;  %v9982_v26 = vadd.f32 %v3698_v43, %v11961_v53  ;;  %v3700_v41 = vpop.f32.mrb[191].mxu1  ;;  %v4374_v18 = vpop.f32.mrb[191].mxu0 }
 0x524   : > { %v11967_v41 = vld [vmem:[#allocation100_spill] sm:$0xff] }
 0x525   : > { %11962 = vst [vmem:[#allocation15_spill] sm:$0xff] %v9982_v26  ;;  %4617 = vmatmul.mubr.bf16.gmra.mrb[40].mxu1 %v11963_v63  ;;  %4906 = vmatmul.mubr.bf16.gmra.mrb[40].mxu0 %v11755_v49  ;;  %v11968_v49 = vld [vmem:[#allocation74_spill] sm:$0xff] }
 0x526   : > { %4624 = vmatprep.mubr.bf16.mxu1 %v11964_v1  ;;  %4913 = vmatprep.mubr.bf16.mxu0 %v11965_v58  ;;  %v11969_v58 = vld [vmem:[#allocation209_spill] sm:$0xff] }
 0x528   : > { %v4410_v11 = vpop.f32.mrb[192].mxu1  ;;  %v4699_v16 = vpop.f32.mrb[192].mxu0 }
 0x529   : > { %v4411_v2 = vadd.f32 %v4410_v11, %v11966_v8  ;;  %v4412_v20 = vpop.f32.mrb[193].mxu1  ;;  %v4701_v62 = vpop.f32.mrb[193].mxu0  ;;  %v11970_v11 = vld [vmem:[#allocation213_spill] sm:$0xff] }
 0x52a   : > { %v4413_v25 = vpop.f32.mrb[194].mxu1  ;;  %v4702_v43 = vpop.f32.mrb[194].mxu0  ;;  %v11971_v20 = vld [vmem:[#allocation214_spill] sm:$0xff] }
 0x52b   : > { %v4700_v53 = vadd.f32 %v4699_v16, %v4411_v2  ;;  %v4414_v18 = vadd.f32 %v4413_v25, %v11967_v41  ;;  %v4415_v26 = vpop.f32.mrb[195].mxu1  ;;  %v4704_v63 = vpop.f32.mrb[195].mxu0  ;;  %v11972_v16 = vld [vmem:[#allocation81_spill] sm:$0xff] }
 0x52c   : > { %v11973_v63 = vld [vmem:[#allocation220_spill] sm:$0xff] }
 0x52d   : > { %v4954_v1 = vadd.f32 %v4700_v53, %v11968_v49  ;;  %v4703_v14 = vadd.f32 %v4702_v43, %v4414_v18  ;;  %4625 = vmatmul.mubr.bf16.gmra.mrb[44].mxu1 %v11969_v58  ;;  %4914 = vmatmul.mubr.bf16.gmra.mrb[44].mxu0 %v11760_v17 }
 0x52e   : > { %4632 = vmatprep.mubr.bf16.mxu1 %v11970_v11  ;;  %4921 = vmatprep.mubr.bf16.mxu0 %v11971_v20  ;;  %v11974_v11 = vld [vmem:[#allocation44_spill] sm:$0xff] }
 0x52f   : > { %v5025_v62 = vadd.f32 %v9990_v40, %v4954_v1  ;;  %v4955_v25 = vadd.f32 %v4703_v14, %v11972_v16 }
 0x530   : > { %v4418_v26 = vpop.f32.mrb[196].mxu1  ;;  %v4707_v8 = vpop.f32.mrb[196].mxu0 }
 0x531   : > { %v5089_v2 = vmax.f32 %v5025_v62, 0.0  ;;  %v5026_v41 = vadd.f32 %v9990_v40, %v4955_v25  ;;  %v4419_v53 = vadd.f32 %v4418_v26, %v11973_v63  ;;  %v4420_v43 = vpop.f32.mrb[197].mxu1  ;;  %v4709_v18 = vpop.f32.mrb[197].mxu0  ;;  %v11975_v62 = vld [vmem:[#allocation16_spill] sm:$0xff]  ;;  %v11976_v26 = vld [vmem:[#allocation215_spill] sm:$0xff] }
 0x532   : > { %v4421_v49 = vpop.f32.mrb[198].mxu1  ;;  %v4710_v58 = vpop.f32.mrb[198].mxu0  ;;  %v11977_v63 = vld [vmem:[#allocation216_spill] sm:$0xff]  ;;  %v11978_v43 = vld [vmem:[#allocation222_spill] sm:$0xff]  ;;  %v11979_v18 = vld [vmem:[#allocation223_spill] sm:$0xff] }
 0x533   : > { %5153 = vst [vmem:[%s10002_s22] sm:$0xff] %v5089_v2  ;;  %v5090_v17 = vmax.f32 %v5026_v41, 0.0  ;;  %v4708_v1 = vadd.f32 %v4707_v8, %v4419_v53  ;;  %v4422_v14 = vadd.f32 %v4421_v49, %v11974_v11  ;;  %v4423_v20 = vpop.f32.mrb[199].mxu1  ;;  %v4712_v16 = vpop.f32.mrb[199].mxu0  ;;  %v11980_v8 = vld [vmem:[#allocation84_spill] sm:$0xff] }
 0x535   : > { %5154 = vst [vmem:[%s10002_s22 + $0x8] sm:$0xff] %v5090_v17  ;;  %v4956_v25 = vadd.f32 %v4708_v1, %v11975_v62  ;;  %v4711_v35 = vadd.f32 %v4710_v58, %v4422_v14  ;;  %4633 = vmatmul.mubr.bf16.gmra.mrb[48].mxu1 %v11976_v26  ;;  %4922 = vmatmul.mubr.bf16.gmra.mrb[48].mxu0 %v11977_v63  ;;  %v11981_v58 = vld [vmem:[#allocation48_spill] sm:$0xff] }
 0x536   : > { %4640 = vmatprep.mubr.bf16.mxu1 %v11978_v43  ;;  %4929 = vmatprep.mubr.bf16.mxu0 %v11979_v18  ;;  %v11982_v43 = vld [vmem:[#allocation235_spill] sm:$0xff] }
 0x537   : > { %v5027_v2 = vadd.f32 %v9990_v40, %v4956_v25  ;;  %v4957_v41 = vadd.f32 %v4711_v35, %v11980_v8  ;;  %v11983_v35 = vld [vmem:[#allocation70_spill] sm:$0xff] }
 0x538   : > { %v4426_v53 = vpop.f32.mrb[200].mxu1  ;;  %v4715_v49 = vpop.f32.mrb[200].mxu0 }
 0x539   : > { %v5091_v17 = vmax.f32 %v5027_v2, 0.0  ;;  %v5028_v1 = vadd.f32 %v9990_v40, %v4957_v41  ;;  %v4427_v11 = vadd.f32 %v4426_v53, %v11981_v58  ;;  %v4428_v14 = vpop.f32.mrb[201].mxu1  ;;  %v4717_v20 = vpop.f32.mrb[201].mxu0  ;;  %v11984_v2 = vld [vmem:[#allocation224_spill] sm:$0xff]  ;;  %v11985_v41 = vld [vmem:[#allocation225_spill] sm:$0xff]  ;;  %v11986_v53 = vpack.c.bf16 %v9765_v60, %v9771_v45 }
 0x53a   : > { %v4429_v16 = vpop.f32.mrb[202].mxu1  ;;  %v4718_v62 = vpop.f32.mrb[202].mxu0  ;;  %v545_v58 = vrot.slane %v9538_v12, 1 }
 0x53b   : > { %5155 = vst [vmem:[%s10002_s22 + $0x10] sm:$0xff] %v5091_v17  ;;  %v5092_v26 = vmax.f32 %v5028_v1, 0.0  ;;  %v4716_v63 = vadd.f32 %v4715_v49, %v4427_v11  ;;  %v4430_v18 = vadd.f32 %v4429_v16, %v11982_v43  ;;  %v4431_v25 = vpop.f32.mrb[203].mxu1  ;;  %v4720_v30 = vpop.f32.mrb[203].mxu0  ;;  %v11987_v49 = vpack.c.bf16 %v9775_v9, %v9781_v56 }
 0x53c   : > { %v11988_v30 = vld [vmem:[#allocation237_spill] sm:$0xff] }
 0x53d   : > { %5156 = vst [vmem:[%s10002_s22 + $0x18] sm:$0xff] %v5092_v26  ;;  %v4958_v8 = vadd.f32 %v4716_v63, %v11983_v35  ;;  %v4719_v59 = vadd.f32 %v4718_v62, %v4430_v18  ;;  %4641 = vmatmul.mubr.bf16.gmra.mrb[52].mxu1 %v11984_v2  ;;  %4930 = vmatmul.mubr.bf16.gmra.mrb[52].mxu0 %v11985_v41  ;;  %v11989_v62 = vld [vmem:[#allocation57_spill] sm:$0xff]  ;;  %v836_v63 = vrot.slane %v9538_v12, 2  ;;  %v11991_v2 = vld [vmem:[#allocation226_spill] sm:$0xff]  ;;  %v11995_v12 = vld [vmem:[#allocation111_spill] sm:$0xff] }
 0x53e   : > { %4648 = vmatprep.mubr.bf16.mxu1 %v11986_v53  ;;  %4937 = vmatprep.mubr.bf16.mxu0 %v11987_v49  ;;  %v11992_v41 = vrot.slane %v11991_v2, 1  ;;  %v11993_v49 = vld [vmem:[#allocation233_spill] sm:$0xff] }
 0x53f   : > { %v5029_v17 = vadd.f32 %v9990_v40, %v4958_v8  ;;  %v4959_v1 = vadd.f32 %v4719_v59, %v11988_v30  ;;  %v11990_v59 = vld [vmem:[#allocation102_spill] sm:$0xff] }
 0x540   : > { %v4434_v11 = vpop.f32.mrb[204].mxu1  ;;  %v4723_v14 = vpop.f32.mrb[204].mxu0  ;;  %v550_v53 = vsel %vm549_vm0, %v11992_v41, %v545_v58 }
 0x541   : > { %v5093_v20 = vmax.f32 %v5029_v17, 0.0  ;;  %v5030_v16 = vadd.f32 %v9990_v40, %v4959_v1  ;;  %v4435_v60 = vadd.f32 %v4434_v11, %v11989_v62  ;;  %v4436_v45 = vpop.f32.mrb[205].mxu1  ;;  %v4725_v26 = vpop.f32.mrb[205].mxu0  ;;  %v11994_v17 = vrot.slane %v11993_v49, 1  ;;  %v11999_v62 = vld [vmem:[#allocation231_spill] sm:$0xff] }
 0x542   : > { %v4437_v9 = vpop.f32.mrb[206].mxu1  ;;  %v4726_v56 = vpop.f32.mrb[206].mxu0  ;;  %v12002_v26 = vrot.slane %v11991_v2, 2 }
 0x543   : > { %5157 = vst [vmem:[%s10002_s22 + $0x20] sm:$0xff] %v5093_v20  ;;  %v5094_v43 = vmax.f32 %v5030_v16, 0.0  ;;  %v4724_v18 = vadd.f32 %v4723_v14, %v4435_v60  ;;  %v4438_v25 = vadd.f32 %v4437_v9, %v11990_v59  ;;  %v4439_v35 = vpop.f32.mrb[207].mxu1  ;;  %v4728_v8 = vpop.f32.mrb[207].mxu0  ;;  %v692_v30 = vsel %vm549_vm0, %v545_v58, %v11994_v17  ;;  %v11996_v20 = vld [vmem:[#allocation228_spill] sm:$0xff]  ;;  %v11997_v14 = vld [vmem:[#allocation229_spill] sm:$0xff] }
 0x544   : > { %v11998_v16 = vpack.c.bf16 %v11996_v20, %v11997_v14  ;;  %v12000_v60 = vld [vmem:[#allocation230_spill] sm:$0xff]  ;;  %v839_v9 = vsel %vm838_vm1, %v12002_v26, %v836_v63  ;;  %v12003_v59 = vrot.slane %v11993_v49, 2  ;;  %v1125_v8 = vpack.c.bf16 %v692_v30, %v550_v53  ;;  %v12008_v30 = vld [vmem:[#allocation29_spill] sm:$0xff] }
 0x545   : > { %5158 = vst [vmem:[%s10002_s22 + $0x28] sm:$0xff] %v5094_v43  ;;  %v4960_v1 = vadd.f32 %v4724_v18, %v11995_v12  ;;  %v4727_v11 = vadd.f32 %v4726_v56, %v4438_v25  ;;  %v12001_v45 = vpack.c.bf16 %v11999_v62, %v12000_v60  ;;  %v12004_v56 = vpack.c.bf16 %v9811_v5, %v9805_v42  ;;  %v12006_v25 = vld [vmem:[#allocation113_spill] sm:$0xff]  ;;  %v12007_v17 = vld [vmem:[#allocation14_spill] sm:$0xff] }
 0x546   : > { %4649 = vmatmul.mubr.bf16.gmra.mrb[56].mxu1 %v11998_v16  ;;  %v981_v58 = vsel %vm838_vm1, %v836_v63, %v12003_v59  ;;  %v12005_v43 = vpack.c.bf16 %v9821_v48, %v9815_v33 }
 0x547   : > { %4938 = vmatmul.mubr.bf16.gmra.mrb[56].mxu0 %v12001_v45  ;;  %4656 = vmatprep.mubr.bf16.mxu1 %v12004_v56  ;;  %v5031_v18 = vadd.f32 %v9990_v40, %v4960_v1  ;;  %v4961_v35 = vadd.f32 %v4727_v11, %v12006_v25  ;;  %v1197_v49 = vpack.c.bf16 %v981_v58, %v839_v9 }
 0x548   : > { %4945 = vmatprep.mubr.bf16.mxu0 %v12005_v43  ;;  %v4442_v2 = vpop.f32.mrb[208].mxu1  ;;  %v4731_v41 = vpop.f32.mrb[208].mxu0 }
 0x549   : > { %v5095_v27 = vmax.f32 %v5031_v18, 0.0  ;;  %v5032_v63 = vadd.f32 %v9990_v40, %v4961_v35  ;;  %v4443_v42 = vadd.f32 %v4442_v2, %v12007_v17  ;;  %v4444_v5 = vpop.f32.mrb[209].mxu1  ;;  %v4733_v12 = vpop.f32.mrb[209].mxu0 }
 0x54a   : > { %v4445_v20 = vpop.f32.mrb[210].mxu1  ;;  %v4734_v14 = vpop.f32.mrb[210].mxu0 }
 0x54b   : > { %5159 = vst [vmem:[%s10002_s22 + $0x30] sm:$0xff] %v5095_v27  ;;  %v5096_v33 = vmax.f32 %v5032_v63, 0.0  ;;  %v4732_v48 = vadd.f32 %v4731_v41, %v4443_v42  ;;  %v4446_v1 = vadd.f32 %v4445_v20, %v9548_v13  ;;  %v4447_v11 = vpop.f32.mrb[211].mxu1  ;;  %v4736_v53 = vpop.f32.mrb[211].mxu0 }
 0x54d   : > { %5160 = vst [vmem:[%s10002_s22 + $0x38] sm:$0xff] %v5096_v33  ;;  %v4962_v16 = vadd.f32 %v4732_v48, %v12008_v30  ;;  %v4735_v62 = vadd.f32 %v4734_v14, %v4446_v1 }
 0x54e   : > { %4657 = vmatmul.mubr.bf16.gmra.mrb[60].mxu1 %v1125_v8 }
 0x54f   : > { %4946 = vmatmul.mubr.bf16.gmra.mrb[60].mxu0 %v1197_v49  ;;  %v5033_v60 = vadd.f32 %v9990_v40, %v4962_v16  ;;  %v4963_v45 = vadd.f32 %v4735_v62, %v9551_v0 }
 0x550   : > { %v4450_v26 = vpop.f32.mrb[212].mxu1  ;;  %v4739_v9 = vpop.f32.mrb[212].mxu0 }
 0x551   : > { %v5097_v59 = vmax.f32 %v5033_v60, 0.0  ;;  %v5034_v58 = vadd.f32 %v9990_v40, %v4963_v45  ;;  %v4451_v13 = vadd.f32 %v4450_v26, %v9556_v31  ;;  %v4452_v56 = vpop.f32.mrb[213].mxu1  ;;  %v4741_v43 = vpop.f32.mrb[213].mxu0 }
 0x552   : > { %v4453_v18 = vpop.f32.mrb[214].mxu1  ;;  %v4742_v25 = vpop.f32.mrb[214].mxu0 }
 0x553   : > { %5161 = vst [vmem:[%s10002_s22 + $0x40] sm:$0xff] %v5097_v59  ;;  %v5098_v35 = vmax.f32 %v5034_v58, 0.0  ;;  %v4740_v8 = vadd.f32 %v4739_v9, %v4451_v13  ;;  %v4454_v2 = vadd.f32 %v4453_v18, %v9561_v55  ;;  %v4455_v41 = vpop.f32.mrb[215].mxu1  ;;  %v4744_v0 = vpop.f32.mrb[215].mxu0 }
 0x555   : > { %5162 = vst [vmem:[%s10002_s22 + $0x48] sm:$0xff] %v5098_v35  ;;  %v4964_v49 = vadd.f32 %v4740_v8, %v9559_v44  ;;  %v4743_v27 = vadd.f32 %v4742_v25, %v4454_v2 }
 0x557   : > { %v5035_v63 = vadd.f32 %v9990_v40, %v4964_v49  ;;  %v4965_v31 = vadd.f32 %v4743_v27, %v9564_v57 }
 0x558   : > { %v4458_v17 = vpop.f32.mrb[216].mxu1  ;;  %v4747_v42 = vpop.f32.mrb[216].mxu0 }
 0x559   : > { %v5099_v5 = vmax.f32 %v5035_v63, 0.0  ;;  %v5036_v12 = vadd.f32 %v9990_v40, %v4965_v31  ;;  %v4459_v20 = vadd.f32 %v4458_v17, %v9570_v29  ;;  %v4460_v55 = vpop.f32.mrb[217].mxu1  ;;  %v4749_v14 = vpop.f32.mrb[217].mxu0 }
 0x55a   : > { %v4461_v33 = vpop.f32.mrb[218].mxu1  ;;  %v4750_v48 = vpop.f32.mrb[218].mxu0 }
 0x55b   : > { %5163 = vst [vmem:[%s10002_s22 + $0x50] sm:$0xff] %v5099_v5  ;;  %v5100_v1 = vmax.f32 %v5036_v12, 0.0  ;;  %v4748_v44 = vadd.f32 %v4747_v42, %v4459_v20  ;;  %v4462_v11 = vadd.f32 %v4461_v33, %v9575_v46  ;;  %v4463_v53 = vpop.f32.mrb[219].mxu1  ;;  %v4752_v57 = vpop.f32.mrb[219].mxu0 }
 0x55d   : > { %5164 = vst [vmem:[%s10002_s22 + $0x58] sm:$0xff] %v5100_v1  ;;  %v4966_v30 = vadd.f32 %v4748_v44, %v9573_v19  ;;  %v4751_v16 = vadd.f32 %v4750_v48, %v4462_v11 }
 0x55f   : > { %v5037_v62 = vadd.f32 %v9990_v40, %v4966_v30  ;;  %v4967_v29 = vadd.f32 %v4751_v16, %v9578_v50 }
 0x560   : > { %v4466_v60 = vpop.f32.mrb[220].mxu1  ;;  %v4755_v45 = vpop.f32.mrb[220].mxu0 }
 0x561   : > { %v5101_v26 = vmax.f32 %v5037_v62, 0.0  ;;  %v5038_v9 = vadd.f32 %v9990_v40, %v4967_v29  ;;  %v4467_v59 = vadd.f32 %v4466_v60, %v9584_v51  ;;  %v4468_v46 = vpop.f32.mrb[221].mxu1  ;;  %v4757_v58 = vpop.f32.mrb[221].mxu0 }
 0x562   : > { %v4469_v13 = vpop.f32.mrb[222].mxu1  ;;  %v4758_v56 = vpop.f32.mrb[222].mxu0 }
 0x563   : > { %5165 = vst [vmem:[%s10002_s22 + $0x60] sm:$0xff] %v5101_v26  ;;  %v5102_v43 = vmax.f32 %v5038_v9, 0.0  ;;  %v4756_v19 = vadd.f32 %v4755_v45, %v4467_v59  ;;  %v4470_v18 = vadd.f32 %v4469_v13, %v9589_v15  ;;  %v4471_v25 = vpop.f32.mrb[223].mxu1  ;;  %v4760_v50 = vpop.f32.mrb[223].mxu0 }
 0x565   : > { %5166 = vst [vmem:[%s10002_s22 + $0x68] sm:$0xff] %v5102_v43  ;;  %v4968_v35 = vadd.f32 %v4756_v19, %v9587_v32  ;;  %v4759_v8 = vadd.f32 %v4758_v56, %v4470_v18 }
 0x567   : > { %v5039_v2 = vadd.f32 %v9990_v40, %v4968_v35  ;;  %v4969_v51 = vadd.f32 %v4759_v8, %v9592_v3 }
 0x568   : > { %v4474_v41 = vpop.f32.mrb[224].mxu1  ;;  %v4763_v0 = vpop.f32.mrb[224].mxu0 }
 0x569   : > { %v5103_v49 = vmax.f32 %v5039_v2, 0.0  ;;  %v5040_v27 = vadd.f32 %v9990_v40, %v4969_v51  ;;  %v4475_v63 = vadd.f32 %v4474_v41, %v9598_v34  ;;  %v4476_v15 = vpop.f32.mrb[225].mxu1  ;;  %v4765_v31 = vpop.f32.mrb[225].mxu0 }
 0x56a   : > { %v4477_v17 = vpop.f32.mrb[226].mxu1  ;;  %v4766_v42 = vpop.f32.mrb[226].mxu0 }
 0x56b   : > { %5167 = vst [vmem:[%s10002_s22 + $0x70] sm:$0xff] %v5103_v49  ;;  %v5104_v5 = vmax.f32 %v5040_v27, 0.0  ;;  %v4764_v32 = vadd.f32 %v4763_v0, %v4475_v63  ;;  %v4478_v12 = vadd.f32 %v4477_v17, %v9603_v4  ;;  %v4479_v20 = vpop.f32.mrb[227].mxu1  ;;  %v4768_v3 = vpop.f32.mrb[227].mxu0 }
 0x56d   : > { %5168 = vst [vmem:[%s10002_s22 + $0x78] sm:$0xff] %v5104_v5  ;;  %v4970_v55 = vadd.f32 %v4764_v32, %v9601_v21  ;;  %v4767_v14 = vadd.f32 %v4766_v42, %v4478_v12 }
 0x56f   : > { %v5041_v33 = vadd.f32 %v9990_v40, %v4970_v55  ;;  %v4971_v34 = vadd.f32 %v4767_v14, %v9606_v52 }
 0x570   : > { %v4482_v48 = vpop.f32.mrb[228].mxu1  ;;  %v4771_v1 = vpop.f32.mrb[228].mxu0 }
 0x571   : > { %v5105_v44 = vmax.f32 %v5041_v33, 0.0  ;;  %v5042_v11 = vadd.f32 %v9990_v40, %v4971_v34  ;;  %v4483_v53 = vadd.f32 %v4482_v48, %v9612_v22  ;;  %v4484_v4 = vpop.f32.mrb[229].mxu1  ;;  %v4773_v57 = vpop.f32.mrb[229].mxu0 }
 0x572   : > { %v4485_v30 = vpop.f32.mrb[230].mxu1  ;;  %v4774_v16 = vpop.f32.mrb[230].mxu0  ;;  %v12009_v4 = vld [vmem:[#allocation76_spill] sm:$0xff] }
 0x573   : > { %5169 = vst [vmem:[%s10002_s22 + $0x80] sm:$0xff] %v5105_v44  ;;  %v5106_v62 = vmax.f32 %v5042_v11, 0.0  ;;  %v4772_v21 = vadd.f32 %v4771_v1, %v4483_v53  ;;  %v4486_v29 = vadd.f32 %v4485_v30, %v9617_v28  ;;  %v4487_v60 = vpop.f32.mrb[231].mxu1  ;;  %v4776_v52 = vpop.f32.mrb[231].mxu0 }
 0x574   : > { %v12011_v60 = vld [vmem:[#allocation105_spill] sm:$0xff] }
 0x575   : > { %5170 = vst [vmem:[%s10002_s22 + $0x88] sm:$0xff] %v5106_v62  ;;  %v4972_v45 = vadd.f32 %v4772_v21, %v9615_v36  ;;  %v4775_v26 = vadd.f32 %v4774_v16, %v4486_v29  ;;  %v12010_v16 = vld [vmem:[#allocation103_spill] sm:$0xff] }
 0x577   : > { %v5043_v9 = vadd.f32 %v9990_v40, %v4972_v45  ;;  %v4973_v22 = vadd.f32 %v4775_v26, %v9620_v37 }
 0x578   : > { %v4490_v59 = vpop.f32.mrb[232].mxu1  ;;  %v4779_v46 = vpop.f32.mrb[232].mxu0 }
 0x579   : > { %v5107_v58 = vmax.f32 %v5043_v9, 0.0  ;;  %v5044_v13 = vadd.f32 %v9990_v40, %v4973_v22  ;;  %v4491_v56 = vadd.f32 %v4490_v59, %v9626_v61  ;;  %v4492_v28 = vpop.f32.mrb[233].mxu1  ;;  %v4781_v43 = vpop.f32.mrb[233].mxu0 }
 0x57a   : > { %v4493_v19 = vpop.f32.mrb[234].mxu1  ;;  %v4782_v18 = vpop.f32.mrb[234].mxu0  ;;  %v12012_v43 = vld [vmem:[#allocation18_spill] sm:$0xff] }
 0x57b   : > { %5171 = vst [vmem:[%s10002_s22 + $0x90] sm:$0xff] %v5107_v58  ;;  %v5108_v25 = vmax.f32 %v5044_v13, 0.0  ;;  %v4780_v36 = vadd.f32 %v4779_v46, %v4491_v56  ;;  %v4494_v50 = vadd.f32 %v4493_v19, %v9631_v24  ;;  %v4495_v35 = vpop.f32.mrb[235].mxu1  ;;  %v4784_v37 = vpop.f32.mrb[235].mxu0 }
 0x57d   : > { %5172 = vst [vmem:[%s10002_s22 + $0x98] sm:$0xff] %v5108_v25  ;;  %v4974_v8 = vadd.f32 %v4780_v36, %v9629_v23  ;;  %v4783_v2 = vadd.f32 %v4782_v18, %v4494_v50  ;;  %v12013_v36 = vld [vmem:[#allocation78_spill] sm:$0xff] }
 0x57f   : > { %v5045_v51 = vadd.f32 %v9990_v40, %v4974_v8  ;;  %v4975_v61 = vadd.f32 %v4783_v2, %v9634_v10  ;;  %v12014_v8 = vld [vmem:[#allocation45_spill] sm:$0xff] }
 0x580   : > { %v4498_v41 = vpop.f32.mrb[236].mxu1  ;;  %v4787_v0 = vpop.f32.mrb[236].mxu0 }
 0x581   : > { %v5109_v49 = vmax.f32 %v5045_v51, 0.0  ;;  %v5046_v27 = vadd.f32 %v9990_v40, %v4975_v61  ;;  %v4499_v63 = vadd.f32 %v4498_v41, %v9640_v38  ;;  %v4500_v24 = vpop.f32.mrb[237].mxu1  ;;  %v4789_v15 = vpop.f32.mrb[237].mxu0 }
 0x582   : > { %v4501_v31 = vpop.f32.mrb[238].mxu1  ;;  %v4790_v17 = vpop.f32.mrb[238].mxu0 }
 0x583   : > { %5173 = vst [vmem:[%s10002_s22 + $0xa0] sm:$0xff] %v5109_v49  ;;  %v5110_v42 = vmax.f32 %v5046_v27, 0.0  ;;  %v4788_v23 = vadd.f32 %v4787_v0, %v4499_v63  ;;  %v4502_v5 = vadd.f32 %v4501_v31, %v9645_v39  ;;  %v4503_v32 = vpop.f32.mrb[239].mxu1  ;;  %v4792_v10 = vpop.f32.mrb[239].mxu0  ;;  %v12015_v0 = vld [vmem:[#allocation83_spill] sm:$0xff] }
 0x584   : > { %v12017_v10 = vld [vmem:[#allocation107_spill] sm:$0xff] }
 0x585   : > { %5174 = vst [vmem:[%s10002_s22 + $0xa8] sm:$0xff] %v5110_v42  ;;  %v4976_v12 = vadd.f32 %v4788_v23, %v9643_v47  ;;  %v4791_v20 = vadd.f32 %v4790_v17, %v4502_v5  ;;  %v12016_v42 = vld [vmem:[#allocation125_spill] sm:$0xff] }
 0x587   : > { %v5047_v3 = vadd.f32 %v9990_v40, %v4976_v12  ;;  %v4977_v38 = vadd.f32 %v4791_v20, %v9648_v6 }
 0x588   : > { %v4506_v55 = vpop.f32.mrb[240].mxu1  ;;  %v4795_v14 = vpop.f32.mrb[240].mxu0 }
 0x589   : > { %v5111_v33 = vmax.f32 %v5047_v3, 0.0  ;;  %v5048_v34 = vadd.f32 %v9990_v40, %v4977_v38  ;;  %v4507_v48 = vadd.f32 %v4506_v55, %v9654_v54  ;;  %v4508_v39 = vpop.f32.mrb[241].mxu1  ;;  %v4797_v1 = vpop.f32.mrb[241].mxu0  ;;  %v12018_v38 = vld [vmem:[#allocation20_spill] sm:$0xff] }
 0x58a   : > { %v4509_v44 = vpop.f32.mrb[242].mxu1  ;;  %v4798_v11 = vpop.f32.mrb[242].mxu0  ;;  %v12019_v39 = vld [vmem:[#allocation59_spill] sm:$0xff] }
 0x58b   : > { %5175 = vst [vmem:[%s10002_s22 + $0xb0] sm:$0xff] %v5111_v33  ;;  %v5112_v53 = vmax.f32 %v5048_v34, 0.0  ;;  %v4796_v47 = vadd.f32 %v4795_v14, %v4507_v48  ;;  %v4510_v57 = vadd.f32 %v4509_v44, %v12009_v4  ;;  %v4511_v30 = vpop.f32.mrb[243].mxu1  ;;  %v4800_v6 = vpop.f32.mrb[243].mxu0 }
 0x58c   : > { %v12020_v30 = vld [vmem:[#allocation131_spill] sm:$0xff] }
 0x58d   : > { %5176 = vst [vmem:[%s10002_s22 + $0xb8] sm:$0xff] %v5112_v53  ;;  %v4978_v62 = vadd.f32 %v4796_v47, %v12010_v16  ;;  %v4799_v21 = vadd.f32 %v4798_v11, %v4510_v57 }
 0x58f   : > { %v5049_v29 = vadd.f32 %v9990_v40, %v4978_v62  ;;  %v4979_v54 = vadd.f32 %v4799_v21, %v12011_v60  ;;  %v12021_v21 = vld [vmem:[#allocation110_spill] sm:$0xff] }
 0x590   : > { %v4514_v52 = vpop.f32.mrb[244].mxu1  ;;  %v4803_v45 = vpop.f32.mrb[244].mxu0 }
 0x591   : > { %v5113_v26 = vmax.f32 %v5049_v29, 0.0  ;;  %v5050_v9 = vadd.f32 %v9990_v40, %v4979_v54  ;;  %v4515_v22 = vadd.f32 %v4514_v52, %v9668_v7  ;;  %v4516_v59 = vpop.f32.mrb[245].mxu1  ;;  %v4805_v46 = vpop.f32.mrb[245].mxu0  ;;  %v12022_v52 = vld [vmem:[#allocation116_spill] sm:$0xff] }
 0x592   : > { %v4517_v58 = vpop.f32.mrb[246].mxu1  ;;  %v4806_v13 = vpop.f32.mrb[246].mxu0  ;;  %v12023_v46 = vld [vmem:[#allocation133_spill] sm:$0xff] }
 0x593   : > { %5177 = vst [vmem:[%s10002_s22 + $0xc0] sm:$0xff] %v5113_v26  ;;  %v5114_v56 = vmax.f32 %v5050_v9, 0.0  ;;  %v4804_v28 = vadd.f32 %v4803_v45, %v4515_v22  ;;  %v4518_v19 = vadd.f32 %v4517_v58, %v12012_v43  ;;  %v4519_v18 = vpop.f32.mrb[247].mxu1  ;;  %v4808_v25 = vpop.f32.mrb[247].mxu0 }
 0x594   : > { %v12024_v25 = vld [vmem:[#allocation75_spill] sm:$0xff] }
 0x595   : > { %5178 = vst [vmem:[%s10002_s22 + $0xc8] sm:$0xff] %v5114_v56  ;;  %v4980_v50 = vadd.f32 %v4804_v28, %v12013_v36  ;;  %v4807_v35 = vadd.f32 %v4806_v13, %v4518_v19 }
 0x597   : > { %v5051_v37 = vadd.f32 %v9990_v40, %v4980_v50  ;;  %v4981_v7 = vadd.f32 %v4807_v35, %v12014_v8 }
 0x598   : > { %v4522_v2 = vpop.f32.mrb[248].mxu1  ;;  %v4811_v51 = vpop.f32.mrb[248].mxu0 }
 0x599   : > { %v5115_v61 = vmax.f32 %v5051_v37, 0.0  ;;  %v5052_v41 = vadd.f32 %v9990_v40, %v4981_v7  ;;  %v4523_v49 = vadd.f32 %v4522_v2, %v12015_v0  ;;  %v4524_v27 = vpop.f32.mrb[249].mxu1  ;;  %v4813_v63 = vpop.f32.mrb[249].mxu0  ;;  %v12025_v37 = vld [vmem:[#allocation23_spill] sm:$0xff] }
 0x59a   : > { %v4525_v24 = vpop.f32.mrb[250].mxu1  ;;  %v4814_v15 = vpop.f32.mrb[250].mxu0  ;;  %v12027_v63 = vld [vmem:[#allocation25_spill] sm:$0xff] }
 0x59b   : > { %5179 = vst [vmem:[%s10002_s22 + $0xd0] sm:$0xff] %v5115_v61  ;;  %v5116_v31 = vmax.f32 %v5052_v41, 0.0  ;;  %v4812_v17 = vadd.f32 %v4811_v51, %v4523_v49  ;;  %v4526_v23 = vadd.f32 %v4525_v24, %v12016_v42  ;;  %v4527_v5 = vpop.f32.mrb[251].mxu1  ;;  %v4816_v32 = vpop.f32.mrb[251].mxu0  ;;  %v12026_v51 = vld [vmem:[#allocation121_spill] sm:$0xff] }
 0x59c   : > { %v12028_v32 = vld [vmem:[#allocation123_spill] sm:$0xff] }
 0x59d   : > { %5180 = vst [vmem:[%s10002_s22 + $0xd8] sm:$0xff] %v5116_v31  ;;  %v4982_v12 = vadd.f32 %v4812_v17, %v12017_v10  ;;  %v4815_v20 = vadd.f32 %v4814_v15, %v4526_v23 }
 0x59f   : > { %v5053_v3 = vadd.f32 %v9990_v40, %v4982_v12  ;;  %v4983_v55 = vadd.f32 %v4815_v20, %v12018_v38 }
 0x5a0   : > { %v4530_v14 = vpop.f32.mrb[252].mxu1  ;;  %v4819_v33 = vpop.f32.mrb[252].mxu0 }
 0x5a1   : > { %v5117_v34 = vmax.f32 %v5053_v3, 0.0  ;;  %v5054_v48 = vadd.f32 %v9990_v40, %v4983_v55  ;;  %v4531_v1 = vadd.f32 %v4530_v14, %v12019_v39  ;;  %v4532_v44 = vpop.f32.mrb[253].mxu1  ;;  %v4821_v11 = vpop.f32.mrb[253].mxu0  ;;  %v12029_v3 = vld [vmem:[#allocation27_spill] sm:$0xff] }
 0x5a2   : > { %v4533_v53 = vpop.f32.mrb[254].mxu1  ;;  %v4822_v47 = vpop.f32.mrb[254].mxu0  ;;  %v12031_v11 = vld [vmem:[#allocation30_spill] sm:$0xff] }
 0x5a3   : > { %5181 = vst [vmem:[%s10002_s22 + $0xe0] sm:$0xff] %v5117_v34  ;;  %v5118_v4 = vmax.f32 %v5054_v48, 0.0  ;;  %v4820_v57 = vadd.f32 %v4819_v33, %v4531_v1  ;;  %v4534_v6 = vadd.f32 %v4533_v53, %v12020_v30  ;;  %v4535_v16 = vpop.f32.mrb[255].mxu1  ;;  %v4824_v62 = vpop.f32.mrb[255].mxu0  ;;  %v12030_v33 = vld [vmem:[#allocation128_spill] sm:$0xff] }
 0x5a4   : > { %v12032_v62 = vld [vmem:[#allocation130_spill] sm:$0xff] }
 0x5a5   : > { %5182 = vst [vmem:[%s10002_s22 + $0xe8] sm:$0xff] %v5118_v4  ;;  %v4984_v29 = vadd.f32 %v4820_v57, %v12021_v21  ;;  %v4823_v60 = vadd.f32 %v4822_v47, %v4534_v6 }
 0x5a7   : > { %v5055_v54 = vadd.f32 %v9990_v40, %v4984_v29  ;;  %v4985_v45 = vadd.f32 %v4823_v60, %v12022_v52 }
 0x5a8   : > { %v4538_v26 = vpop.f32.mrb[0].mxu1  ;;  %v4827_v9 = vpop.f32.mrb[0].mxu0 }
 0x5a9   : > { %v5119_v22 = vmax.f32 %v5055_v54, 0.0  ;;  %v5056_v59 = vadd.f32 %v9990_v40, %v4985_v45  ;;  %v4539_v58 = vadd.f32 %v4538_v26, %v12023_v46  ;;  %v4540_v13 = vpop.f32.mrb[1].mxu1  ;;  %v4829_v56 = vpop.f32.mrb[1].mxu0  ;;  %v12033_v54 = vld [vmem:[#allocation32_spill] sm:$0xff] }
 0x5aa   : > { %v4541_v28 = vpop.f32.mrb[2].mxu1  ;;  %v4830_v43 = vpop.f32.mrb[2].mxu0  ;;  %v12035_v56 = vld [vmem:[#allocation34_spill] sm:$0xff] }
 0x5ab   : > { %5183 = vst [vmem:[%s10002_s22 + $0xf0] sm:$0xff] %v5119_v22  ;;  %v5120_v19 = vmax.f32 %v5056_v59, 0.0  ;;  %v4828_v18 = vadd.f32 %v4827_v9, %v4539_v58  ;;  %v4542_v36 = vadd.f32 %v4541_v28, %v12024_v25  ;;  %v4543_v50 = vpop.f32.mrb[3].mxu1  ;;  %v4832_v35 = vpop.f32.mrb[3].mxu0  ;;  %v12034_v9 = vld [vmem:[#allocation136_spill] sm:$0xff] }
 0x5ac   : > { %v12036_v35 = vld [vmem:[#allocation138_spill] sm:$0xff] }
 0x5ad   : > { %5184 = vst [vmem:[%s10002_s22 + $0xf8] sm:$0xff] %v5120_v19  ;;  %v4986_v8 = vadd.f32 %v4828_v18, %v12025_v37  ;;  %v4831_v7 = vadd.f32 %v4830_v43, %v4542_v36 }
 0x5af   : > { %v5057_v2 = vadd.f32 %v9990_v40, %v4986_v8  ;;  %v4987_v61 = vadd.f32 %v4831_v7, %v12026_v51 }
 0x5b0   : > { %v4546_v41 = vpop.f32.mrb[4].mxu1  ;;  %v4835_v0 = vpop.f32.mrb[4].mxu0 }
 0x5b1   : > { %v5121_v49 = vmax.f32 %v5057_v2, 0.0  ;;  %v5058_v27 = vadd.f32 %v9990_v40, %v4987_v61  ;;  %v4547_v24 = vadd.f32 %v4546_v41, %v12027_v63  ;;  %v4548_v15 = vpop.f32.mrb[5].mxu1  ;;  %v4837_v31 = vpop.f32.mrb[5].mxu0  ;;  %v12037_v2 = vld [vmem:[#allocation37_spill] sm:$0xff] }
 0x5b2   : > { %v4549_v17 = vpop.f32.mrb[6].mxu1  ;;  %v4838_v42 = vpop.f32.mrb[6].mxu0  ;;  %v12039_v31 = vld [vmem:[#allocation40_spill] sm:$0xff] }
 0x5b3   : > { %5185 = vst [vmem:[%s10002_s22 + $0x100] sm:$0xff] %v5121_v49  ;;  %v5122_v23 = vmax.f32 %v5058_v27, 0.0  ;;  %v4836_v5 = vadd.f32 %v4835_v0, %v4547_v24  ;;  %v4550_v10 = vadd.f32 %v4549_v17, %v12028_v32  ;;  %v4551_v12 = vpop.f32.mrb[7].mxu1  ;;  %v4840_v20 = vpop.f32.mrb[7].mxu0  ;;  %v12038_v0 = vld [vmem:[#allocation141_spill] sm:$0xff] }
 0x5b4   : > { %v12040_v20 = vld [vmem:[#allocation35_spill] sm:$0xff] }
 0x5b5   : > { %5186 = vst [vmem:[%s10002_s22 + $0x108] sm:$0xff] %v5122_v23  ;;  %v4988_v38 = vadd.f32 %v4836_v5, %v12029_v3  ;;  %v4839_v55 = vadd.f32 %v4838_v42, %v4550_v10 }
 0x5b7   : > { %v5059_v14 = vadd.f32 %v9990_v40, %v4988_v38  ;;  %v4989_v34 = vadd.f32 %v4839_v55, %v12030_v33 }
 0x5b8   : > { %v4554_v48 = vpop.f32.mrb[8].mxu1  ;;  %v4843_v39 = vpop.f32.mrb[8].mxu0 }
 0x5b9   : > { %v5123_v1 = vmax.f32 %v5059_v14, 0.0  ;;  %v5060_v44 = vadd.f32 %v9990_v40, %v4989_v34  ;;  %v4555_v53 = vadd.f32 %v4554_v48, %v12031_v11  ;;  %v4556_v47 = vpop.f32.mrb[9].mxu1  ;;  %v4845_v4 = vpop.f32.mrb[9].mxu0  ;;  %v12041_v14 = vld [vmem:[#allocation42_spill] sm:$0xff] }
 0x5ba   : > { %v4557_v57 = vpop.f32.mrb[10].mxu1  ;;  %v4846_v30 = vpop.f32.mrb[10].mxu0  ;;  %v12043_v4 = vld [vmem:[#allocation53_spill] sm:$0xff] }
 0x5bb   : > { %5187 = vst [vmem:[%s10002_s22 + $0x110] sm:$0xff] %v5123_v1  ;;  %v5124_v6 = vmax.f32 %v5060_v44, 0.0  ;;  %v4844_v16 = vadd.f32 %v4843_v39, %v4555_v53  ;;  %v4558_v21 = vadd.f32 %v4557_v57, %v12032_v62  ;;  %v4559_v29 = vpop.f32.mrb[11].mxu1  ;;  %v4848_v60 = vpop.f32.mrb[11].mxu0  ;;  %v12042_v39 = vld [vmem:[#allocation50_spill] sm:$0xff] }
 0x5bc   : > { %v12044_v60 = vld [vmem:[#allocation41_spill] sm:$0xff] }
 0x5bd   : > { %5188 = vst [vmem:[%s10002_s22 + $0x118] sm:$0xff] %v5124_v6  ;;  %v4990_v52 = vadd.f32 %v4844_v16, %v12033_v54  ;;  %v4847_v45 = vadd.f32 %v4846_v30, %v4558_v21 }
 0x5bf   : > { %v5061_v26 = vadd.f32 %v9990_v40, %v4990_v52  ;;  %v4991_v22 = vadd.f32 %v4847_v45, %v12034_v9 }
 0x5c0   : > { %v4562_v59 = vpop.f32.mrb[12].mxu1  ;;  %v4851_v46 = vpop.f32.mrb[12].mxu0 }
 0x5c1   : > { %v5125_v58 = vmax.f32 %v5061_v26, 0.0  ;;  %v5062_v13 = vadd.f32 %v9990_v40, %v4991_v22  ;;  %v4563_v28 = vadd.f32 %v4562_v59, %v12035_v56  ;;  %v4564_v43 = vpop.f32.mrb[13].mxu1  ;;  %v4853_v19 = vpop.f32.mrb[13].mxu0  ;;  %v12045_v26 = vld [vmem:[#allocation38_spill] sm:$0xff] }
 0x5c2   : > { %v4565_v18 = vpop.f32.mrb[14].mxu1  ;;  %v4854_v25 = vpop.f32.mrb[14].mxu0  ;;  %v12047_v19 = vld [vmem:[#allocation61_spill] sm:$0xff] }
 0x5c3   : > { %5189 = vst [vmem:[%s10002_s22 + $0x120] sm:$0xff] %v5125_v58  ;;  %v5126_v36 = vmax.f32 %v5062_v13, 0.0  ;;  %v4852_v50 = vadd.f32 %v4851_v46, %v4563_v28  ;;  %v4566_v37 = vadd.f32 %v4565_v18, %v12036_v35  ;;  %v4567_v8 = vpop.f32.mrb[15].mxu1  ;;  %v4856_v7 = vpop.f32.mrb[15].mxu0  ;;  %v12046_v46 = vld [vmem:[#allocation56_spill] sm:$0xff] }
 0x5c4   : > { %v12048_v7 = vld [vmem:[#allocation51_spill] sm:$0xff] }
 0x5c5   : > { %5190 = vst [vmem:[%s10002_s22 + $0x128] sm:$0xff] %v5126_v36  ;;  %v4992_v51 = vadd.f32 %v4852_v50, %v12037_v2  ;;  %v4855_v61 = vadd.f32 %v4854_v25, %v4566_v37 }
 0x5c7   : > { %v5063_v41 = vadd.f32 %v9990_v40, %v4992_v51  ;;  %v4993_v49 = vadd.f32 %v4855_v61, %v12038_v0 }
 0x5c8   : > { %v4570_v27 = vpop.f32.mrb[16].mxu1  ;;  %v4859_v63 = vpop.f32.mrb[16].mxu0 }
 0x5c9   : > { %v5127_v24 = vmax.f32 %v5063_v41, 0.0  ;;  %v5064_v15 = vadd.f32 %v9990_v40, %v4993_v49  ;;  %v4571_v17 = vadd.f32 %v4570_v27, %v12039_v31  ;;  %v4572_v42 = vpop.f32.mrb[17].mxu1  ;;  %v4861_v23 = vpop.f32.mrb[17].mxu0  ;;  %v12049_v41 = vld [vmem:[#allocation43_spill] sm:$0xff] }
 0x5ca   : > { %v4573_v5 = vpop.f32.mrb[18].mxu1  ;;  %v4862_v32 = vpop.f32.mrb[18].mxu0  ;;  %v12051_v23 = vld [vmem:[#allocation68_spill] sm:$0xff] }
 0x5cb   : > { %5191 = vst [vmem:[%s10002_s22 + $0x130] sm:$0xff] %v5127_v24  ;;  %v5128_v10 = vmax.f32 %v5064_v15, 0.0  ;;  %v4860_v12 = vadd.f32 %v4859_v63, %v4571_v17  ;;  %v4574_v3 = vadd.f32 %v4573_v5, %v12040_v20  ;;  %v4575_v38 = vpop.f32.mrb[19].mxu1  ;;  %v4864_v55 = vpop.f32.mrb[19].mxu0  ;;  %v12050_v63 = vld [vmem:[#allocation64_spill] sm:$0xff] }
 0x5cc   : > { %v12052_v55 = vld [vmem:[#allocation60_spill] sm:$0xff] }
 0x5cd   : > { %5192 = vst [vmem:[%s10002_s22 + $0x138] sm:$0xff] %v5128_v10  ;;  %v4994_v33 = vadd.f32 %v4860_v12, %v12041_v14  ;;  %v4863_v34 = vadd.f32 %v4862_v32, %v4574_v3 }
 0x5cf   : > { %v5065_v48 = vadd.f32 %v9990_v40, %v4994_v33  ;;  %v4995_v1 = vadd.f32 %v4863_v34, %v12042_v39 }
 0x5d0   : > { %v4578_v44 = vpop.f32.mrb[20].mxu1  ;;  %v4867_v11 = vpop.f32.mrb[20].mxu0 }
 0x5d1   : > { %v5129_v53 = vmax.f32 %v5065_v48, 0.0  ;;  %v5066_v47 = vadd.f32 %v9990_v40, %v4995_v1  ;;  %v4579_v57 = vadd.f32 %v4578_v44, %v12043_v4  ;;  %v4580_v30 = vpop.f32.mrb[21].mxu1  ;;  %v4869_v6 = vpop.f32.mrb[21].mxu0  ;;  %v12053_v48 = vld [vmem:[#allocation54_spill] sm:$0xff] }
 0x5d2   : > { %v4581_v16 = vpop.f32.mrb[22].mxu1  ;;  %v4870_v62 = vpop.f32.mrb[22].mxu0  ;;  %v12055_v6 = vld [vmem:[#allocation188_spill] sm:$0xff] }
 0x5d3   : > { %5193 = vst [vmem:[%s10002_s22 + $0x140] sm:$0xff] %v5129_v53  ;;  %v5130_v21 = vmax.f32 %v5066_v47, 0.0  ;;  %v4868_v29 = vadd.f32 %v4867_v11, %v4579_v57  ;;  %v4582_v54 = vadd.f32 %v4581_v16, %v12044_v60  ;;  %v4583_v52 = vpop.f32.mrb[23].mxu1  ;;  %v4872_v45 = vpop.f32.mrb[23].mxu0  ;;  %v12054_v11 = vld [vmem:[#allocation71_spill] sm:$0xff] }
 0x5d4   : > { %v12056_v45 = vld [vmem:[#allocation160_spill] sm:$0xff] }
 0x5d5   : > { %5194 = vst [vmem:[%s10002_s22 + $0x148] sm:$0xff] %v5130_v21  ;;  %v4996_v9 = vadd.f32 %v4868_v29, %v12045_v26  ;;  %v4871_v22 = vadd.f32 %v4870_v62, %v4582_v54 }
 0x5d7   : > { %v5067_v59 = vadd.f32 %v9990_v40, %v4996_v9  ;;  %v4997_v58 = vadd.f32 %v4871_v22, %v12046_v46 }
 0x5d8   : > { %v4586_v13 = vpop.f32.mrb[24].mxu1  ;;  %v4875_v56 = vpop.f32.mrb[24].mxu0 }
 0x5d9   : > { %v5131_v28 = vmax.f32 %v5067_v59, 0.0  ;;  %v5068_v43 = vadd.f32 %v9990_v40, %v4997_v58  ;;  %v4587_v18 = vadd.f32 %v4586_v13, %v12047_v19  ;;  %v4588_v25 = vpop.f32.mrb[25].mxu1  ;;  %v4877_v36 = vpop.f32.mrb[25].mxu0  ;;  %v12057_v59 = vld [vmem:[#allocation62_spill] sm:$0xff] }
 0x5da   : > { %v4589_v50 = vpop.f32.mrb[26].mxu1  ;;  %v4878_v35 = vpop.f32.mrb[26].mxu0  ;;  %v10236_v25 = vld [vmem:[#allocation7] ss:$0 sm:$0xff] }
 0x5db   : > { %5195 = vst [vmem:[%s10002_s22 + $0x150] sm:$0xff] %v5131_v28  ;;  %v5132_v37 = vmax.f32 %v5068_v43, 0.0  ;;  %v4876_v8 = vadd.f32 %v4875_v56, %v4587_v18  ;;  %v4590_v2 = vadd.f32 %v4589_v50, %v12048_v7  ;;  %v4591_v51 = vpop.f32.mrb[27].mxu1  ;;  %v4880_v61 = vpop.f32.mrb[27].mxu0  ;;  %v12058_v56 = vld [vmem:[#allocation65_spill] sm:$0xff]  ;;  %v12059_v50 = vld [vmem:[#allocation190_spill] sm:$0xff] }
 0x5dd   : > { %5196 = vst [vmem:[%s10002_s22 + $0x158] sm:$0xff] %v5132_v37  ;;  %v4998_v0 = vadd.f32 %v4876_v8, %v12049_v41  ;;  %v4879_v49 = vadd.f32 %v4878_v35, %v4590_v2 }
 0x5df   : > { %v5069_v27 = vadd.f32 %v9990_v40, %v4998_v0  ;;  %v4999_v24 = vadd.f32 %v4879_v49, %v12050_v63 }
 0x5e0   : > { %v4594_v15 = vpop.f32.mrb[28].mxu1  ;;  %v4883_v31 = vpop.f32.mrb[28].mxu0 }
 0x5e1   : > { %v5133_v17 = vmax.f32 %v5069_v27, 0.0  ;;  %v5070_v42 = vadd.f32 %v9990_v40, %v4999_v24  ;;  %v4595_v5 = vadd.f32 %v4594_v15, %v12051_v23  ;;  %v4596_v32 = vpop.f32.mrb[29].mxu1  ;;  %v4885_v10 = vpop.f32.mrb[29].mxu0  ;;  %v12061_v27 = vld [vmem:[#allocation196_spill] sm:$0xff] }
 0x5e2   : > { %v4597_v12 = vpop.f32.mrb[30].mxu1  ;;  %v4886_v20 = vpop.f32.mrb[30].mxu0  ;;  %v12063_v10 = vld [vmem:[#allocation204_spill] sm:$0xff] }
 0x5e3   : > { %5197 = vst [vmem:[%s10002_s22 + $0x160] sm:$0xff] %v5133_v17  ;;  %v5134_v3 = vmax.f32 %v5070_v42, 0.0  ;;  %v4884_v38 = vadd.f32 %v4883_v31, %v4595_v5  ;;  %v4598_v14 = vadd.f32 %v4597_v12, %v12052_v55  ;;  %v4599_v33 = vpop.f32.mrb[31].mxu1  ;;  %v4888_v34 = vpop.f32.mrb[31].mxu0  ;;  %v12062_v31 = vld [vmem:[#allocation198_spill] sm:$0xff] }
 0x5e4   : > { %v12064_v34 = vld [vmem:[#allocation82_spill] sm:$0xff] }
 0x5e5   : > { %5198 = vst [vmem:[%s10002_s22 + $0x168] sm:$0xff] %v5134_v3  ;;  %v5000_v39 = vadd.f32 %v4884_v38, %v12053_v48  ;;  %v4887_v1 = vadd.f32 %v4886_v20, %v4598_v14 }
 0x5e7   : > { %v5071_v44 = vadd.f32 %v9990_v40, %v5000_v39  ;;  %v5001_v53 = vadd.f32 %v4887_v1, %v12054_v11 }
 0x5e8   : > { %v4602_v47 = vpop.f32.mrb[32].mxu1  ;;  %v4891_v4 = vpop.f32.mrb[32].mxu0 }
 0x5e9   : > { %v5135_v57 = vmax.f32 %v5071_v44, 0.0  ;;  %v5072_v30 = vadd.f32 %v9990_v40, %v5001_v53  ;;  %v4603_v16 = vadd.f32 %v4602_v47, %v12055_v6  ;;  %v4604_v62 = vpop.f32.mrb[33].mxu1  ;;  %v4893_v21 = vpop.f32.mrb[33].mxu0  ;;  %v12065_v44 = vld [vmem:[#allocation79_spill] sm:$0xff] }
 0x5ea   : > { %v4605_v29 = vpop.f32.mrb[34].mxu1  ;;  %v4894_v60 = vpop.f32.mrb[34].mxu0  ;;  %v12067_v21 = vld [vmem:[#allocation211_spill] sm:$0xff] }
 0x5eb   : > { %5199 = vst [vmem:[%s10002_s22 + $0x170] sm:$0xff] %v5135_v57  ;;  %v5136_v54 = vmax.f32 %v5072_v30, 0.0  ;;  %v4892_v52 = vadd.f32 %v4891_v4, %v4603_v16  ;;  %v4606_v26 = vadd.f32 %v4605_v29, %v12056_v45  ;;  %v4607_v9 = vpop.f32.mrb[35].mxu1  ;;  %v4896_v22 = vpop.f32.mrb[35].mxu0  ;;  %v12066_v4 = vld [vmem:[#allocation206_spill] sm:$0xff] }
 0x5ec   : > { %v12068_v22 = vld [vmem:[#allocation108_spill] sm:$0xff] }
 0x5ed   : > { %5200 = vst [vmem:[%s10002_s22 + $0x178] sm:$0xff] %v5136_v54  ;;  %v5002_v46 = vadd.f32 %v4892_v52, %v12057_v59  ;;  %v4895_v58 = vadd.f32 %v4894_v60, %v4606_v26 }
 0x5ef   : > { %v5073_v13 = vadd.f32 %v9990_v40, %v5002_v46  ;;  %v5003_v28 = vadd.f32 %v4895_v58, %v12058_v56  ;;  %v12060_v40 = vld [vmem:[#allocation162_spill] sm:$0xff] }
 0x5f0   : > { %v4610_v43 = vpop.f32.mrb[36].mxu1  ;;  %v4899_v19 = vpop.f32.mrb[36].mxu0 }
 0x5f1   : > { %v5137_v18 = vmax.f32 %v5073_v13, 0.0  ;;  %v5074_v36 = vadd.f32 %v10236_v25, %v5003_v28  ;;  %v4611_v35 = vadd.f32 %v4610_v43, %v12059_v50  ;;  %v4612_v37 = vpop.f32.mrb[37].mxu1  ;;  %v4901_v8 = vpop.f32.mrb[37].mxu0  ;;  %v12069_v13 = vld [vmem:[#allocation73_spill] sm:$0xff] }
 0x5f2   : > { %v4613_v7 = vpop.f32.mrb[38].mxu1  ;;  %v4902_v2 = vpop.f32.mrb[38].mxu0  ;;  %v12071_v8 = vld [vmem:[#allocation219_spill] sm:$0xff] }
 0x5f3   : > { %5201 = vst [vmem:[%s10002_s22 + $0x180] sm:$0xff] %v5137_v18  ;;  %v5138_v51 = vmax.f32 %v5074_v36, 0.0  ;;  %v4900_v61 = vadd.f32 %v4899_v19, %v4611_v35  ;;  %v4614_v41 = vadd.f32 %v4613_v7, %v12060_v40  ;;  %v4615_v0 = vpop.f32.mrb[39].mxu1  ;;  %v4904_v49 = vpop.f32.mrb[39].mxu0  ;;  %v12070_v19 = vld [vmem:[#allocation212_spill] sm:$0xff] }
 0x5f4   : > { %v12072_v49 = vld [vmem:[#allocation176_spill] sm:$0xff] }
 0x5f5   : > { %5202 = vst [vmem:[%s10002_s22 + $0x188] sm:$0xff] %v5138_v51  ;;  %v5004_v63 = vadd.f32 %v4900_v61, %v12061_v27  ;;  %v4903_v24 = vadd.f32 %v4902_v2, %v4614_v41 }
 0x5f7   : > { %v5075_v15 = vadd.f32 %v10236_v25, %v5004_v63  ;;  %v5005_v17 = vadd.f32 %v4903_v24, %v12062_v31 }
 0x5f8   : > { %v4618_v42 = vpop.f32.mrb[40].mxu1  ;;  %v4907_v23 = vpop.f32.mrb[40].mxu0 }
 0x5f9   : > { %v5139_v5 = vmax.f32 %v5075_v15, 0.0  ;;  %v5076_v32 = vadd.f32 %v10236_v25, %v5005_v17  ;;  %v4619_v12 = vadd.f32 %v4618_v42, %v12063_v10  ;;  %v4620_v20 = vpop.f32.mrb[41].mxu1  ;;  %v4909_v3 = vpop.f32.mrb[41].mxu0  ;;  %v12073_v15 = vld [vmem:[#allocation112_spill] sm:$0xff] }
 0x5fa   : > { %v4621_v38 = vpop.f32.mrb[42].mxu1  ;;  %v4910_v55 = vpop.f32.mrb[42].mxu0  ;;  %v12075_v3 = vld [vmem:[#allocation221_spill] sm:$0xff] }
 0x5fb   : > { %5203 = vst [vmem:[%s10002_s22 + $0x190] sm:$0xff] %v5139_v5  ;;  %v5140_v14 = vmax.f32 %v5076_v32, 0.0  ;;  %v4908_v33 = vadd.f32 %v4907_v23, %v4619_v12  ;;  %v4622_v48 = vadd.f32 %v4621_v38, %v12064_v34  ;;  %v4623_v39 = vpop.f32.mrb[43].mxu1  ;;  %v4912_v1 = vpop.f32.mrb[43].mxu0  ;;  %v12074_v23 = vld [vmem:[#allocation114_spill] sm:$0xff] }
 0x5fc   : > { %v12076_v1 = vld [vmem:[#allocation119_spill] sm:$0xff] }
 0x5fd   : > { %5204 = vst [vmem:[%s10002_s22 + $0x198] sm:$0xff] %v5140_v14  ;;  %v5006_v11 = vadd.f32 %v4908_v33, %v12065_v44  ;;  %v4911_v53 = vadd.f32 %v4910_v55, %v4622_v48 }
 0x5ff   : > { %v5077_v47 = vadd.f32 %v10236_v25, %v5006_v11  ;;  %v5007_v57 = vadd.f32 %v4911_v53, %v12066_v4 }
 0x600   : > { %v4626_v30 = vpop.f32.mrb[44].mxu1  ;;  %v4915_v6 = vpop.f32.mrb[44].mxu0 }
 0x601   : > { %v5141_v16 = vmax.f32 %v5077_v47, 0.0  ;;  %v5078_v62 = vadd.f32 %v10236_v25, %v5007_v57  ;;  %v4627_v29 = vadd.f32 %v4626_v30, %v12067_v21  ;;  %v4628_v60 = vpop.f32.mrb[45].mxu1  ;;  %v4917_v54 = vpop.f32.mrb[45].mxu0  ;;  %v12077_v47 = vld [vmem:[#allocation227_spill] sm:$0xff] }
 0x602   : > { %v4629_v52 = vpop.f32.mrb[46].mxu1  ;;  %v4918_v45 = vpop.f32.mrb[46].mxu0  ;;  %v12079_v54 = vld [vmem:[#allocation232_spill] sm:$0xff] }
 0x603   : > { %5205 = vst [vmem:[%s10002_s22 + $0x1a0] sm:$0xff] %v5141_v16  ;;  %v5142_v26 = vmax.f32 %v5078_v62, 0.0  ;;  %v4916_v9 = vadd.f32 %v4915_v6, %v4627_v29  ;;  %v4630_v59 = vadd.f32 %v4629_v52, %v12068_v22  ;;  %v4631_v46 = vpop.f32.mrb[47].mxu1  ;;  %v4920_v58 = vpop.f32.mrb[47].mxu0  ;;  %v12078_v6 = vld [vmem:[#allocation80_spill] sm:$0xff] }
 0x604   : > { %v12080_v58 = vld [vmem:[#allocation126_spill] sm:$0xff] }
 0x605   : > { %5206 = vst [vmem:[%s10002_s22 + $0x1a8] sm:$0xff] %v5142_v26  ;;  %v5008_v56 = vadd.f32 %v4916_v9, %v12069_v13  ;;  %v4919_v28 = vadd.f32 %v4918_v45, %v4630_v59 }
 0x607   : > { %v5079_v43 = vadd.f32 %v10236_v25, %v5008_v56  ;;  %v5009_v18 = vadd.f32 %v4919_v28, %v12070_v19 }
 0x608   : > { %v4634_v36 = vpop.f32.mrb[48].mxu1  ;;  %v4923_v50 = vpop.f32.mrb[48].mxu0 }
 0x609   : > { %v5143_v35 = vmax.f32 %v5079_v43, 0.0  ;;  %v5080_v37 = vadd.f32 %v10236_v25, %v5009_v18  ;;  %v4635_v7 = vadd.f32 %v4634_v36, %v12071_v8  ;;  %v4636_v2 = vpop.f32.mrb[49].mxu1  ;;  %v4925_v51 = vpop.f32.mrb[49].mxu0  ;;  %v12081_v43 = vld [vmem:[#allocation236_spill] sm:$0xff] }
 0x60a   : > { %v4637_v61 = vpop.f32.mrb[50].mxu1  ;;  %v4926_v40 = vpop.f32.mrb[50].mxu0  ;;  %v12083_v51 = vld [vmem:[#allocation139_spill] sm:$0xff] }
 0x60b   : > { %5207 = vst [vmem:[%s10002_s22 + $0x1b0] sm:$0xff] %v5143_v35  ;;  %v5144_v41 = vmax.f32 %v5080_v37, 0.0  ;;  %v4924_v0 = vadd.f32 %v4923_v50, %v4635_v7  ;;  %v4638_v27 = vadd.f32 %v4637_v61, %v12072_v49  ;;  %v4639_v63 = vpop.f32.mrb[51].mxu1  ;;  %v4928_v24 = vpop.f32.mrb[51].mxu0  ;;  %v12082_v50 = vld [vmem:[#allocation238_spill] sm:$0xff] }
 0x60c   : > { %v12084_v24 = vld [vmem:[#allocation134_spill] sm:$0xff] }
 0x60d   : > { %5208 = vst [vmem:[%s10002_s22 + $0x1b8] sm:$0xff] %v5144_v41  ;;  %v5010_v31 = vadd.f32 %v4924_v0, %v12073_v15  ;;  %v4927_v17 = vadd.f32 %v4926_v40, %v4638_v27 }
 0x60f   : > { %v5081_v42 = vadd.f32 %v10236_v25, %v5010_v31  ;;  %v5011_v5 = vadd.f32 %v4927_v17, %v12074_v23 }
 0x610   : > { %v4642_v32 = vpop.f32.mrb[52].mxu1  ;;  %v4931_v10 = vpop.f32.mrb[52].mxu0 }
 0x611   : > { %v5145_v12 = vmax.f32 %v5081_v42, 0.0  ;;  %v5082_v20 = vadd.f32 %v10236_v25, %v5011_v5  ;;  %v4643_v38 = vadd.f32 %v4642_v32, %v12075_v3  ;;  %v4644_v55 = vpop.f32.mrb[53].mxu1  ;;  %v4933_v14 = vpop.f32.mrb[53].mxu0  ;;  %v12085_v42 = vld [vmem:[#allocation132_spill] sm:$0xff] }
 0x612   : > { %v4645_v33 = vpop.f32.mrb[54].mxu1  ;;  %v4934_v34 = vpop.f32.mrb[54].mxu0 }
 0x613   : > { %5209 = vst [vmem:[%s10002_s22 + $0x1c0] sm:$0xff] %v5145_v12  ;;  %v5146_v48 = vmax.f32 %v5082_v20, 0.0  ;;  %v4932_v39 = vadd.f32 %v4931_v10, %v4643_v38  ;;  %v4646_v44 = vadd.f32 %v4645_v33, %v12076_v1  ;;  %v4647_v11 = vpop.f32.mrb[55].mxu1  ;;  %v4936_v53 = vpop.f32.mrb[55].mxu0  ;;  %v12086_v10 = vld [vmem:[#allocation15_spill] sm:$0xff] }
 0x615   : > { %5210 = vst [vmem:[%s10002_s22 + $0x1c8] sm:$0xff] %v5146_v48  ;;  %v5012_v4 = vadd.f32 %v4932_v39, %v12077_v47  ;;  %v4935_v57 = vadd.f32 %v4934_v34, %v4646_v44 }
 0x617   : > { %v5083_v30 = vadd.f32 %v10236_v25, %v5012_v4  ;;  %v5013_v16 = vadd.f32 %v4935_v57, %v12078_v6 }
 0x619   : > { %v4650_v62 = vpop.f32.mrb[56].mxu1  ;;  %v5147_v29 = vmax.f32 %v5083_v30, 0.0  ;;  %v5084_v60 = vadd.f32 %v10236_v25, %v5013_v16 }
 0x61a   : > { %v4939_v21 = vpop.f32.mrb[56].mxu0  ;;  %v4651_v52 = vadd.f32 %v4650_v62, %v12079_v54  ;;  %v4652_v45 = vpop.f32.mrb[57].mxu1 }
 0x61b   : > { %v4941_v26 = vpop.f32.mrb[57].mxu0  ;;  %v4653_v9 = vpop.f32.mrb[58].mxu1  ;;  %5211 = vst [vmem:[%s10002_s22 + $0x1d0] sm:$0xff] %v5147_v29  ;;  %v5148_v59 = vmax.f32 %v5084_v60, 0.0 }
 0x61c   : > { %v4942_v22 = vpop.f32.mrb[58].mxu0  ;;  %v4940_v46 = vadd.f32 %v4939_v21, %v4651_v52  ;;  %v4654_v13 = vadd.f32 %v4653_v9, %v12080_v58  ;;  %v4655_v56 = vpop.f32.mrb[59].mxu1 }
 0x61d   : > { %v4944_v28 = vpop.f32.mrb[59].mxu0  ;;  %5212 = vst [vmem:[%s10002_s22 + $0x1d8] sm:$0xff] %v5148_v59 }
 0x61e   : > { %v5014_v19 = vadd.f32 %v4940_v46, %v12081_v43  ;;  %v4943_v18 = vadd.f32 %v4942_v22, %v4654_v13 }
 0x620   : > { %v5085_v36 = vadd.f32 %v10236_v25, %v5014_v19  ;;  %v5015_v35 = vadd.f32 %v4943_v18, %v12082_v50 }
 0x621   : > { %v4658_v37 = vpop.f32.mrb[60].mxu1 }
 0x622   : > { %v4947_v8 = vpop.f32.mrb[60].mxu0  ;;  %v5149_v7 = vmax.f32 %v5085_v36, 0.0  ;;  %v5086_v2 = vadd.f32 %v10236_v25, %v5015_v35  ;;  %v4659_v61 = vadd.f32 %v4658_v37, %v12083_v51  ;;  %v4660_v40 = vpop.f32.mrb[61].mxu1 }
 0x623   : > { %v4949_v41 = vpop.f32.mrb[61].mxu0  ;;  %v4661_v0 = vpop.f32.mrb[62].mxu1 }
 0x624   : > { %v4950_v49 = vpop.f32.mrb[62].mxu0  ;;  %5213 = vst [vmem:[%s10002_s22 + $0x1e0] sm:$0xff] %v5149_v7  ;;  %v5150_v27 = vmax.f32 %v5086_v2, 0.0  ;;  %v4948_v63 = vadd.f32 %v4947_v8, %v4659_v61  ;;  %v4662_v15 = vadd.f32 %v4661_v0, %v12084_v24  ;;  %v4663_v31 = vpop.f32.mrb[63].mxu1 }
 0x625   : > { %v4952_v17 = vpop.f32.mrb[63].mxu0 }
 0x626   : > { %5214 = vst [vmem:[%s10002_s22 + $0x1e8] sm:$0xff] %v5150_v27  ;;  %v5016_v23 = vadd.f32 %v4948_v63, %v12085_v42  ;;  %v4951_v5 = vadd.f32 %v4950_v49, %v4662_v15 }
 0x628   : > { %v5087_v32 = vadd.f32 %v10236_v25, %v5016_v23  ;;  %v5017_v12 = vadd.f32 %v4951_v5, %v12086_v10 }
 0x62a   : > { %v5151_v20 = vmax.f32 %v5087_v32, 0.0  ;;  %v5088_v3 = vadd.f32 %v10236_v25, %v5017_v12 }
 0x62c   : > { %5215 = vst [vmem:[%s10002_s22 + $0x1f0] sm:$0xff] %v5151_v20  ;;  %v5152_v38 = vmax.f32 %v5088_v3, 0.0 }
 0x62e   : > { %5216 = vst [vmem:[%s10002_s22 + $0x1f8] sm:$0xff] %v5152_v38 }
 0x62f   : > { %5949 = shalt.err (!%p5946_p2)
}
 0x630   : > { %s5950_s10 = scalar_lea.hbm %s10300_s9, 8192  ;;  %s5954_s29 = scalar_lea.hbm %s10356_s3, 16384 }
 0x631   : > { %p5951_p0 = scmp.ne.s32.totalorder %s10300_s9, %s5950_s10  ;;  %p5955_p6 = scmp.lt.u32.totalorder %s10300_s9, %s10356_s3 }
 0x632   : > { %p5956_p7 = scmp.lt.u32.totalorder %s5954_s29, %s5950_s10  ;;  %p5958_p8 = scmp.lt.u32.totalorder %s5950_s10, %s10300_s9 }
 0x633   : > { %p5952_p4 = pnand %p5951_p0, %p12087_p12 }
 0x634   : > { %p5957_p11 = por %p5956_p7, %p5955_p6 }
 0x635   : > { %p5953_p13 = pneg %p5952_p4 }
 0x636   : > { %p5959_p1 = por %p5958_p8, %p5957_p11 }
 0x638   : > { %p5960_p10 = pnand %p5959_p1, %p5953_p13 }
 0x63a   : > { %5963 = shalt.err (!%p5960_p10)
}
 0x63b   : > { %s6033_s22 = smov 128   ;;  %s6034_s24 = smov 8  }
 0x63c   : > { %5556 = dma.vmem_to_hbm [thread:$0]  (%p12087_p12), %s10302_s30, 8192, %s10300_s9, %s5218_s28, %s6033_s22, %s6033_s22, %s6034_s24  }
 0x63d PF: > { %s5250_s7 = sand.u32 1, %s6002_s12   ;;  %p12088_p3 = scmp.ne.s32.totalorder %s10760_s23, 0 }
 0x63e   : > { %p12089_p5 = scmp.ge.s32.totalorder %s6022_s17, 2  ;;  %s5251_s26 = scalar_lea.sflag [#allocation4], %s5250_s7 }
 0x640   : > { %p5570_p9 = pnand %p12089_p5, %p12088_p3 }
 0x642   : > { %5997 = dma.done.wait (!%p5570_p9), %s5251_s26, 8192  }
 0x643   : > { %5999 = vsyncadd (!%p5570_p9), %s5251_s26, 4294959104  ;;  %s20_s17 = sadd.s32 1, %s6022_s17   ;;  %s12090_s12 = smov %s6006_s13 }
 0x644   : > { %p17_p2 = scmp.ge.s32.totalorder %s20_s17, 4   ;;  %s12091_s13 = smov %s6010_s14 }
 0x645   : > { %s12092_s14 = smov %s6201_s4  ;;  %s12093_s15 = smov %s6018_s16 }
 0x646   : > { %s12094_s16 = smov %s12096_s18  ;;  %19 = sbr.rel (!%p17_p2) target bundleno = 7 (0x7), region = 89 }
 0x64d   :  { %5256 = vsyncpa [#allocation3], 1 }
 0x64e   :  { %5258 = vsyncpa [#allocation3 + $0x1], 1 }
 0x64f   :  { %5259 = vsyncpa [#allocation6], 1 }
 0x650   :  { %5260 = vsyncpa [#allocation4], 1 }
 0x651   :  { %5262 = vsyncpa [#allocation4 + $0x1], 1 }

</bundles_post_ra>
